<compile_context>
chip_gen: v5e
topology: v5e:2x2
jax: 0.10.0
libtpu: 0.0.40
codegen_flags: <defaults>
</compile_context>

<pallas_src>
import functools

import jax
import jax.numpy as jnp
from jax.experimental import pallas as pl
from jax.experimental.pallas import tpu as pltpu

# Static network configuration (small shapes consistent with the module).
H = 16              # spatial height
W = 16              # spatial width
CIN = 4             # input channels
WIDTH = 16          # backbone channel width
NUM_CLASSES = 10
C_PAD = 128         # lane-dense padded channel count (TPU lane width)
CLS_PAD = 128       # lane-dense padded class count
HW = H * W


# --------------------------------------------------------------------------
# Fused whole-network kernel (one grid step = one image, all layers in VMEM)
# --------------------------------------------------------------------------
def _resnet_fused_kernel(
    x_ref,                       # (1, H+2, W+2, C_PAD) f32: zero-haloed, channel-padded image
    wh_ref, bh_ref,              # head conv:   (9, C_PAD, C_PAD) bf16, (1, C_PAD) f32
    w1a_ref, b1a_ref,            # block-1 conv-1
    w1b_ref, b1b_ref,            # block-1 conv-2
    w2a_ref, b2a_ref,            # block-2 conv-1
    w2b_ref, b2b_ref,            # block-2 conv-2
    wd_ref, bd_ref,              # dense: (C_PAD, CLS_PAD) bf16, (1, CLS_PAD) f32
    o_ref,                       # (1, 1, CLS_PAD) f32 logits for this image
    xp_ref,                      # scratch (H+2, W+2, C_PAD) f32: haloed activation buffer
    skip_ref,                    # scratch (HW, C_PAD) f32: residual skip
):
    def conv3x3(w_ref):
        # 3x3 "same" conv as 9 shifted-accumulate bf16 MXU matmuls over the
        # haloed activation buffer currently held in xp_ref (no im2col in HBM).
        acc = jnp.zeros((HW, C_PAD), jnp.float32)
        for k in range(9):
            dy, dx = divmod(k, 3)
            xs = xp_ref[dy:dy + H, dx:dx + W, :].reshape(HW, C_PAD)
            acc = acc + jnp.dot(
                xs.astype(jnp.bfloat16), w_ref[k],
                preferred_element_type=jnp.float32)
        return acc

    # Load the haloed input image into the working buffer (halo ring is zero).
    xp_ref[...] = x_ref[0]

    # ---- head: conv3x3 + (folded-BN) bias + ReLU -------------------------
    y = jnp.maximum(conv3x3(wh_ref) + bh_ref[...], 0.0)          # (HW, C_PAD) f32

    # ---- backbone: 2 basic residual blocks, fully resident in VMEM -------
    for wa_ref, ba_ref, wb_ref, bb_ref in (
        (w1a_ref, b1a_ref, w1b_ref, b1b_ref),
        (w2a_ref, b2a_ref, w2b_ref, b2b_ref),
    ):
        skip_ref[...] = y
        xp_ref[1:H + 1, 1:W + 1, :] = y.reshape(H, W, C_PAD)     # halo stays zero
        h = jnp.maximum(conv3x3(wa_ref) + ba_ref[...], 0.0)
        xp_ref[1:H + 1, 1:W + 1, :] = h.reshape(H, W, C_PAD)
        y = jnp.maximum(conv3x3(wb_ref) + bb_ref[...] + skip_ref[...], 0.0)

    # ---- dense head: fused global-average-pool + linear ------------------
    pooled = jnp.sum(y, axis=0, keepdims=True) * (1.0 / HW)      # (1, C_PAD)
    logits = jnp.dot(pooled.astype(jnp.bfloat16), wd_ref[...],
                     preferred_element_type=jnp.float32) + bd_ref[...]
    o_ref[...] = logits.reshape(1, 1, CLS_PAD)


def _resident_spec(shape):
    # Full-array block whose index_map is constant -> stays resident across grid.
    n = len(shape)
    return pl.BlockSpec(shape, lambda i, n=n: (0,) * n)


# --------------------------------------------------------------------------
# Wrapper: layout glue + pallas_call
# --------------------------------------------------------------------------
def resnet_forward(x_nchw, params):
    N = x_nchw.shape[0]
    # NCHW -> NHWC, zero-pad channels to C_PAD and add a 1-px zero spatial halo.
    x = jnp.transpose(x_nchw, (0, 2, 3, 1)).astype(jnp.float32)
    x = jnp.pad(x, ((0, 0), (1, 1), (1, 1), (0, C_PAD - CIN)))

    weight_names = ["head_w", "head_b",
                    "b1a_w", "b1a_b", "b1b_w", "b1b_b",
                    "b2a_w", "b2a_b", "b2b_w", "b2b_b",
                    "dense_w", "dense_b"]
    wargs = [params[n] for n in weight_names]

    in_specs = ([pl.BlockSpec((1, H + 2, W + 2, C_PAD), lambda i: (i, 0, 0, 0))]
                + [_resident_spec(a.shape) for a in wargs])

    flops = N * (5 * 9 * 2 * HW * C_PAD * C_PAD + 2 * C_PAD * CLS_PAD)
    bytes_accessed = (x.size * 4
                      + sum(int(a.size) * a.dtype.itemsize for a in wargs)
                      + N * CLS_PAD * 4)

    out = pl.pallas_call(
        _resnet_fused_kernel,
        out_shape=jax.ShapeDtypeStruct((N, 1, CLS_PAD), jnp.float32),
        grid=(N,),
        in_specs=in_specs,
        out_specs=pl.BlockSpec((1, 1, CLS_PAD), lambda i: (i, 0, 0)),
        scratch_shapes=[
            pltpu.VMEM((H + 2, W + 2, C_PAD), jnp.float32),   # haloed activation buffer
            pltpu.VMEM((HW, C_PAD), jnp.float32),             # residual skip
        ],
        compiler_params=pltpu.CompilerParams(
            dimension_semantics=("parallel",),                # v7x: shard batch over 2 TCs
            vmem_limit_bytes=32 * 1024 * 1024,                # safe on v5e/v6e/v7x
        ),
        cost_estimate=pl.CostEstimate(
            flops=flops, transcendentals=0, bytes_accessed=bytes_accessed),
    )(x, *wargs)

    return out.reshape(N, CLS_PAD)[:, :NUM_CLASSES]


# --------------------------------------------------------------------------
# Parameter construction: BN folding into weights, channel padding, bf16 cast
# --------------------------------------------------------------------------
def _fold_bn(gamma, beta, mean, var, eps=1e-5):
    scale = gamma / jnp.sqrt(var + eps)
    bias = beta - mean * scale
    return scale, bias


def _conv_bn_params(key, cin, cout):
    kw, kg, kb, km, kv = jax.random.split(key, 5)
    w = jax.random.normal(kw, (3, 3, cin, cout), jnp.float32) * 0.1
    gamma = jax.random.uniform(kg, (cout,), jnp.float32, 0.5, 1.5)
    beta = jax.random.normal(kb, (cout,), jnp.float32) * 0.1
    mean = jax.random.normal(km, (cout,), jnp.float32) * 0.1
    var = jax.random.uniform(kv, (cout,), jnp.float32, 0.5, 1.5)
    scale, bias = _fold_bn(gamma, beta, mean, var)
    # Fold BN scale into the conv weight (one-time constant transform).
    w = w * scale[None, None, None, :]
    # Pad channels to the lane-dense layout; pack as (9, Cin_pad, Cout_pad) bf16.
    w_pad = jnp.zeros((3, 3, C_PAD, C_PAD), jnp.float32).at[:, :, :cin, :cout].set(w)
    b_pad = jnp.zeros((1, C_PAD), jnp.float32).at[0, :cout].set(bias)
    return w_pad.reshape(9, C_PAD, C_PAD).astype(jnp.bfloat16), b_pad


def init_params(key):
    keys = jax.random.split(key, 7)
    p = {}
    p["head_w"], p["head_b"] = _conv_bn_params(keys[0], CIN, WIDTH)
    p["b1a_w"], p["b1a_b"] = _conv_bn_params(keys[1], WIDTH, WIDTH)
    p["b1b_w"], p["b1b_b"] = _conv_bn_params(keys[2], WIDTH, WIDTH)
    p["b2a_w"], p["b2a_b"] = _conv_bn_params(keys[3], WIDTH, WIDTH)
    p["b2b_w"], p["b2b_b"] = _conv_bn_params(keys[4], WIDTH, WIDTH)
    wd = jax.random.normal(keys[5], (WIDTH, NUM_CLASSES), jnp.float32) * 0.1
    bd = jax.random.normal(keys[6], (NUM_CLASSES,), jnp.float32) * 0.1
    p["dense_w"] = (jnp.zeros((C_PAD, CLS_PAD), jnp.float32)
                    .at[:WIDTH, :NUM_CLASSES].set(wd).astype(jnp.bfloat16))
    p["dense_b"] = jnp.zeros((1, CLS_PAD), jnp.float32).at[0, :NUM_CLASSES].set(bd)
    return p


# --------------------------------------------------------------------------
# Pure-JAX reference (same math, incl. bf16 rounding) for correctness check
# --------------------------------------------------------------------------
def resnet_forward_ref(x_nchw, params):
    x = jnp.transpose(x_nchw, (0, 2, 3, 1)).astype(jnp.float32)
    N = x.shape[0]
    xp = jnp.pad(x, ((0, 0), (1, 1), (1, 1), (0, C_PAD - CIN)))

    def conv3x3(xpad, w_bf16):
        wf = w_bf16.astype(jnp.float32)                 # (9, C_PAD, C_PAD)
        acc = jnp.zeros((N, HW, C_PAD), jnp.float32)
        for k in range(9):
            dy, dx = divmod(k, 3)
            xs = xpad[:, dy:dy + H, dx:dx + W, :].reshape(N, HW, C_PAD)
            xs = xs.astype(jnp.bfloat16).astype(jnp.float32)
            acc = acc + jnp.einsum("nmc,cd->nmd", xs, wf[k])
        return acc

    def halo(y):
        return jnp.pad(y.reshape(N, H, W, C_PAD), ((0, 0), (1, 1), (1, 1), (0, 0)))

    y = jnp.maximum(conv3x3(xp, params["head_w"]) + params["head_b"], 0.0)
    for wa, ba, wb, bb in (("b1a_w", "b1a_b", "b1b_w", "b1b_b"),
                           ("b2a_w", "b2a_b", "b2b_w", "b2b_b")):
        skip = y
        h = jnp.maximum(conv3x3(halo(y), params[wa]) + params[ba], 0.0)
        y = jnp.maximum(conv3x3(halo(h), params[wb]) + params[bb] + skip, 0.0)

    pooled = y.mean(axis=1).astype(jnp.bfloat16).astype(jnp.float32)   # (N, C_PAD)
    logits = pooled @ params["dense_w"].astype(jnp.float32) + params["dense_b"]
    return logits[:, :NUM_CLASSES]


if __name__ == "__main__":
    key = jax.random.PRNGKey(0)
    kx, kp = jax.random.split(key)

    x = jax.random.normal(kx, (2, CIN, H, W), jnp.float32)   # NCHW, like PyTorch
    params = init_params(kp)

    fwd = jax.jit(functools.partial(resnet_forward, params=params))
    out = jax.block_until_ready(fwd(x))

    ref = resnet_forward_ref(x, params)
    assert out.shape == (2, NUM_CLASSES), out.shape
    assert jnp.allclose(out, ref, rtol=1e-2, atol=1e-2), "mismatch vs JAX reference"

    print("KERNEL_OK")
</pallas_src>

<mosaic_0001>
module attributes {stable_mosaic.version = 11 : i64} {
  func.func @_resnet_fused_kernel(%arg0: i32, %arg1: memref<1x18x18x128xf32, #tpu.memory_space<vmem>>, %arg2: memref<9x128x128xbf16, #tpu.memory_space<vmem>>, %arg3: memref<1x128xf32, #tpu.memory_space<vmem>>, %arg4: memref<9x128x128xbf16, #tpu.memory_space<vmem>>, %arg5: memref<1x128xf32, #tpu.memory_space<vmem>>, %arg6: memref<9x128x128xbf16, #tpu.memory_space<vmem>>, %arg7: memref<1x128xf32, #tpu.memory_space<vmem>>, %arg8: memref<9x128x128xbf16, #tpu.memory_space<vmem>>, %arg9: memref<1x128xf32, #tpu.memory_space<vmem>>, %arg10: memref<9x128x128xbf16, #tpu.memory_space<vmem>>, %arg11: memref<1x128xf32, #tpu.memory_space<vmem>>, %arg12: memref<128x128xbf16, #tpu.memory_space<vmem>>, %arg13: memref<1x128xf32, #tpu.memory_space<vmem>>, %arg14: memref<1x1x128xf32, #tpu.memory_space<vmem>>, %arg15: memref<18x18x128xf32, #tpu.memory_space<vmem>>, %arg16: memref<256x128xf32, #tpu.memory_space<vmem>>) attributes {dimension_semantics = [#tpu.dimension_semantics<parallel>], iteration_bounds = array<i64: 2>, scalar_prefetch = 0 : i64, scratch_operands = 2 : i64, tpu.core_type = #tpu.core_type<tc>, window_params = [{transform_indices = @transform_0, window_bounds = array<i64: 1, 18, 18, 128>}, {pipeline_mode = #tpu.pipeline_mode<synchronous>, transform_indices = @transform_1, window_bounds = array<i64: 9, 128, 128>}, {pipeline_mode = #tpu.pipeline_mode<synchronous>, transform_indices = @transform_2, window_bounds = array<i64: 1, 128>}, {pipeline_mode = #tpu.pipeline_mode<synchronous>, transform_indices = @transform_3, window_bounds = array<i64: 9, 128, 128>}, {pipeline_mode = #tpu.pipeline_mode<synchronous>, transform_indices = @transform_4, window_bounds = array<i64: 1, 128>}, {pipeline_mode = #tpu.pipeline_mode<synchronous>, transform_indices = @transform_5, window_bounds = array<i64: 9, 128, 128>}, {pipeline_mode = #tpu.pipeline_mode<synchronous>, transform_indices = @transform_6, window_bounds = array<i64: 1, 128>}, {pipeline_mode = #tpu.pipeline_mode<synchronous>, transform_indices = @transform_7, window_bounds = array<i64: 9, 128, 128>}, {pipeline_mode = #tpu.pipeline_mode<synchronous>, transform_indices = @transform_8, window_bounds = array<i64: 1, 128>}, {pipeline_mode = #tpu.pipeline_mode<synchronous>, transform_indices = @transform_9, window_bounds = array<i64: 9, 128, 128>}, {pipeline_mode = #tpu.pipeline_mode<synchronous>, transform_indices = @transform_10, window_bounds = array<i64: 1, 128>}, {pipeline_mode = #tpu.pipeline_mode<synchronous>, transform_indices = @transform_11, window_bounds = array<i64: 128, 128>}, {pipeline_mode = #tpu.pipeline_mode<synchronous>, transform_indices = @transform_12, window_bounds = array<i64: 1, 128>}, {transform_indices = @transform_13, window_bounds = array<i64: 1, 1, 128>}]} {
    %c0 = arith.constant 0 : index
    %c0_0 = arith.constant 0 : index
    %c0_1 = arith.constant 0 : index
    %c0_2 = arith.constant 0 : index
    %0 = vector.load %arg1[%c0, %c0_0, %c0_1, %c0_2] : memref<1x18x18x128xf32, #tpu.memory_space<vmem>>, vector<1x18x18x128xf32>
    %1 = vector.shape_cast %0 : vector<1x18x18x128xf32> to vector<18x18x128xf32>
    %c0_3 = arith.constant 0 : index
    %c0_4 = arith.constant 0 : index
    %c0_5 = arith.constant 0 : index
    %2 = vector.load %arg15[%c0_3, %c0_4, %c0_5] : memref<18x18x128xf32, #tpu.memory_space<vmem>>, vector<18x18x128xf32>
    tpu.vector_store %arg15[%c0_3, %c0_4, %c0_5], %1 {strides = array<i32>} : memref<18x18x128xf32, #tpu.memory_space<vmem>>, vector<18x18x128xf32>,
    %cst = arith.constant 0.000000e+00 : f32
    %3 = vector.broadcast %cst : f32 to vector<256x128xf32>
    %c0_6 = arith.constant 0 : index
    %c0_7 = arith.constant 0 : index
    %c0_8 = arith.constant 0 : index
    %4 = vector.load %arg15[%c0_6, %c0_7, %c0_8] : memref<18x18x128xf32, #tpu.memory_space<vmem>>, vector<16x16x128xf32>
    %5 = vector.shape_cast %4 : vector<16x16x128xf32> to vector<256x128xf32>
    %6 = arith.truncf %5 : vector<256x128xf32> to vector<256x128xbf16>
    %c0_9 = arith.constant 0 : index
    %c0_10 = arith.constant 0 : index
    %c0_11 = arith.constant 0 : index
    %7 = vector.load %arg2[%c0_9, %c0_10, %c0_11] : memref<9x128x128xbf16, #tpu.memory_space<vmem>>, vector<1x128x128xbf16>
    %8 = vector.shape_cast %7 : vector<1x128x128xbf16> to vector<128x128xbf16>
    %cst_12 = arith.constant dense<0.000000e+00> : vector<256x128xf32>
    %9 = tpu.matmul %6, %8, %cst_12 {dimension_numbers = #tpu.dot_dimension_numbers<[1], [0], [0], [1], [0, 0, 1, 1], [], []>} : vector<256x128xbf16>, vector<128x128xbf16>, vector<256x128xf32> -> vector<256x128xf32>
    %10 = arith.addf %3, %9 : vector<256x128xf32>
    %c0_13 = arith.constant 0 : index
    %c1 = arith.constant 1 : index
    %c0_14 = arith.constant 0 : index
    %11 = vector.load %arg15[%c0_13, %c1, %c0_14] : memref<18x18x128xf32, #tpu.memory_space<vmem>>, vector<16x16x128xf32>
    %12 = vector.shape_cast %11 : vector<16x16x128xf32> to vector<256x128xf32>
    %13 = arith.truncf %12 : vector<256x128xf32> to vector<256x128xbf16>
    %c1_15 = arith.constant 1 : index
    %c0_16 = arith.constant 0 : index
    %c0_17 = arith.constant 0 : index
    %14 = vector.load %arg2[%c1_15, %c0_16, %c0_17] : memref<9x128x128xbf16, #tpu.memory_space<vmem>>, vector<1x128x128xbf16>
    %15 = vector.shape_cast %14 : vector<1x128x128xbf16> to vector<128x128xbf16>
    %cst_18 = arith.constant dense<0.000000e+00> : vector<256x128xf32>
    %16 = tpu.matmul %13, %15, %cst_18 {dimension_numbers = #tpu.dot_dimension_numbers<[1], [0], [0], [1], [0, 0, 1, 1], [], []>} : vector<256x128xbf16>, vector<128x128xbf16>, vector<256x128xf32> -> vector<256x128xf32>
    %17 = arith.addf %10, %16 : vector<256x128xf32>
    %c0_19 = arith.constant 0 : index
    %c2 = arith.constant 2 : index
    %c0_20 = arith.constant 0 : index
    %18 = vector.load %arg15[%c0_19, %c2, %c0_20] : memref<18x18x128xf32, #tpu.memory_space<vmem>>, vector<16x16x128xf32>
    %19 = vector.shape_cast %18 : vector<16x16x128xf32> to vector<256x128xf32>
    %20 = arith.truncf %19 : vector<256x128xf32> to vector<256x128xbf16>
    %c2_21 = arith.constant 2 : index
    %c0_22 = arith.constant 0 : index
    %c0_23 = arith.constant 0 : index
    %21 = vector.load %arg2[%c2_21, %c0_22, %c0_23] : memref<9x128x128xbf16, #tpu.memory_space<vmem>>, vector<1x128x128xbf16>
    %22 = vector.shape_cast %21 : vector<1x128x128xbf16> to vector<128x128xbf16>
    %cst_24 = arith.constant dense<0.000000e+00> : vector<256x128xf32>
    %23 = tpu.matmul %20, %22, %cst_24 {dimension_numbers = #tpu.dot_dimension_numbers<[1], [0], [0], [1], [0, 0, 1, 1], [], []>} : vector<256x128xbf16>, vector<128x128xbf16>, vector<256x128xf32> -> vector<256x128xf32>
    %24 = arith.addf %17, %23 : vector<256x128xf32>
    %c1_25 = arith.constant 1 : index
    %c0_26 = arith.constant 0 : index
    %c0_27 = arith.constant 0 : index
    %25 = vector.load %arg15[%c1_25, %c0_26, %c0_27] : memref<18x18x128xf32, #tpu.memory_space<vmem>>, vector<16x16x128xf32>
    %26 = vector.shape_cast %25 : vector<16x16x128xf32> to vector<256x128xf32>
    %27 = arith.truncf %26 : vector<256x128xf32> to vector<256x128xbf16>
    %c3 = arith.constant 3 : index
    %c0_28 = arith.constant 0 : index
    %c0_29 = arith.constant 0 : index
    %28 = vector.load %arg2[%c3, %c0_28, %c0_29] : memref<9x128x128xbf16, #tpu.memory_space<vmem>>, vector<1x128x128xbf16>
    %29 = vector.shape_cast %28 : vector<1x128x128xbf16> to vector<128x128xbf16>
    %cst_30 = arith.constant dense<0.000000e+00> : vector<256x128xf32>
    %30 = tpu.matmul %27, %29, %cst_30 {dimension_numbers = #tpu.dot_dimension_numbers<[1], [0], [0], [1], [0, 0, 1, 1], [], []>} : vector<256x128xbf16>, vector<128x128xbf16>, vector<256x128xf32> -> vector<256x128xf32>
    %31 = arith.addf %24, %30 : vector<256x128xf32>
    %c1_31 = arith.constant 1 : index
    %c1_32 = arith.constant 1 : index
    %c0_33 = arith.constant 0 : index
    %32 = vector.load %arg15[%c1_31, %c1_32, %c0_33] : memref<18x18x128xf32, #tpu.memory_space<vmem>>, vector<16x16x128xf32>
    %33 = vector.shape_cast %32 : vector<16x16x128xf32> to vector<256x128xf32>
    %34 = arith.truncf %33 : vector<256x128xf32> to vector<256x128xbf16>
    %c4 = arith.constant 4 : index
    %c0_34 = arith.constant 0 : index
    %c0_35 = arith.constant 0 : index
    %35 = vector.load %arg2[%c4, %c0_34, %c0_35] : memref<9x128x128xbf16, #tpu.memory_space<vmem>>, vector<1x128x128xbf16>
    %36 = vector.shape_cast %35 : vector<1x128x128xbf16> to vector<128x128xbf16>
    %cst_36 = arith.constant dense<0.000000e+00> : vector<256x128xf32>
    %37 = tpu.matmul %34, %36, %cst_36 {dimension_numbers = #tpu.dot_dimension_numbers<[1], [0], [0], [1], [0, 0, 1, 1], [], []>} : vector<256x128xbf16>, vector<128x128xbf16>, vector<256x128xf32> -> vector<256x128xf32>
    %38 = arith.addf %31, %37 : vector<256x128xf32>
    %c1_37 = arith.constant 1 : index
    %c2_38 = arith.constant 2 : index
    %c0_39 = arith.constant 0 : index
    %39 = vector.load %arg15[%c1_37, %c2_38, %c0_39] : memref<18x18x128xf32, #tpu.memory_space<vmem>>, vector<16x16x128xf32>
    %40 = vector.shape_cast %39 : vector<16x16x128xf32> to vector<256x128xf32>
    %41 = arith.truncf %40 : vector<256x128xf32> to vector<256x128xbf16>
    %c5 = arith.constant 5 : index
    %c0_40 = arith.constant 0 : index
    %c0_41 = arith.constant 0 : index
    %42 = vector.load %arg2[%c5, %c0_40, %c0_41] : memref<9x128x128xbf16, #tpu.memory_space<vmem>>, vector<1x128x128xbf16>
    %43 = vector.shape_cast %42 : vector<1x128x128xbf16> to vector<128x128xbf16>
    %cst_42 = arith.constant dense<0.000000e+00> : vector<256x128xf32>
    %44 = tpu.matmul %41, %43, %cst_42 {dimension_numbers = #tpu.dot_dimension_numbers<[1], [0], [0], [1], [0, 0, 1, 1], [], []>} : vector<256x128xbf16>, vector<128x128xbf16>, vector<256x128xf32> -> vector<256x128xf32>
    %45 = arith.addf %38, %44 : vector<256x128xf32>
    %c2_43 = arith.constant 2 : index
    %c0_44 = arith.constant 0 : index
    %c0_45 = arith.constant 0 : index
    %46 = vector.load %arg15[%c2_43, %c0_44, %c0_45] : memref<18x18x128xf32, #tpu.memory_space<vmem>>, vector<16x16x128xf32>
    %47 = vector.shape_cast %46 : vector<16x16x128xf32> to vector<256x128xf32>
    %48 = arith.truncf %47 : vector<256x128xf32> to vector<256x128xbf16>
    %c6 = arith.constant 6 : index
    %c0_46 = arith.constant 0 : index
    %c0_47 = arith.constant 0 : index
    %49 = vector.load %arg2[%c6, %c0_46, %c0_47] : memref<9x128x128xbf16, #tpu.memory_space<vmem>>, vector<1x128x128xbf16>
    %50 = vector.shape_cast %49 : vector<1x128x128xbf16> to vector<128x128xbf16>
    %cst_48 = arith.constant dense<0.000000e+00> : vector<256x128xf32>
    %51 = tpu.matmul %48, %50, %cst_48 {dimension_numbers = #tpu.dot_dimension_numbers<[1], [0], [0], [1], [0, 0, 1, 1], [], []>} : vector<256x128xbf16>, vector<128x128xbf16>, vector<256x128xf32> -> vector<256x128xf32>
    %52 = arith.addf %45, %51 : vector<256x128xf32>
    %c2_49 = arith.constant 2 : index
    %c1_50 = arith.constant 1 : index
    %c0_51 = arith.constant 0 : index
    %53 = vector.load %arg15[%c2_49, %c1_50, %c0_51] : memref<18x18x128xf32, #tpu.memory_space<vmem>>, vector<16x16x128xf32>
    %54 = vector.shape_cast %53 : vector<16x16x128xf32> to vector<256x128xf32>
    %55 = arith.truncf %54 : vector<256x128xf32> to vector<256x128xbf16>
    %c7 = arith.constant 7 : index
    %c0_52 = arith.constant 0 : index
    %c0_53 = arith.constant 0 : index
    %56 = vector.load %arg2[%c7, %c0_52, %c0_53] : memref<9x128x128xbf16, #tpu.memory_space<vmem>>, vector<1x128x128xbf16>
    %57 = vector.shape_cast %56 : vector<1x128x128xbf16> to vector<128x128xbf16>
    %cst_54 = arith.constant dense<0.000000e+00> : vector<256x128xf32>
    %58 = tpu.matmul %55, %57, %cst_54 {dimension_numbers = #tpu.dot_dimension_numbers<[1], [0], [0], [1], [0, 0, 1, 1], [], []>} : vector<256x128xbf16>, vector<128x128xbf16>, vector<256x128xf32> -> vector<256x128xf32>
    %59 = arith.addf %52, %58 : vector<256x128xf32>
    %c2_55 = arith.constant 2 : index
    %c2_56 = arith.constant 2 : index
    %c0_57 = arith.constant 0 : index
    %60 = vector.load %arg15[%c2_55, %c2_56, %c0_57] : memref<18x18x128xf32, #tpu.memory_space<vmem>>, vector<16x16x128xf32>
    %61 = vector.shape_cast %60 : vector<16x16x128xf32> to vector<256x128xf32>
    %62 = arith.truncf %61 : vector<256x128xf32> to vector<256x128xbf16>
    %c8 = arith.constant 8 : index
    %c0_58 = arith.constant 0 : index
    %c0_59 = arith.constant 0 : index
    %63 = vector.load %arg2[%c8, %c0_58, %c0_59] : memref<9x128x128xbf16, #tpu.memory_space<vmem>>, vector<1x128x128xbf16>
    %64 = vector.shape_cast %63 : vector<1x128x128xbf16> to vector<128x128xbf16>
    %cst_60 = arith.constant dense<0.000000e+00> : vector<256x128xf32>
    %65 = tpu.matmul %62, %64, %cst_60 {dimension_numbers = #tpu.dot_dimension_numbers<[1], [0], [0], [1], [0, 0, 1, 1], [], []>} : vector<256x128xbf16>, vector<128x128xbf16>, vector<256x128xf32> -> vector<256x128xf32>
    %66 = arith.addf %59, %65 : vector<256x128xf32>
    %c0_61 = arith.constant 0 : index
    %c0_62 = arith.constant 0 : index
    %67 = vector.load %arg3[%c0_61, %c0_62] : memref<1x128xf32, #tpu.memory_space<vmem>>, vector<1x128xf32>
    %68 = vector.broadcast %67 : vector<1x128xf32> to vector<256x128xf32>
    %69 = arith.addf %66, %68 : vector<256x128xf32>
    %cst_63 = arith.constant 0.000000e+00 : f32
    %70 = vector.broadcast %cst_63 : f32 to vector<256x128xf32>
    %71 = arith.maximumf %69, %70 : vector<256x128xf32>
    %c0_64 = arith.constant 0 : index
    %c0_65 = arith.constant 0 : index
    %72 = vector.load %arg16[%c0_64, %c0_65] : memref<256x128xf32, #tpu.memory_space<vmem>>, vector<256x128xf32>
    tpu.vector_store %arg16[%c0_64, %c0_65], %71 {strides = array<i32>} : memref<256x128xf32, #tpu.memory_space<vmem>>, vector<256x128xf32>,
    %73 = vector.shape_cast %71 : vector<256x128xf32> to vector<16x16x128xf32>
    %c1_66 = arith.constant 1 : index
    %c1_67 = arith.constant 1 : index
    %c0_68 = arith.constant 0 : index
    %74 = vector.load %arg15[%c1_66, %c1_67, %c0_68] : memref<18x18x128xf32, #tpu.memory_space<vmem>>, vector<16x16x128xf32>
    tpu.vector_store %arg15[%c1_66, %c1_67, %c0_68], %73 {strides = array<i32>} : memref<18x18x128xf32, #tpu.memory_space<vmem>>, vector<16x16x128xf32>,
    %cst_69 = arith.constant 0.000000e+00 : f32
    %75 = vector.broadcast %cst_69 : f32 to vector<256x128xf32>
    %c0_70 = arith.constant 0 : index
    %c0_71 = arith.constant 0 : index
    %c0_72 = arith.constant 0 : index
    %76 = vector.load %arg15[%c0_70, %c0_71, %c0_72] : memref<18x18x128xf32, #tpu.memory_space<vmem>>, vector<16x16x128xf32>
    %77 = vector.shape_cast %76 : vector<16x16x128xf32> to vector<256x128xf32>
    %78 = arith.truncf %77 : vector<256x128xf32> to vector<256x128xbf16>
    %c0_73 = arith.constant 0 : index
    %c0_74 = arith.constant 0 : index
    %c0_75 = arith.constant 0 : index
    %79 = vector.load %arg4[%c0_73, %c0_74, %c0_75] : memref<9x128x128xbf16, #tpu.memory_space<vmem>>, vector<1x128x128xbf16>
    %80 = vector.shape_cast %79 : vector<1x128x128xbf16> to vector<128x128xbf16>
    %cst_76 = arith.constant dense<0.000000e+00> : vector<256x128xf32>
    %81 = tpu.matmul %78, %80, %cst_76 {dimension_numbers = #tpu.dot_dimension_numbers<[1], [0], [0], [1], [0, 0, 1, 1], [], []>} : vector<256x128xbf16>, vector<128x128xbf16>, vector<256x128xf32> -> vector<256x128xf32>
    %82 = arith.addf %75, %81 : vector<256x128xf32>
    %c0_77 = arith.constant 0 : index
    %c1_78 = arith.constant 1 : index
    %c0_79 = arith.constant 0 : index
    %83 = vector.load %arg15[%c0_77, %c1_78, %c0_79] : memref<18x18x128xf32, #tpu.memory_space<vmem>>, vector<16x16x128xf32>
    %84 = vector.shape_cast %83 : vector<16x16x128xf32> to vector<256x128xf32>
    %85 = arith.truncf %84 : vector<256x128xf32> to vector<256x128xbf16>
    %c1_80 = arith.constant 1 : index
    %c0_81 = arith.constant 0 : index
    %c0_82 = arith.constant 0 : index
    %86 = vector.load %arg4[%c1_80, %c0_81, %c0_82] : memref<9x128x128xbf16, #tpu.memory_space<vmem>>, vector<1x128x128xbf16>
    %87 = vector.shape_cast %86 : vector<1x128x128xbf16> to vector<128x128xbf16>
    %cst_83 = arith.constant dense<0.000000e+00> : vector<256x128xf32>
    %88 = tpu.matmul %85, %87, %cst_83 {dimension_numbers = #tpu.dot_dimension_numbers<[1], [0], [0], [1], [0, 0, 1, 1], [], []>} : vector<256x128xbf16>, vector<128x128xbf16>, vector<256x128xf32> -> vector<256x128xf32>
    %89 = arith.addf %82, %88 : vector<256x128xf32>
    %c0_84 = arith.constant 0 : index
    %c2_85 = arith.constant 2 : index
    %c0_86 = arith.constant 0 : index
    %90 = vector.load %arg15[%c0_84, %c2_85, %c0_86] : memref<18x18x128xf32, #tpu.memory_space<vmem>>, vector<16x16x128xf32>
    %91 = vector.shape_cast %90 : vector<16x16x128xf32> to vector<256x128xf32>
    %92 = arith.truncf %91 : vector<256x128xf32> to vector<256x128xbf16>
    %c2_87 = arith.constant 2 : index
    %c0_88 = arith.constant 0 : index
    %c0_89 = arith.constant 0 : index
    %93 = vector.load %arg4[%c2_87, %c0_88, %c0_89] : memref<9x128x128xbf16, #tpu.memory_space<vmem>>, vector<1x128x128xbf16>
    %94 = vector.shape_cast %93 : vector<1x128x128xbf16> to vector<128x128xbf16>
    %cst_90 = arith.constant dense<0.000000e+00> : vector<256x128xf32>
    %95 = tpu.matmul %92, %94, %cst_90 {dimension_numbers = #tpu.dot_dimension_numbers<[1], [0], [0], [1], [0, 0, 1, 1], [], []>} : vector<256x128xbf16>, vector<128x128xbf16>, vector<256x128xf32> -> vector<256x128xf32>
    %96 = arith.addf %89, %95 : vector<256x128xf32>
    %c1_91 = arith.constant 1 : index
    %c0_92 = arith.constant 0 : index
    %c0_93 = arith.constant 0 : index
    %97 = vector.load %arg15[%c1_91, %c0_92, %c0_93] : memref<18x18x128xf32, #tpu.memory_space<vmem>>, vector<16x16x128xf32>
    %98 = vector.shape_cast %97 : vector<16x16x128xf32> to vector<256x128xf32>
    %99 = arith.truncf %98 : vector<256x128xf32> to vector<256x128xbf16>
    %c3_94 = arith.constant 3 : index
    %c0_95 = arith.constant 0 : index
    %c0_96 = arith.constant 0 : index
    %100 = vector.load %arg4[%c3_94, %c0_95, %c0_96] : memref<9x128x128xbf16, #tpu.memory_space<vmem>>, vector<1x128x128xbf16>
    %101 = vector.shape_cast %100 : vector<1x128x128xbf16> to vector<128x128xbf16>
    %cst_97 = arith.constant dense<0.000000e+00> : vector<256x128xf32>
    %102 = tpu.matmul %99, %101, %cst_97 {dimension_numbers = #tpu.dot_dimension_numbers<[1], [0], [0], [1], [0, 0, 1, 1], [], []>} : vector<256x128xbf16>, vector<128x128xbf16>, vector<256x128xf32> -> vector<256x128xf32>
    %103 = arith.addf %96, %102 : vector<256x128xf32>
    %c1_98 = arith.constant 1 : index
    %c1_99 = arith.constant 1 : index
    %c0_100 = arith.constant 0 : index
    %104 = vector.load %arg15[%c1_98, %c1_99, %c0_100] : memref<18x18x128xf32, #tpu.memory_space<vmem>>, vector<16x16x128xf32>
    %105 = vector.shape_cast %104 : vector<16x16x128xf32> to vector<256x128xf32>
    %106 = arith.truncf %105 : vector<256x128xf32> to vector<256x128xbf16>
    %c4_101 = arith.constant 4 : index
    %c0_102 = arith.constant 0 : index
    %c0_103 = arith.constant 0 : index
    %107 = vector.load %arg4[%c4_101, %c0_102, %c0_103] : memref<9x128x128xbf16, #tpu.memory_space<vmem>>, vector<1x128x128xbf16>
    %108 = vector.shape_cast %107 : vector<1x128x128xbf16> to vector<128x128xbf16>
    %cst_104 = arith.constant dense<0.000000e+00> : vector<256x128xf32>
    %109 = tpu.matmul %106, %108, %cst_104 {dimension_numbers = #tpu.dot_dimension_numbers<[1], [0], [0], [1], [0, 0, 1, 1], [], []>} : vector<256x128xbf16>, vector<128x128xbf16>, vector<256x128xf32> -> vector<256x128xf32>
    %110 = arith.addf %103, %109 : vector<256x128xf32>
    %c1_105 = arith.constant 1 : index
    %c2_106 = arith.constant 2 : index
    %c0_107 = arith.constant 0 : index
    %111 = vector.load %arg15[%c1_105, %c2_106, %c0_107] : memref<18x18x128xf32, #tpu.memory_space<vmem>>, vector<16x16x128xf32>
    %112 = vector.shape_cast %111 : vector<16x16x128xf32> to vector<256x128xf32>
    %113 = arith.truncf %112 : vector<256x128xf32> to vector<256x128xbf16>
    %c5_108 = arith.constant 5 : index
    %c0_109 = arith.constant 0 : index
    %c0_110 = arith.constant 0 : index
    %114 = vector.load %arg4[%c5_108, %c0_109, %c0_110] : memref<9x128x128xbf16, #tpu.memory_space<vmem>>, vector<1x128x128xbf16>
    %115 = vector.shape_cast %114 : vector<1x128x128xbf16> to vector<128x128xbf16>
    %cst_111 = arith.constant dense<0.000000e+00> : vector<256x128xf32>
    %116 = tpu.matmul %113, %115, %cst_111 {dimension_numbers = #tpu.dot_dimension_numbers<[1], [0], [0], [1], [0, 0, 1, 1], [], []>} : vector<256x128xbf16>, vector<128x128xbf16>, vector<256x128xf32> -> vector<256x128xf32>
    %117 = arith.addf %110, %116 : vector<256x128xf32>
    %c2_112 = arith.constant 2 : index
    %c0_113 = arith.constant 0 : index
    %c0_114 = arith.constant 0 : index
    %118 = vector.load %arg15[%c2_112, %c0_113, %c0_114] : memref<18x18x128xf32, #tpu.memory_space<vmem>>, vector<16x16x128xf32>
    %119 = vector.shape_cast %118 : vector<16x16x128xf32> to vector<256x128xf32>
    %120 = arith.truncf %119 : vector<256x128xf32> to vector<256x128xbf16>
    %c6_115 = arith.constant 6 : index
    %c0_116 = arith.constant 0 : index
    %c0_117 = arith.constant 0 : index
    %121 = vector.load %arg4[%c6_115, %c0_116, %c0_117] : memref<9x128x128xbf16, #tpu.memory_space<vmem>>, vector<1x128x128xbf16>
    %122 = vector.shape_cast %121 : vector<1x128x128xbf16> to vector<128x128xbf16>
    %cst_118 = arith.constant dense<0.000000e+00> : vector<256x128xf32>
    %123 = tpu.matmul %120, %122, %cst_118 {dimension_numbers = #tpu.dot_dimension_numbers<[1], [0], [0], [1], [0, 0, 1, 1], [], []>} : vector<256x128xbf16>, vector<128x128xbf16>, vector<256x128xf32> -> vector<256x128xf32>
    %124 = arith.addf %117, %123 : vector<256x128xf32>
    %c2_119 = arith.constant 2 : index
    %c1_120 = arith.constant 1 : index
    %c0_121 = arith.constant 0 : index
    %125 = vector.load %arg15[%c2_119, %c1_120, %c0_121] : memref<18x18x128xf32, #tpu.memory_space<vmem>>, vector<16x16x128xf32>
    %126 = vector.shape_cast %125 : vector<16x16x128xf32> to vector<256x128xf32>
    %127 = arith.truncf %126 : vector<256x128xf32> to vector<256x128xbf16>
    %c7_122 = arith.constant 7 : index
    %c0_123 = arith.constant 0 : index
    %c0_124 = arith.constant 0 : index
    %128 = vector.load %arg4[%c7_122, %c0_123, %c0_124] : memref<9x128x128xbf16, #tpu.memory_space<vmem>>, vector<1x128x128xbf16>
    %129 = vector.shape_cast %128 : vector<1x128x128xbf16> to vector<128x128xbf16>
    %cst_125 = arith.constant dense<0.000000e+00> : vector<256x128xf32>
    %130 = tpu.matmul %127, %129, %cst_125 {dimension_numbers = #tpu.dot_dimension_numbers<[1], [0], [0], [1], [0, 0, 1, 1], [], []>} : vector<256x128xbf16>, vector<128x128xbf16>, vector<256x128xf32> -> vector<256x128xf32>
    %131 = arith.addf %124, %130 : vector<256x128xf32>
    %c2_126 = arith.constant 2 : index
    %c2_127 = arith.constant 2 : index
    %c0_128 = arith.constant 0 : index
    %132 = vector.load %arg15[%c2_126, %c2_127, %c0_128] : memref<18x18x128xf32, #tpu.memory_space<vmem>>, vector<16x16x128xf32>
    %133 = vector.shape_cast %132 : vector<16x16x128xf32> to vector<256x128xf32>
    %134 = arith.truncf %133 : vector<256x128xf32> to vector<256x128xbf16>
    %c8_129 = arith.constant 8 : index
    %c0_130 = arith.constant 0 : index
    %c0_131 = arith.constant 0 : index
    %135 = vector.load %arg4[%c8_129, %c0_130, %c0_131] : memref<9x128x128xbf16, #tpu.memory_space<vmem>>, vector<1x128x128xbf16>
    %136 = vector.shape_cast %135 : vector<1x128x128xbf16> to vector<128x128xbf16>
    %cst_132 = arith.constant dense<0.000000e+00> : vector<256x128xf32>
    %137 = tpu.matmul %134, %136, %cst_132 {dimension_numbers = #tpu.dot_dimension_numbers<[1], [0], [0], [1], [0, 0, 1, 1], [], []>} : vector<256x128xbf16>, vector<128x128xbf16>, vector<256x128xf32> -> vector<256x128xf32>
    %138 = arith.addf %131, %137 : vector<256x128xf32>
    %c0_133 = arith.constant 0 : index
    %c0_134 = arith.constant 0 : index
    %139 = vector.load %arg5[%c0_133, %c0_134] : memref<1x128xf32, #tpu.memory_space<vmem>>, vector<1x128xf32>
    %140 = vector.broadcast %139 : vector<1x128xf32> to vector<256x128xf32>
    %141 = arith.addf %138, %140 : vector<256x128xf32>
    %cst_135 = arith.constant 0.000000e+00 : f32
    %142 = vector.broadcast %cst_135 : f32 to vector<256x128xf32>
    %143 = arith.maximumf %141, %142 : vector<256x128xf32>
    %144 = vector.shape_cast %143 : vector<256x128xf32> to vector<16x16x128xf32>
    %c1_136 = arith.constant 1 : index
    %c1_137 = arith.constant 1 : index
    %c0_138 = arith.constant 0 : index
    %145 = vector.load %arg15[%c1_136, %c1_137, %c0_138] : memref<18x18x128xf32, #tpu.memory_space<vmem>>, vector<16x16x128xf32>
    tpu.vector_store %arg15[%c1_136, %c1_137, %c0_138], %144 {strides = array<i32>} : memref<18x18x128xf32, #tpu.memory_space<vmem>>, vector<16x16x128xf32>,
    %cst_139 = arith.constant 0.000000e+00 : f32
    %146 = vector.broadcast %cst_139 : f32 to vector<256x128xf32>
    %c0_140 = arith.constant 0 : index
    %c0_141 = arith.constant 0 : index
    %c0_142 = arith.constant 0 : index
    %147 = vector.load %arg15[%c0_140, %c0_141, %c0_142] : memref<18x18x128xf32, #tpu.memory_space<vmem>>, vector<16x16x128xf32>
    %148 = vector.shape_cast %147 : vector<16x16x128xf32> to vector<256x128xf32>
    %149 = arith.truncf %148 : vector<256x128xf32> to vector<256x128xbf16>
    %c0_143 = arith.constant 0 : index
    %c0_144 = arith.constant 0 : index
    %c0_145 = arith.constant 0 : index
    %150 = vector.load %arg6[%c0_143, %c0_144, %c0_145] : memref<9x128x128xbf16, #tpu.memory_space<vmem>>, vector<1x128x128xbf16>
    %151 = vector.shape_cast %150 : vector<1x128x128xbf16> to vector<128x128xbf16>
    %cst_146 = arith.constant dense<0.000000e+00> : vector<256x128xf32>
    %152 = tpu.matmul %149, %151, %cst_146 {dimension_numbers = #tpu.dot_dimension_numbers<[1], [0], [0], [1], [0, 0, 1, 1], [], []>} : vector<256x128xbf16>, vector<128x128xbf16>, vector<256x128xf32> -> vector<256x128xf32>
    %153 = arith.addf %146, %152 : vector<256x128xf32>
    %c0_147 = arith.constant 0 : index
    %c1_148 = arith.constant 1 : index
    %c0_149 = arith.constant 0 : index
    %154 = vector.load %arg15[%c0_147, %c1_148, %c0_149] : memref<18x18x128xf32, #tpu.memory_space<vmem>>, vector<16x16x128xf32>
    %155 = vector.shape_cast %154 : vector<16x16x128xf32> to vector<256x128xf32>
    %156 = arith.truncf %155 : vector<256x128xf32> to vector<256x128xbf16>
    %c1_150 = arith.constant 1 : index
    %c0_151 = arith.constant 0 : index
    %c0_152 = arith.constant 0 : index
    %157 = vector.load %arg6[%c1_150, %c0_151, %c0_152] : memref<9x128x128xbf16, #tpu.memory_space<vmem>>, vector<1x128x128xbf16>
    %158 = vector.shape_cast %157 : vector<1x128x128xbf16> to vector<128x128xbf16>
    %cst_153 = arith.constant dense<0.000000e+00> : vector<256x128xf32>
    %159 = tpu.matmul %156, %158, %cst_153 {dimension_numbers = #tpu.dot_dimension_numbers<[1], [0], [0], [1], [0, 0, 1, 1], [], []>} : vector<256x128xbf16>, vector<128x128xbf16>, vector<256x128xf32> -> vector<256x128xf32>
    %160 = arith.addf %153, %159 : vector<256x128xf32>
    %c0_154 = arith.constant 0 : index
    %c2_155 = arith.constant 2 : index
    %c0_156 = arith.constant 0 : index
    %161 = vector.load %arg15[%c0_154, %c2_155, %c0_156] : memref<18x18x128xf32, #tpu.memory_space<vmem>>, vector<16x16x128xf32>
    %162 = vector.shape_cast %161 : vector<16x16x128xf32> to vector<256x128xf32>
    %163 = arith.truncf %162 : vector<256x128xf32> to vector<256x128xbf16>
    %c2_157 = arith.constant 2 : index
    %c0_158 = arith.constant 0 : index
    %c0_159 = arith.constant 0 : index
    %164 = vector.load %arg6[%c2_157, %c0_158, %c0_159] : memref<9x128x128xbf16, #tpu.memory_space<vmem>>, vector<1x128x128xbf16>
    %165 = vector.shape_cast %164 : vector<1x128x128xbf16> to vector<128x128xbf16>
    %cst_160 = arith.constant dense<0.000000e+00> : vector<256x128xf32>
    %166 = tpu.matmul %163, %165, %cst_160 {dimension_numbers = #tpu.dot_dimension_numbers<[1], [0], [0], [1], [0, 0, 1, 1], [], []>} : vector<256x128xbf16>, vector<128x128xbf16>, vector<256x128xf32> -> vector<256x128xf32>
    %167 = arith.addf %160, %166 : vector<256x128xf32>
    %c1_161 = arith.constant 1 : index
    %c0_162 = arith.constant 0 : index
    %c0_163 = arith.constant 0 : index
    %168 = vector.load %arg15[%c1_161, %c0_162, %c0_163] : memref<18x18x128xf32, #tpu.memory_space<vmem>>, vector<16x16x128xf32>
    %169 = vector.shape_cast %168 : vector<16x16x128xf32> to vector<256x128xf32>
    %170 = arith.truncf %169 : vector<256x128xf32> to vector<256x128xbf16>
    %c3_164 = arith.constant 3 : index
    %c0_165 = arith.constant 0 : index
    %c0_166 = arith.constant 0 : index
    %171 = vector.load %arg6[%c3_164, %c0_165, %c0_166] : memref<9x128x128xbf16, #tpu.memory_space<vmem>>, vector<1x128x128xbf16>
    %172 = vector.shape_cast %171 : vector<1x128x128xbf16> to vector<128x128xbf16>
    %cst_167 = arith.constant dense<0.000000e+00> : vector<256x128xf32>
    %173 = tpu.matmul %170, %172, %cst_167 {dimension_numbers = #tpu.dot_dimension_numbers<[1], [0], [0], [1], [0, 0, 1, 1], [], []>} : vector<256x128xbf16>, vector<128x128xbf16>, vector<256x128xf32> -> vector<256x128xf32>
    %174 = arith.addf %167, %173 : vector<256x128xf32>
    %c1_168 = arith.constant 1 : index
    %c1_169 = arith.constant 1 : index
    %c0_170 = arith.constant 0 : index
    %175 = vector.load %arg15[%c1_168, %c1_169, %c0_170] : memref<18x18x128xf32, #tpu.memory_space<vmem>>, vector<16x16x128xf32>
    %176 = vector.shape_cast %175 : vector<16x16x128xf32> to vector<256x128xf32>
    %177 = arith.truncf %176 : vector<256x128xf32> to vector<256x128xbf16>
    %c4_171 = arith.constant 4 : index
    %c0_172 = arith.constant 0 : index
    %c0_173 = arith.constant 0 : index
    %178 = vector.load %arg6[%c4_171, %c0_172, %c0_173] : memref<9x128x128xbf16, #tpu.memory_space<vmem>>, vector<1x128x128xbf16>
    %179 = vector.shape_cast %178 : vector<1x128x128xbf16> to vector<128x128xbf16>
    %cst_174 = arith.constant dense<0.000000e+00> : vector<256x128xf32>
    %180 = tpu.matmul %177, %179, %cst_174 {dimension_numbers = #tpu.dot_dimension_numbers<[1], [0], [0], [1], [0, 0, 1, 1], [], []>} : vector<256x128xbf16>, vector<128x128xbf16>, vector<256x128xf32> -> vector<256x128xf32>
    %181 = arith.addf %174, %180 : vector<256x128xf32>
    %c1_175 = arith.constant 1 : index
    %c2_176 = arith.constant 2 : index
    %c0_177 = arith.constant 0 : index
    %182 = vector.load %arg15[%c1_175, %c2_176, %c0_177] : memref<18x18x128xf32, #tpu.memory_space<vmem>>, vector<16x16x128xf32>
    %183 = vector.shape_cast %182 : vector<16x16x128xf32> to vector<256x128xf32>
    %184 = arith.truncf %183 : vector<256x128xf32> to vector<256x128xbf16>
    %c5_178 = arith.constant 5 : index
    %c0_179 = arith.constant 0 : index
    %c0_180 = arith.constant 0 : index
    %185 = vector.load %arg6[%c5_178, %c0_179, %c0_180] : memref<9x128x128xbf16, #tpu.memory_space<vmem>>, vector<1x128x128xbf16>
    %186 = vector.shape_cast %185 : vector<1x128x128xbf16> to vector<128x128xbf16>
    %cst_181 = arith.constant dense<0.000000e+00> : vector<256x128xf32>
    %187 = tpu.matmul %184, %186, %cst_181 {dimension_numbers = #tpu.dot_dimension_numbers<[1], [0], [0], [1], [0, 0, 1, 1], [], []>} : vector<256x128xbf16>, vector<128x128xbf16>, vector<256x128xf32> -> vector<256x128xf32>
    %188 = arith.addf %181, %187 : vector<256x128xf32>
    %c2_182 = arith.constant 2 : index
    %c0_183 = arith.constant 0 : index
    %c0_184 = arith.constant 0 : index
    %189 = vector.load %arg15[%c2_182, %c0_183, %c0_184] : memref<18x18x128xf32, #tpu.memory_space<vmem>>, vector<16x16x128xf32>
    %190 = vector.shape_cast %189 : vector<16x16x128xf32> to vector<256x128xf32>
    %191 = arith.truncf %190 : vector<256x128xf32> to vector<256x128xbf16>
    %c6_185 = arith.constant 6 : index
    %c0_186 = arith.constant 0 : index
    %c0_187 = arith.constant 0 : index
    %192 = vector.load %arg6[%c6_185, %c0_186, %c0_187] : memref<9x128x128xbf16, #tpu.memory_space<vmem>>, vector<1x128x128xbf16>
    %193 = vector.shape_cast %192 : vector<1x128x128xbf16> to vector<128x128xbf16>
    %cst_188 = arith.constant dense<0.000000e+00> : vector<256x128xf32>
    %194 = tpu.matmul %191, %193, %cst_188 {dimension_numbers = #tpu.dot_dimension_numbers<[1], [0], [0], [1], [0, 0, 1, 1], [], []>} : vector<256x128xbf16>, vector<128x128xbf16>, vector<256x128xf32> -> vector<256x128xf32>
    %195 = arith.addf %188, %194 : vector<256x128xf32>
    %c2_189 = arith.constant 2 : index
    %c1_190 = arith.constant 1 : index
    %c0_191 = arith.constant 0 : index
    %196 = vector.load %arg15[%c2_189, %c1_190, %c0_191] : memref<18x18x128xf32, #tpu.memory_space<vmem>>, vector<16x16x128xf32>
    %197 = vector.shape_cast %196 : vector<16x16x128xf32> to vector<256x128xf32>
    %198 = arith.truncf %197 : vector<256x128xf32> to vector<256x128xbf16>
    %c7_192 = arith.constant 7 : index
    %c0_193 = arith.constant 0 : index
    %c0_194 = arith.constant 0 : index
    %199 = vector.load %arg6[%c7_192, %c0_193, %c0_194] : memref<9x128x128xbf16, #tpu.memory_space<vmem>>, vector<1x128x128xbf16>
    %200 = vector.shape_cast %199 : vector<1x128x128xbf16> to vector<128x128xbf16>
    %cst_195 = arith.constant dense<0.000000e+00> : vector<256x128xf32>
    %201 = tpu.matmul %198, %200, %cst_195 {dimension_numbers = #tpu.dot_dimension_numbers<[1], [0], [0], [1], [0, 0, 1, 1], [], []>} : vector<256x128xbf16>, vector<128x128xbf16>, vector<256x128xf32> -> vector<256x128xf32>
    %202 = arith.addf %195, %201 : vector<256x128xf32>
    %c2_196 = arith.constant 2 : index
    %c2_197 = arith.constant 2 : index
    %c0_198 = arith.constant 0 : index
    %203 = vector.load %arg15[%c2_196, %c2_197, %c0_198] : memref<18x18x128xf32, #tpu.memory_space<vmem>>, vector<16x16x128xf32>
    %204 = vector.shape_cast %203 : vector<16x16x128xf32> to vector<256x128xf32>
    %205 = arith.truncf %204 : vector<256x128xf32> to vector<256x128xbf16>
    %c8_199 = arith.constant 8 : index
    %c0_200 = arith.constant 0 : index
    %c0_201 = arith.constant 0 : index
    %206 = vector.load %arg6[%c8_199, %c0_200, %c0_201] : memref<9x128x128xbf16, #tpu.memory_space<vmem>>, vector<1x128x128xbf16>
    %207 = vector.shape_cast %206 : vector<1x128x128xbf16> to vector<128x128xbf16>
    %cst_202 = arith.constant dense<0.000000e+00> : vector<256x128xf32>
    %208 = tpu.matmul %205, %207, %cst_202 {dimension_numbers = #tpu.dot_dimension_numbers<[1], [0], [0], [1], [0, 0, 1, 1], [], []>} : vector<256x128xbf16>, vector<128x128xbf16>, vector<256x128xf32> -> vector<256x128xf32>
    %209 = arith.addf %202, %208 : vector<256x128xf32>
    %c0_203 = arith.constant 0 : index
    %c0_204 = arith.constant 0 : index
    %210 = vector.load %arg7[%c0_203, %c0_204] : memref<1x128xf32, #tpu.memory_space<vmem>>, vector<1x128xf32>
    %211 = vector.broadcast %210 : vector<1x128xf32> to vector<256x128xf32>
    %212 = arith.addf %209, %211 : vector<256x128xf32>
    %c0_205 = arith.constant 0 : index
    %c0_206 = arith.constant 0 : index
    %213 = vector.load %arg16[%c0_205, %c0_206] : memref<256x128xf32, #tpu.memory_space<vmem>>, vector<256x128xf32>
    %214 = arith.addf %212, %213 : vector<256x128xf32>
    %cst_207 = arith.constant 0.000000e+00 : f32
    %215 = vector.broadcast %cst_207 : f32 to vector<256x128xf32>
    %216 = arith.maximumf %214, %215 : vector<256x128xf32>
    %c0_208 = arith.constant 0 : index
    %c0_209 = arith.constant 0 : index
    %217 = vector.load %arg16[%c0_208, %c0_209] : memref<256x128xf32, #tpu.memory_space<vmem>>, vector<256x128xf32>
    tpu.vector_store %arg16[%c0_208, %c0_209], %216 {strides = array<i32>} : memref<256x128xf32, #tpu.memory_space<vmem>>, vector<256x128xf32>,
    %218 = vector.shape_cast %216 : vector<256x128xf32> to vector<16x16x128xf32>
    %c1_210 = arith.constant 1 : index
    %c1_211 = arith.constant 1 : index
    %c0_212 = arith.constant 0 : index
    %219 = vector.load %arg15[%c1_210, %c1_211, %c0_212] : memref<18x18x128xf32, #tpu.memory_space<vmem>>, vector<16x16x128xf32>
    tpu.vector_store %arg15[%c1_210, %c1_211, %c0_212], %218 {strides = array<i32>} : memref<18x18x128xf32, #tpu.memory_space<vmem>>, vector<16x16x128xf32>,
    %cst_213 = arith.constant 0.000000e+00 : f32
    %220 = vector.broadcast %cst_213 : f32 to vector<256x128xf32>
    %c0_214 = arith.constant 0 : index
    %c0_215 = arith.constant 0 : index
    %c0_216 = arith.constant 0 : index
    %221 = vector.load %arg15[%c0_214, %c0_215, %c0_216] : memref<18x18x128xf32, #tpu.memory_space<vmem>>, vector<16x16x128xf32>
    %222 = vector.shape_cast %221 : vector<16x16x128xf32> to vector<256x128xf32>
    %223 = arith.truncf %222 : vector<256x128xf32> to vector<256x128xbf16>
    %c0_217 = arith.constant 0 : index
    %c0_218 = arith.constant 0 : index
    %c0_219 = arith.constant 0 : index
    %224 = vector.load %arg8[%c0_217, %c0_218, %c0_219] : memref<9x128x128xbf16, #tpu.memory_space<vmem>>, vector<1x128x128xbf16>
    %225 = vector.shape_cast %224 : vector<1x128x128xbf16> to vector<128x128xbf16>
    %cst_220 = arith.constant dense<0.000000e+00> : vector<256x128xf32>
    %226 = tpu.matmul %223, %225, %cst_220 {dimension_numbers = #tpu.dot_dimension_numbers<[1], [0], [0], [1], [0, 0, 1, 1], [], []>} : vector<256x128xbf16>, vector<128x128xbf16>, vector<256x128xf32> -> vector<256x128xf32>
    %227 = arith.addf %220, %226 : vector<256x128xf32>
    %c0_221 = arith.constant 0 : index
    %c1_222 = arith.constant 1 : index
    %c0_223 = arith.constant 0 : index
    %228 = vector.load %arg15[%c0_221, %c1_222, %c0_223] : memref<18x18x128xf32, #tpu.memory_space<vmem>>, vector<16x16x128xf32>
    %229 = vector.shape_cast %228 : vector<16x16x128xf32> to vector<256x128xf32>
    %230 = arith.truncf %229 : vector<256x128xf32> to vector<256x128xbf16>
    %c1_224 = arith.constant 1 : index
    %c0_225 = arith.constant 0 : index
    %c0_226 = arith.constant 0 : index
    %231 = vector.load %arg8[%c1_224, %c0_225, %c0_226] : memref<9x128x128xbf16, #tpu.memory_space<vmem>>, vector<1x128x128xbf16>
    %232 = vector.shape_cast %231 : vector<1x128x128xbf16> to vector<128x128xbf16>
    %cst_227 = arith.constant dense<0.000000e+00> : vector<256x128xf32>
    %233 = tpu.matmul %230, %232, %cst_227 {dimension_numbers = #tpu.dot_dimension_numbers<[1], [0], [0], [1], [0, 0, 1, 1], [], []>} : vector<256x128xbf16>, vector<128x128xbf16>, vector<256x128xf32> -> vector<256x128xf32>
    %234 = arith.addf %227, %233 : vector<256x128xf32>
    %c0_228 = arith.constant 0 : index
    %c2_229 = arith.constant 2 : index
    %c0_230 = arith.constant 0 : index
    %235 = vector.load %arg15[%c0_228, %c2_229, %c0_230] : memref<18x18x128xf32, #tpu.memory_space<vmem>>, vector<16x16x128xf32>
    %236 = vector.shape_cast %235 : vector<16x16x128xf32> to vector<256x128xf32>
    %237 = arith.truncf %236 : vector<256x128xf32> to vector<256x128xbf16>
    %c2_231 = arith.constant 2 : index
    %c0_232 = arith.constant 0 : index
    %c0_233 = arith.constant 0 : index
    %238 = vector.load %arg8[%c2_231, %c0_232, %c0_233] : memref<9x128x128xbf16, #tpu.memory_space<vmem>>, vector<1x128x128xbf16>
    %239 = vector.shape_cast %238 : vector<1x128x128xbf16> to vector<128x128xbf16>
    %cst_234 = arith.constant dense<0.000000e+00> : vector<256x128xf32>
    %240 = tpu.matmul %237, %239, %cst_234 {dimension_numbers = #tpu.dot_dimension_numbers<[1], [0], [0], [1], [0, 0, 1, 1], [], []>} : vector<256x128xbf16>, vector<128x128xbf16>, vector<256x128xf32> -> vector<256x128xf32>
    %241 = arith.addf %234, %240 : vector<256x128xf32>
    %c1_235 = arith.constant 1 : index
    %c0_236 = arith.constant 0 : index
    %c0_237 = arith.constant 0 : index
    %242 = vector.load %arg15[%c1_235, %c0_236, %c0_237] : memref<18x18x128xf32, #tpu.memory_space<vmem>>, vector<16x16x128xf32>
    %243 = vector.shape_cast %242 : vector<16x16x128xf32> to vector<256x128xf32>
    %244 = arith.truncf %243 : vector<256x128xf32> to vector<256x128xbf16>
    %c3_238 = arith.constant 3 : index
    %c0_239 = arith.constant 0 : index
    %c0_240 = arith.constant 0 : index
    %245 = vector.load %arg8[%c3_238, %c0_239, %c0_240] : memref<9x128x128xbf16, #tpu.memory_space<vmem>>, vector<1x128x128xbf16>
    %246 = vector.shape_cast %245 : vector<1x128x128xbf16> to vector<128x128xbf16>
    %cst_241 = arith.constant dense<0.000000e+00> : vector<256x128xf32>
    %247 = tpu.matmul %244, %246, %cst_241 {dimension_numbers = #tpu.dot_dimension_numbers<[1], [0], [0], [1], [0, 0, 1, 1], [], []>} : vector<256x128xbf16>, vector<128x128xbf16>, vector<256x128xf32> -> vector<256x128xf32>
    %248 = arith.addf %241, %247 : vector<256x128xf32>
    %c1_242 = arith.constant 1 : index
    %c1_243 = arith.constant 1 : index
    %c0_244 = arith.constant 0 : index
    %249 = vector.load %arg15[%c1_242, %c1_243, %c0_244] : memref<18x18x128xf32, #tpu.memory_space<vmem>>, vector<16x16x128xf32>
    %250 = vector.shape_cast %249 : vector<16x16x128xf32> to vector<256x128xf32>
    %251 = arith.truncf %250 : vector<256x128xf32> to vector<256x128xbf16>
    %c4_245 = arith.constant 4 : index
    %c0_246 = arith.constant 0 : index
    %c0_247 = arith.constant 0 : index
    %252 = vector.load %arg8[%c4_245, %c0_246, %c0_247] : memref<9x128x128xbf16, #tpu.memory_space<vmem>>, vector<1x128x128xbf16>
    %253 = vector.shape_cast %252 : vector<1x128x128xbf16> to vector<128x128xbf16>
    %cst_248 = arith.constant dense<0.000000e+00> : vector<256x128xf32>
    %254 = tpu.matmul %251, %253, %cst_248 {dimension_numbers = #tpu.dot_dimension_numbers<[1], [0], [0], [1], [0, 0, 1, 1], [], []>} : vector<256x128xbf16>, vector<128x128xbf16>, vector<256x128xf32> -> vector<256x128xf32>
    %255 = arith.addf %248, %254 : vector<256x128xf32>
    %c1_249 = arith.constant 1 : index
    %c2_250 = arith.constant 2 : index
    %c0_251 = arith.constant 0 : index
    %256 = vector.load %arg15[%c1_249, %c2_250, %c0_251] : memref<18x18x128xf32, #tpu.memory_space<vmem>>, vector<16x16x128xf32>
    %257 = vector.shape_cast %256 : vector<16x16x128xf32> to vector<256x128xf32>
    %258 = arith.truncf %257 : vector<256x128xf32> to vector<256x128xbf16>
    %c5_252 = arith.constant 5 : index
    %c0_253 = arith.constant 0 : index
    %c0_254 = arith.constant 0 : index
    %259 = vector.load %arg8[%c5_252, %c0_253, %c0_254] : memref<9x128x128xbf16, #tpu.memory_space<vmem>>, vector<1x128x128xbf16>
    %260 = vector.shape_cast %259 : vector<1x128x128xbf16> to vector<128x128xbf16>
    %cst_255 = arith.constant dense<0.000000e+00> : vector<256x128xf32>
    %261 = tpu.matmul %258, %260, %cst_255 {dimension_numbers = #tpu.dot_dimension_numbers<[1], [0], [0], [1], [0, 0, 1, 1], [], []>} : vector<256x128xbf16>, vector<128x128xbf16>, vector<256x128xf32> -> vector<256x128xf32>
    %262 = arith.addf %255, %261 : vector<256x128xf32>
    %c2_256 = arith.constant 2 : index
    %c0_257 = arith.constant 0 : index
    %c0_258 = arith.constant 0 : index
    %263 = vector.load %arg15[%c2_256, %c0_257, %c0_258] : memref<18x18x128xf32, #tpu.memory_space<vmem>>, vector<16x16x128xf32>
    %264 = vector.shape_cast %263 : vector<16x16x128xf32> to vector<256x128xf32>
    %265 = arith.truncf %264 : vector<256x128xf32> to vector<256x128xbf16>
    %c6_259 = arith.constant 6 : index
    %c0_260 = arith.constant 0 : index
    %c0_261 = arith.constant 0 : index
    %266 = vector.load %arg8[%c6_259, %c0_260, %c0_261] : memref<9x128x128xbf16, #tpu.memory_space<vmem>>, vector<1x128x128xbf16>
    %267 = vector.shape_cast %266 : vector<1x128x128xbf16> to vector<128x128xbf16>
    %cst_262 = arith.constant dense<0.000000e+00> : vector<256x128xf32>
    %268 = tpu.matmul %265, %267, %cst_262 {dimension_numbers = #tpu.dot_dimension_numbers<[1], [0], [0], [1], [0, 0, 1, 1], [], []>} : vector<256x128xbf16>, vector<128x128xbf16>, vector<256x128xf32> -> vector<256x128xf32>
    %269 = arith.addf %262, %268 : vector<256x128xf32>
    %c2_263 = arith.constant 2 : index
    %c1_264 = arith.constant 1 : index
    %c0_265 = arith.constant 0 : index
    %270 = vector.load %arg15[%c2_263, %c1_264, %c0_265] : memref<18x18x128xf32, #tpu.memory_space<vmem>>, vector<16x16x128xf32>
    %271 = vector.shape_cast %270 : vector<16x16x128xf32> to vector<256x128xf32>
    %272 = arith.truncf %271 : vector<256x128xf32> to vector<256x128xbf16>
    %c7_266 = arith.constant 7 : index
    %c0_267 = arith.constant 0 : index
    %c0_268 = arith.constant 0 : index
    %273 = vector.load %arg8[%c7_266, %c0_267, %c0_268] : memref<9x128x128xbf16, #tpu.memory_space<vmem>>, vector<1x128x128xbf16>
    %274 = vector.shape_cast %273 : vector<1x128x128xbf16> to vector<128x128xbf16>
    %cst_269 = arith.constant dense<0.000000e+00> : vector<256x128xf32>
    %275 = tpu.matmul %272, %274, %cst_269 {dimension_numbers = #tpu.dot_dimension_numbers<[1], [0], [0], [1], [0, 0, 1, 1], [], []>} : vector<256x128xbf16>, vector<128x128xbf16>, vector<256x128xf32> -> vector<256x128xf32>
    %276 = arith.addf %269, %275 : vector<256x128xf32>
    %c2_270 = arith.constant 2 : index
    %c2_271 = arith.constant 2 : index
    %c0_272 = arith.constant 0 : index
    %277 = vector.load %arg15[%c2_270, %c2_271, %c0_272] : memref<18x18x128xf32, #tpu.memory_space<vmem>>, vector<16x16x128xf32>
    %278 = vector.shape_cast %277 : vector<16x16x128xf32> to vector<256x128xf32>
    %279 = arith.truncf %278 : vector<256x128xf32> to vector<256x128xbf16>
    %c8_273 = arith.constant 8 : index
    %c0_274 = arith.constant 0 : index
    %c0_275 = arith.constant 0 : index
    %280 = vector.load %arg8[%c8_273, %c0_274, %c0_275] : memref<9x128x128xbf16, #tpu.memory_space<vmem>>, vector<1x128x128xbf16>
    %281 = vector.shape_cast %280 : vector<1x128x128xbf16> to vector<128x128xbf16>
    %cst_276 = arith.constant dense<0.000000e+00> : vector<256x128xf32>
    %282 = tpu.matmul %279, %281, %cst_276 {dimension_numbers = #tpu.dot_dimension_numbers<[1], [0], [0], [1], [0, 0, 1, 1], [], []>} : vector<256x128xbf16>, vector<128x128xbf16>, vector<256x128xf32> -> vector<256x128xf32>
    %283 = arith.addf %276, %282 : vector<256x128xf32>
    %c0_277 = arith.constant 0 : index
    %c0_278 = arith.constant 0 : index
    %284 = vector.load %arg9[%c0_277, %c0_278] : memref<1x128xf32, #tpu.memory_space<vmem>>, vector<1x128xf32>
    %285 = vector.broadcast %284 : vector<1x128xf32> to vector<256x128xf32>
    %286 = arith.addf %283, %285 : vector<256x128xf32>
    %cst_279 = arith.constant 0.000000e+00 : f32
    %287 = vector.broadcast %cst_279 : f32 to vector<256x128xf32>
    %288 = arith.maximumf %286, %287 : vector<256x128xf32>
    %289 = vector.shape_cast %288 : vector<256x128xf32> to vector<16x16x128xf32>
    %c1_280 = arith.constant 1 : index
    %c1_281 = arith.constant 1 : index
    %c0_282 = arith.constant 0 : index
    %290 = vector.load %arg15[%c1_280, %c1_281, %c0_282] : memref<18x18x128xf32, #tpu.memory_space<vmem>>, vector<16x16x128xf32>
    tpu.vector_store %arg15[%c1_280, %c1_281, %c0_282], %289 {strides = array<i32>} : memref<18x18x128xf32, #tpu.memory_space<vmem>>, vector<16x16x128xf32>,
    %cst_283 = arith.constant 0.000000e+00 : f32
    %291 = vector.broadcast %cst_283 : f32 to vector<256x128xf32>
    %c0_284 = arith.constant 0 : index
    %c0_285 = arith.constant 0 : index
    %c0_286 = arith.constant 0 : index
    %292 = vector.load %arg15[%c0_284, %c0_285, %c0_286] : memref<18x18x128xf32, #tpu.memory_space<vmem>>, vector<16x16x128xf32>
    %293 = vector.shape_cast %292 : vector<16x16x128xf32> to vector<256x128xf32>
    %294 = arith.truncf %293 : vector<256x128xf32> to vector<256x128xbf16>
    %c0_287 = arith.constant 0 : index
    %c0_288 = arith.constant 0 : index
    %c0_289 = arith.constant 0 : index
    %295 = vector.load %arg10[%c0_287, %c0_288, %c0_289] : memref<9x128x128xbf16, #tpu.memory_space<vmem>>, vector<1x128x128xbf16>
    %296 = vector.shape_cast %295 : vector<1x128x128xbf16> to vector<128x128xbf16>
    %cst_290 = arith.constant dense<0.000000e+00> : vector<256x128xf32>
    %297 = tpu.matmul %294, %296, %cst_290 {dimension_numbers = #tpu.dot_dimension_numbers<[1], [0], [0], [1], [0, 0, 1, 1], [], []>} : vector<256x128xbf16>, vector<128x128xbf16>, vector<256x128xf32> -> vector<256x128xf32>
    %298 = arith.addf %291, %297 : vector<256x128xf32>
    %c0_291 = arith.constant 0 : index
    %c1_292 = arith.constant 1 : index
    %c0_293 = arith.constant 0 : index
    %299 = vector.load %arg15[%c0_291, %c1_292, %c0_293] : memref<18x18x128xf32, #tpu.memory_space<vmem>>, vector<16x16x128xf32>
    %300 = vector.shape_cast %299 : vector<16x16x128xf32> to vector<256x128xf32>
    %301 = arith.truncf %300 : vector<256x128xf32> to vector<256x128xbf16>
    %c1_294 = arith.constant 1 : index
    %c0_295 = arith.constant 0 : index
    %c0_296 = arith.constant 0 : index
    %302 = vector.load %arg10[%c1_294, %c0_295, %c0_296] : memref<9x128x128xbf16, #tpu.memory_space<vmem>>, vector<1x128x128xbf16>
    %303 = vector.shape_cast %302 : vector<1x128x128xbf16> to vector<128x128xbf16>
    %cst_297 = arith.constant dense<0.000000e+00> : vector<256x128xf32>
    %304 = tpu.matmul %301, %303, %cst_297 {dimension_numbers = #tpu.dot_dimension_numbers<[1], [0], [0], [1], [0, 0, 1, 1], [], []>} : vector<256x128xbf16>, vector<128x128xbf16>, vector<256x128xf32> -> vector<256x128xf32>
    %305 = arith.addf %298, %304 : vector<256x128xf32>
    %c0_298 = arith.constant 0 : index
    %c2_299 = arith.constant 2 : index
    %c0_300 = arith.constant 0 : index
    %306 = vector.load %arg15[%c0_298, %c2_299, %c0_300] : memref<18x18x128xf32, #tpu.memory_space<vmem>>, vector<16x16x128xf32>
    %307 = vector.shape_cast %306 : vector<16x16x128xf32> to vector<256x128xf32>
    %308 = arith.truncf %307 : vector<256x128xf32> to vector<256x128xbf16>
    %c2_301 = arith.constant 2 : index
    %c0_302 = arith.constant 0 : index
    %c0_303 = arith.constant 0 : index
    %309 = vector.load %arg10[%c2_301, %c0_302, %c0_303] : memref<9x128x128xbf16, #tpu.memory_space<vmem>>, vector<1x128x128xbf16>
    %310 = vector.shape_cast %309 : vector<1x128x128xbf16> to vector<128x128xbf16>
    %cst_304 = arith.constant dense<0.000000e+00> : vector<256x128xf32>
    %311 = tpu.matmul %308, %310, %cst_304 {dimension_numbers = #tpu.dot_dimension_numbers<[1], [0], [0], [1], [0, 0, 1, 1], [], []>} : vector<256x128xbf16>, vector<128x128xbf16>, vector<256x128xf32> -> vector<256x128xf32>
    %312 = arith.addf %305, %311 : vector<256x128xf32>
    %c1_305 = arith.constant 1 : index
    %c0_306 = arith.constant 0 : index
    %c0_307 = arith.constant 0 : index
    %313 = vector.load %arg15[%c1_305, %c0_306, %c0_307] : memref<18x18x128xf32, #tpu.memory_space<vmem>>, vector<16x16x128xf32>
    %314 = vector.shape_cast %313 : vector<16x16x128xf32> to vector<256x128xf32>
    %315 = arith.truncf %314 : vector<256x128xf32> to vector<256x128xbf16>
    %c3_308 = arith.constant 3 : index
    %c0_309 = arith.constant 0 : index
    %c0_310 = arith.constant 0 : index
    %316 = vector.load %arg10[%c3_308, %c0_309, %c0_310] : memref<9x128x128xbf16, #tpu.memory_space<vmem>>, vector<1x128x128xbf16>
    %317 = vector.shape_cast %316 : vector<1x128x128xbf16> to vector<128x128xbf16>
    %cst_311 = arith.constant dense<0.000000e+00> : vector<256x128xf32>
    %318 = tpu.matmul %315, %317, %cst_311 {dimension_numbers = #tpu.dot_dimension_numbers<[1], [0], [0], [1], [0, 0, 1, 1], [], []>} : vector<256x128xbf16>, vector<128x128xbf16>, vector<256x128xf32> -> vector<256x128xf32>
    %319 = arith.addf %312, %318 : vector<256x128xf32>
    %c1_312 = arith.constant 1 : index
    %c1_313 = arith.constant 1 : index
    %c0_314 = arith.constant 0 : index
    %320 = vector.load %arg15[%c1_312, %c1_313, %c0_314] : memref<18x18x128xf32, #tpu.memory_space<vmem>>, vector<16x16x128xf32>
    %321 = vector.shape_cast %320 : vector<16x16x128xf32> to vector<256x128xf32>
    %322 = arith.truncf %321 : vector<256x128xf32> to vector<256x128xbf16>
    %c4_315 = arith.constant 4 : index
    %c0_316 = arith.constant 0 : index
    %c0_317 = arith.constant 0 : index
    %323 = vector.load %arg10[%c4_315, %c0_316, %c0_317] : memref<9x128x128xbf16, #tpu.memory_space<vmem>>, vector<1x128x128xbf16>
    %324 = vector.shape_cast %323 : vector<1x128x128xbf16> to vector<128x128xbf16>
    %cst_318 = arith.constant dense<0.000000e+00> : vector<256x128xf32>
    %325 = tpu.matmul %322, %324, %cst_318 {dimension_numbers = #tpu.dot_dimension_numbers<[1], [0], [0], [1], [0, 0, 1, 1], [], []>} : vector<256x128xbf16>, vector<128x128xbf16>, vector<256x128xf32> -> vector<256x128xf32>
    %326 = arith.addf %319, %325 : vector<256x128xf32>
    %c1_319 = arith.constant 1 : index
    %c2_320 = arith.constant 2 : index
    %c0_321 = arith.constant 0 : index
    %327 = vector.load %arg15[%c1_319, %c2_320, %c0_321] : memref<18x18x128xf32, #tpu.memory_space<vmem>>, vector<16x16x128xf32>
    %328 = vector.shape_cast %327 : vector<16x16x128xf32> to vector<256x128xf32>
    %329 = arith.truncf %328 : vector<256x128xf32> to vector<256x128xbf16>
    %c5_322 = arith.constant 5 : index
    %c0_323 = arith.constant 0 : index
    %c0_324 = arith.constant 0 : index
    %330 = vector.load %arg10[%c5_322, %c0_323, %c0_324] : memref<9x128x128xbf16, #tpu.memory_space<vmem>>, vector<1x128x128xbf16>
    %331 = vector.shape_cast %330 : vector<1x128x128xbf16> to vector<128x128xbf16>
    %cst_325 = arith.constant dense<0.000000e+00> : vector<256x128xf32>
    %332 = tpu.matmul %329, %331, %cst_325 {dimension_numbers = #tpu.dot_dimension_numbers<[1], [0], [0], [1], [0, 0, 1, 1], [], []>} : vector<256x128xbf16>, vector<128x128xbf16>, vector<256x128xf32> -> vector<256x128xf32>
    %333 = arith.addf %326, %332 : vector<256x128xf32>
    %c2_326 = arith.constant 2 : index
    %c0_327 = arith.constant 0 : index
    %c0_328 = arith.constant 0 : index
    %334 = vector.load %arg15[%c2_326, %c0_327, %c0_328] : memref<18x18x128xf32, #tpu.memory_space<vmem>>, vector<16x16x128xf32>
    %335 = vector.shape_cast %334 : vector<16x16x128xf32> to vector<256x128xf32>
    %336 = arith.truncf %335 : vector<256x128xf32> to vector<256x128xbf16>
    %c6_329 = arith.constant 6 : index
    %c0_330 = arith.constant 0 : index
    %c0_331 = arith.constant 0 : index
    %337 = vector.load %arg10[%c6_329, %c0_330, %c0_331] : memref<9x128x128xbf16, #tpu.memory_space<vmem>>, vector<1x128x128xbf16>
    %338 = vector.shape_cast %337 : vector<1x128x128xbf16> to vector<128x128xbf16>
    %cst_332 = arith.constant dense<0.000000e+00> : vector<256x128xf32>
    %339 = tpu.matmul %336, %338, %cst_332 {dimension_numbers = #tpu.dot_dimension_numbers<[1], [0], [0], [1], [0, 0, 1, 1], [], []>} : vector<256x128xbf16>, vector<128x128xbf16>, vector<256x128xf32> -> vector<256x128xf32>
    %340 = arith.addf %333, %339 : vector<256x128xf32>
    %c2_333 = arith.constant 2 : index
    %c1_334 = arith.constant 1 : index
    %c0_335 = arith.constant 0 : index
    %341 = vector.load %arg15[%c2_333, %c1_334, %c0_335] : memref<18x18x128xf32, #tpu.memory_space<vmem>>, vector<16x16x128xf32>
    %342 = vector.shape_cast %341 : vector<16x16x128xf32> to vector<256x128xf32>
    %343 = arith.truncf %342 : vector<256x128xf32> to vector<256x128xbf16>
    %c7_336 = arith.constant 7 : index
    %c0_337 = arith.constant 0 : index
    %c0_338 = arith.constant 0 : index
    %344 = vector.load %arg10[%c7_336, %c0_337, %c0_338] : memref<9x128x128xbf16, #tpu.memory_space<vmem>>, vector<1x128x128xbf16>
    %345 = vector.shape_cast %344 : vector<1x128x128xbf16> to vector<128x128xbf16>
    %cst_339 = arith.constant dense<0.000000e+00> : vector<256x128xf32>
    %346 = tpu.matmul %343, %345, %cst_339 {dimension_numbers = #tpu.dot_dimension_numbers<[1], [0], [0], [1], [0, 0, 1, 1], [], []>} : vector<256x128xbf16>, vector<128x128xbf16>, vector<256x128xf32> -> vector<256x128xf32>
    %347 = arith.addf %340, %346 : vector<256x128xf32>
    %c2_340 = arith.constant 2 : index
    %c2_341 = arith.constant 2 : index
    %c0_342 = arith.constant 0 : index
    %348 = vector.load %arg15[%c2_340, %c2_341, %c0_342] : memref<18x18x128xf32, #tpu.memory_space<vmem>>, vector<16x16x128xf32>
    %349 = vector.shape_cast %348 : vector<16x16x128xf32> to vector<256x128xf32>
    %350 = arith.truncf %349 : vector<256x128xf32> to vector<256x128xbf16>
    %c8_343 = arith.constant 8 : index
    %c0_344 = arith.constant 0 : index
    %c0_345 = arith.constant 0 : index
    %351 = vector.load %arg10[%c8_343, %c0_344, %c0_345] : memref<9x128x128xbf16, #tpu.memory_space<vmem>>, vector<1x128x128xbf16>
    %352 = vector.shape_cast %351 : vector<1x128x128xbf16> to vector<128x128xbf16>
    %cst_346 = arith.constant dense<0.000000e+00> : vector<256x128xf32>
    %353 = tpu.matmul %350, %352, %cst_346 {dimension_numbers = #tpu.dot_dimension_numbers<[1], [0], [0], [1], [0, 0, 1, 1], [], []>} : vector<256x128xbf16>, vector<128x128xbf16>, vector<256x128xf32> -> vector<256x128xf32>
    %354 = arith.addf %347, %353 : vector<256x128xf32>
    %c0_347 = arith.constant 0 : index
    %c0_348 = arith.constant 0 : index
    %355 = vector.load %arg11[%c0_347, %c0_348] : memref<1x128xf32, #tpu.memory_space<vmem>>, vector<1x128xf32>
    %356 = vector.broadcast %355 : vector<1x128xf32> to vector<256x128xf32>
    %357 = arith.addf %354, %356 : vector<256x128xf32>
    %c0_349 = arith.constant 0 : index
    %c0_350 = arith.constant 0 : index
    %358 = vector.load %arg16[%c0_349, %c0_350] : memref<256x128xf32, #tpu.memory_space<vmem>>, vector<256x128xf32>
    %359 = arith.addf %357, %358 : vector<256x128xf32>
    %cst_351 = arith.constant 0.000000e+00 : f32
    %360 = vector.broadcast %cst_351 : f32 to vector<256x128xf32>
    %361 = arith.maximumf %359, %360 : vector<256x128xf32>
    %cst_352 = arith.constant dense<0.000000e+00> : vector<128xf32>
    %362 = vector.multi_reduction <add>, %361, %cst_352 [0] : vector<256x128xf32> to vector<128xf32>
    %363 = vector.shape_cast %362 : vector<128xf32> to vector<1x128xf32>
    %cst_353 = arith.constant 3.906250e-03 : f32
    %364 = vector.broadcast %cst_353 : f32 to vector<1x128xf32>
    %365 = arith.mulf %363, %364 : vector<1x128xf32>
    %366 = arith.truncf %365 : vector<1x128xf32> to vector<1x128xbf16>
    %c0_354 = arith.constant 0 : index
    %c0_355 = arith.constant 0 : index
    %367 = vector.load %arg12[%c0_354, %c0_355] : memref<128x128xbf16, #tpu.memory_space<vmem>>, vector<128x128xbf16>
    %cst_356 = arith.constant dense<0.000000e+00> : vector<1x128xf32>
    %368 = tpu.matmul %366, %367, %cst_356 {dimension_numbers = #tpu.dot_dimension_numbers<[1], [0], [0], [1], [0, 0, 1, 1], [], []>} : vector<1x128xbf16>, vector<128x128xbf16>, vector<1x128xf32> -> vector<1x128xf32>
    %c0_357 = arith.constant 0 : index
    %c0_358 = arith.constant 0 : index
    %369 = vector.load %arg13[%c0_357, %c0_358] : memref<1x128xf32, #tpu.memory_space<vmem>>, vector<1x128xf32>
    %370 = arith.addf %368, %369 : vector<1x128xf32>
    %371 = vector.shape_cast %370 : vector<1x128xf32> to vector<1x1x128xf32>
    %c0_359 = arith.constant 0 : index
    %c0_360 = arith.constant 0 : index
    %c0_361 = arith.constant 0 : index
    %372 = vector.load %arg14[%c0_359, %c0_360, %c0_361] : memref<1x1x128xf32, #tpu.memory_space<vmem>>, vector<1x1x128xf32>
    tpu.vector_store %arg14[%c0_359, %c0_360, %c0_361], %371 {strides = array<i32>} : memref<1x1x128xf32, #tpu.memory_space<vmem>>, vector<1x1x128xf32>,
    return
  }
  func.func @transform_0(%arg0: i32) -> (i32, i32, i32, i32) {
    %c0_i32 = arith.constant 0 : i32
    %c0_i32_0 = arith.constant 0 : i32
    %c0_i32_1 = arith.constant 0 : i32
    %c0_i32_2 = arith.constant 0 : i32
    return %arg0, %c0_i32, %c0_i32_0, %c0_i32_1 : i32, i32, i32, i32
  }
  func.func @transform_1(%arg0: i32) -> (i32, i32, i32) {
    %c0_i32 = arith.constant 0 : i32
    %c0_i32_0 = arith.constant 0 : i32
    %c0_i32_1 = arith.constant 0 : i32
    %c0_i32_2 = arith.constant 0 : i32
    return %c0_i32, %c0_i32_0, %c0_i32_1 : i32, i32, i32
  }
  func.func @transform_2(%arg0: i32) -> (i32, i32) {
    %c0_i32 = arith.constant 0 : i32
    %c0_i32_0 = arith.constant 0 : i32
    %c0_i32_1 = arith.constant 0 : i32
    return %c0_i32, %c0_i32_0 : i32, i32
  }
  func.func @transform_3(%arg0: i32) -> (i32, i32, i32) {
    %c0_i32 = arith.constant 0 : i32
    %c0_i32_0 = arith.constant 0 : i32
    %c0_i32_1 = arith.constant 0 : i32
    %c0_i32_2 = arith.constant 0 : i32
    return %c0_i32, %c0_i32_0, %c0_i32_1 : i32, i32, i32
  }
  func.func @transform_4(%arg0: i32) -> (i32, i32) {
    %c0_i32 = arith.constant 0 : i32
    %c0_i32_0 = arith.constant 0 : i32
    %c0_i32_1 = arith.constant 0 : i32
    return %c0_i32, %c0_i32_0 : i32, i32
  }
  func.func @transform_5(%arg0: i32) -> (i32, i32, i32) {
    %c0_i32 = arith.constant 0 : i32
    %c0_i32_0 = arith.constant 0 : i32
    %c0_i32_1 = arith.constant 0 : i32
    %c0_i32_2 = arith.constant 0 : i32
    return %c0_i32, %c0_i32_0, %c0_i32_1 : i32, i32, i32
  }
  func.func @transform_6(%arg0: i32) -> (i32, i32) {
    %c0_i32 = arith.constant 0 : i32
    %c0_i32_0 = arith.constant 0 : i32
    %c0_i32_1 = arith.constant 0 : i32
    return %c0_i32, %c0_i32_0 : i32, i32
  }
  func.func @transform_7(%arg0: i32) -> (i32, i32, i32) {
    %c0_i32 = arith.constant 0 : i32
    %c0_i32_0 = arith.constant 0 : i32
    %c0_i32_1 = arith.constant 0 : i32
    %c0_i32_2 = arith.constant 0 : i32
    return %c0_i32, %c0_i32_0, %c0_i32_1 : i32, i32, i32
  }
  func.func @transform_8(%arg0: i32) -> (i32, i32) {
    %c0_i32 = arith.constant 0 : i32
    %c0_i32_0 = arith.constant 0 : i32
    %c0_i32_1 = arith.constant 0 : i32
    return %c0_i32, %c0_i32_0 : i32, i32
  }
  func.func @transform_9(%arg0: i32) -> (i32, i32, i32) {
    %c0_i32 = arith.constant 0 : i32
    %c0_i32_0 = arith.constant 0 : i32
    %c0_i32_1 = arith.constant 0 : i32
    %c0_i32_2 = arith.constant 0 : i32
    return %c0_i32, %c0_i32_0, %c0_i32_1 : i32, i32, i32
  }
  func.func @transform_10(%arg0: i32) -> (i32, i32) {
    %c0_i32 = arith.constant 0 : i32
    %c0_i32_0 = arith.constant 0 : i32
    %c0_i32_1 = arith.constant 0 : i32
    return %c0_i32, %c0_i32_0 : i32, i32
  }
  func.func @transform_11(%arg0: i32) -> (i32, i32) {
    %c0_i32 = arith.constant 0 : i32
    %c0_i32_0 = arith.constant 0 : i32
    %c0_i32_1 = arith.constant 0 : i32
    return %c0_i32, %c0_i32_0 : i32, i32
  }
  func.func @transform_12(%arg0: i32) -> (i32, i32) {
    %c0_i32 = arith.constant 0 : i32
    %c0_i32_0 = arith.constant 0 : i32
    %c0_i32_1 = arith.constant 0 : i32
    return %c0_i32, %c0_i32_0 : i32, i32
  }
  func.func @transform_13(%arg0: i32) -> (i32, i32, i32) {
    %c0_i32 = arith.constant 0 : i32
    %c0_i32_0 = arith.constant 0 : i32
    %c0_i32_1 = arith.constant 0 : i32
    return %arg0, %c0_i32, %c0_i32_0 : i32, i32, i32
  }
}

</mosaic_0001>

<bundles_post_ra>
// kernel: resnet_forward.1
= control target key start
LH: loop header
LB: loop body
LE: loop exit
PB: predicated region body
PF: predicated region fallthrough
CT: control target
= control target key end

     0   :  { %18 = vsyncpa [#allocation5], 0  ;;  %s18552_s0 = inlined_call_operand.vmem [shape: f32[2,18,18,128], index: 0, kind: input, shape index: {}]   ;;  %s18553_s1 = inlined_call_operand.hbm [shape: bf16[9,128,128], index: 1, kind: input, shape index: {}]   ;;  %s18554_s2 = inlined_call_operand.vmem [shape: f32[1,128], index: 2, kind: input, shape index: {}]   ;;  %s18555_s3 = inlined_call_operand.hbm [shape: bf16[9,128,128], index: 3, kind: input, shape index: {}]   ;;  %s18556_s4 = inlined_call_operand.vmem [shape: f32[1,128], index: 4, kind: input, shape index: {}]   ;;  %s18557_s5 = inlined_call_operand.vmem [shape: bf16[9,128,128], index: 5, kind: input, shape index: {}]   ;;  %s18558_s6 = inlined_call_operand.vmem [shape: f32[1,128], index: 6, kind: input, shape index: {}]   ;;  %s18559_s7 = inlined_call_operand.vmem [shape: bf16[9,128,128], index: 7, kind: input, shape index: {}]   ;;  %s18560_s8 = inlined_call_operand.vmem [shape: f32[1,128], index: 8, kind: input, shape index: {}]   ;;  %s18561_s9 = inlined_call_operand.vmem [shape: bf16[9,128,128], index: 9, kind: input, shape index: {}]   ;;  %s18562_s10 = inlined_call_operand.vmem [shape: f32[1,128], index: 10, kind: input, shape index: {}]   ;;  %s18563_s11 = inlined_call_operand.vmem [shape: bf16[128,128], index: 11, kind: input, shape index: {}]   ;;  %s18564_s12 = inlined_call_operand.vmem [shape: f32[1,128], index: 12, kind: input, shape index: {}]   ;;  %s18565_s13 = inlined_call_operand.hbm [shape: f32[2,1,128], index: 13, kind: output, shape index: {}]  }
   0x1   :  { %19 = vsyncpa [#allocation8], 0 }
   0x2   :  { %20 = vsyncpa [#allocation6], 0 }
   0x3   :  { %22 = vsyncpa [#allocation6 + $0x1], 0  ;;  %s14192_s25 = smov 0   ;;  %s14194_s26 = smov 0  }
   0x4   :  { %s14196_s27 = smov 0   ;;  %s14198_s28 = smov 0  }
   0x5 LB: > { %18643 = sst [smem:[#allocation13_spill]] %s14112_s27  ;;  %s14213_s29 = sadd.s32 4294967295, %s14116_s28   ;;  %s14116_s28 = sphi %s14198_s28, %s18966_s28   ;;  %s14112_s27 = sphi %s14196_s27, %s18971_s27   ;;  %s14108_s26 = sphi %s14194_s26, %s18970_s26   ;;  %s14104_s25 = sphi %s14192_s25, %s18969_s25  }
   0x6   : > { %s11655_s30 = sadd.s32 4294967294, %s14116_s28   ;;  %s14217_s14 = sadd.s32 1, %s14116_s28  }
   0x7   : > { %18644 = sst [smem:[#allocation14_spill]] %s14217_s14  ;;  %s313_s15 = sadd.s32 1, %s14112_s27 }
   0x8   : > { %s310_s16 = ssub.s32 %s14116_s28, %s14217_s14  ;;  %p323_p0 = scmp.ne.s32.totalorder %s14112_s27, %s14108_s26 }
   0x9   : > { %p311_p1 = scmp.eq.s32.totalorder %s310_s16, 0  ;;  %p324_p2 = scmp.eq.s32.totalorder %s14213_s29, 1 }
   0xa   : > { %p329_p3 = scmp.ne.s32.totalorder %s14108_s26, %s14104_s25  ;;  %p330_p4 = scmp.eq.s32.totalorder %s11655_s30, 1 }
   0xb   : > { %s14228_s17 = scalar_select %p311_p1, %s14112_s27, %s313_s15  }
   0xc   : > { %p14230_p5 = por %p324_p2, %p323_p0  ;;  %p14234_p6 = por %p330_p4, %p329_p3 }
   0xd   : > { %18645 = sst [smem:[#allocation15_spill]] %s14228_s17  ;;  %p11656_p7 = scmp.ge.s32.totalorder %s14116_s28, 1 }
   0xe   : > { %s18647_s19 = scalar_select %p14234_p6, 1, 0 }
   0xf   : > { %p337_p8 = scmp.lt.s32.totalorder %s14116_s28, 3  ;;  %p13936_p9 = scmp.eq.s32.totalorder %s14213_s29, 0 }
  0x10   : > { %18648 = sst [smem:[#allocation16_spill]] %s18647_s19  ;;  %s348_s23 = sshll.u32 %s18553_s1, 4  ;;  %s349_s23 = int_to_ptr.hbm [resolvable:$true] %s348_s23 }
  0x11   : > { %p14241_p10 = pnand %p11656_p7, %p337_p8  ;;  %s14118_s24 = smov [#allocation4]  }
  0x12   : > { %s350_s30 = sshll.u32 %s14118_s24, 4  ;;  %s365_s17 = sshll.u32 %s18555_s3, 4  ;;  %s351_s30 = int_to_ptr.vmem [resolvable:$true] %s350_s30  ;;  %s366_s17 = int_to_ptr.hbm [resolvable:$true] %s365_s17 }
  0x13   : > { %p13925_p11 = pneg %p14241_p10  ;;  %s14119_s27 = smov 64  }
  0x14   : > { %s14120_s14 = smov 4   ;;  %s14121_s19 = smov [#allocation7]  }
  0x15   : > { %p13926_p12 = pnand %p13936_p9, %p13925_p11  ;;  %s367_s21 = sshll.u32 %s14121_s19, 4  ;;  %s368_s21 = int_to_ptr.vmem [resolvable:$true] %s367_s21 }
  0x16   : > { %418 = sbr.rel (%p14241_p10) target bundleno = 3612 (0xe1c), region = 72 }
  0x17   : > { %13928 = dma.hbm_to_vmem [thread:$0]  (!%p13926_p12), %s349_s23, 9216, %s351_s30, [#allocation5], %s14119_s27, %s14119_s27, %s14120_s14  }
  0x18   : > { %13931 = dma.hbm_to_vmem [thread:$0]  (!%p13926_p12), %s366_s17, 9216, %s368_s21, [#allocation8], %s14119_s27, %s14119_s27, %s14120_s14  }
  0x1b   : > { %14091 = dma.done.wait (%p13936_p9), [#allocation5], 9216  }
  0x1c   : > { %14093 = vsyncadd (%p13936_p9), [#allocation5], 4294958080 }
  0x1d   : > { %14095 = dma.done.wait (%p13936_p9), [#allocation8], 9216  }
  0x1e   : > { %14097 = vsyncadd (%p13936_p9), [#allocation8], 4294958080  ;;  %p467_p13 = scmp.lt.s32.totalorder %s14213_s29, 1  ;;  %v13537_v0 = vld [vmem:[#allocation4 + $0x78] sm:$0xff]  ;;  %v13536_v1 = vld [vmem:[#allocation4 + $0x70] sm:$0xff]  ;;  %s465_s17 = sand.u32 1, %s14108_s26  }
  0x1f   : > { %757 = vmatpush.bf16.msra.mxu0 %v13537_v0  ;;  %13890 = vmatpush.bf16.msra.mxu1 %v13537_v0  ;;  %v13535_v8 = vld [vmem:[#allocation4 + $0x68] sm:$0xff]  ;;  %v13534_v13 = vld [vmem:[#allocation4 + $0x60] sm:$0xff]  ;;  %v13533_v17 = vld [vmem:[#allocation4 + $0x58] sm:$0xff]  ;;  %s11574_s23 = scalar_lea.hbm %s18565_s13, %s14213_s29  ;;  %s466_s15 = scalar_lea.vmem [#allocation9], %s465_s17 }
  0x20   : > { %s468_s19 = scalar_select %p467_p13, %s14213_s29, 1  ;;  %13891 = vmatpush.bf16.msra.mxu2 %v13537_v0  ;;  %13892 = vmatpush.bf16.msra.mxu3 %v13537_v0  ;;  %v13532_v23 = vld [vmem:[#allocation4 + $0x50] sm:$0xff]  ;;  %v13531_v28 = vld [vmem:[#allocation4 + $0x48] sm:$0xff]  ;;  %v13530_v31 = vld [vmem:[#allocation4 + $0x40] sm:$0xff] }
  0x21   : > { %v13529_v44 = vld [vmem:[#allocation4 + $0x38] sm:$0xff]  ;;  %v13552_v54 = vld [vmem:[#allocation4 + $0xf0] sm:$0xff]  ;;  %v13551_v60 = vld [vmem:[#allocation4 + $0xe8] sm:$0xff]  ;;  %s11576_s16 = sshll.u32 %s466_s15, 4  ;;  %s11578_s21 = sshll.u32 %s11574_s23, 4  ;;  %s11577_s16 = int_to_ptr.vmem [resolvable:$true] %s11576_s16  ;;  %s11579_s21 = int_to_ptr.hbm [resolvable:$true] %s11578_s21 }
  0x22   : > { %s13914_s27 = smul.u32 432, %s468_s19  ;;  %v13553_v45 = vld [vmem:[#allocation4 + $0xf8] sm:$0xff]  ;;  %v13528_v55 = vld [vmem:[#allocation4 + $0x30] sm:$0xff]  ;;  %v13527_v61 = vld [vmem:[#allocation4 + $0x28] sm:$0xff]  ;;  %s11566_s19 = scalar_lea.sflag [#allocation6], %s465_s17 }
  0x23   : > { %758 = vmatpush.bf16.msra.mxu0 %v13536_v1  ;;  %13893 = vmatpush.bf16.msra.mxu1 %v13536_v1  ;;  %v13550_v62 = vld [vmem:[#allocation4 + $0xe0] sm:$0xff]  ;;  %s14066_s22 = scalar_lea.hbm %s18565_s13, 2 }
  0x24   : > { %s14270_s20 = scalar_lea.vmem %s18552_s0, %s13914_s27  ;;  %13894 = vmatpush.bf16.msra.mxu2 %v13536_v1  ;;  %13895 = vmatpush.bf16.msra.mxu3 %v13536_v1  ;;  %v13526_v63 = vld [vmem:[#allocation4 + $0x20] sm:$0xff]  ;;  %s14060_s27 = sshra.s32 %s11579_s21, 4  ;;  %s14061_s27 = int_to_ptr.hbm [resolvable:$true] %s14060_s27 }
  0x25   : > { %v14273_v2 = vld [vmem:[%s14270_s20] sm:$0xff]  ;;  %v14276_v3 = vld [vmem:[%s14270_s20 + $0x8] sm:$0xff]  ;;  %v474_v4 = vld [vmem:[%s14270_s20 + $0x10] sm:$0x3]  ;;  %s14062_s14 = scalar_lea.hbm %s14061_s27, 1  ;;  %p14067_p3 = scmp.lt.s32.totalorder %s14061_s27, %s18565_s13 }
  0x26   : > { %526 = vst [vmem:[#allocation2] sm:$0xff] %v14273_v2  ;;  %v14281_v5 = vld [vmem:[%s14270_s20 + $0x78] sm:$0xff]  ;;  %v14285_v6 = vld [vmem:[%s14270_s20 + $0x80] sm:$0xff]  ;;  %v489_v7 = vld [vmem:[%s14270_s20 + $0x88] sm:$0x3]  ;;  %p14063_p0 = scmp.ne.s32.totalorder %s14061_s27, %s14062_s14  ;;  %p14068_p4 = scmp.lt.s32.totalorder %s14066_s22, %s14062_s14 }
  0x27   : > { %527 = vst [vmem:[#allocation2 + $0x8] sm:$0xff] %v14276_v3  ;;  %v14290_v9 = vld [vmem:[%s14270_s20 + $0xd8] sm:$0xff]  ;;  %v14294_v10 = vld [vmem:[%s14270_s20 + $0xe0] sm:$0xff]  ;;  %v501_v11 = vld [vmem:[%s14270_s20 + $0xe8] sm:$0x3]  ;;  %759 = vmatpush.bf16.msra.mxu0 %v13535_v8  ;;  %13896 = vmatpush.bf16.msra.mxu1 %v13535_v8 }
  0x28   : > { %528 = vst [vmem:[#allocation2 + $0x10] sm:$0x3] %v474_v4  ;;  %v514_v12 = vld [vmem:[%s14270_s20 + $0x150] sm:$0xff]  ;;  %v515_v14 = vld [vmem:[%s14270_s20 + $0x158] sm:$0xff]  ;;  %13897 = vmatpush.bf16.msra.mxu2 %v13535_v8  ;;  %13898 = vmatpush.bf16.msra.mxu3 %v13535_v8  ;;  %v516_v15 = vld [vmem:[%s14270_s20 + $0x160] sm:$0x3]  ;;  %p14064_p1 = pnand %p14063_p0, %p14230_p5  ;;  %p14069_p7 = por %p14068_p4, %p14067_p3 }
  0x29   : > { %541 = vst [vmem:[#allocation2 + $0x78] sm:$0xff] %v14281_v5  ;;  %v14303_v16 = vld [vmem:[%s14270_s20 + $0x18] sm:$0xff]  ;;  %v14306_v18 = vld [vmem:[%s14270_s20 + $0x20] sm:$0xff]  ;;  %v477_v19 = vld [vmem:[%s14270_s20 + $0x28] sm:$0x3] }
  0x2a   : > { %542 = vst [vmem:[#allocation2 + $0x80] sm:$0xff] %v14285_v6  ;;  %v14311_v20 = vld [vmem:[%s14270_s20 + $0x90] sm:$0xff]  ;;  %v14315_v21 = vld [vmem:[%s14270_s20 + $0x98] sm:$0xff]  ;;  %v492_v22 = vld [vmem:[%s14270_s20 + $0xa0] sm:$0x3]  ;;  %p14065_p2 = pneg %p14064_p1 }
  0x2b   : > { %543 = vst [vmem:[#allocation2 + $0x88] sm:$0x3] %v489_v7  ;;  %760 = vmatpush.bf16.msra.mxu0 %v13534_v13  ;;  %13899 = vmatpush.bf16.msra.mxu1 %v13534_v13  ;;  %v14320_v24 = vld [vmem:[%s14270_s20 + $0xf0] sm:$0xff]  ;;  %v14324_v25 = vld [vmem:[%s14270_s20 + $0xf8] sm:$0xff]  ;;  %v504_v26 = vld [vmem:[%s14270_s20 + $0x100] sm:$0x3] }
  0x2c   : > { %553 = vst [vmem:[#allocation2 + $0xd8] sm:$0xff] %v14290_v9  ;;  %13900 = vmatpush.bf16.msra.mxu2 %v13534_v13  ;;  %13901 = vmatpush.bf16.msra.mxu3 %v13534_v13  ;;  %v517_v27 = vld [vmem:[%s14270_s20 + $0x168] sm:$0xff]  ;;  %v518_v29 = vld [vmem:[%s14270_s20 + $0x170] sm:$0xff]  ;;  %v519_v30 = vld [vmem:[%s14270_s20 + $0x178] sm:$0x3]  ;;  %p14070_p8 = pnand %p14069_p7, %p14065_p2 }
  0x2d   : > { %554 = vst [vmem:[#allocation2 + $0xe0] sm:$0xff] %v14294_v10  ;;  %v14333_v34 = vld [vmem:[%s14270_s20 + $0x30] sm:$0xff]  ;;  %v14336_v37 = vld [vmem:[%s14270_s20 + $0x38] sm:$0xff]  ;;  %v480_v40 = vld [vmem:[%s14270_s20 + $0x40] sm:$0x3] }
  0x2e   : > { %555 = vst [vmem:[#allocation2 + $0xe8] sm:$0x3] %v501_v11  ;;  %v644_v32 = vld [vmem:[#allocation2 + $0x1] sm:$0xff]  ;;  %v14345_v46 = vld [vmem:[%s14270_s20 + $0xb0] sm:$0xff]  ;;  %v495_v49 = vld [vmem:[%s14270_s20 + $0xb8] sm:$0x3] }
  0x2f   : > { %568 = vst [vmem:[#allocation2 + $0x150] sm:$0xff] %v514_v12  ;;  %761 = vmatpush.bf16.msra.mxu0 %v13533_v17  ;;  %13902 = vmatpush.bf16.msra.mxu1 %v13533_v17  ;;  %v645_v33 = vld [vmem:[#allocation2 + $0x9] sm:$0xff]  ;;  %v507_v56 = vld [vmem:[%s14270_s20 + $0x118] sm:$0x3]  ;;  %v14375_v0 = vld [vmem:[%s14270_s20 + $0xc0] sm:$0xff] }
  0x30   : > { %569 = vst [vmem:[#allocation2 + $0x158] sm:$0xff] %v515_v14  ;;  %13903 = vmatpush.bf16.msra.mxu2 %v13533_v17  ;;  %13904 = vmatpush.bf16.msra.mxu3 %v13533_v17  ;;  %v14341_v43 = vld [vmem:[%s14270_s20 + $0xa8] sm:$0xff]  ;;  %v676_v47 = vpack.c.bf16 %v645_v33, %v644_v32  ;;  %v14358_v53 = vld [vmem:[%s14270_s20 + $0x110] sm:$0xff]  ;;  %v483_v59 = vld [vmem:[%s14270_s20 + $0x58] sm:$0x3] }
  0x31   : > { %570 = vst [vmem:[#allocation2 + $0x160] sm:$0x3] %v516_v15  ;;  %v654_v35 = vld [vmem:[#allocation2 + $0x79] sm:$0xff]  ;;  %v14354_v52 = vld [vmem:[%s14270_s20 + $0x108] sm:$0xff]  ;;  %v14369_v58 = vld [vmem:[%s14270_s20 + $0x50] sm:$0xff] }
  0x32   : > { %529 = vst [vmem:[#allocation2 + $0x18] sm:$0xff] %v14303_v16  ;;  %v655_v36 = vld [vmem:[#allocation2 + $0x81] sm:$0xff]  ;;  %v498_v7 = vld [vmem:[%s14270_s20 + $0xd0] sm:$0x3] }
  0x33   : > { %530 = vst [vmem:[#allocation2 + $0x20] sm:$0xff] %v14306_v18  ;;  %762 = vmatpush.bf16.msra.mxu0 %v13532_v23  ;;  %13905 = vmatpush.bf16.msra.mxu1 %v13532_v23  ;;  %v14347_v48 = vpack.c.bf16 %v655_v36, %v654_v35  ;;  %v14366_v57 = vld [vmem:[%s14270_s20 + $0x48] sm:$0xff]  ;;  %v14383_v8 = vld [vmem:[%s14270_s20 + $0x120] sm:$0xff]  ;;  %v510_v17 = vld [vmem:[%s14270_s20 + $0x130] sm:$0x3] }
  0x34   : > { %531 = vst [vmem:[#allocation2 + $0x28] sm:$0x3] %v477_v19  ;;  %13906 = vmatpush.bf16.msra.mxu2 %v13532_v23  ;;  %13907 = vmatpush.bf16.msra.mxu3 %v13532_v23  ;;  %v662_v38 = vld [vmem:[#allocation2 + $0xd9] sm:$0xff]  ;;  %v14378_v1 = vld [vmem:[%s14270_s20 + $0xc8] sm:$0xff] }
  0x35   : > { %544 = vst [vmem:[#allocation2 + $0x90] sm:$0xff] %v14311_v20  ;;  %v663_v39 = vld [vmem:[#allocation2 + $0xe1] sm:$0xff] }
  0x36   : > { %545 = vst [vmem:[#allocation2 + $0x98] sm:$0xff] %v14315_v21  ;;  %v14350_v50 = vpack.c.bf16 %v663_v39, %v662_v38  ;;  %v14387_v13 = vld [vmem:[%s14270_s20 + $0x128] sm:$0xff]  ;;  %v13548_v32 = vld [vmem:[#allocation4 + $0xd0] sm:$0xff] }
  0x37   : > { %546 = vst [vmem:[#allocation2 + $0xa0] sm:$0x3] %v492_v22  ;;  %763 = vmatpush.bf16.msra.mxu0 %v13531_v28  ;;  %13908 = vmatpush.bf16.msra.mxu1 %v13531_v28  ;;  %v672_v41 = vld [vmem:[#allocation2 + $0x151] sm:$0xff]  ;;  %v13524_v33 = vld [vmem:[#allocation4 + $0x10] sm:$0xff]  ;;  %v13545_v35 = vld [vmem:[#allocation4 + $0xb8] sm:$0xff] }
  0x38   : > { %556 = vst [vmem:[#allocation2 + $0xf0] sm:$0xff] %v14320_v24  ;;  %13909 = vmatpush.bf16.msra.mxu2 %v13531_v28  ;;  %13910 = vmatpush.bf16.msra.mxu3 %v13531_v28  ;;  %v673_v42 = vld [vmem:[#allocation2 + $0x159] sm:$0xff]  ;;  %v13561_v36 = vld [vmem:[#allocation4 + $0x138] sm:$0xff] }
  0x39   : > { %557 = vst [vmem:[#allocation2 + $0xf8] sm:$0xff] %v14324_v25  ;;  %v690_v51 = vpack.c.bf16 %v673_v42, %v672_v41  ;;  %v13544_v38 = vld [vmem:[#allocation4 + $0xb0] sm:$0xff]  ;;  %v13523_v41 = vld [vmem:[#allocation4 + $0x8] sm:$0xff] }
  0x3a   : > { %558 = vst [vmem:[#allocation2 + $0x100] sm:$0x3] %v504_v26  ;;  %v646_v4 = vld [vmem:[#allocation2 + $0x19] sm:$0xff]  ;;  %v13549_v26 = vld [vmem:[#allocation4 + $0xd8] sm:$0xff] }
  0x3b   : > { %571 = vst [vmem:[#allocation2 + $0x168] sm:$0xff] %v517_v27  ;;  %764 = vmatpush.bf16.msra.mxu0 %v13530_v31  ;;  %13911 = vmatpush.bf16.msra.mxu1 %v13530_v31  ;;  %v647_v11 = vld [vmem:[#allocation2 + $0x21] sm:$0xff] }
  0x3c   : > { %572 = vst [vmem:[#allocation2 + $0x170] sm:$0xff] %v518_v29  ;;  %13912 = vmatpush.bf16.msra.mxu2 %v13530_v31  ;;  %13913 = vmatpush.bf16.msra.mxu3 %v13530_v31  ;;  %v13525_v27 = vld [vmem:[#allocation4 + $0x18] sm:$0xff]  ;;  %v14392_v28 = vpack.c.bf16 %v647_v11, %v646_v4  ;;  %v13560_v39 = vld [vmem:[#allocation4 + $0x130] sm:$0xff]  ;;  %v13542_v11 = vld [vmem:[#allocation4 + $0xa0] sm:$0xff] }
  0x3d   : > { %573 = vst [vmem:[#allocation2 + $0x178] sm:$0x3] %v519_v30  ;;  %v656_v12 = vld [vmem:[#allocation2 + $0x91] sm:$0xff]  ;;  %v14402_v42 = vld [vmem:[%s14270_s20 + $0x60] sm:$0xff] }
  0x3e   : > { %532 = vst [vmem:[#allocation2 + $0x30] sm:$0xff] %v14333_v34  ;;  %765 = vmatmul.bf16.vlgmr.msra.gmra.mxu0 %v676_v47  ;;  %790 = vmatmul.bf16.vlgmr.msra.gmra.mxu1 %v14347_v48  ;;  %v657_v14 = vld [vmem:[#allocation2 + $0x99] sm:$0xff]  ;;  %v486_v47 = vld [vmem:[%s14270_s20 + $0x70] sm:$0x3] }
  0x3f   : > { %533 = vst [vmem:[#allocation2 + $0x38] sm:$0xff] %v14336_v37  ;;  %894 = vmatpush.bf16.msrb.mxu1 %v13529_v44  ;;  %810 = vmatmul.bf16.vlgmr.msra.gmra.mxu2 %v14350_v50  ;;  %v14394_v29 = vpack.c.bf16 %v657_v14, %v656_v12  ;;  %v14405_v44 = vld [vmem:[%s14270_s20 + $0x68] sm:$0xff]  ;;  %v13558_v12 = vld [vmem:[#allocation4 + $0x120] sm:$0xff] }
  0x40   : > { %534 = vst [vmem:[#allocation2 + $0x40] sm:$0x3] %v480_v40  ;;  %1331 = vmatpush.bf16.msrb.mxu3 %v13553_v45  ;;  %v664_v15 = vld [vmem:[#allocation2 + $0xf1] sm:$0xff]  ;;  %1096 = vmatpush.bf16.msrb.mxu2 %v13545_v35 }
  0x41   : > { %547 = vst [vmem:[#allocation2 + $0xa8] sm:$0xff] %v14341_v43  ;;  %835 = vmatmul.bf16.vlgmr.msra.gmra.mxu3 %v690_v51  ;;  %v665_v19 = vld [vmem:[#allocation2 + $0xf9] sm:$0xff]  ;;  %1565 = vmatpush.bf16.msrb.mxu0 %v13561_v36 }
  0x42   : > { %548 = vst [vmem:[#allocation2 + $0xb0] sm:$0xff] %v14345_v46  ;;  %v14396_v30 = vpack.c.bf16 %v665_v19, %v664_v15  ;;  %v13547_v40 = vld [vmem:[#allocation4 + $0xc8] sm:$0xff]  ;;  %v1250_v19 = vpack.c.bf16 %v14306_v18, %v14303_v16 }
  0x43   : > { %549 = vst [vmem:[#allocation2 + $0xb8] sm:$0x3] %v495_v49  ;;  %895 = vmatpush.bf16.msrb.mxu1 %v13528_v55  ;;  %v674_v22 = vld [vmem:[#allocation2 + $0x169] sm:$0xff]  ;;  %v13543_v45 = vld [vmem:[#allocation4 + $0xa8] sm:$0xff] }
  0x44   : > { %559 = vst [vmem:[#allocation2 + $0x108] sm:$0xff] %v14354_v52  ;;  %1332 = vmatpush.bf16.msrb.mxu3 %v13552_v54  ;;  %v675_v23 = vld [vmem:[#allocation2 + $0x171] sm:$0xff]  ;;  %1097 = vmatpush.bf16.msrb.mxu2 %v13544_v38  ;;  %v14414_v54 = vld [vmem:[%s14270_s20 + $0x140] sm:$0xff] }
  0x45   : > { %560 = vst [vmem:[#allocation2 + $0x110] sm:$0xff] %v14358_v53  ;;  %v691_v31 = vpack.c.bf16 %v675_v23, %v674_v22  ;;  %1566 = vmatpush.bf16.msrb.mxu0 %v13560_v39  ;;  %v13559_v49 = vld [vmem:[#allocation4 + $0x128] sm:$0xff]  ;;  %v13546_v55 = vld [vmem:[#allocation4 + $0xc0] sm:$0xff]  ;;  %v612_v22 = vpack.c.bf16 %v14276_v3, %v14273_v2  ;;  %v13541_v23 = vld [vmem:[#allocation4 + $0x98] sm:$0xff] }
  0x46   : > { %561 = vst [vmem:[#allocation2 + $0x118] sm:$0x3] %v507_v56  ;;  %v14411_v51 = vld [vmem:[%s14270_s20 + $0x138] sm:$0xff]  ;;  %v13522_v56 = vld [vmem:[#allocation4] sm:$0xff] }
  0x47   : > { %535 = vst [vmem:[#allocation2 + $0x48] sm:$0xff] %v14366_v57  ;;  %896 = vmatpush.bf16.msrb.mxu1 %v13527_v61  ;;  %v649_v61 = vld [vmem:[#allocation2 + $0x39] sm:$0xff]  ;;  %v13538_v39 = vld [vmem:[#allocation4 + $0x80] sm:$0xff] }
  0x48   : > { %536 = vst [vmem:[#allocation2 + $0x50] sm:$0xff] %v14369_v58  ;;  %1333 = vmatpush.bf16.msrb.mxu3 %v13551_v60  ;;  %v648_v60 = vld [vmem:[#allocation2 + $0x31] sm:$0xff]  ;;  %1098 = vmatpush.bf16.msrb.mxu2 %v13543_v45 }
  0x49   : > { %537 = vst [vmem:[#allocation2 + $0x58] sm:$0x3] %v483_v59  ;;  %v513_v59 = vld [vmem:[%s14270_s20 + $0x148] sm:$0x3]  ;;  %1567 = vmatpush.bf16.msrb.mxu0 %v13559_v49  ;;  %v14419_v14 = vpack.c.bf16 %v649_v61, %v648_v60  ;;  %v13539_v16 = vld [vmem:[#allocation4 + $0x88] sm:$0xff]  ;;  %v1251_v49 = vpack.c.bf16 %v14336_v37, %v14333_v34  ;;  %v13568_v34 = vld [vmem:[#allocation4 + $0x170] sm:$0xff] }
  0x4a   : > { %550 = vst [vmem:[#allocation2 + $0xc0] sm:$0xff] %v14375_v0  ;;  %v13555_v18 = vld [vmem:[#allocation4 + $0x108] sm:$0xff]  ;;  %v983_v37 = vld [vmem:[#allocation2 + $0x2] sm:$0xff] }
  0x4b   : > { %551 = vst [vmem:[#allocation2 + $0xc8] sm:$0xff] %v14378_v1  ;;  %897 = vmatpush.bf16.msrb.mxu1 %v13526_v63  ;;  %v659_v63 = vld [vmem:[#allocation2 + $0xb1] sm:$0xff] }
  0x4c   : > { %552 = vst [vmem:[#allocation2 + $0xd0] sm:$0x3] %v498_v7  ;;  %1334 = vmatpush.bf16.msrb.mxu3 %v13550_v62  ;;  %v658_v62 = vld [vmem:[#allocation2 + $0xa9] sm:$0xff]  ;;  %1099 = vmatpush.bf16.msrb.mxu2 %v13542_v11  ;;  %v1253_v11 = vpack.c.bf16 %v14405_v44, %v14402_v42 }
  0x4d   : > { %562 = vst [vmem:[#allocation2 + $0x120] sm:$0xff] %v14383_v8  ;;  %v666_v4 = vld [vmem:[#allocation2 + $0x109] sm:$0xff]  ;;  %v667_v7 = vld [vmem:[#allocation2 + $0x111] sm:$0xff]  ;;  %v14421_v15 = vpack.c.bf16 %v659_v63, %v658_v62  ;;  %1568 = vmatpush.bf16.msrb.mxu0 %v13558_v12  ;;  %v1252_v63 = vpack.c.bf16 %v14369_v58, %v14366_v57  ;;  %v985_v12 = vld [vmem:[#allocation2 + $0x1a] sm:$0xff] }
  0x4e   : > { %563 = vst [vmem:[#allocation2 + $0x128] sm:$0xff] %v14387_v13  ;;  %770 = vmatmul.bf16.gmra.mxu0 %v14392_v28  ;;  %795 = vmatmul.bf16.gmra.mxu1 %v14394_v29  ;;  %v986_v57 = vld [vmem:[#allocation2 + $0x22] sm:$0xff] }
  0x4f   : > { %564 = vst [vmem:[#allocation2 + $0x130] sm:$0x3] %v510_v17  ;;  %898 = vmatpush.bf16.msrb.mxu1 %v13525_v27  ;;  %815 = vmatmul.bf16.gmra.mxu2 %v14396_v30  ;;  %v14423_v17 = vpack.c.bf16 %v667_v7, %v666_v4  ;;  %v13569_v27 = vld [vmem:[#allocation4 + $0x178] sm:$0xff]  ;;  %v14448_v58 = vpack.c.bf16 %v986_v57, %v985_v12 }
  0x50   : > { %1335 = vmatpush.bf16.msrb.mxu3 %v13549_v26  ;;  %538 = vst [vmem:[#allocation2 + $0x60] sm:$0xff] %v14402_v42  ;;  %v13557_v26 = vld [vmem:[#allocation4 + $0x118] sm:$0xff]  ;;  %1100 = vmatpush.bf16.msrb.mxu2 %v13541_v23  ;;  %v651_v3 = vld [vmem:[#allocation2 + $0x51] sm:$0xff] }
  0x51   : > { %840 = vmatmul.bf16.gmra.mxu3 %v691_v31  ;;  %539 = vst [vmem:[#allocation2 + $0x68] sm:$0xff] %v14405_v44  ;;  %1569 = vmatpush.bf16.msrb.mxu0 %v13557_v26  ;;  %v13540_v31 = vld [vmem:[#allocation4 + $0x90] sm:$0xff]  ;;  %v650_v2 = vld [vmem:[#allocation2 + $0x49] sm:$0xff]  ;;  %v13567_v23 = vld [vmem:[#allocation4 + $0x168] sm:$0xff] }
  0x52   : > { %540 = vst [vmem:[#allocation2 + $0x70] sm:$0x3] %v486_v47  ;;  %v984_v4 = vld [vmem:[#allocation2 + $0xa] sm:$0xff]  ;;  %v987_v42 = vld [vmem:[#allocation2 + $0x32] sm:$0xff]  ;;  %v988_v44 = vld [vmem:[#allocation2 + $0x3a] sm:$0xff] }
  0x53   : > { %899 = vmatpush.bf16.msrb.mxu1 %v13524_v33  ;;  %565 = vst [vmem:[#allocation2 + $0x138] sm:$0xff] %v14411_v51  ;;  %v660_v33 = vld [vmem:[#allocation2 + $0xc1] sm:$0xff]  ;;  %v661_v35 = vld [vmem:[#allocation2 + $0xc9] sm:$0xff]  ;;  %v1015_v7 = vpack.c.bf16 %v984_v4, %v983_v37  ;;  %v1258_v37 = vpack.c.bf16 %v14294_v10, %v14290_v9 }
  0x54   : > { %1336 = vmatpush.bf16.msrb.mxu3 %v13548_v32  ;;  %566 = vst [vmem:[#allocation2 + $0x140] sm:$0xff] %v14414_v54  ;;  %v13556_v32 = vld [vmem:[#allocation4 + $0x110] sm:$0xff]  ;;  %1101 = vmatpush.bf16.msrb.mxu2 %v13540_v31  ;;  %v14432_v45 = vpack.c.bf16 %v661_v35, %v660_v33  ;;  %v1256_v31 = vpack.c.bf16 %v14345_v46, %v14341_v43  ;;  %v13565_v4 = vld [vmem:[#allocation4 + $0x158] sm:$0xff] }
  0x55   : > { %567 = vst [vmem:[#allocation2 + $0x148] sm:$0x3] %v513_v59  ;;  %1570 = vmatpush.bf16.msrb.mxu0 %v13556_v32  ;;  %v668_v36 = vld [vmem:[#allocation2 + $0x121] sm:$0xff] }
  0x56   : > { %v669_v38 = vld [vmem:[#allocation2 + $0x129] sm:$0xff] }
  0x57   : > { %900 = vmatpush.bf16.msrb.mxu1 %v13523_v41  ;;  %v679_v41 = vpack.c.bf16 %v651_v3, %v650_v2  ;;  %v14434_v47 = vpack.c.bf16 %v669_v38, %v668_v36  ;;  %v14483_v38 = vpack.c.bf16 %v14378_v1, %v14375_v0  ;;  %v13593_v0 = vld [vmem:[#allocation4 + $0x238] sm:$0xff]  ;;  %v993_v1 = vld [vmem:[#allocation2 + $0x7a] sm:$0xff] }
  0x58   : > { %1337 = vmatpush.bf16.msrb.mxu3 %v13547_v40  ;;  %1102 = vmatpush.bf16.msrb.mxu2 %v13539_v16  ;;  %v13554_v40 = vld [vmem:[#allocation4 + $0x100] sm:$0xff]  ;;  %v991_v2 = vld [vmem:[#allocation2 + $0x62] sm:$0xff] }
  0x59   : > { %1571 = vmatpush.bf16.msrb.mxu0 %v13555_v18  ;;  %v992_v3 = vld [vmem:[#allocation2 + $0x6a] sm:$0xff] }
  0x5a   : > { %v1019_v36 = vpack.c.bf16 %v992_v3, %v991_v2 }
  0x5b   : > { %901 = vmatpush.bf16.msrb.mxu1 %v13522_v56  ;;  %v653_v56 = vld [vmem:[#allocation2 + $0x69] sm:$0xff]  ;;  %v670_v59 = vld [vmem:[#allocation2 + $0x139] sm:$0xff] }
  0x5c   : > { %1338 = vmatpush.bf16.msrb.mxu3 %v13546_v55  ;;  %1103 = vmatpush.bf16.msrb.mxu2 %v13538_v39  ;;  %v652_v55 = vld [vmem:[#allocation2 + $0x61] sm:$0xff] }
  0x5d   : > { %1572 = vmatpush.bf16.msrb.mxu0 %v13554_v40  ;;  %v671_v60 = vld [vmem:[#allocation2 + $0x141] sm:$0xff]  ;;  %v680_v61 = vpack.c.bf16 %v653_v56, %v652_v55 }
  0x5e   : > { %775 = vmatmul.bf16.gmra.mxu0 %v14419_v14  ;;  %800 = vmatmul.bf16.gmra.mxu1 %v14421_v15  ;;  %v14440_v62 = vpack.c.bf16 %v671_v60, %v670_v59  ;;  %v13577_v39 = vld [vmem:[#allocation4 + $0x1b8] sm:$0xff] }
  0x5f   : > { %820 = vmatmul.bf16.gmra.mxu2 %v14423_v17  ;;  %1799 = vmatpush.bf16.msra.mxu1 %v13569_v27  ;;  %v13585_v40 = vld [vmem:[#allocation4 + $0x1f8] sm:$0xff] }
  0x60   : > { %2034 = vmatpush.bf16.msra.mxu2 %v13577_v39  ;;  %2268 = vmatpush.bf16.msra.mxu3 %v13585_v40  ;;  %v994_v59 = vld [vmem:[#allocation2 + $0x82] sm:$0xff] }
  0x61   : > { %1339 = vmatmul.bf16.vlgmr.msrb.gmra.mxu3 %v1250_v19  ;;  %2502 = vmatpush.bf16.msra.mxu0 %v13593_v0 }
  0x63   : > { %1800 = vmatpush.bf16.msra.mxu1 %v13568_v34  ;;  %v1020_v34 = vpack.c.bf16 %v994_v59, %v993_v1  ;;  %v14544_v1 = vpack.c.bf16 %v14358_v53, %v14354_v52  ;;  %v999_v53 = vld [vmem:[#allocation2 + $0xc2] sm:$0xff] }
  0x67   : > { %1801 = vmatpush.bf16.msra.mxu1 %v13567_v23  ;;  %v996_v23 = vld [vmem:[#allocation2 + $0x9a] sm:$0xff] }
  0x6e   : > { %780 = vmatmul.bf16.gmra.mxu0 %v679_v41  ;;  %805 = vmatmul.bf16.gmra.mxu1 %v14432_v45 }
  0x6f   : > { %825 = vmatmul.bf16.gmra.mxu2 %v14434_v47 }
  0x71   : > { %1344 = vmatmul.bf16.gmra.mxu3 %v1251_v49 }
  0x7e   : > { %785 = vmatmul.bf16.gmra.mxu0 %v680_v61  ;;  %902 = vmatmul.bf16.vlgmr.msrb.gmra.mxu1 %v612_v22  ;;  %v1254_v22 = vpack.c.bf16 %v14285_v6, %v14281_v5  ;;  %v989_v5 = vld [vmem:[#allocation2 + $0x4a] sm:$0xff]  ;;  %v990_v6 = vld [vmem:[#allocation2 + $0x52] sm:$0xff] }
  0x7f   : > { %830 = vmatmul.bf16.gmra.mxu2 %v14440_v62  ;;  %v1018_v27 = vpack.c.bf16 %v990_v6, %v989_v5  ;;  %v13576_v5 = vld [vmem:[#allocation4 + $0x1b0] sm:$0xff] }
  0x80   : > { %v13584_v6 = vld [vmem:[#allocation4 + $0x1f0] sm:$0xff]  ;;  %2035 = vmatpush.bf16.msra.mxu2 %v13576_v5 }
  0x81   : > { %1349 = vmatmul.bf16.gmra.mxu3 %v1252_v63 }
  0x82   : > { %2269 = vmatpush.bf16.msra.mxu3 %v13584_v6 }
  0x8e   : > { %907 = vmatmul.bf16.gmra.mxu1 %v1250_v19  ;;  %1573 = vmatmul.bf16.vlgmr.msrb.gmra.mxu0 %v14392_v28  ;;  %v14454_v28 = vpack.c.bf16 %v988_v44, %v987_v42  ;;  %v1255_v19 = vpack.c.bf16 %v14315_v21, %v14311_v20  ;;  %v13566_v20 = vld [vmem:[#allocation4 + $0x160] sm:$0xff] }
  0x8f   : > { %1104 = vmatmul.bf16.vlgmr.msrb.gmra.mxu2 %v1015_v7  ;;  %1802 = vmatpush.bf16.msra.mxu1 %v13566_v20 }
  0x91   : > { %1354 = vmatmul.bf16.gmra.mxu3 %v1253_v11 }
  0x93   : > { %1803 = vmatpush.bf16.msra.mxu1 %v13565_v4 }
  0x9e   : > { %912 = vmatmul.bf16.gmra.mxu1 %v1251_v49  ;;  %1578 = vmatmul.bf16.gmra.mxu0 %v14419_v14 }
  0x9f   : > { %1109 = vmatmul.bf16.gmra.mxu2 %v14448_v58 }
  0xa1   : > { %1359 = vmatmul.bf16.gmra.mxu3 %v1254_v22 }
  0xae   : > { %917 = vmatmul.bf16.gmra.mxu1 %v1252_v63  ;;  %1583 = vmatmul.bf16.gmra.mxu0 %v679_v41 }
  0xaf   : > { %1114 = vmatmul.bf16.gmra.mxu2 %v14454_v28 }
  0xb1   : > { %1364 = vmatmul.bf16.gmra.mxu3 %v1255_v19 }
  0xbb   : > { %v14459_v14 = vpop.f32.mrf.mxu0  ;;  %v14461_v26 = vpop.f32.mrf.mxu1 }
  0xbe   : > { %922 = vmatmul.bf16.gmra.mxu1 %v1253_v11  ;;  %1588 = vmatmul.bf16.gmra.mxu0 %v680_v61 }
  0xbf   : > { %1119 = vmatmul.bf16.gmra.mxu2 %v1018_v27 }
  0xc1   : > { %1369 = vmatmul.bf16.gmra.mxu3 %v1256_v31 }
  0xc2   : > { %v14465_v21 = vpop.f32.mrf.mxu2 }
  0xc3   : > { %v14469_v16 = vpop.f32.mrf.mxu0  ;;  %v14471_v18 = vpop.f32.mrf.mxu1 }
  0xc4   : > { %v14467_v32 = vpop.f32.mrf.mxu3 }
  0xca   : > { %v14473_v33 = vpop.f32.mrf.mxu2 }
  0xcb   : > { %v14477_v43 = vpop.f32.mrf.mxu0  ;;  %v14479_v46 = vpop.f32.mrf.mxu1 }
  0xcc   : > { %v14475_v35 = vpop.f32.mrf.mxu3 }
  0xcd   : > { %18650 = vst [vmem:[#allocation17_spill] sm:$0xff] %v14475_v35 }
  0xce   : > { %927 = vmatmul.bf16.gmra.mxu1 %v1254_v22  ;;  %1593 = vmatmul.bf16.gmra.mxu0 %v14347_v48  ;;  %v995_v22 = vld [vmem:[#allocation2 + $0x92] sm:$0xff] }
  0xcf   : > { %1124 = vmatmul.bf16.gmra.mxu2 %v1019_v36  ;;  %v1021_v44 = vpack.c.bf16 %v996_v23, %v995_v22 }
  0xd1   : > { %1374 = vmatmul.bf16.gmra.mxu3 %v14483_v38 }
  0xd2   : > { %v14487_v41 = vpop.f32.mrf.mxu2 }
  0xd3   : > { %v14491_v55 = vpop.f32.mrf.mxu0  ;;  %v14493_v56 = vpop.f32.mrf.mxu1 }
  0xd4   : > { %v14489_v49 = vpop.f32.mrf.mxu3 }
  0xd5   : > { %18651 = vst [vmem:[#allocation18_spill] sm:$0xff] %v14489_v49 }
  0xda   : > { %v14495_v48 = vpop.f32.mrf.mxu2 }
  0xdb   : > { %v14499_v61 = vpop.f32.mrf.mxu0  ;;  %v14501_v63 = vpop.f32.mrf.mxu1 }
  0xdc   : > { %v14497_v60 = vpop.f32.mrf.mxu3 }
  0xdd   : > { %18652 = vst [vmem:[#allocation19_spill] sm:$0xff] %v14497_v60 }
  0xde   : > { %932 = vmatmul.bf16.gmra.mxu1 %v1255_v19  ;;  %1598 = vmatmul.bf16.gmra.mxu0 %v14394_v29  ;;  %v14524_v19 = vpack.c.bf16 %v14324_v25, %v14320_v24  ;;  %v13592_v24 = vld [vmem:[#allocation4 + $0x230] sm:$0xff]  ;;  %v997_v25 = vld [vmem:[#allocation2 + $0xaa] sm:$0xff] }
  0xdf   : > { %1129 = vmatmul.bf16.gmra.mxu2 %v1020_v34  ;;  %2503 = vmatpush.bf16.msra.mxu0 %v13592_v24  ;;  %v13564_v34 = vld [vmem:[#allocation4 + $0x150] sm:$0xff] }
  0xe0   : > { %1804 = vmatpush.bf16.msra.mxu1 %v13564_v34 }
  0xe1   : > { %1379 = vmatmul.bf16.gmra.mxu3 %v1258_v37 }
  0xe2   : > { %v14506_v7 = vpop.f32.mrf.mxu2 }
  0xe3   : > { %v14510_v12 = vpop.f32.mrf.mxu0  ;;  %v14512_v57 = vpop.f32.mrf.mxu1 }
  0xe4   : > { %v14508_v11 = vpop.f32.mrf.mxu3 }
  0xea   : > { %v14514_v42 = vpop.f32.mrf.mxu2 }
  0xeb   : > { %v14518_v10 = vpop.f32.mrf.mxu0  ;;  %v14520_v29 = vpop.f32.mrf.mxu1 }
  0xec   : > { %v14516_v9 = vpop.f32.mrf.mxu3 }
  0xee   : > { %937 = vmatmul.bf16.gmra.mxu1 %v1256_v31  ;;  %1603 = vmatmul.bf16.gmra.mxu0 %v14421_v15  ;;  %v998_v31 = vld [vmem:[#allocation2 + $0xb2] sm:$0xff] }
  0xef   : > { %1134 = vmatmul.bf16.gmra.mxu2 %v1021_v44  ;;  %v1022_v0 = vpack.c.bf16 %v998_v31, %v997_v25  ;;  %v14563_v25 = vpack.c.bf16 %v14387_v13, %v14383_v8 }
  0xf1   : > { %1384 = vmatmul.bf16.gmra.mxu3 %v14524_v19 }
  0xf2   : > { %v14528_v27 = vpop.f32.mrf.mxu2 }
  0xf3   : > { %v14532_v2 = vpop.f32.mrf.mxu0  ;;  %v14534_v3 = vpop.f32.mrf.mxu1 }
  0xf4   : > { %v14530_v20 = vpop.f32.mrf.mxu3 }
  0xfa   : > { %v14536_v15 = vpop.f32.mrf.mxu2 }
  0xfb   : > { %v14540_v39 = vpop.f32.mrf.mxu0  ;;  %v903_v40 = vpop.f32.mrf.mxu1 }
  0xfc   : > { %v14538_v36 = vpop.f32.mrf.mxu3  ;;  %v904_v59 = vadd.f32 %v903_v40, %v14459_v14  ;;  %v1000_v14 = vld [vmem:[#allocation2 + $0xca] sm:$0xff]  ;;  %v13583_v40 = vld [vmem:[#allocation4 + $0x1e8] sm:$0xff] }
  0xfd   : > { %v1023_v24 = vpack.c.bf16 %v1000_v14, %v999_v53  ;;  %2270 = vmatpush.bf16.msra.mxu3 %v13583_v40 }
  0xfe   : > { %942 = vmatmul.bf16.gmra.mxu1 %v14483_v38  ;;  %1608 = vmatmul.bf16.gmra.mxu0 %v14432_v45 }
  0xff   : > { %1139 = vmatmul.bf16.gmra.mxu2 %v1022_v0 }
 0x101   : > { %1389 = vmatmul.bf16.gmra.mxu3 %v14544_v1 }
 0x102   : > { %v14550_v4 = vpop.f32.mrf.mxu2 }
 0x103   : > { %v14554_v23 = vpop.f32.mrf.mxu0  ;;  %v905_v44 = vpop.f32.mrf.mxu1 }
 0x104   : > { %v14552_v22 = vpop.f32.mrf.mxu3  ;;  %v906_v52 = vadd.f32 %v905_v44, %v14469_v16  ;;  %v13575_v16 = vld [vmem:[#allocation4 + $0x1a8] sm:$0xff] }
 0x105   : > { %2036 = vmatpush.bf16.msra.mxu2 %v13575_v16 }
 0x10a   : > { %v14557_v5 = vpop.f32.mrf.mxu2 }
 0x10b   : > { %v908_v45 = vpop.f32.mrf.mxu1  ;;  %v1574_v6 = vpop.f32.mrf.mxu0 }
 0x10c   : > { %v14559_v38 = vpop.f32.mrf.mxu3  ;;  %v909_v31 = vadd.f32 %v908_v45, %v14477_v43  ;;  %v13591_v43 = vld [vmem:[#allocation4 + $0x228] sm:$0xff]  ;;  %v1002_v45 = vld [vmem:[#allocation2 + $0xe2] sm:$0xff] }
 0x10d   : > { %2504 = vmatpush.bf16.msra.mxu0 %v13591_v43 }
 0x10e   : > { %947 = vmatmul.bf16.gmra.mxu1 %v1258_v37  ;;  %1613 = vmatmul.bf16.gmra.mxu0 %v14350_v50  ;;  %v1001_v37 = vld [vmem:[#allocation2 + $0xda] sm:$0xff] }
 0x10f   : > { %1144 = vmatmul.bf16.gmra.mxu2 %v1023_v24  ;;  %v1024_v35 = vpack.c.bf16 %v1002_v45, %v1001_v37  ;;  %v13582_v45 = vld [vmem:[#allocation4 + $0x1e0] sm:$0xff] }
 0x110   : > { %2271 = vmatpush.bf16.msra.mxu3 %v13582_v45  ;;  %v1006_v45 = vld [vmem:[#allocation2 + $0x112] sm:$0xff] }
 0x111   : > { %1394 = vmatmul.bf16.gmra.mxu3 %v14563_v25 }
 0x112   : > { %v1105_v0 = vpop.f32.mrf.mxu2 }
 0x113   : > { %v1185_v44 = vadd.f32 %v1105_v0, %v904_v59  ;;  %v910_v53 = vpop.f32.mrf.mxu1  ;;  %v1576_v14 = vpop.f32.mrf.mxu0  ;;  %v14578_v59 = vpack.c.bf16 %v14414_v54, %v14411_v51 }
 0x114   : > { %v14568_v34 = vpop.f32.mrf.mxu3  ;;  %v911_v8 = vadd.f32 %v910_v53, %v14491_v55 }
 0x115   : > { %v1420_v13 = vadd.f32 %v14508_v11, %v1185_v44 }
 0x117   : > { %v14572_v50 = vadd.f32 %v1574_v6, %v1420_v13  ;;  %v13563_v6 = vld [vmem:[#allocation4 + $0x148] sm:$0xff]  ;;  %v1244_v13 = vld [vmem:[#allocation2 + $0x150] sm:$0xff] }
 0x118   : > { %1805 = vmatpush.bf16.msra.mxu1 %v13563_v6  ;;  %v14603_v6 = vld [vmem:[%s14270_s20 + $0x188] sm:$0xff] }
 0x119   : > { %575 = vst [vmem:[#allocation2 + $0x188] sm:$0xff] %v14603_v6 }
 0x11a   : > { %v1107_v24 = vpop.f32.mrf.mxu2 }
 0x11b   : > { %v1186_v16 = vadd.f32 %v1107_v24, %v906_v52  ;;  %v913_v40 = vpop.f32.mrf.mxu1  ;;  %v1579_v49 = vpop.f32.mrf.mxu0 }
 0x11c   : > { %v14574_v60 = vpop.f32.mrf.mxu3  ;;  %v914_v55 = vadd.f32 %v913_v40, %v14499_v61 }
 0x11d   : > { %v1421_v11 = vadd.f32 %v14516_v9, %v1186_v16 }
 0x11e   : > { %952 = vmatmul.bf16.gmra.mxu1 %v14524_v19  ;;  %1618 = vmatmul.bf16.gmra.mxu0 %v14396_v30  ;;  %v1003_v19 = vld [vmem:[#allocation2 + $0xf2] sm:$0xff] }
 0x11f   : > { %1149 = vmatmul.bf16.gmra.mxu2 %v1024_v35  ;;  %v14585_v52 = vadd.f32 %v1576_v14, %v1421_v11  ;;  %v1004_v35 = vld [vmem:[#allocation2 + $0xfa] sm:$0xff] }
 0x120   : > { %v1245_v14 = vld [vmem:[#allocation2 + $0x158] sm:$0xff]  ;;  %v1025_v40 = vpack.c.bf16 %v1004_v35, %v1003_v19 }
 0x121   : > { %1399 = vmatmul.bf16.gmra.mxu3 %v14578_v59  ;;  %v14595_v11 = vpack.c.bf16 %v1245_v14, %v1244_v13  ;;  %v13579_v13 = vld [vmem:[#allocation4 + $0x1c8] sm:$0xff]  ;;  %v13590_v14 = vld [vmem:[#allocation4 + $0x220] sm:$0xff] }
 0x122   : > { %v1110_v0 = vpop.f32.mrf.mxu2  ;;  %2505 = vmatpush.bf16.msra.mxu0 %v13590_v14 }
 0x123   : > { %v1187_v51 = vadd.f32 %v1110_v0, %v909_v31  ;;  %v915_v54 = vpop.f32.mrf.mxu1  ;;  %v1581_v53 = vpop.f32.mrf.mxu0 }
 0x124   : > { %v14587_v44 = vpop.f32.mrf.mxu3  ;;  %v916_v61 = vadd.f32 %v915_v54, %v14510_v12  ;;  %v13580_v54 = vld [vmem:[#allocation4 + $0x1d0] sm:$0xff] }
 0x125   : > { %v1422_v9 = vadd.f32 %v14530_v20, %v1187_v51  ;;  %v14599_v20 = vld [vmem:[%s14270_s20 + $0x180] sm:$0xff] }
 0x126   : > { %574 = vst [vmem:[#allocation2 + $0x180] sm:$0xff] %v14599_v20 }
 0x127   : > { %v14591_v30 = vadd.f32 %v1579_v49, %v1422_v9 }
 0x12a   : > { %v1112_v43 = vpop.f32.mrf.mxu2 }
 0x12b   : > { %v1188_v24 = vadd.f32 %v1112_v43, %v911_v8  ;;  %v918_v31 = vpop.f32.mrf.mxu1  ;;  %v1584_v16 = vpop.f32.mrf.mxu0  ;;  %v13581_v8 = vld [vmem:[#allocation4 + $0x1d8] sm:$0xff] }
 0x12c   : > { %v14593_v37 = vpop.f32.mrf.mxu3  ;;  %v919_v12 = vadd.f32 %v918_v31, %v14518_v10  ;;  %v13574_v10 = vld [vmem:[#allocation4 + $0x1a0] sm:$0xff]  ;;  %2272 = vmatpush.bf16.msra.mxu3 %v13581_v8 }
 0x12d   : > { %v1423_v49 = vadd.f32 %v14538_v36, %v1188_v24  ;;  %2037 = vmatpush.bf16.msra.mxu2 %v13574_v10  ;;  %v1005_v43 = vld [vmem:[#allocation2 + $0x10a] sm:$0xff] }
 0x12e   : > { %957 = vmatmul.bf16.gmra.mxu1 %v14544_v1  ;;  %1623 = vmatmul.bf16.gmra.mxu0 %v14423_v17  ;;  %v1246_v24 = vld [vmem:[#allocation2 + $0x168] sm:$0xff]  ;;  %v1247_v31 = vld [vmem:[#allocation2 + $0x170] sm:$0xff] }
 0x12f   : > { %1154 = vmatmul.bf16.gmra.mxu2 %v1025_v40  ;;  %v14610_v0 = vadd.f32 %v1581_v53, %v1423_v49 }
 0x130   : > { %2273 = vmatpush.bf16.msra.mxu3 %v13580_v54  ;;  %v14620_v54 = vpack.c.bf16 %v1247_v31, %v1246_v24 }
 0x131   : > { %1404 = vmatmul.bf16.gmra.mxu3 %v14595_v11 }
 0x132   : > { %v1115_v36 = vpop.f32.mrf.mxu2 }
 0x133   : > { %v1189_v9 = vadd.f32 %v1115_v36, %v914_v55  ;;  %v920_v19 = vpop.f32.mrf.mxu1  ;;  %v1586_v1 = vpop.f32.mrf.mxu0  ;;  %v13578_v55 = vld [vmem:[#allocation4 + $0x1c0] sm:$0xff]  ;;  %v1026_v36 = vpack.c.bf16 %v1006_v45, %v1005_v43 }
 0x134   : > { %v14612_v51 = vpop.f32.mrf.mxu3  ;;  %v921_v17 = vadd.f32 %v920_v19, %v14532_v2  ;;  %2274 = vmatpush.bf16.msra.mxu3 %v13579_v13  ;;  %v1008_v45 = vld [vmem:[#allocation2 + $0x12a] sm:$0xff] }
 0x135   : > { %v1424_v35 = vadd.f32 %v14552_v22, %v1189_v9  ;;  %v13562_v9 = vld [vmem:[#allocation4 + $0x140] sm:$0xff] }
 0x136   : > { %1806 = vmatpush.bf16.msra.mxu1 %v13562_v9 }
 0x137   : > { %v14616_v53 = vadd.f32 %v1584_v16, %v1424_v35 }
 0x138   : > { %2275 = vmatpush.bf16.msra.mxu3 %v13578_v55 }
 0x13a   : > { %v1117_v40 = vpop.f32.mrf.mxu2 }
 0x13b   : > { %v1190_v8 = vadd.f32 %v1117_v40, %v916_v61  ;;  %v923_v10 = vpop.f32.mrf.mxu1  ;;  %v1589_v2 = vpop.f32.mrf.mxu0 }
 0x13c   : > { %v14618_v49 = vpop.f32.mrf.mxu3  ;;  %v924_v22 = vadd.f32 %v923_v10, %v14540_v39 }
 0x13d   : > { %v1425_v16 = vadd.f32 %v14559_v38, %v1190_v8 }
 0x13e   : > { %962 = vmatmul.bf16.gmra.mxu1 %v14563_v25  ;;  %1628 = vmatmul.bf16.gmra.mxu0 %v14434_v47  ;;  %v1007_v47 = vld [vmem:[#allocation2 + $0x122] sm:$0xff] }
 0x13f   : > { %1159 = vmatmul.bf16.gmra.mxu2 %v1026_v36  ;;  %v14627_v19 = vadd.f32 %v1586_v1, %v1425_v16  ;;  %v1027_v8 = vpack.c.bf16 %v1008_v45, %v1007_v47 }
 0x141   : > { %1409 = vmatmul.bf16.gmra.mxu3 %v14620_v54 }
 0x142   : > { %v1120_v61 = vpop.f32.mrf.mxu2 }
 0x143   : > { %v1191_v13 = vadd.f32 %v1120_v61, %v919_v12  ;;  %v925_v14 = vpop.f32.mrf.mxu1  ;;  %v1591_v39 = vpop.f32.mrf.mxu0  ;;  %v1265_v12 = vpack.c.bf16 %v14603_v6, %v14599_v20  ;;  %v522_v61 = vld [vmem:[%s14270_s20 + $0x190] sm:$0x3] }
 0x144   : > { %v14629_v35 = vpop.f32.mrf.mxu3  ;;  %v926_v43 = vadd.f32 %v925_v14, %v14554_v23  ;;  %v13573_v23 = vld [vmem:[#allocation4 + $0x198] sm:$0xff]  ;;  %576 = vst [vmem:[#allocation2 + $0x190] sm:$0x3] %v522_v61  ;;  %v1478_v6 = vld [vmem:[#allocation2 + $0x151] sm:$0xff]  ;;  %v13572_v61 = vld [vmem:[#allocation4 + $0x190] sm:$0xff] }
 0x145   : > { %v1426_v38 = vadd.f32 %v14568_v34, %v1191_v13  ;;  %2038 = vmatpush.bf16.msra.mxu2 %v13573_v23  ;;  %v1010_v14 = vld [vmem:[#allocation2 + $0x142] sm:$0xff] }
 0x147   : > { %v14633_v25 = vadd.f32 %v1589_v2, %v1426_v38  ;;  %v2156_v38 = vld [vmem:[#allocation2 + $0x39] sm:$0xff] }
 0x149   : > { %2039 = vmatpush.bf16.msra.mxu2 %v13572_v61 }
 0x14a   : > { %v1122_v24 = vpop.f32.mrf.mxu2 }
 0x14b   : > { %v1192_v1 = vadd.f32 %v1122_v24, %v921_v17  ;;  %v928_v40 = vpop.f32.mrf.mxu1  ;;  %v1594_v55 = vpop.f32.mrf.mxu0 }
 0x14c   : > { %v14635_v31 = vpop.f32.mrf.mxu3 }
 0x14d   : > { %v1427_v10 = vadd.f32 %v14574_v60, %v1192_v1  ;;  %v13589_v60 = vld [vmem:[#allocation4 + $0x218] sm:$0xff] }
 0x14e   : > { %967 = vmatmul.bf16.gmra.mxu1 %v14578_v59  ;;  %1633 = vmatmul.bf16.gmra.mxu0 %v14440_v62  ;;  %v1009_v59 = vld [vmem:[#allocation2 + $0x13a] sm:$0xff] }
 0x14f   : > { %1164 = vmatmul.bf16.gmra.mxu2 %v1027_v8  ;;  %v14642_v34 = vadd.f32 %v1591_v39, %v1427_v10  ;;  %v1479_v62 = vld [vmem:[#allocation2 + $0x159] sm:$0xff]  ;;  %2506 = vmatpush.bf16.msra.mxu0 %v13589_v60  ;;  %v2155_v39 = vld [vmem:[#allocation2 + $0x31] sm:$0xff] }
 0x151   : > { %1414 = vmatmul.bf16.gmra.mxu3 %v1265_v12  ;;  %v2187_v12 = vpack.c.bf16 %v2156_v38, %v2155_v39  ;;  %v1481_v39 = vld [vmem:[#allocation2 + $0x171] sm:$0xff] }
 0x152   : > { %v1125_v17 = vpop.f32.mrf.mxu2 }
 0x153   : > { %v1193_v36 = vadd.f32 %v1125_v17, %v924_v22  ;;  %v930_v16 = vpop.f32.mrf.mxu1  ;;  %v1596_v9 = vpop.f32.mrf.mxu0  ;;  %v14652_v22 = vpack.c.bf16 %v1479_v62, %v1478_v6  ;;  %v929_v17 = vadd.f32 %v928_v40, %v14461_v26  ;;  %v13571_v6 = vld [vmem:[#allocation4 + $0x188] sm:$0xff]  ;;  %v2157_v40 = vld [vmem:[#allocation2 + $0x49] sm:$0xff] }
 0x154   : > { %v14644_v2 = vpop.f32.mrf.mxu3  ;;  %v13587_v62 = vld [vmem:[#allocation4 + $0x208] sm:$0xff]  ;;  %2040 = vmatpush.bf16.msra.mxu2 %v13571_v6 }
 0x155   : > { %v1428_v20 = vadd.f32 %v14587_v44, %v1193_v36  ;;  %v1028_v44 = vpack.c.bf16 %v1010_v14, %v1009_v59  ;;  %v1011_v14 = vld [vmem:[#allocation2 + $0x152] sm:$0xff]  ;;  %v1012_v26 = vld [vmem:[#allocation2 + $0x15a] sm:$0xff] }
 0x157   : > { %v14648_v13 = vadd.f32 %v1594_v55, %v1428_v20  ;;  %v13609_v55 = vld [vmem:[#allocation7 + $0x78] sm:$0xff]  ;;  %v13588_v20 = vld [vmem:[#allocation4 + $0x210] sm:$0xff] }
 0x158   : > { %2932 = vmatpush.bf16.msrb.mxu1 %v13609_v55  ;;  %2507 = vmatpush.bf16.msra.mxu0 %v13588_v20  ;;  %v13586_v55 = vld [vmem:[#allocation4 + $0x200] sm:$0xff]  ;;  %v1029_v20 = vpack.c.bf16 %v1012_v26, %v1011_v14 }
 0x159   : > { %v1013_v26 = vld [vmem:[#allocation2 + $0x16a] sm:$0xff] }
 0x15a   : > { %v1127_v47 = vpop.f32.mrf.mxu2 }
 0x15b   : > { %v1194_v24 = vadd.f32 %v1127_v47, %v926_v43  ;;  %v933_v1 = vpop.f32.mrf.mxu1  ;;  %v1599_v8 = vpop.f32.mrf.mxu0  ;;  %v2158_v47 = vld [vmem:[#allocation2 + $0x51] sm:$0xff] }
 0x15c   : > { %v14650_v45 = vpop.f32.mrf.mxu3  ;;  %2508 = vmatpush.bf16.msra.mxu0 %v13587_v62 }
 0x15d   : > { %v1429_v10 = vadd.f32 %v14593_v37, %v1194_v24  ;;  %v931_v24 = vadd.f32 %v930_v16, %v14471_v18  ;;  %v934_v16 = vadd.f32 %v933_v1, %v14479_v46 }
 0x15e   : > { %972 = vmatmul.bf16.gmra.mxu1 %v14595_v11  ;;  %1638 = vmatmul.bf16.gmra.mxu0 %v14652_v22 }
 0x15f   : > { %1169 = vmatmul.bf16.gmra.mxu2 %v1028_v44  ;;  %v14657_v23 = vadd.f32 %v1596_v9, %v1429_v10  ;;  %v1480_v9 = vld [vmem:[#allocation2 + $0x169] sm:$0xff] }
 0x160   : > { %v14668_v10 = vpack.c.bf16 %v1481_v39, %v1480_v9  ;;  %2509 = vmatpush.bf16.msra.mxu0 %v13586_v55 }
 0x161   : > { %2276 = vmatmul.bf16.vlgmr.msra.gmra.mxu3 %v2187_v12 }
 0x162   : > { %v1130_v36 = vpop.f32.mrf.mxu2 }
 0x163   : > { %v1195_v60 = vadd.f32 %v1130_v36, %v929_v17  ;;  %v935_v59 = vpop.f32.mrf.mxu1  ;;  %v1601_v37 = vpop.f32.mrf.mxu0 }
 0x164   : > { %v14660_v43 = vpop.f32.mrf.mxu3 }
 0x165   : > { %v1430_v11 = vadd.f32 %v14612_v51, %v1195_v60  ;;  %v13570_v51 = vld [vmem:[#allocation4 + $0x180] sm:$0xff] }
 0x166   : > { %2041 = vmatpush.bf16.msra.mxu2 %v13570_v51 }
 0x167   : > { %v14663_v38 = vadd.f32 %v1599_v8, %v1430_v11  ;;  %v2188_v8 = vpack.c.bf16 %v2158_v47, %v2157_v40  ;;  %v1483_v40 = vld [vmem:[#allocation2 + $0x189] sm:$0xff]  ;;  %v1014_v47 = vld [vmem:[#allocation2 + $0x172] sm:$0xff] }
 0x16a   : > { %v1132_v44 = vpop.f32.mrf.mxu2 }
 0x16b   : > { %v1196_v17 = vadd.f32 %v1132_v44, %v931_v24  ;;  %v938_v36 = vpop.f32.mrf.mxu1  ;;  %v1604_v61 = vpop.f32.mrf.mxu0  ;;  %v2159_v24 = vld [vmem:[#allocation2 + $0x61] sm:$0xff]  ;;  %v2160_v44 = vld [vmem:[#allocation2 + $0x69] sm:$0xff] }
 0x16c   : > { %v14666_v12 = vpop.f32.mrf.mxu3 }
 0x16d   : > { %v1431_v60 = vadd.f32 %v14618_v49, %v1196_v17  ;;  %v1482_v49 = vld [vmem:[#allocation2 + $0x181] sm:$0xff] }
 0x16e   : > { %977 = vmatmul.bf16.gmra.mxu1 %v14620_v54  ;;  %1643 = vmatmul.bf16.gmra.mxu0 %v14668_v10  ;;  %v14684_v1 = vpack.c.bf16 %v1483_v40, %v1482_v49  ;;  %v1921_v49 = vld [vmem:[#allocation2 + $0x30] sm:$0xff] }
 0x16f   : > { %1174 = vmatmul.bf16.gmra.mxu2 %v1029_v20  ;;  %v14673_v18 = vadd.f32 %v1601_v37, %v1431_v60  ;;  %v936_v37 = vadd.f32 %v935_v59, %v14493_v56  ;;  %v939_v59 = vadd.f32 %v938_v36, %v14501_v63  ;;  %v2389_v40 = vld [vmem:[#allocation2 + $0x32] sm:$0xff] }
 0x171   : > { %2281 = vmatmul.bf16.gmra.mxu3 %v2188_v8  ;;  %v1030_v8 = vpack.c.bf16 %v1014_v47, %v1013_v26  ;;  %v2390_v47 = vld [vmem:[#allocation2 + $0x3a] sm:$0xff] }
 0x172   : > { %v1135_v11 = vpop.f32.mrf.mxu2 }
 0x173   : > { %v1197_v62 = vadd.f32 %v1135_v11, %v934_v16  ;;  %v940_v14 = vpop.f32.mrf.mxu1  ;;  %v1606_v9 = vpop.f32.mrf.mxu0 }
 0x174   : > { %v14676_v6 = vpop.f32.mrf.mxu3 }
 0x175   : > { %v1432_v39 = vadd.f32 %v14629_v35, %v1197_v62  ;;  %v2189_v35 = vpack.c.bf16 %v2160_v44, %v2159_v24  ;;  %v1922_v24 = vld [vmem:[#allocation2 + $0x38] sm:$0xff] }
 0x176   : > { %v2161_v44 = vld [vmem:[#allocation2 + $0x79] sm:$0xff] }
 0x177   : > { %v14679_v54 = vadd.f32 %v1604_v61, %v1432_v39  ;;  %v13608_v61 = vld [vmem:[#allocation7 + $0x70] sm:$0xff] }
 0x178   : > { %2933 = vmatpush.bf16.msrb.mxu1 %v13608_v61 }
 0x17a   : > { %v1137_v51 = vpop.f32.mrf.mxu2 }
 0x17b   : > { %v1198_v55 = vadd.f32 %v1137_v51, %v936_v37  ;;  %v943_v17 = vpop.f32.mrf.mxu1  ;;  %v1609_v20 = vpop.f32.mrf.mxu0  ;;  %v941_v37 = vadd.f32 %v940_v14, %v14512_v57  ;;  %v2421_v51 = vpack.c.bf16 %v2390_v47, %v2389_v40  ;;  %v1690_v40 = vld [vmem:[#allocation2 + $0x4a] sm:$0xff]  ;;  %v1691_v47 = vld [vmem:[#allocation2 + $0x52] sm:$0xff] }
 0x17c   : > { %v14682_v46 = vpop.f32.mrf.mxu3  ;;  %v944_v57 = vadd.f32 %v943_v17, %v14520_v29  ;;  %v1720_v17 = vpack.c.bf16 %v1691_v47, %v1690_v40  ;;  %v1692_v47 = vld [vmem:[#allocation2 + $0x62] sm:$0xff] }
 0x17d   : > { %v1433_v60 = vadd.f32 %v14635_v31, %v1198_v55 }
 0x17e   : > { %1648 = vmatmul.bf16.gmra.mxu0 %v14684_v1  ;;  %1807 = vmatmul.bf16.vlgmr.msra.gmra.mxu1 %v14448_v58 }
 0x17f   : > { %1179 = vmatmul.bf16.gmra.mxu2 %v1030_v8  ;;  %v14689_v56 = vadd.f32 %v1606_v9, %v1433_v60  ;;  %v2162_v9 = vld [vmem:[#allocation2 + $0x81] sm:$0xff]  ;;  %v1953_v60 = vpack.c.bf16 %v1922_v24, %v1921_v49 }
 0x180   : > { %v2190_v61 = vpack.c.bf16 %v2162_v9, %v2161_v44  ;;  %v2163_v44 = vld [vmem:[#allocation2 + $0x91] sm:$0xff]  ;;  %v2164_v9 = vld [vmem:[#allocation2 + $0x99] sm:$0xff] }
 0x181   : > { %2286 = vmatmul.bf16.gmra.mxu3 %v2189_v35 }
 0x182   : > { %v1140_v16 = vpop.f32.mrf.mxu2 }
 0x183   : > { %v1199_v62 = vadd.f32 %v1140_v16, %v939_v59  ;;  %v945_v39 = vpop.f32.mrf.mxu1  ;;  %v1611_v26 = vpop.f32.mrf.mxu0 }
 0x184   : > { %v14692_v11 = vpop.f32.mrf.mxu3 }
 0x185   : > { %v1434_v31 = vadd.f32 %v14644_v2, %v1199_v62 }
 0x187   : > { %v14695_v58 = vadd.f32 %v1609_v20, %v1434_v31 }
 0x18a   : > { %v1142_v63 = vpop.f32.mrf.mxu2 }
 0x18b   : > { %v1200_v55 = vadd.f32 %v1142_v63, %v941_v37  ;;  %v948_v8 = vpop.f32.mrf.mxu1  ;;  %v1614_v35 = vpop.f32.mrf.mxu0 }
 0x18c   : > { %v14698_v36 = vpop.f32.mrf.mxu3 }
 0x18d   : > { %v1435_v2 = vadd.f32 %v14650_v45, %v1200_v55  ;;  %v1923_v45 = vld [vmem:[#allocation2 + $0x48] sm:$0xff] }
 0x18e   : > { %1812 = vmatmul.bf16.gmra.mxu1 %v14454_v28  ;;  %2510 = vmatmul.bf16.vlgmr.msra.gmra.mxu0 %v2421_v51  ;;  %v1924_v28 = vld [vmem:[#allocation2 + $0x50] sm:$0xff] }
 0x18f   : > { %2042 = vmatmul.bf16.vlgmr.msra.gmra.mxu2 %v1953_v60  ;;  %v14702_v20 = vadd.f32 %v1611_v26, %v1435_v2  ;;  %v946_v26 = vadd.f32 %v945_v39, %v14534_v3  ;;  %v1954_v60 = vpack.c.bf16 %v1924_v28, %v1923_v45  ;;  %v949_v3 = vadd.f32 %v948_v8, %v14465_v21  ;;  %v1925_v45 = vld [vmem:[#allocation2 + $0x60] sm:$0xff] }
 0x191   : > { %2291 = vmatmul.bf16.gmra.mxu3 %v2190_v61  ;;  %v2191_v61 = vpack.c.bf16 %v2164_v9, %v2163_v44  ;;  %v1926_v44 = vld [vmem:[#allocation2 + $0x68] sm:$0xff] }
 0x192   : > { %v1145_v14 = vpop.f32.mrf.mxu2  ;;  %v2165_v9 = vld [vmem:[#allocation2 + $0xa9] sm:$0xff] }
 0x193   : > { %v1201_v16 = vadd.f32 %v1145_v14, %v944_v57  ;;  %v950_v62 = vpop.f32.mrf.mxu1  ;;  %v1616_v31 = vpop.f32.mrf.mxu0 }
 0x194   : > { %v14705_v59 = vpop.f32.mrf.mxu3 }
 0x195   : > { %v1436_v49 = vadd.f32 %v14660_v43, %v1201_v16 }
 0x197   : > { %v14708_v24 = vadd.f32 %v1614_v35, %v1436_v49  ;;  %v13607_v35 = vld [vmem:[#allocation7 + $0x68] sm:$0xff] }
 0x198   : > { %2934 = vmatpush.bf16.msrb.mxu1 %v13607_v35 }
 0x19a   : > { %v1147_v37 = vpop.f32.mrf.mxu2 }
 0x19b   : > { %v1202_v63 = vadd.f32 %v1147_v37, %v946_v26  ;;  %v953_v51 = vpop.f32.mrf.mxu1  ;;  %v1619_v55 = vpop.f32.mrf.mxu0  ;;  %v951_v26 = vadd.f32 %v950_v62, %v14473_v33 }
 0x19c   : > { %v14711_v29 = vpop.f32.mrf.mxu3  ;;  %v954_v35 = vadd.f32 %v953_v51, %v14487_v41 }
 0x19d   : > { %v1437_v43 = vadd.f32 %v14666_v12, %v1202_v63  ;;  %v1693_v12 = vld [vmem:[#allocation2 + $0x6a] sm:$0xff] }
 0x19e   : > { %1817 = vmatmul.bf16.gmra.mxu1 %v1720_v17  ;;  %2515 = vmatmul.bf16.gmra.mxu0 %v1720_v17  ;;  %v1721_v37 = vpack.c.bf16 %v1693_v12, %v1692_v47  ;;  %v1694_v47 = vld [vmem:[#allocation2 + $0x7a] sm:$0xff]  ;;  %v1695_v12 = vld [vmem:[#allocation2 + $0x82] sm:$0xff] }
 0x19f   : > { %2047 = vmatmul.bf16.gmra.mxu2 %v1954_v60  ;;  %v14714_v2 = vadd.f32 %v1616_v31, %v1437_v43  ;;  %v2166_v31 = vld [vmem:[#allocation2 + $0xb1] sm:$0xff]  ;;  %v1722_v51 = vpack.c.bf16 %v1695_v12, %v1694_v47 }
 0x1a0   : > { %v2192_v43 = vpack.c.bf16 %v2166_v31, %v2165_v9  ;;  %v2167_v9 = vld [vmem:[#allocation2 + $0xc1] sm:$0xff]  ;;  %v2168_v31 = vld [vmem:[#allocation2 + $0xc9] sm:$0xff]  ;;  %v1696_v12 = vld [vmem:[#allocation2 + $0x92] sm:$0xff] }
 0x1a1   : > { %2296 = vmatmul.bf16.gmra.mxu3 %v2191_v61  ;;  %v1955_v61 = vpack.c.bf16 %v1926_v44, %v1925_v45  ;;  %v1927_v45 = vld [vmem:[#allocation2 + $0x78] sm:$0xff]  ;;  %v1928_v44 = vld [vmem:[#allocation2 + $0x80] sm:$0xff] }
 0x1a2   : > { %v1150_v39 = vpop.f32.mrf.mxu2 }
 0x1a3   : > { %v1203_v14 = vadd.f32 %v1150_v39, %v949_v3  ;;  %v955_v16 = vpop.f32.mrf.mxu1  ;;  %v1621_v49 = vpop.f32.mrf.mxu0 }
 0x1a4   : > { %v14717_v57 = vpop.f32.mrf.mxu3 }
 0x1a5   : > { %v1438_v40 = vadd.f32 %v14676_v6, %v1203_v14 }
 0x1a7   : > { %v14720_v28 = vadd.f32 %v1619_v55, %v1438_v40 }
 0x1aa   : > { %v1152_v21 = vpop.f32.mrf.mxu2 }
 0x1ab   : > { %v1204_v17 = vadd.f32 %v1152_v21, %v951_v26  ;;  %v958_v63 = vpop.f32.mrf.mxu1  ;;  %v1624_v60 = vpop.f32.mrf.mxu0 }
 0x1ac   : > { %v14723_v8 = vpop.f32.mrf.mxu3 }
 0x1ad   : > { %v1439_v6 = vadd.f32 %v14682_v46, %v1204_v17 }
 0x1ae   : > { %1822 = vmatmul.bf16.gmra.mxu1 %v1721_v37  ;;  %2520 = vmatmul.bf16.gmra.mxu0 %v1721_v37 }
 0x1af   : > { %2052 = vmatmul.bf16.gmra.mxu2 %v1955_v61  ;;  %v14726_v55 = vadd.f32 %v1621_v49, %v1439_v6  ;;  %v956_v49 = vadd.f32 %v955_v16, %v14495_v48  ;;  %v1956_v61 = vpack.c.bf16 %v1928_v44, %v1927_v45  ;;  %v959_v48 = vadd.f32 %v958_v63, %v14506_v7  ;;  %v1929_v45 = vld [vmem:[#allocation2 + $0x90] sm:$0xff] }
 0x1b1   : > { %2301 = vmatmul.bf16.gmra.mxu3 %v2192_v43  ;;  %v2193_v43 = vpack.c.bf16 %v2168_v31, %v2167_v9  ;;  %v1930_v9 = vld [vmem:[#allocation2 + $0x98] sm:$0xff] }
 0x1b2   : > { %v1155_v33 = vpop.f32.mrf.mxu2  ;;  %v2169_v31 = vld [vmem:[#allocation2 + $0xd9] sm:$0xff] }
 0x1b3   : > { %v1205_v3 = vadd.f32 %v1155_v33, %v954_v35  ;;  %v960_v39 = vpop.f32.mrf.mxu1  ;;  %v1626_v14 = vpop.f32.mrf.mxu0 }
 0x1b4   : > { %v14729_v62 = vpop.f32.mrf.mxu3 }
 0x1b5   : > { %v1440_v40 = vadd.f32 %v14692_v11, %v1205_v3 }
 0x1b7   : > { %v14732_v46 = vadd.f32 %v1624_v60, %v1440_v40  ;;  %v13606_v60 = vld [vmem:[#allocation7 + $0x60] sm:$0xff] }
 0x1b8   : > { %2935 = vmatpush.bf16.msrb.mxu1 %v13606_v60 }
 0x1ba   : > { %v1157_v26 = vpop.f32.mrf.mxu2 }
 0x1bb   : > { %v1206_v21 = vadd.f32 %v1157_v26, %v956_v49  ;;  %v963_v37 = vpop.f32.mrf.mxu1  ;;  %v1629_v17 = vpop.f32.mrf.mxu0  ;;  %v961_v49 = vadd.f32 %v960_v39, %v14514_v42 }
 0x1bc   : > { %v14735_v41 = vpop.f32.mrf.mxu3  ;;  %v964_v60 = vadd.f32 %v963_v37, %v14528_v27 }
 0x1bd   : > { %v1441_v11 = vadd.f32 %v14698_v36, %v1206_v21  ;;  %v1697_v36 = vld [vmem:[#allocation2 + $0x9a] sm:$0xff] }
 0x1be   : > { %1827 = vmatmul.bf16.gmra.mxu1 %v1722_v51  ;;  %2525 = vmatmul.bf16.gmra.mxu0 %v1722_v51  ;;  %v1723_v26 = vpack.c.bf16 %v1697_v36, %v1696_v12  ;;  %v1698_v12 = vld [vmem:[#allocation2 + $0xaa] sm:$0xff]  ;;  %v1699_v36 = vld [vmem:[#allocation2 + $0xb2] sm:$0xff] }
 0x1bf   : > { %2057 = vmatmul.bf16.gmra.mxu2 %v1956_v61  ;;  %v14738_v6 = vadd.f32 %v1626_v14, %v1441_v11  ;;  %v2170_v14 = vld [vmem:[#allocation2 + $0xe1] sm:$0xff]  ;;  %v1724_v37 = vpack.c.bf16 %v1699_v36, %v1698_v12 }
 0x1c0   : > { %v2194_v11 = vpack.c.bf16 %v2170_v14, %v2169_v31  ;;  %v2171_v31 = vld [vmem:[#allocation2 + $0xf1] sm:$0xff]  ;;  %v2172_v14 = vld [vmem:[#allocation2 + $0xf9] sm:$0xff]  ;;  %v13601_v36 = vld [vmem:[#allocation7 + $0x38] sm:$0xff] }
 0x1c1   : > { %2306 = vmatmul.bf16.gmra.mxu3 %v2193_v43  ;;  %v1957_v43 = vpack.c.bf16 %v1930_v9, %v1929_v45  ;;  %v1931_v45 = vld [vmem:[#allocation2 + $0xa8] sm:$0xff]  ;;  %v1932_v9 = vld [vmem:[#allocation2 + $0xb0] sm:$0xff]  ;;  %3069 = vmatpush.bf16.msrb.mxu2 %v13601_v36 }
 0x1c2   : > { %v1160_v16 = vpop.f32.mrf.mxu2 }
 0x1c3   : > { %v1207_v33 = vadd.f32 %v1160_v16, %v959_v48  ;;  %v965_v3 = vpop.f32.mrf.mxu1  ;;  %v1631_v40 = vpop.f32.mrf.mxu0 }
 0x1c4   : > { %v14741_v35 = vpop.f32.mrf.mxu3 }
 0x1c5   : > { %v1442_v47 = vadd.f32 %v14705_v59, %v1207_v33 }
 0x1c7   : > { %v14744_v44 = vadd.f32 %v1629_v17, %v1442_v47 }
 0x1ca   : > { %v1162_v7 = vpop.f32.mrf.mxu2 }
 0x1cb   : > { %v1208_v51 = vadd.f32 %v1162_v7, %v961_v49  ;;  %v968_v21 = vpop.f32.mrf.mxu1  ;;  %v1634_v61 = vpop.f32.mrf.mxu0 }
 0x1cc   : > { %v14747_v63 = vpop.f32.mrf.mxu3 }
 0x1cd   : > { %v1443_v59 = vadd.f32 %v14711_v29, %v1208_v51 }
 0x1ce   : > { %1832 = vmatmul.bf16.gmra.mxu1 %v1723_v26  ;;  %2530 = vmatmul.bf16.gmra.mxu0 %v1723_v26 }
 0x1cf   : > { %2062 = vmatmul.bf16.gmra.mxu2 %v1957_v43  ;;  %v14750_v17 = vadd.f32 %v1631_v40, %v1443_v59  ;;  %v966_v40 = vadd.f32 %v965_v3, %v14536_v15  ;;  %v1958_v43 = vpack.c.bf16 %v1932_v9, %v1931_v45  ;;  %v969_v15 = vadd.f32 %v968_v21, %v14550_v4  ;;  %v1701_v45 = vld [vmem:[#allocation2 + $0xca] sm:$0xff]  ;;  %v1933_v9 = vld [vmem:[#allocation2 + $0xc0] sm:$0xff] }
 0x1d1   : > { %2311 = vmatmul.bf16.gmra.mxu3 %v2194_v11  ;;  %v2195_v11 = vpack.c.bf16 %v2172_v14, %v2171_v31  ;;  %v2173_v14 = vld [vmem:[#allocation2 + $0x109] sm:$0xff] }
 0x1d2   : > { %v1165_v42 = vpop.f32.mrf.mxu2 }
 0x1d3   : > { %v1209_v48 = vadd.f32 %v1165_v42, %v964_v60  ;;  %v970_v16 = vpop.f32.mrf.mxu1  ;;  %v1636_v33 = vpop.f32.mrf.mxu0 }
 0x1d4   : > { %v14753_v39 = vpop.f32.mrf.mxu3  ;;  %v971_v4 = vadd.f32 %v970_v16, %v14557_v5 }
 0x1d5   : > { %v1444_v47 = vadd.f32 %v14717_v57, %v1209_v48 }
 0x1d7   : > { %v14756_v29 = vadd.f32 %v1634_v61, %v1444_v47  ;;  %v13605_v61 = vld [vmem:[#allocation7 + $0x58] sm:$0xff] }
 0x1d8   : > { %2936 = vmatpush.bf16.msrb.mxu1 %v13605_v61 }
 0x1da   : > { %v1167_v49 = vpop.f32.mrf.mxu2 }
 0x1db   : > { %v1210_v7 = vadd.f32 %v1167_v49, %v966_v40  ;;  %v973_v26 = vpop.f32.mrf.mxu1  ;;  %v1639_v51 = vpop.f32.mrf.mxu0  ;;  %v2174_v40 = vld [vmem:[#allocation2 + $0x111] sm:$0xff] }
 0x1dc   : > { %v14759_v27 = vpop.f32.mrf.mxu3 }
 0x1dd   : > { %v1445_v57 = vadd.f32 %v14723_v8, %v1210_v7  ;;  %v1700_v8 = vld [vmem:[#allocation2 + $0xc2] sm:$0xff] }
 0x1de   : > { %1837 = vmatmul.bf16.gmra.mxu1 %v1724_v37  ;;  %2535 = vmatmul.bf16.gmra.mxu0 %v1724_v37  ;;  %v1725_v37 = vpack.c.bf16 %v1701_v45, %v1700_v8  ;;  %v1702_v8 = vld [vmem:[#allocation2 + $0xda] sm:$0xff]  ;;  %v1703_v45 = vld [vmem:[#allocation2 + $0xe2] sm:$0xff] }
 0x1df   : > { %2067 = vmatmul.bf16.gmra.mxu2 %v1958_v43  ;;  %v14762_v59 = vadd.f32 %v1636_v33, %v1445_v57  ;;  %v1934_v33 = vld [vmem:[#allocation2 + $0xc8] sm:$0xff]  ;;  %v2196_v57 = vpack.c.bf16 %v2174_v40, %v2173_v14 }
 0x1e0   : > { %v2175_v14 = vld [vmem:[#allocation2 + $0x121] sm:$0xff]  ;;  %v2176_v40 = vld [vmem:[#allocation2 + $0x129] sm:$0xff] }
 0x1e1   : > { %2316 = vmatmul.bf16.gmra.mxu3 %v2195_v11 }
 0x1e2   : > { %v1170_v3 = vpop.f32.mrf.mxu2 }
 0x1e3   : > { %v1211_v42 = vadd.f32 %v1170_v3, %v969_v15  ;;  %v975_v48 = vpop.f32.mrf.mxu1  ;;  %v1641_v47 = vpop.f32.mrf.mxu0  ;;  %v974_v15 = vadd.f32 %v973_v26, %v14467_v32  ;;  %v1726_v26 = vpack.c.bf16 %v1703_v45, %v1702_v8 }
 0x1e4   : > { %v14765_v60 = vpop.f32.mrf.mxu3 }
 0x1e5   : > { %v1446_v12 = vadd.f32 %v14729_v62, %v1211_v42  ;;  %v1959_v62 = vpack.c.bf16 %v1934_v33, %v1933_v9  ;;  %v1935_v9 = vld [vmem:[#allocation2 + $0xd8] sm:$0xff]  ;;  %v1936_v33 = vld [vmem:[#allocation2 + $0xe0] sm:$0xff] }
 0x1e7   : > { %v14768_v31 = vadd.f32 %v1639_v51, %v1446_v12 }
 0x1ea   : > { %v1172_v21 = vpop.f32.mrf.mxu2 }
 0x1eb   : > { %v1212_v7 = vadd.f32 %v1172_v21, %v971_v4  ;;  %v978_v43 = vpop.f32.mrf.mxu1  ;;  %v1644_v11 = vpop.f32.mrf.mxu0 }
 0x1ec   : > { %v14771_v49 = vpop.f32.mrf.mxu3 }
 0x1ed   : > { %v1447_v61 = vadd.f32 %v14735_v41, %v1212_v7 }
 0x1ee   : > { %1842 = vmatmul.bf16.gmra.mxu1 %v1725_v37  ;;  %2540 = vmatmul.bf16.gmra.mxu0 %v1725_v37 }
 0x1ef   : > { %2072 = vmatmul.bf16.gmra.mxu2 %v1959_v62  ;;  %v14774_v51 = vadd.f32 %v1641_v47, %v1447_v61  ;;  %v18653_v47 = vld [vmem:[#allocation17_spill] sm:$0xff]  ;;  %v2197_v61 = vpack.c.bf16 %v2176_v40, %v2175_v14  ;;  %v1705_v14 = vld [vmem:[#allocation2 + $0xfa] sm:$0xff] }
 0x1f0   : > { %v976_v4 = vadd.f32 %v975_v48, %v18653_v47 }
 0x1f1   : > { %2321 = vmatmul.bf16.gmra.mxu3 %v2196_v57  ;;  %v1960_v57 = vpack.c.bf16 %v1936_v33, %v1935_v9  ;;  %v13604_v9 = vld [vmem:[#allocation7 + $0x50] sm:$0xff]  ;;  %v1704_v33 = vld [vmem:[#allocation2 + $0xf2] sm:$0xff] }
 0x1f2   : > { %v1175_v5 = vpop.f32.mrf.mxu2  ;;  %2937 = vmatpush.bf16.msrb.mxu1 %v13604_v9 }
 0x1f3   : > { %v1213_v3 = vadd.f32 %v1175_v5, %v974_v15  ;;  %v980_v42 = vpop.f32.mrf.mxu1  ;;  %v1646_v12 = vpop.f32.mrf.mxu0  ;;  %v18655_v15 = vld [vmem:[#allocation18_spill] sm:$0xff] }
 0x1f4   : > { %v14777_v16 = vpop.f32.mrf.mxu3  ;;  %v979_v5 = vadd.f32 %v978_v43, %v18655_v15 }
 0x1f5   : > { %v1448_v36 = vadd.f32 %v14741_v35, %v1213_v3 }
 0x1f7   : > { %v14780_v41 = vadd.f32 %v1644_v11, %v1448_v36 }
 0x1fa   : > { %v1177_v21 = vpop.f32.mrf.mxu2 }
 0x1fb   : > { %v1214_v37 = vadd.f32 %v1177_v21, %v976_v4  ;;  %v1649_v7 = vpop.f32.mrf.mxu0  ;;  %v1808_v62 = vpop.f32.mrf.mxu1  ;;  %v1938_v4 = vld [vmem:[#allocation2 + $0xf8] sm:$0xff]  ;;  %v2178_v21 = vld [vmem:[#allocation2 + $0x141] sm:$0xff] }
 0x1fc   : > { %v14783_v32 = vpop.f32.mrf.mxu3 }
 0x1fd   : > { %v1449_v35 = vadd.f32 %v14747_v63, %v1214_v37  ;;  %v1937_v63 = vld [vmem:[#allocation2 + $0xf0] sm:$0xff] }
 0x1fe   : > { %1847 = vmatmul.bf16.gmra.mxu1 %v1726_v26  ;;  %2545 = vmatmul.bf16.gmra.mxu0 %v1726_v26  ;;  %v18656_v26 = vld [vmem:[#allocation19_spill] sm:$0xff] }
 0x1ff   : > { %2077 = vmatmul.bf16.gmra.mxu2 %v1960_v57  ;;  %v14786_v11 = vadd.f32 %v1646_v12, %v1449_v35  ;;  %v2177_v12 = vld [vmem:[#allocation2 + $0x139] sm:$0xff]  ;;  %v981_v43 = vadd.f32 %v980_v42, %v18656_v26  ;;  %v1888_v42 = vadd.f32 %v1808_v62, %v14572_v50 }
 0x201   : > { %2326 = vmatmul.bf16.gmra.mxu3 %v2197_v61  ;;  %18654 = vst [vmem:[#allocation17_spill] sm:$0xff] %v14786_v11  ;;  %v1727_v61 = vpack.c.bf16 %v1705_v14, %v1704_v33  ;;  %v13600_v11 = vld [vmem:[#allocation7 + $0x30] sm:$0xff] }
 0x202   : > { %v1180_v48 = vpop.f32.mrf.mxu2  ;;  %3070 = vmatpush.bf16.msrb.mxu2 %v13600_v11  ;;  %v1940_v11 = vld [vmem:[#allocation2 + $0x110] sm:$0xff] }
 0x203   : > { %v1215_v36 = vadd.f32 %v1180_v48, %v979_v5  ;;  %v1651_v8 = vpop.f32.mrf.mxu0  ;;  %v1810_v45 = vpop.f32.mrf.mxu1  ;;  %v2198_v48 = vpack.c.bf16 %v2178_v21, %v2177_v12  ;;  %v1706_v12 = vld [vmem:[#allocation2 + $0x10a] sm:$0xff] }
 0x204   : > { %v14789_v3 = vpop.f32.mrf.mxu3  ;;  %v1939_v21 = vld [vmem:[#allocation2 + $0x108] sm:$0xff]  ;;  %v1889_v50 = vadd.f32 %v1810_v45, %v14585_v52 }
 0x205   : > { %v1450_v47 = vadd.f32 %v14753_v39, %v1215_v36  ;;  %v1961_v39 = vpack.c.bf16 %v1938_v4, %v1937_v63  ;;  %v13617_v52 = vld [vmem:[#allocation7 + $0xb8] sm:$0xff] }
 0x206   : > { %3271 = vmatpush.bf16.msrb.mxu3 %v13617_v52 }
 0x207   : > { %v14792_v40 = vadd.f32 %v1649_v7, %v1450_v47 }
 0x20a   : > { %v1182_v37 = vpop.f32.mrf.mxu2 }
 0x20b   : > { %v1216_v35 = vadd.f32 %v1182_v37, %v981_v43  ;;  %v1813_v15 = vpop.f32.mrf.mxu1  ;;  %v2511_v5 = vpop.f32.mrf.mxu0 }
 0x20c   : > { %v14795_v57 = vpop.f32.mrf.mxu3 }
 0x20d   : > { %v1451_v36 = vadd.f32 %v14759_v27, %v1216_v35  ;;  %v14807_v27 = vld [vmem:[%s18554_s2] ss:$0 sm:$0xff] }
 0x20e   : > { %1852 = vmatmul.bf16.gmra.mxu1 %v1727_v61  ;;  %2550 = vmatmul.bf16.gmra.mxu0 %v1727_v61 }
 0x20f   : > { %2082 = vmatmul.bf16.gmra.mxu2 %v1961_v39  ;;  %v14798_v7 = vadd.f32 %v1651_v8, %v1451_v36  ;;  %v1707_v8 = vld [vmem:[#allocation2 + $0x112] sm:$0xff]  ;;  %v1962_v36 = vpack.c.bf16 %v1940_v11, %v1939_v21  ;;  %v14828_v11 = vld [vmem:[%s14270_s20 + $0x1a0] sm:$0xff] }
 0x210   : > { %v1728_v61 = vpack.c.bf16 %v1707_v8, %v1706_v12  ;;  %578 = vst [vmem:[#allocation2 + $0x1a0] sm:$0xff] %v14828_v11 }
 0x211   : > { %2331 = vmatmul.bf16.gmra.mxu3 %v2198_v48 }
 0x212   : > { %v2043_v47 = vpop.f32.mrf.mxu2 }
 0x213   : > { %v2123_v33 = vadd.f32 %v2043_v47, %v1888_v42  ;;  %v1815_v14 = vpop.f32.mrf.mxu1  ;;  %v2513_v26 = vpop.f32.mrf.mxu0  ;;  %v1890_v42 = vadd.f32 %v1813_v15, %v14591_v30  ;;  %v525_v15 = vld [vmem:[%s14270_s20 + $0x1a8] sm:$0x3] }
 0x214   : > { %v14801_v9 = vpop.f32.mrf.mxu3  ;;  %579 = vst [vmem:[#allocation2 + $0x1a8] sm:$0x3] %v525_v15  ;;  %v13599_v15 = vld [vmem:[#allocation7 + $0x28] sm:$0xff] }
 0x215   : > { %v2357_v63 = vadd.f32 %v14765_v60, %v2123_v33  ;;  %3071 = vmatpush.bf16.msrb.mxu2 %v13599_v15 }
 0x217   : > { %v2591_v4 = vadd.f32 %v2511_v5, %v2357_v63 }
 0x219   : > { %v2627_v62 = vadd.f32 %v14807_v27, %v2591_v4  ;;  %v13616_v4 = vld [vmem:[#allocation7 + $0xb0] sm:$0xff] }
 0x21a   : > { %v2045_v43 = vpop.f32.mrf.mxu2  ;;  %3272 = vmatpush.bf16.msrb.mxu3 %v13616_v4 }
 0x21b   : > { %v14813_v35 = vmax.f32 %v2627_v62, 0.0  ;;  %v2124_v60 = vadd.f32 %v2045_v43, %v1889_v50  ;;  %v1818_v39 = vpop.f32.mrf.mxu1  ;;  %v2516_v48 = vpop.f32.mrf.mxu0  ;;  %v13615_v50 = vld [vmem:[#allocation7 + $0xa8] sm:$0xff]  ;;  %v1708_v43 = vld [vmem:[#allocation2 + $0x122] sm:$0xff] }
 0x21c   : > { %v14811_v37 = vpop.f32.mrf.mxu3 }
 0x21d   : > { %18657 = vst [vmem:[#allocation18_spill] sm:$0xff] %v14813_v35  ;;  %v2358_v5 = vadd.f32 %v14771_v49, %v2124_v60  ;;  %v1941_v60 = vld [vmem:[#allocation2 + $0x120] sm:$0xff] }
 0x21e   : > { %2723 = vst [vmem:[#allocation2 + $0x19] sm:$0xff] %v14813_v35  ;;  %1857 = vmatmul.bf16.gmra.mxu1 %v1728_v61  ;;  %2555 = vmatmul.bf16.gmra.mxu0 %v1728_v61  ;;  %v1709_v61 = vld [vmem:[#allocation2 + $0x12a] sm:$0xff] }
 0x21f   : > { %v2592_v45 = vadd.f32 %v2513_v26, %v2358_v5  ;;  %2087 = vmatmul.bf16.gmra.mxu2 %v1962_v36  ;;  %v14825_v26 = vld [vmem:[%s14270_s20 + $0x198] sm:$0xff]  ;;  %v1942_v36 = vld [vmem:[#allocation2 + $0x128] sm:$0xff]  ;;  %3273 = vmatpush.bf16.msrb.mxu3 %v13615_v50  ;;  %v1891_v5 = vadd.f32 %v1815_v14, %v14610_v0  ;;  %v1892_v50 = vadd.f32 %v1818_v39, %v14616_v53 }
 0x220   : > { %577 = vst [vmem:[#allocation2 + $0x198] sm:$0xff] %v14825_v26  ;;  %v13613_v0 = vld [vmem:[#allocation7 + $0x98] sm:$0xff]  ;;  %v1943_v39 = vld [vmem:[#allocation2 + $0x138] sm:$0xff] }
 0x221   : > { %2336 = vmatmul.bf16.gmra.mxu3 %v14652_v22  ;;  %v2628_v47 = vadd.f32 %v14807_v27, %v2592_v45  ;;  %v13603_v22 = vld [vmem:[#allocation7 + $0x48] sm:$0xff]  ;;  %v1711_v53 = vld [vmem:[#allocation2 + $0x142] sm:$0xff] }
 0x222   : > { %v2048_v33 = vpop.f32.mrf.mxu2  ;;  %2938 = vmatpush.bf16.msrb.mxu1 %v13603_v22 }
 0x223   : > { %v14822_v49 = vmax.f32 %v2628_v47, 0.0  ;;  %v2125_v12 = vadd.f32 %v2048_v33, %v1890_v42  ;;  %v1820_v8 = vpop.f32.mrf.mxu1  ;;  %v2518_v21 = vpop.f32.mrf.mxu0  ;;  %v1729_v42 = vpack.c.bf16 %v1709_v61, %v1708_v43  ;;  %v13614_v47 = vld [vmem:[#allocation7 + $0xa0] sm:$0xff] }
 0x224   : > { %v14820_v63 = vpop.f32.mrf.mxu3  ;;  %3274 = vmatpush.bf16.msrb.mxu3 %v13614_v47  ;;  %v1944_v47 = vld [vmem:[#allocation2 + $0x140] sm:$0xff] }
 0x225   : > { %18658 = vst [vmem:[#allocation19_spill] sm:$0xff] %v14822_v49  ;;  %v2359_v30 = vadd.f32 %v14777_v16, %v2125_v12 }
 0x226   : > { %2724 = vst [vmem:[#allocation2 + $0x21] sm:$0xff] %v14822_v49 }
 0x227   : > { %v2593_v62 = vadd.f32 %v2516_v48, %v2359_v30  ;;  %v1963_v30 = vpack.c.bf16 %v1942_v36, %v1941_v60  ;;  %v13612_v60 = vld [vmem:[#allocation7 + $0x90] sm:$0xff] }
 0x228   : > { %3275 = vmatpush.bf16.msrb.mxu3 %v13613_v0 }
 0x229   : > { %v2629_v52 = vadd.f32 %v14807_v27, %v2593_v62 }
 0x22a   : > { %v2050_v16 = vpop.f32.mrf.mxu2 }
 0x22b   : > { %v14839_v33 = vmax.f32 %v2629_v52, 0.0  ;;  %v2126_v48 = vadd.f32 %v2050_v16, %v1891_v5  ;;  %v1823_v4 = vpop.f32.mrf.mxu1  ;;  %v2521_v12 = vpop.f32.mrf.mxu0 }
 0x22c   : > { %v14837_v45 = vpop.f32.mrf.mxu3  ;;  %3276 = vmatpush.bf16.msrb.mxu3 %v13612_v60 }
 0x22d   : > { %18659 = vst [vmem:[#allocation20_spill] sm:$0xff] %v14839_v33  ;;  %v2360_v22 = vadd.f32 %v14783_v32, %v2126_v48  ;;  %v1893_v48 = vadd.f32 %v1820_v8, %v14627_v19  ;;  %v1894_v8 = vadd.f32 %v1823_v4, %v14633_v25  ;;  %v1946_v25 = vld [vmem:[#allocation2 + $0x158] sm:$0xff] }
 0x22e   : > { %2725 = vst [vmem:[#allocation2 + $0x31] sm:$0xff] %v14839_v33  ;;  %1862 = vmatmul.bf16.gmra.mxu1 %v1729_v42  ;;  %2560 = vmatmul.bf16.gmra.mxu0 %v1729_v42  ;;  %v1710_v42 = vld [vmem:[#allocation2 + $0x13a] sm:$0xff] }
 0x22f   : > { %v2594_v14 = vadd.f32 %v2518_v21, %v2360_v22  ;;  %2092 = vmatmul.bf16.gmra.mxu2 %v1963_v30  ;;  %v13611_v21 = vld [vmem:[#allocation7 + $0x88] sm:$0xff]  ;;  %v1730_v0 = vpack.c.bf16 %v1711_v53, %v1710_v42 }
 0x230   : > { %3277 = vmatpush.bf16.msrb.mxu3 %v13611_v21  ;;  %v2185_v4 = vld [vmem:[#allocation2 + $0x199] sm:$0xff] }
 0x231   : > { %2341 = vmatmul.bf16.gmra.mxu3 %v14668_v10  ;;  %v2630_v62 = vadd.f32 %v14807_v27, %v2594_v14  ;;  %v13610_v14 = vld [vmem:[#allocation7 + $0x80] sm:$0xff] }
 0x232   : > { %v2053_v43 = vpop.f32.mrf.mxu2 }
 0x233   : > { %v14848_v36 = vmax.f32 %v2630_v62, 0.0  ;;  %v2127_v32 = vadd.f32 %v2053_v43, %v1892_v50  ;;  %v1825_v5 = vpop.f32.mrf.mxu1  ;;  %v2523_v52 = vpop.f32.mrf.mxu0 }
 0x234   : > { %v14846_v61 = vpop.f32.mrf.mxu3  ;;  %3278 = vmatpush.bf16.msrb.mxu3 %v13610_v14 }
 0x235   : > { %18660 = vst [vmem:[#allocation21_spill] sm:$0xff] %v14848_v36  ;;  %v2361_v10 = vadd.f32 %v14789_v3, %v2127_v32 }
 0x236   : > { %2726 = vst [vmem:[#allocation2 + $0x39] sm:$0xff] %v14848_v36 }
 0x237   : > { %v2595_v16 = vadd.f32 %v2521_v12, %v2361_v10  ;;  %v1964_v12 = vpack.c.bf16 %v1944_v47, %v1943_v39 }
 0x239   : > { %v2631_v30 = vadd.f32 %v14807_v27, %v2595_v16 }
 0x23a   : > { %v2055_v22 = vpop.f32.mrf.mxu2 }
 0x23b   : > { %v14856_v50 = vmax.f32 %v2631_v30, 0.0  ;;  %v2128_v62 = vadd.f32 %v2055_v22, %v1893_v48  ;;  %v1828_v3 = vpop.f32.mrf.mxu1  ;;  %v2526_v43 = vpop.f32.mrf.mxu0  ;;  %v1712_v48 = vld [vmem:[#allocation2 + $0x152] sm:$0xff]  ;;  %v2186_v22 = vld [vmem:[#allocation2 + $0x1a1] sm:$0xff] }
 0x23c   : > { %v14854_v15 = vpop.f32.mrf.mxu3  ;;  %v1945_v30 = vld [vmem:[#allocation2 + $0x150] sm:$0xff] }
 0x23d   : > { %18661 = vst [vmem:[#allocation22_spill] sm:$0xff] %v14856_v50  ;;  %v2362_v60 = vadd.f32 %v14795_v57, %v2128_v62 }
 0x23e   : > { %2727 = vst [vmem:[#allocation2 + $0x49] sm:$0xff] %v14856_v50  ;;  %1867 = vmatmul.bf16.gmra.mxu1 %v1730_v0  ;;  %2565 = vmatmul.bf16.gmra.mxu0 %v1730_v0  ;;  %v1895_v0 = vadd.f32 %v1825_v5, %v14642_v34  ;;  %v13625_v5 = vld [vmem:[#allocation7 + $0xf8] sm:$0xff] }
 0x23f   : > { %v2596_v19 = vadd.f32 %v2523_v52, %v2362_v60  ;;  %2097 = vmatmul.bf16.gmra.mxu2 %v1964_v12  ;;  %v13602_v52 = vld [vmem:[#allocation7 + $0x40] sm:$0xff]  ;;  %3505 = vmatpush.bf16.msrb.mxu0 %v13625_v5 }
 0x240   : > { %2939 = vmatpush.bf16.msrb.mxu1 %v13602_v52  ;;  %v1896_v52 = vadd.f32 %v1828_v3, %v14648_v13  ;;  %v1715_v3 = vld [vmem:[#allocation2 + $0x172] sm:$0xff] }
 0x241   : > { %2346 = vmatmul.bf16.gmra.mxu3 %v14684_v1  ;;  %v2632_v32 = vadd.f32 %v14807_v27, %v2596_v19  ;;  %v1713_v1 = vld [vmem:[#allocation2 + $0x15a] sm:$0xff] }
 0x242   : > { %v2058_v10 = vpop.f32.mrf.mxu2  ;;  %v1731_v60 = vpack.c.bf16 %v1713_v1, %v1712_v48 }
 0x243   : > { %v14865_v16 = vmax.f32 %v2632_v32, 0.0  ;;  %v2129_v42 = vadd.f32 %v2058_v10, %v1894_v8  ;;  %v1830_v53 = vpop.f32.mrf.mxu1  ;;  %v2528_v39 = vpop.f32.mrf.mxu0  ;;  %v1965_v32 = vpack.c.bf16 %v1946_v25, %v1945_v30  ;;  %v2202_v10 = vpack.c.bf16 %v2186_v22, %v2185_v4  ;;  %v13624_v22 = vld [vmem:[#allocation7 + $0xf0] sm:$0xff] }
 0x244   : > { %v14863_v21 = vpop.f32.mrf.mxu3  ;;  %3506 = vmatpush.bf16.msrb.mxu0 %v13624_v22  ;;  %v13622_v22 = vld [vmem:[#allocation7 + $0xe0] sm:$0xff] }
 0x245   : > { %18662 = vst [vmem:[#allocation23_spill] sm:$0xff] %v14865_v16  ;;  %v2363_v57 = vadd.f32 %v14801_v9, %v2129_v42 }
 0x246   : > { %2728 = vst [vmem:[#allocation2 + $0x51] sm:$0xff] %v14865_v16 }
 0x247   : > { %v2597_v47 = vadd.f32 %v2526_v43, %v2363_v57  ;;  %v13598_v57 = vld [vmem:[#allocation7 + $0x20] sm:$0xff] }
 0x248   : > { %3072 = vmatpush.bf16.msrb.mxu2 %v13598_v57 }
 0x249   : > { %v2633_v14 = vadd.f32 %v14807_v27, %v2597_v47 }
 0x24a   : > { %v2060_v62 = vpop.f32.mrf.mxu2 }
 0x24b   : > { %v14873_v19 = vmax.f32 %v2633_v14, 0.0  ;;  %v2130_v9 = vadd.f32 %v2060_v62, %v1895_v0  ;;  %v1833_v8 = vpop.f32.mrf.mxu1  ;;  %v2531_v43 = vpop.f32.mrf.mxu0  ;;  %v1714_v0 = vld [vmem:[#allocation2 + $0x16a] sm:$0xff] }
 0x24c   : > { %v14871_v12 = vpop.f32.mrf.mxu3  ;;  %v1947_v14 = vld [vmem:[#allocation2 + $0x168] sm:$0xff]  ;;  %v1948_v62 = vld [vmem:[#allocation2 + $0x170] sm:$0xff]  ;;  %v1732_v5 = vpack.c.bf16 %v1715_v3, %v1714_v0  ;;  %v1898_v3 = vadd.f32 %v1833_v8, %v14663_v38 }
 0x24d   : > { %18663 = vst [vmem:[#allocation24_spill] sm:$0xff] %v14873_v19  ;;  %v2364_v42 = vadd.f32 %v14811_v37, %v2130_v9  ;;  %v3159_v9 = vld [vmem:[#allocation2 + $0xa] sm:$0xff]  ;;  %v1716_v8 = vld [vmem:[#allocation2 + $0x182] sm:$0xff] }
 0x24e   : > { %2729 = vst [vmem:[#allocation2 + $0x61] sm:$0xff] %v14873_v19  ;;  %1872 = vmatmul.bf16.gmra.mxu1 %v1731_v60  ;;  %2570 = vmatmul.bf16.gmra.mxu0 %v1731_v60  ;;  %v3158_v60 = vld [vmem:[#allocation2 + $0x2] sm:$0xff] }
 0x24f   : > { %v2598_v34 = vadd.f32 %v2528_v39, %v2364_v42  ;;  %2102 = vmatmul.bf16.gmra.mxu2 %v1965_v32  ;;  %v13623_v32 = vld [vmem:[#allocation7 + $0xe8] sm:$0xff]  ;;  %v13597_v0 = vld [vmem:[#allocation7 + $0x18] sm:$0xff] }
 0x250   : > { %3507 = vmatpush.bf16.msrb.mxu0 %v13623_v32  ;;  %3073 = vmatpush.bf16.msrb.mxu2 %v13597_v0 }
 0x251   : > { %2351 = vmatmul.bf16.gmra.mxu3 %v2202_v10  ;;  %v2634_v47 = vadd.f32 %v14807_v27, %v2598_v34  ;;  %v1897_v10 = vadd.f32 %v1830_v53, %v14657_v23 }
 0x252   : > { %v2063_v48 = vpop.f32.mrf.mxu2 }
 0x253   : > { %v14881_v30 = vmax.f32 %v2634_v47, 0.0  ;;  %v2131_v25 = vadd.f32 %v2063_v48, %v1896_v52  ;;  %v14883_v37 = vpop.f32.mrf.mxu1  ;;  %v2533_v4 = vpop.f32.mrf.mxu0  ;;  %v1966_v48 = vpack.c.bf16 %v1948_v62, %v1947_v14 }
 0x254   : > { %v14879_v1 = vpop.f32.mrf.mxu3  ;;  %3508 = vmatpush.bf16.msrb.mxu0 %v13622_v22  ;;  %v13595_v22 = vld [vmem:[#allocation7 + $0x8] sm:$0xff] }
 0x255   : > { %18664 = vst [vmem:[#allocation25_spill] sm:$0xff] %v14881_v30  ;;  %v2365_v39 = vadd.f32 %v14820_v63, %v2131_v25  ;;  %v3190_v25 = vpack.c.bf16 %v3159_v9, %v3158_v60 }
 0x256   : > { %2730 = vst [vmem:[#allocation2 + $0x69] sm:$0xff] %v14881_v30 }
 0x257   : > { %v2599_v13 = vadd.f32 %v2531_v43, %v2365_v39  ;;  %v13618_v39 = vld [vmem:[#allocation7 + $0xc0] sm:$0xff] }
 0x259   : > { %v2635_v42 = vadd.f32 %v14807_v27, %v2599_v13  ;;  %v13621_v13 = vld [vmem:[#allocation7 + $0xd8] sm:$0xff] }
 0x25a   : > { %v2065_v57 = vpop.f32.mrf.mxu2  ;;  %3509 = vmatpush.bf16.msrb.mxu0 %v13621_v13 }
 0x25b   : > { %v14891_v52 = vmax.f32 %v2635_v42, 0.0  ;;  %v2132_v63 = vadd.f32 %v2065_v57, %v1897_v10  ;;  %v14893_v47 = vpop.f32.mrf.mxu1  ;;  %v2536_v43 = vpop.f32.mrf.mxu0  ;;  %v13596_v10 = vld [vmem:[#allocation7 + $0x10] sm:$0xff] }
 0x25c   : > { %v14889_v34 = vpop.f32.mrf.mxu3  ;;  %v13620_v42 = vld [vmem:[#allocation7 + $0xd0] sm:$0xff]  ;;  %3074 = vmatpush.bf16.msrb.mxu2 %v13596_v10 }
 0x25d   : > { %18665 = vst [vmem:[#allocation26_spill] sm:$0xff] %v14891_v52  ;;  %v2366_v23 = vadd.f32 %v14837_v45, %v2132_v63  ;;  %v1717_v63 = vld [vmem:[#allocation2 + $0x18a] sm:$0xff] }
 0x25e   : > { %2731 = vst [vmem:[#allocation2 + $0x79] sm:$0xff] %v14891_v52  ;;  %1877 = vmatmul.bf16.gmra.mxu1 %v1732_v5  ;;  %2575 = vmatmul.bf16.gmra.mxu0 %v1732_v5  ;;  %v13633_v5 = vld [vmem:[#allocation7 + $0x138] sm:$0xff] }
 0x25f   : > { %v2600_v53 = vadd.f32 %v2533_v4, %v2366_v23  ;;  %2107 = vmatmul.bf16.gmra.mxu2 %v1966_v48  ;;  %v1949_v48 = vld [vmem:[#allocation2 + $0x180] sm:$0xff]  ;;  %3739 = vmatpush.bf16.msra.mxu1 %v13633_v5  ;;  %v13619_v23 = vld [vmem:[#allocation7 + $0xc8] sm:$0xff]  ;;  %v13594_v5 = vld [vmem:[#allocation7] sm:$0xff] }
 0x260   : > { %3510 = vmatpush.bf16.msrb.mxu0 %v13620_v42  ;;  %3075 = vmatpush.bf16.msrb.mxu2 %v13595_v22 }
 0x261   : > { %3279 = vmatmul.bf16.vlgmr.msrb.gmra.mxu3 %v3190_v25  ;;  %v2636_v14 = vadd.f32 %v14807_v27, %v2600_v53  ;;  %v1950_v25 = vld [vmem:[#allocation2 + $0x188] sm:$0xff]  ;;  %v1899_v53 = vadd.f32 %v14883_v37, %v14673_v18 }
 0x262   : > { %v2068_v62 = vpop.f32.mrf.mxu2  ;;  %v1967_v42 = vpack.c.bf16 %v1950_v25, %v1949_v48 }
 0x263   : > { %v14903_v45 = vmax.f32 %v2636_v14, 0.0  ;;  %v2133_v9 = vadd.f32 %v2068_v62, %v1898_v3  ;;  %v1840_v4 = vpop.f32.mrf.mxu1  ;;  %v2538_v32 = vpop.f32.mrf.mxu0  ;;  %v3160_v14 = vld [vmem:[#allocation2 + $0x1a] sm:$0xff]  ;;  %v3161_v62 = vld [vmem:[#allocation2 + $0x22] sm:$0xff] }
 0x264   : > { %v14901_v60 = vpop.f32.mrf.mxu3  ;;  %3511 = vmatpush.bf16.msrb.mxu0 %v13619_v23  ;;  %v3191_v37 = vpack.c.bf16 %v3161_v62, %v3160_v14  ;;  %3076 = vmatpush.bf16.msrb.mxu2 %v13594_v5  ;;  %v2820_v14 = vld [vmem:[#allocation2 + $0x9] sm:$0xff] }
 0x265   : > { %18666 = vst [vmem:[#allocation27_spill] sm:$0xff] %v14903_v45  ;;  %v2367_v57 = vadd.f32 %v14846_v61, %v2133_v9  ;;  %v1733_v61 = vpack.c.bf16 %v1717_v63, %v1716_v8  ;;  %v1900_v8 = vadd.f32 %v14893_v47, %v14679_v54  ;;  %v1901_v54 = vadd.f32 %v1840_v4, %v14689_v56 }
 0x266   : > { %2732 = vst [vmem:[#allocation2 + $0x81] sm:$0xff] %v14903_v45  ;;  %v18670_v4 = vpack.c.bf16 %v14828_v11, %v14825_v26  ;;  %v2755_v11 = vld [vmem:[#allocation2] sm:$0xff] }
 0x267   : > { %v2601_v38 = vadd.f32 %v2536_v43, %v2367_v57 }
 0x268   : > { %3512 = vmatpush.bf16.msrb.mxu0 %v13618_v39  ;;  %v2420_v39 = vld [vmem:[#allocation2 + $0x1a2] sm:$0xff] }
 0x269   : > { %v2637_v0 = vadd.f32 %v14807_v27, %v2601_v38 }
 0x26a   : > { %v2070_v13 = vpop.f32.mrf.mxu2 }
 0x26b   : > { %v14912_v43 = vmax.f32 %v2637_v0, 0.0  ;;  %v2134_v9 = vadd.f32 %v2070_v13, %v1899_v53  ;;  %v1843_v10 = vpop.f32.mrf.mxu1  ;;  %v2541_v57 = vpop.f32.mrf.mxu0  ;;  %v2419_v0 = vld [vmem:[#allocation2 + $0x19a] sm:$0xff] }
 0x26c   : > { %v14910_v3 = vpop.f32.mrf.mxu3 }
 0x26d   : > { %18667 = vst [vmem:[#allocation28_spill] sm:$0xff] %v14912_v43  ;;  %v2368_v18 = vadd.f32 %v14854_v15, %v2134_v9 }
 0x26e   : > { %2733 = vst [vmem:[#allocation2 + $0x91] sm:$0xff] %v14912_v43  ;;  %1882 = vmatmul.bf16.gmra.mxu1 %v1733_v61  ;;  %2580 = vmatmul.bf16.gmra.mxu0 %v1733_v61  ;;  %v2819_v61 = vld [vmem:[#allocation2 + $0x1] sm:$0xff] }
 0x26f   : > { %v2602_v38 = vadd.f32 %v2538_v32, %v2368_v18  ;;  %2112 = vmatmul.bf16.gmra.mxu2 %v1967_v42  ;;  %v2436_v42 = vpack.c.bf16 %v2420_v39, %v2419_v0  ;;  %v2851_v5 = vpack.c.bf16 %v2820_v14, %v2819_v61  ;;  %v3162_v18 = vld [vmem:[#allocation2 + $0x32] sm:$0xff] }
 0x271   : > { %3284 = vmatmul.bf16.gmra.mxu3 %v3191_v37  ;;  %v2638_v63 = vadd.f32 %v14807_v27, %v2602_v38  ;;  %v3163_v37 = vld [vmem:[#allocation2 + $0x3a] sm:$0xff] }
 0x272   : > { %v2073_v48 = vpop.f32.mrf.mxu2 }
 0x273   : > { %v14921_v22 = vmax.f32 %v2638_v63, 0.0  ;;  %v2135_v23 = vadd.f32 %v2073_v48, %v1900_v8  ;;  %v1845_v15 = vpop.f32.mrf.mxu1  ;;  %v2543_v53 = vpop.f32.mrf.mxu0  ;;  %v3192_v48 = vpack.c.bf16 %v3163_v37, %v3162_v18  ;;  %v3164_v18 = vld [vmem:[#allocation2 + $0x4a] sm:$0xff]  ;;  %v3165_v37 = vld [vmem:[#allocation2 + $0x52] sm:$0xff] }
 0x274   : > { %v14919_v25 = vpop.f32.mrf.mxu3 }
 0x275   : > { %18668 = vst [vmem:[#allocation29_spill] sm:$0xff] %v14921_v22  ;;  %v2369_v32 = vadd.f32 %v14863_v21, %v2135_v23  ;;  %v1902_v23 = vadd.f32 %v1843_v10, %v14695_v58  ;;  %v1903_v58 = vadd.f32 %v1845_v15, %v14702_v20  ;;  %v3193_v15 = vpack.c.bf16 %v3165_v37, %v3164_v18  ;;  %v3166_v18 = vld [vmem:[#allocation2 + $0x62] sm:$0xff]  ;;  %v3167_v37 = vld [vmem:[#allocation2 + $0x6a] sm:$0xff] }
 0x276   : > { %2734 = vst [vmem:[#allocation2 + $0x99] sm:$0xff] %v14921_v22 }
 0x277   : > { %v2603_v13 = vadd.f32 %v2541_v57, %v2369_v32 }
 0x279   : > { %v2639_v47 = vadd.f32 %v14807_v27, %v2603_v13 }
 0x27a   : > { %v2075_v62 = vpop.f32.mrf.mxu2 }
 0x27b   : > { %v14929_v38 = vmax.f32 %v2639_v47, 0.0  ;;  %v2136_v8 = vadd.f32 %v2075_v62, %v1901_v54  ;;  %v1848_v21 = vpop.f32.mrf.mxu1  ;;  %v2546_v63 = vpop.f32.mrf.mxu0  ;;  %v13632_v54 = vld [vmem:[#allocation7 + $0x130] sm:$0xff]  ;;  %v2756_v47 = vld [vmem:[#allocation2 + $0x8] sm:$0xff] }
 0x27c   : > { %v14927_v9 = vpop.f32.mrf.mxu3  ;;  %3740 = vmatpush.bf16.msra.mxu1 %v13632_v54  ;;  %v3393_v62 = vld [vmem:[#allocation2 + $0x20] sm:$0xff] }
 0x27d   : > { %18669 = vst [vmem:[#allocation30_spill] sm:$0xff] %v14929_v38  ;;  %v2370_v57 = vadd.f32 %v14871_v12, %v2136_v8 }
 0x27e   : > { %2735 = vst [vmem:[#allocation2 + $0xa9] sm:$0xff] %v14929_v38  ;;  %2585 = vmatmul.bf16.gmra.mxu0 %v2436_v42  ;;  %2940 = vmatmul.bf16.vlgmr.msrb.gmra.mxu1 %v2851_v5 }
 0x27f   : > { %v2604_v56 = vadd.f32 %v2543_v53, %v2370_v57  ;;  %2117 = vmatmul.bf16.gmra.mxu2 %v18670_v4  ;;  %v2852_v4 = vpack.c.bf16 %v14822_v49, %v14813_v35 }
 0x281   : > { %3289 = vmatmul.bf16.gmra.mxu3 %v3192_v48  ;;  %v2640_v32 = vadd.f32 %v14807_v27, %v2604_v56  ;;  %v2787_v56 = vpack.c.bf16 %v2756_v47, %v2755_v11 }
 0x282   : > { %v2078_v0 = vpop.f32.mrf.mxu2 }
 0x283   : > { %v14940_v39 = vmax.f32 %v2640_v32, 0.0  ;;  %v2137_v61 = vadd.f32 %v2078_v0, %v1902_v23  ;;  %v1850_v12 = vpop.f32.mrf.mxu1  ;;  %v2548_v14 = vpop.f32.mrf.mxu0  ;;  %v1904_v0 = vadd.f32 %v1848_v21, %v14708_v24  ;;  %v3395_v24 = vld [vmem:[#allocation2 + $0x38] sm:$0xff] }
 0x284   : > { %v14938_v13 = vpop.f32.mrf.mxu3 }
 0x285   : > { %18671 = vst [vmem:[#allocation31_spill] sm:$0xff] %v14940_v39  ;;  %v2371_v53 = vadd.f32 %v14879_v1, %v2137_v61 }
 0x286   : > { %2736 = vst [vmem:[#allocation2 + $0xb1] sm:$0xff] %v14940_v39 }
 0x287   : > { %v2605_v26 = vadd.f32 %v2546_v63, %v2371_v53  ;;  %v3392_v63 = vld [vmem:[#allocation2 + $0x18] sm:$0xff] }
 0x288   : > { %v3424_v23 = vpack.c.bf16 %v3393_v62, %v3392_v63 }
 0x289   : > { %v2641_v10 = vadd.f32 %v14807_v27, %v2605_v26 }
 0x28a   : > { %v2080_v42 = vpop.f32.mrf.mxu2 }
 0x28b   : > { %v14948_v8 = vmax.f32 %v2641_v10, 0.0  ;;  %v2138_v57 = vadd.f32 %v2080_v42, %v1903_v58  ;;  %v1853_v48 = vpop.f32.mrf.mxu1  ;;  %v2551_v1 = vpop.f32.mrf.mxu0 }
 0x28c   : > { %v14946_v5 = vpop.f32.mrf.mxu3 }
 0x28d   : > { %18672 = vst [vmem:[#allocation32_spill] sm:$0xff] %v14948_v8  ;;  %v2372_v20 = vadd.f32 %v14889_v34, %v2138_v57 }
 0x28e   : > { %2737 = vst [vmem:[#allocation2 + $0xc1] sm:$0xff] %v14948_v8  ;;  %2945 = vmatmul.bf16.gmra.mxu1 %v2852_v4  ;;  %3513 = vmatmul.bf16.vlgmr.msrb.gmra.mxu0 %v3424_v23 }
 0x28f   : > { %v2606_v32 = vadd.f32 %v2548_v14, %v2372_v20  ;;  %3077 = vmatmul.bf16.vlgmr.msrb.gmra.mxu2 %v2787_v56  ;;  %v1905_v14 = vadd.f32 %v1850_v12, %v14714_v2  ;;  %v3394_v20 = vld [vmem:[#allocation2 + $0x30] sm:$0xff]  ;;  %v3194_v12 = vpack.c.bf16 %v3167_v37, %v3166_v18  ;;  %v3168_v18 = vld [vmem:[#allocation2 + $0x7a] sm:$0xff]  ;;  %v3169_v37 = vld [vmem:[#allocation2 + $0x82] sm:$0xff] }
 0x291   : > { %3294 = vmatmul.bf16.gmra.mxu3 %v3193_v15  ;;  %v2642_v61 = vadd.f32 %v14807_v27, %v2606_v32  ;;  %v1906_v32 = vadd.f32 %v1853_v48, %v14720_v28  ;;  %v3397_v48 = vld [vmem:[#allocation2 + $0x50] sm:$0xff] }
 0x292   : > { %v2083_v53 = vpop.f32.mrf.mxu2 }
 0x293   : > { %v14958_v26 = vmax.f32 %v2642_v61, 0.0  ;;  %v2139_v11 = vadd.f32 %v2083_v53, %v1904_v0  ;;  %v1855_v47 = vpop.f32.mrf.mxu1  ;;  %v2553_v58 = vpop.f32.mrf.mxu0 }
 0x294   : > { %v14956_v54 = vpop.f32.mrf.mxu3 }
 0x295   : > { %18673 = vst [vmem:[#allocation33_spill] sm:$0xff] %v14958_v26  ;;  %v2373_v34 = vadd.f32 %v14901_v60, %v2139_v11  ;;  %v2853_v60 = vpack.c.bf16 %v14848_v36, %v14839_v33 }
 0x296   : > { %2738 = vst [vmem:[#allocation2 + $0xc9] sm:$0xff] %v14958_v26 }
 0x297   : > { %v2607_v10 = vadd.f32 %v2551_v1, %v2373_v34  ;;  %v14970_v1 = vpack.c.bf16 %v3395_v24, %v3394_v20 }
 0x299   : > { %v2643_v62 = vadd.f32 %v14807_v27, %v2607_v10 }
 0x29a   : > { %v2085_v21 = vpop.f32.mrf.mxu2 }
 0x29b   : > { %v14966_v57 = vmax.f32 %v2643_v62, 0.0  ;;  %v2140_v56 = vadd.f32 %v2085_v21, %v1905_v14  ;;  %v1858_v63 = vpop.f32.mrf.mxu1  ;;  %v2556_v4 = vpop.f32.mrf.mxu0  ;;  %v13631_v62 = vld [vmem:[#allocation7 + $0x128] sm:$0xff] }
 0x29c   : > { %v14964_v42 = vpop.f32.mrf.mxu3  ;;  %3741 = vmatpush.bf16.msra.mxu1 %v13631_v62 }
 0x29d   : > { %18674 = vst [vmem:[#allocation34_spill] sm:$0xff] %v14966_v57  ;;  %v2374_v2 = vadd.f32 %v14910_v3, %v2140_v56 }
 0x29e   : > { %2739 = vst [vmem:[#allocation2 + $0xd9] sm:$0xff] %v14966_v57  ;;  %2950 = vmatmul.bf16.gmra.mxu1 %v2853_v60  ;;  %3518 = vmatmul.bf16.gmra.mxu0 %v14970_v1 }
 0x29f   : > { %v2608_v15 = vadd.f32 %v2553_v58, %v2374_v2  ;;  %3082 = vmatmul.bf16.gmra.mxu2 %v3424_v23  ;;  %v1907_v23 = vadd.f32 %v1855_v47, %v14726_v55  ;;  %v3195_v47 = vpack.c.bf16 %v3169_v37, %v3168_v18  ;;  %v3170_v18 = vld [vmem:[#allocation2 + $0x92] sm:$0xff]  ;;  %v3171_v37 = vld [vmem:[#allocation2 + $0x9a] sm:$0xff] }
 0x2a1   : > { %3299 = vmatmul.bf16.gmra.mxu3 %v3194_v12  ;;  %v2644_v0 = vadd.f32 %v14807_v27, %v2608_v15  ;;  %v3396_v12 = vld [vmem:[#allocation2 + $0x48] sm:$0xff] }
 0x2a2   : > { %v2088_v61 = vpop.f32.mrf.mxu2 }
 0x2a3   : > { %v14979_v11 = vmax.f32 %v2644_v0, 0.0  ;;  %v2141_v34 = vadd.f32 %v2088_v61, %v1906_v32  ;;  %v1860_v10 = vpop.f32.mrf.mxu1  ;;  %v2558_v14 = vpop.f32.mrf.mxu0  ;;  %v1908_v32 = vadd.f32 %v1858_v63, %v14732_v46  ;;  %v3399_v46 = vld [vmem:[#allocation2 + $0x68] sm:$0xff] }
 0x2a4   : > { %v14977_v53 = vpop.f32.mrf.mxu3 }
 0x2a5   : > { %18675 = vst [vmem:[#allocation35_spill] sm:$0xff] %v14979_v11  ;;  %v2375_v3 = vadd.f32 %v14919_v25, %v2141_v34  ;;  %v2854_v25 = vpack.c.bf16 %v14865_v16, %v14856_v50  ;;  %v3642_v35 = vld [vmem:[#allocation2 + $0xd9] sm:$0xff] }
 0x2a6   : > { %2740 = vst [vmem:[#allocation2 + $0xe1] sm:$0xff] %v14979_v11 }
 0x2a7   : > { %v2609_v58 = vadd.f32 %v2556_v4, %v2375_v3  ;;  %v14991_v4 = vpack.c.bf16 %v3397_v48, %v3396_v12 }
 0x2a9   : > { %v2645_v28 = vadd.f32 %v14807_v27, %v2609_v58 }
 0x2aa   : > { %v2090_v24 = vpop.f32.mrf.mxu2 }
 0x2ab   : > { %v14987_v56 = vmax.f32 %v2645_v28, 0.0  ;;  %v2142_v20 = vadd.f32 %v2090_v24, %v1907_v23  ;;  %v1863_v60 = vpop.f32.mrf.mxu1  ;;  %v2561_v2 = vpop.f32.mrf.mxu0  ;;  %v1909_v28 = vadd.f32 %v1860_v10, %v14738_v6  ;;  %v3196_v10 = vpack.c.bf16 %v3171_v37, %v3170_v18 }
 0x2ac   : > { %v14985_v21 = vpop.f32.mrf.mxu3 }
 0x2ad   : > { %18676 = vst [vmem:[#allocation36_spill] sm:$0xff] %v14987_v56  ;;  %v2376_v55 = vadd.f32 %v14927_v9, %v2142_v20 }
 0x2ae   : > { %2741 = vst [vmem:[#allocation2 + $0xf1] sm:$0xff] %v14987_v56  ;;  %2955 = vmatmul.bf16.gmra.mxu1 %v2854_v25  ;;  %3523 = vmatmul.bf16.gmra.mxu0 %v14991_v4 }
 0x2af   : > { %v2610_v15 = vadd.f32 %v2558_v14, %v2376_v55  ;;  %3087 = vmatmul.bf16.gmra.mxu2 %v14970_v1 }
 0x2b1   : > { %3304 = vmatmul.bf16.gmra.mxu3 %v3195_v47  ;;  %v2646_v0 = vadd.f32 %v14807_v27, %v2610_v15  ;;  %v3398_v47 = vld [vmem:[#allocation2 + $0x60] sm:$0xff] }
 0x2b2   : > { %v2093_v61 = vpop.f32.mrf.mxu2 }
 0x2b3   : > { %v15001_v3 = vmax.f32 %v2646_v0, 0.0  ;;  %v2143_v62 = vadd.f32 %v2093_v61, %v1908_v32  ;;  %v1865_v58 = vpop.f32.mrf.mxu1  ;;  %v2563_v9 = vpop.f32.mrf.mxu0  ;;  %v1910_v32 = vadd.f32 %v1863_v60, %v14744_v44  ;;  %v3401_v60 = vld [vmem:[#allocation2 + $0x80] sm:$0xff] }
 0x2b4   : > { %v14999_v34 = vpop.f32.mrf.mxu3 }
 0x2b5   : > { %18677 = vst [vmem:[#allocation37_spill] sm:$0xff] %v15001_v3  ;;  %v2377_v23 = vadd.f32 %v14938_v13, %v2143_v62  ;;  %v2855_v13 = vpack.c.bf16 %v14881_v30, %v14873_v19  ;;  %v3634_v30 = vld [vmem:[#allocation2 + $0x79] sm:$0xff] }
 0x2b6   : > { %2742 = vst [vmem:[#allocation2 + $0xf9] sm:$0xff] %v15001_v3 }
 0x2b7   : > { %v2611_v14 = vadd.f32 %v2561_v2, %v2377_v23  ;;  %v15013_v2 = vpack.c.bf16 %v3399_v46, %v3398_v47  ;;  %v3173_v47 = vld [vmem:[#allocation2 + $0xb2] sm:$0xff] }
 0x2b9   : > { %v2647_v48 = vadd.f32 %v14807_v27, %v2611_v14 }
 0x2ba   : > { %v2095_v63 = vpop.f32.mrf.mxu2 }
 0x2bb   : > { %v15009_v20 = vmax.f32 %v2647_v48, 0.0  ;;  %v2144_v12 = vadd.f32 %v2095_v63, %v1909_v28  ;;  %v1868_v25 = vpop.f32.mrf.mxu1  ;;  %v2566_v55 = vpop.f32.mrf.mxu0  ;;  %v1911_v63 = vadd.f32 %v1865_v58, %v14750_v17 }
 0x2bc   : > { %v15007_v24 = vpop.f32.mrf.mxu3 }
 0x2bd   : > { %18678 = vst [vmem:[#allocation38_spill] sm:$0xff] %v15009_v20  ;;  %v2378_v6 = vadd.f32 %v14946_v5, %v2144_v12  ;;  %v3172_v12 = vld [vmem:[#allocation2 + $0xaa] sm:$0xff] }
 0x2be   : > { %2743 = vst [vmem:[#allocation2 + $0x109] sm:$0xff] %v15009_v20  ;;  %2960 = vmatmul.bf16.gmra.mxu1 %v2855_v13  ;;  %3528 = vmatmul.bf16.gmra.mxu0 %v15013_v2  ;;  %v3197_v58 = vpack.c.bf16 %v3173_v47, %v3172_v12 }
 0x2bf   : > { %v2612_v15 = vadd.f32 %v2563_v9, %v2378_v6  ;;  %3092 = vmatmul.bf16.gmra.mxu2 %v14991_v4  ;;  %v13630_v9 = vld [vmem:[#allocation7 + $0x120] sm:$0xff] }
 0x2c0   : > { %3742 = vmatpush.bf16.msra.mxu1 %v13630_v9 }
 0x2c1   : > { %3309 = vmatmul.bf16.gmra.mxu3 %v3196_v10  ;;  %v2648_v0 = vadd.f32 %v14807_v27, %v2612_v15 }
 0x2c2   : > { %v2098_v61 = vpop.f32.mrf.mxu2 }
 0x2c3   : > { %v15023_v23 = vmax.f32 %v2648_v0, 0.0  ;;  %v2145_v14 = vadd.f32 %v2098_v61, %v1910_v32  ;;  %v1870_v28 = vpop.f32.mrf.mxu1  ;;  %v2568_v5 = vpop.f32.mrf.mxu0  ;;  %v3400_v32 = vld [vmem:[#allocation2 + $0x78] sm:$0xff]  ;;  %v1912_v61 = vadd.f32 %v1868_v25, %v14756_v29 }
 0x2c4   : > { %v15021_v62 = vpop.f32.mrf.mxu3  ;;  %v3403_v29 = vld [vmem:[#allocation2 + $0x98] sm:$0xff] }
 0x2c5   : > { %18679 = vst [vmem:[#allocation39_spill] sm:$0xff] %v15023_v23  ;;  %v2379_v48 = vadd.f32 %v14956_v54, %v2145_v14  ;;  %v2856_v54 = vpack.c.bf16 %v14903_v45, %v14891_v52 }
 0x2c6   : > { %2744 = vst [vmem:[#allocation2 + $0x111] sm:$0xff] %v15023_v23 }
 0x2c7   : > { %v2613_v46 = vadd.f32 %v2566_v55, %v2379_v48  ;;  %v15035_v55 = vpack.c.bf16 %v3401_v60, %v3400_v32  ;;  %v3175_v32 = vld [vmem:[#allocation2 + $0xca] sm:$0xff] }
 0x2c9   : > { %v2649_v44 = vadd.f32 %v14807_v27, %v2613_v46 }
 0x2ca   : > { %v2100_v18 = vpop.f32.mrf.mxu2 }
 0x2cb   : > { %v15031_v13 = vmax.f32 %v2649_v44, 0.0  ;;  %v2146_v6 = vadd.f32 %v2100_v18, %v1911_v63  ;;  %v1873_v10 = vpop.f32.mrf.mxu1  ;;  %v2571_v15 = vpop.f32.mrf.mxu0  ;;  %v1913_v18 = vadd.f32 %v1870_v28, %v14762_v59 }
 0x2cc   : > { %v15029_v37 = vpop.f32.mrf.mxu3 }
 0x2cd   : > { %18680 = vst [vmem:[#allocation40_spill] sm:$0xff] %v15031_v13  ;;  %v2380_v17 = vadd.f32 %v14964_v42, %v2146_v6  ;;  %v3174_v6 = vld [vmem:[#allocation2 + $0xc2] sm:$0xff] }
 0x2ce   : > { %2745 = vst [vmem:[#allocation2 + $0x121] sm:$0xff] %v15031_v13  ;;  %2965 = vmatmul.bf16.gmra.mxu1 %v2856_v54  ;;  %3533 = vmatmul.bf16.gmra.mxu0 %v15035_v55  ;;  %v3198_v28 = vpack.c.bf16 %v3175_v32, %v3174_v6 }
 0x2cf   : > { %v2614_v0 = vadd.f32 %v2568_v5, %v2380_v17  ;;  %3097 = vmatmul.bf16.gmra.mxu2 %v15013_v2 }
 0x2d1   : > { %3314 = vmatmul.bf16.gmra.mxu3 %v3197_v58  ;;  %v2650_v14 = vadd.f32 %v14807_v27, %v2614_v0 }
 0x2d2   : > { %v2103_v48 = vpop.f32.mrf.mxu2 }
 0x2d3   : > { %v15045_v46 = vmax.f32 %v2650_v14, 0.0  ;;  %v2147_v63 = vadd.f32 %v2103_v48, %v1912_v61  ;;  %v1875_v44 = vpop.f32.mrf.mxu1  ;;  %v2573_v42 = vpop.f32.mrf.mxu0  ;;  %v3402_v61 = vld [vmem:[#allocation2 + $0x90] sm:$0xff]  ;;  %v1914_v48 = vadd.f32 %v1873_v10, %v14768_v31 }
 0x2d4   : > { %v15043_v9 = vpop.f32.mrf.mxu3  ;;  %v1915_v32 = vadd.f32 %v1875_v44, %v14774_v51  ;;  %v3405_v10 = vld [vmem:[#allocation2 + $0xb0] sm:$0xff]  ;;  %v13641_v44 = vld [vmem:[#allocation7 + $0x178] sm:$0xff] }
 0x2d5   : > { %18681 = vst [vmem:[#allocation41_spill] sm:$0xff] %v15045_v46  ;;  %v2381_v60 = vadd.f32 %v14977_v53, %v2147_v63  ;;  %v2857_v53 = vpack.c.bf16 %v14921_v22, %v14912_v43  ;;  %3973 = vmatpush.bf16.msra.mxu2 %v13641_v44  ;;  %v3179_v44 = vld [vmem:[#allocation2 + $0xfa] sm:$0xff] }
 0x2d6   : > { %2746 = vst [vmem:[#allocation2 + $0x129] sm:$0xff] %v15045_v46 }
 0x2d7   : > { %v2615_v5 = vadd.f32 %v2571_v15, %v2381_v60  ;;  %v15057_v15 = vpack.c.bf16 %v3403_v29, %v3402_v61 }
 0x2d9   : > { %v2651_v12 = vadd.f32 %v14807_v27, %v2615_v5 }
 0x2da   : > { %v2105_v25 = vpop.f32.mrf.mxu2 }
 0x2db   : > { %v15053_v54 = vmax.f32 %v2651_v12, 0.0  ;;  %v2148_v17 = vadd.f32 %v2105_v25, %v1913_v18  ;;  %v1878_v58 = vpop.f32.mrf.mxu1  ;;  %v2576_v0 = vpop.f32.mrf.mxu0 }
 0x2dc   : > { %v15051_v47 = vpop.f32.mrf.mxu3 }
 0x2dd   : > { %18682 = vst [vmem:[#allocation42_spill] sm:$0xff] %v15053_v54  ;;  %v2382_v59 = vadd.f32 %v14985_v21, %v2148_v17 }
 0x2de   : > { %2747 = vst [vmem:[#allocation2 + $0x139] sm:$0xff] %v15053_v54  ;;  %2970 = vmatmul.bf16.gmra.mxu1 %v2857_v53  ;;  %3538 = vmatmul.bf16.gmra.mxu0 %v15057_v15  ;;  %v3176_v53 = vld [vmem:[#allocation2 + $0xda] sm:$0xff] }
 0x2df   : > { %v2616_v14 = vadd.f32 %v2573_v42, %v2382_v59  ;;  %3102 = vmatmul.bf16.gmra.mxu2 %v15035_v55  ;;  %v13629_v42 = vld [vmem:[#allocation7 + $0x118] sm:$0xff] }
 0x2e0   : > { %3743 = vmatpush.bf16.msra.mxu1 %v13629_v42  ;;  %v3177_v59 = vld [vmem:[#allocation2 + $0xe2] sm:$0xff]  ;;  %v15089_v42 = vld [vmem:[%s18554_s2] ss:$0 sm:$0xff] }
 0x2e1   : > { %3319 = vmatmul.bf16.gmra.mxu3 %v3198_v28  ;;  %v2652_v63 = vadd.f32 %v14807_v27, %v2616_v14 }
 0x2e2   : > { %v2108_v60 = vpop.f32.mrf.mxu2 }
 0x2e3   : > { %v15067_v18 = vmax.f32 %v2652_v63, 0.0  ;;  %v2149_v12 = vadd.f32 %v2108_v60, %v1914_v48  ;;  %v1880_v29 = vpop.f32.mrf.mxu1  ;;  %v2578_v21 = vpop.f32.mrf.mxu0  ;;  %v3404_v60 = vld [vmem:[#allocation2 + $0xa8] sm:$0xff] }
 0x2e4   : > { %v15065_v5 = vpop.f32.mrf.mxu3 }
 0x2e5   : > { %18683 = vst [vmem:[#allocation43_spill] sm:$0xff] %v15067_v18  ;;  %v2383_v25 = vadd.f32 %v14999_v34, %v2149_v12  ;;  %v2858_v34 = vpack.c.bf16 %v14940_v39, %v14929_v38  ;;  %v3406_v39 = vld [vmem:[#allocation2 + $0xc0] sm:$0xff] }
 0x2e6   : > { %2748 = vst [vmem:[#allocation2 + $0x141] sm:$0xff] %v15067_v18 }
 0x2e7   : > { %v2617_v6 = vadd.f32 %v2576_v0, %v2383_v25  ;;  %v15079_v0 = vpack.c.bf16 %v3405_v10, %v3404_v60  ;;  %v1916_v25 = vadd.f32 %v1878_v58, %v14780_v41  ;;  %v18686_v58 = vld [vmem:[#allocation17_spill] sm:$0xff]  ;;  %v3407_v60 = vld [vmem:[#allocation2 + $0xc8] sm:$0xff] }
 0x2e9   : > { %v2653_v31 = vadd.f32 %v14807_v27, %v2617_v6  ;;  %v3199_v27 = vpack.c.bf16 %v3177_v59, %v3176_v53  ;;  %v1917_v59 = vadd.f32 %v1880_v29, %v18686_v58 }
 0x2ea   : > { %v2110_v17 = vpop.f32.mrf.mxu2 }
 0x2eb   : > { %v15075_v28 = vmax.f32 %v2653_v31, 0.0  ;;  %v2150_v14 = vadd.f32 %v2110_v17, %v1915_v32  ;;  %v1883_v48 = vpop.f32.mrf.mxu1  ;;  %v2581_v63 = vpop.f32.mrf.mxu0 }
 0x2ec   : > { %v15073_v61 = vpop.f32.mrf.mxu3  ;;  %v1918_v58 = vadd.f32 %v1883_v48, %v14792_v40 }
 0x2ed   : > { %18684 = vst [vmem:[#allocation44_spill] sm:$0xff] %v15075_v28  ;;  %v2384_v51 = vadd.f32 %v15007_v24, %v2150_v14 }
 0x2ee   : > { %2749 = vst [vmem:[#allocation2 + $0x151] sm:$0xff] %v15075_v28  ;;  %2975 = vmatmul.bf16.gmra.mxu1 %v2858_v34  ;;  %3543 = vmatmul.bf16.gmra.mxu0 %v15079_v0 }
 0x2ef   : > { %v2618_v12 = vadd.f32 %v2578_v21, %v2384_v51  ;;  %3107 = vmatmul.bf16.gmra.mxu2 %v15057_v15 }
 0x2f1   : > { %3324 = vmatmul.bf16.gmra.mxu3 %v3199_v27  ;;  %v2654_v6 = vadd.f32 %v15089_v42, %v2618_v12  ;;  %v3178_v27 = vld [vmem:[#allocation2 + $0xf2] sm:$0xff] }
 0x2f2   : > { %v2113_v24 = vpop.f32.mrf.mxu2 }
 0x2f3   : > { %v15094_v31 = vmax.f32 %v2654_v6, 0.0  ;;  %v2151_v10 = vadd.f32 %v2113_v24, %v1916_v25  ;;  %v1885_v21 = vpop.f32.mrf.mxu1  ;;  %v2583_v17 = vpop.f32.mrf.mxu0 }
 0x2f4   : > { %v15092_v32 = vpop.f32.mrf.mxu3  ;;  %v1919_v40 = vadd.f32 %v1885_v21, %v14798_v7 }
 0x2f5   : > { %18685 = vst [vmem:[#allocation45_spill] sm:$0xff] %v15094_v31  ;;  %v2385_v53 = vadd.f32 %v15021_v62, %v2151_v10  ;;  %v2859_v62 = vpack.c.bf16 %v14958_v26, %v14948_v8  ;;  %v3200_v10 = vpack.c.bf16 %v3179_v44, %v3178_v27  ;;  %v13640_v44 = vld [vmem:[#allocation7 + $0x170] sm:$0xff] }
 0x2f6   : > { %2750 = vst [vmem:[#allocation2 + $0x159] sm:$0xff] %v15094_v31  ;;  %3974 = vmatpush.bf16.msra.mxu2 %v13640_v44 }
 0x2f7   : > { %v2619_v41 = vadd.f32 %v2581_v63, %v2385_v53  ;;  %v15106_v63 = vpack.c.bf16 %v3407_v60, %v3406_v39 }
 0x2f9   : > { %v2655_v14 = vadd.f32 %v15089_v42, %v2619_v41  ;;  %v13628_v41 = vld [vmem:[#allocation7 + $0x110] sm:$0xff] }
 0x2fa   : > { %v2115_v34 = vpop.f32.mrf.mxu2  ;;  %3744 = vmatpush.bf16.msra.mxu1 %v13628_v41  ;;  %v3181_v41 = vld [vmem:[#allocation2 + $0x112] sm:$0xff] }
 0x2fb   : > { %v15102_v12 = vmax.f32 %v2655_v14, 0.0  ;;  %v2152_v25 = vadd.f32 %v2115_v34, %v1917_v59  ;;  %v2586_v6 = vpop.f32.mrf.mxu0  ;;  %v2941_v24 = vpop.f32.mrf.mxu1 }
 0x2fc   : > { %v15100_v51 = vpop.f32.mrf.mxu3 }
 0x2fd   : > { %18687 = vst [vmem:[#allocation17_spill] sm:$0xff] %v15102_v12  ;;  %v2386_v29 = vadd.f32 %v15029_v37, %v2152_v25 }
 0x2fe   : > { %2751 = vst [vmem:[#allocation2 + $0x169] sm:$0xff] %v15102_v12  ;;  %2980 = vmatmul.bf16.gmra.mxu1 %v2859_v62  ;;  %3548 = vmatmul.bf16.gmra.mxu0 %v15106_v63  ;;  %v3409_v62 = vld [vmem:[#allocation2 + $0xe0] sm:$0xff] }
 0x2ff   : > { %v2620_v53 = vadd.f32 %v2583_v17, %v2386_v29  ;;  %3112 = vmatmul.bf16.gmra.mxu2 %v15079_v0 }
 0x301   : > { %3329 = vmatmul.bf16.gmra.mxu3 %v3200_v10  ;;  %v2656_v59 = vadd.f32 %v15089_v42, %v2620_v53  ;;  %v3180_v53 = vld [vmem:[#allocation2 + $0x10a] sm:$0xff] }
 0x302   : > { %v2118_v39 = vpop.f32.mrf.mxu2  ;;  %v3201_v21 = vpack.c.bf16 %v3181_v41, %v3180_v53  ;;  %v3411_v53 = vld [vmem:[#allocation2 + $0xf8] sm:$0xff] }
 0x303   : > { %v15116_v60 = vmax.f32 %v2656_v59, 0.0  ;;  %v2153_v37 = vadd.f32 %v2118_v39, %v1918_v58  ;;  %v2588_v34 = vpop.f32.mrf.mxu0  ;;  %v2943_v27 = vpop.f32.mrf.mxu1 }
 0x304   : > { %v15114_v14 = vpop.f32.mrf.mxu3 }
 0x305   : > { %18688 = vst [vmem:[#allocation46_spill] sm:$0xff] %v15116_v60  ;;  %v2387_v17 = vadd.f32 %v15043_v9, %v2153_v37  ;;  %v3408_v9 = vld [vmem:[#allocation2 + $0xd8] sm:$0xff] }
 0x306   : > { %2752 = vst [vmem:[#allocation2 + $0x171] sm:$0xff] %v15116_v60  ;;  %v15129_v37 = vpack.c.bf16 %v3409_v62, %v3408_v9 }
 0x307   : > { %v2621_v25 = vadd.f32 %v2586_v6, %v2387_v17  ;;  %v2860_v6 = vpack.c.bf16 %v14979_v11, %v14966_v57 }
 0x309   : > { %v15122_v48 = vadd.f32 %v15089_v42, %v2621_v25 }
 0x30a   : > { %v2120_v29 = vpop.f32.mrf.mxu2 }
 0x30b   : > { %18689 = vst [vmem:[#allocation47_spill] sm:$0xff] %v15122_v48  ;;  %v18572_v58 = vmax.f32 %v15122_v48, 0.0  ;;  %v2154_v59 = vadd.f32 %v2120_v29, %v1919_v40  ;;  %v2946_v39 = vpop.f32.mrf.mxu1  ;;  %v3514_v26 = vpop.f32.mrf.mxu0  ;;  %v3410_v48 = vld [vmem:[#allocation2 + $0xf0] sm:$0xff] }
 0x30c   : > { %v15124_v10 = vpop.f32.mrf.mxu3 }
 0x30d   : > { %2753 = vst [vmem:[#allocation2 + $0x181] sm:$0xff] %v18572_v58  ;;  %v2388_v7 = vadd.f32 %v15051_v47, %v2154_v59 }
 0x30e   : > { %2985 = vmatmul.bf16.gmra.mxu1 %v2860_v6  ;;  %3553 = vmatmul.bf16.gmra.mxu0 %v15129_v37  ;;  %v3183_v6 = vld [vmem:[#allocation2 + $0x12a] sm:$0xff] }
 0x30f   : > { %v2622_v17 = vadd.f32 %v2588_v34, %v2388_v7  ;;  %3117 = vmatmul.bf16.gmra.mxu2 %v15106_v63 }
 0x311   : > { %3334 = vmatmul.bf16.gmra.mxu3 %v3201_v21  ;;  %v15137_v44 = vadd.f32 %v15089_v42, %v2622_v17  ;;  %v3182_v42 = vld [vmem:[#allocation2 + $0x122] sm:$0xff] }
 0x312   : > { %v3078_v25 = vpop.f32.mrf.mxu2 }
 0x313   : > { %18690 = vst [vmem:[#allocation48_spill] sm:$0xff] %v15137_v44  ;;  %v18574_v62 = vmax.f32 %v15137_v44, 0.0  ;;  %v3079_v29 = vadd.f32 %v3078_v25, %v2941_v24  ;;  %v2948_v9 = vpop.f32.mrf.mxu1  ;;  %v3516_v58 = vpop.f32.mrf.mxu0  ;;  %v2861_v24 = vpack.c.bf16 %v15001_v3, %v14987_v56  ;;  %v15151_v25 = vpack.c.bf16 %v3411_v53, %v3410_v48 }
 0x314   : > { %v15139_v40 = vpop.f32.mrf.mxu3 }
 0x315   : > { %2754 = vst [vmem:[#allocation2 + $0x189] sm:$0xff] %v18574_v62  ;;  %v3360_v47 = vadd.f32 %v15065_v5, %v3079_v29  ;;  %v3202_v5 = vpack.c.bf16 %v3183_v6, %v3182_v42  ;;  %v13649_v29 = vld [vmem:[#allocation7 + $0x1b8] sm:$0xff]  ;;  %v13648_v42 = vld [vmem:[#allocation7 + $0x1b0] sm:$0xff]  ;;  %v13639_v6 = vld [vmem:[#allocation7 + $0x168] sm:$0xff] }
 0x316   : > { %4207 = vmatpush.bf16.msra.mxu3 %v13649_v29  ;;  %3975 = vmatpush.bf16.msra.mxu2 %v13639_v6  ;;  %v3185_v29 = vld [vmem:[#allocation2 + $0x142] sm:$0xff] }
 0x317   : > { %v15145_v34 = vadd.f32 %v3514_v26, %v3360_v47  ;;  %v13627_v26 = vld [vmem:[#allocation7 + $0x108] sm:$0xff]  ;;  %v13645_v6 = vld [vmem:[#allocation7 + $0x198] sm:$0xff] }
 0x318   : > { %3745 = vmatpush.bf16.msra.mxu1 %v13627_v26  ;;  %v3184_v26 = vld [vmem:[#allocation2 + $0x13a] sm:$0xff] }
 0x31a   : > { %v3080_v41 = vpop.f32.mrf.mxu2  ;;  %4208 = vmatpush.bf16.msra.mxu3 %v13648_v42 }
 0x31b   : > { %v3081_v7 = vadd.f32 %v3080_v41, %v2943_v27  ;;  %v2951_v21 = vpop.f32.mrf.mxu1  ;;  %v3519_v17 = vpop.f32.mrf.mxu0 }
 0x31c   : > { %v15147_v59 = vpop.f32.mrf.mxu3 }
 0x31d   : > { %v3361_v62 = vadd.f32 %v15073_v61, %v3081_v7  ;;  %v13647_v7 = vld [vmem:[#allocation7 + $0x1a8] sm:$0xff] }
 0x31e   : > { %2990 = vmatmul.bf16.gmra.mxu1 %v2861_v24  ;;  %3558 = vmatmul.bf16.gmra.mxu0 %v15151_v25 }
 0x31f   : > { %3122 = vmatmul.bf16.gmra.mxu2 %v15129_v37  ;;  %v15156_v27 = vadd.f32 %v3516_v58, %v3361_v62  ;;  %4209 = vmatpush.bf16.msra.mxu3 %v13647_v7 }
 0x321   : > { %3339 = vmatmul.bf16.gmra.mxu3 %v3202_v5  ;;  %v3413_v5 = vld [vmem:[#allocation2 + $0x110] sm:$0xff] }
 0x322   : > { %v3083_v47 = vpop.f32.mrf.mxu2 }
 0x323   : > { %v3084_v48 = vadd.f32 %v3083_v47, %v2946_v39  ;;  %v2953_v53 = vpop.f32.mrf.mxu1  ;;  %v3521_v44 = vpop.f32.mrf.mxu0  ;;  %v3412_v47 = vld [vmem:[#allocation2 + $0x108] sm:$0xff] }
 0x324   : > { %v15158_v41 = vpop.f32.mrf.mxu3 }
 0x325   : > { %v3362_v61 = vadd.f32 %v15092_v32, %v3084_v48  ;;  %v2862_v32 = vpack.c.bf16 %v15023_v23, %v15009_v20  ;;  %v15167_v48 = vpack.c.bf16 %v3413_v5, %v3412_v47 }
 0x327   : > { %v15161_v24 = vadd.f32 %v3519_v17, %v3362_v61  ;;  %v3203_v17 = vpack.c.bf16 %v3185_v29, %v3184_v26  ;;  %v13646_v61 = vld [vmem:[#allocation7 + $0x1a0] sm:$0xff]  ;;  %v13643_v29 = vld [vmem:[#allocation7 + $0x188] sm:$0xff] }
 0x328   : > { %4210 = vmatpush.bf16.msra.mxu3 %v13646_v61  ;;  %v3187_v61 = vld [vmem:[#allocation2 + $0x15a] sm:$0xff] }
 0x32a   : > { %v3085_v58 = vpop.f32.mrf.mxu2 }
 0x32b   : > { %v3086_v3 = vadd.f32 %v3085_v58, %v2948_v9  ;;  %v2956_v56 = vpop.f32.mrf.mxu1  ;;  %v3524_v39 = vpop.f32.mrf.mxu0 }
 0x32c   : > { %v15163_v62 = vpop.f32.mrf.mxu3  ;;  %4211 = vmatpush.bf16.msra.mxu3 %v13645_v6  ;;  %v2863_v6 = vpack.c.bf16 %v15045_v46, %v15031_v13  ;;  %v3416_v13 = vld [vmem:[#allocation2 + $0x138] sm:$0xff] }
 0x32d   : > { %v3363_v42 = vadd.f32 %v15100_v51, %v3086_v3  ;;  %v13644_v51 = vld [vmem:[#allocation7 + $0x190] sm:$0xff] }
 0x32e   : > { %2995 = vmatmul.bf16.gmra.mxu1 %v2862_v32  ;;  %3563 = vmatmul.bf16.gmra.mxu0 %v15167_v48  ;;  %v3415_v32 = vld [vmem:[#allocation2 + $0x128] sm:$0xff] }
 0x32f   : > { %3127 = vmatmul.bf16.gmra.mxu2 %v15151_v25  ;;  %v15172_v9 = vadd.f32 %v3521_v44, %v3363_v42  ;;  %v3186_v42 = vld [vmem:[#allocation2 + $0x152] sm:$0xff] }
 0x330   : > { %4212 = vmatpush.bf16.msra.mxu3 %v13644_v51 }
 0x331   : > { %3344 = vmatmul.bf16.gmra.mxu3 %v3203_v17 }
 0x332   : > { %v3088_v7 = vpop.f32.mrf.mxu2 }
 0x333   : > { %v3089_v23 = vadd.f32 %v3088_v7, %v2951_v21  ;;  %v2958_v5 = vpop.f32.mrf.mxu1  ;;  %v3526_v47 = vpop.f32.mrf.mxu0  ;;  %v3414_v21 = vld [vmem:[#allocation2 + $0x120] sm:$0xff] }
 0x334   : > { %v15174_v58 = vpop.f32.mrf.mxu3  ;;  %v15183_v7 = vpack.c.bf16 %v3415_v32, %v3414_v21  ;;  %4213 = vmatpush.bf16.msra.mxu3 %v13643_v29 }
 0x335   : > { %v3364_v3 = vadd.f32 %v15114_v14, %v3089_v23  ;;  %v3204_v14 = vpack.c.bf16 %v3187_v61, %v3186_v42  ;;  %v3417_v61 = vld [vmem:[#allocation2 + $0x140] sm:$0xff] }
 0x337   : > { %v15177_v26 = vadd.f32 %v3524_v39, %v3364_v3  ;;  %v13642_v39 = vld [vmem:[#allocation7 + $0x180] sm:$0xff] }
 0x338   : > { %4214 = vmatpush.bf16.msra.mxu3 %v13642_v39 }
 0x33a   : > { %v3090_v17 = vpop.f32.mrf.mxu2 }
 0x33b   : > { %v3091_v20 = vadd.f32 %v3090_v17, %v2953_v53  ;;  %v2961_v11 = vpop.f32.mrf.mxu1  ;;  %v3529_v57 = vpop.f32.mrf.mxu0  ;;  %v13626_v53 = vld [vmem:[#allocation7 + $0x100] sm:$0xff] }
 0x33c   : > { %v15179_v44 = vpop.f32.mrf.mxu3  ;;  %3746 = vmatpush.bf16.msra.mxu1 %v13626_v53 }
 0x33d   : > { %v3365_v23 = vadd.f32 %v15124_v10, %v3091_v20  ;;  %v13638_v10 = vld [vmem:[#allocation7 + $0x160] sm:$0xff] }
 0x33e   : > { %3000 = vmatmul.bf16.gmra.mxu1 %v2863_v6  ;;  %3568 = vmatmul.bf16.gmra.mxu0 %v15183_v7 }
 0x33f   : > { %3132 = vmatmul.bf16.gmra.mxu2 %v15167_v48  ;;  %v15188_v3 = vadd.f32 %v3526_v47, %v3365_v23  ;;  %v3188_v47 = vld [vmem:[#allocation2 + $0x16a] sm:$0xff]  ;;  %v3189_v23 = vld [vmem:[#allocation2 + $0x172] sm:$0xff] }
 0x340   : > { %3976 = vmatpush.bf16.msra.mxu2 %v13638_v10 }
 0x341   : > { %3349 = vmatmul.bf16.gmra.mxu3 %v3204_v14 }
 0x342   : > { %v3093_v51 = vpop.f32.mrf.mxu2 }
 0x343   : > { %v3094_v32 = vadd.f32 %v3093_v51, %v2956_v56  ;;  %v2963_v29 = vpop.f32.mrf.mxu1  ;;  %v3531_v21 = vpop.f32.mrf.mxu0  ;;  %v2864_v56 = vpack.c.bf16 %v15067_v18, %v15053_v54  ;;  %v15199_v51 = vpack.c.bf16 %v3417_v61, %v3416_v13  ;;  %v3418_v54 = vld [vmem:[#allocation2 + $0x150] sm:$0xff] }
 0x344   : > { %v15190_v17 = vpop.f32.mrf.mxu3 }
 0x345   : > { %v3366_v20 = vadd.f32 %v15139_v40, %v3094_v32  ;;  %v3205_v32 = vpack.c.bf16 %v3189_v23, %v3188_v47  ;;  %v13655_v47 = vld [vmem:[#allocation7 + $0x1e8] sm:$0xff] }
 0x347   : > { %v15193_v42 = vadd.f32 %v3529_v57, %v3366_v20  ;;  %v13657_v57 = vld [vmem:[#allocation7 + $0x1f8] sm:$0xff] }
 0x348   : > { %4441 = vmatpush.bf16.msra.mxu0 %v13657_v57 }
 0x34a   : > { %v3095_v6 = vpop.f32.mrf.mxu2 }
 0x34b   : > { %v3096_v39 = vadd.f32 %v3095_v6, %v2958_v5  ;;  %v2966_v53 = vpop.f32.mrf.mxu1  ;;  %v3534_v46 = vpop.f32.mrf.mxu0 }
 0x34c   : > { %v15195_v14 = vpop.f32.mrf.mxu3 }
 0x34d   : > { %v3367_v40 = vadd.f32 %v15147_v59, %v3096_v39  ;;  %v13656_v59 = vld [vmem:[#allocation7 + $0x1f0] sm:$0xff]  ;;  %v3419_v39 = vld [vmem:[#allocation2 + $0x158] sm:$0xff] }
 0x34e   : > { %3005 = vmatmul.bf16.gmra.mxu1 %v2864_v56  ;;  %3573 = vmatmul.bf16.gmra.mxu0 %v15199_v51 }
 0x34f   : > { %3137 = vmatmul.bf16.gmra.mxu2 %v15183_v7  ;;  %v15204_v20 = vadd.f32 %v3531_v21, %v3367_v40  ;;  %4442 = vmatpush.bf16.msra.mxu0 %v13656_v59  ;;  %v13653_v59 = vld [vmem:[#allocation7 + $0x1d8] sm:$0xff] }
 0x351   : > { %3354 = vmatmul.bf16.gmra.mxu3 %v3205_v32 }
 0x352   : > { %v3098_v5 = vpop.f32.mrf.mxu2 }
 0x353   : > { %v3099_v6 = vadd.f32 %v3098_v5, %v2961_v11  ;;  %v2968_v18 = vpop.f32.mrf.mxu1  ;;  %v3536_v13 = vpop.f32.mrf.mxu0  ;;  %4443 = vmatpush.bf16.msra.mxu0 %v13655_v47  ;;  %v2865_v11 = vpack.c.bf16 %v15094_v31, %v15075_v28  ;;  %v15215_v5 = vpack.c.bf16 %v3419_v39, %v3418_v54  ;;  %v13652_v31 = vld [vmem:[#allocation7 + $0x1d0] sm:$0xff] }
 0x354   : > { %v15206_v10 = vpop.f32.mrf.mxu3 }
 0x355   : > { %v3368_v61 = vadd.f32 %v15158_v41, %v3099_v6  ;;  %v13654_v6 = vld [vmem:[#allocation7 + $0x1e0] sm:$0xff] }
 0x357   : > { %v15209_v23 = vadd.f32 %v3534_v46, %v3368_v61  ;;  %v13665_v46 = vld [vmem:[#allocation7 + $0x238] sm:$0xff]  ;;  %4444 = vmatpush.bf16.msra.mxu0 %v13654_v6 }
 0x358   : > { %4675 = vmatpush.bf16.msrb.mxu1 %v13665_v46 }
 0x35a   : > { %v3100_v56 = vpop.f32.mrf.mxu2 }
 0x35b   : > { %v3101_v21 = vadd.f32 %v3100_v56, %v2963_v29  ;;  %v2971_v40 = vpop.f32.mrf.mxu1  ;;  %v3539_v57 = vpop.f32.mrf.mxu0  ;;  %v13637_v29 = vld [vmem:[#allocation7 + $0x158] sm:$0xff]  ;;  %4445 = vmatpush.bf16.msra.mxu0 %v13653_v59  ;;  %v2866_v59 = vpack.c.bf16 %v15116_v60, %v15102_v12 }
 0x35c   : > { %v15211_v32 = vpop.f32.mrf.mxu3  ;;  %3977 = vmatpush.bf16.msra.mxu2 %v13637_v29 }
 0x35d   : > { %v3369_v41 = vadd.f32 %v15163_v62, %v3101_v21 }
 0x35e   : > { %3010 = vmatmul.bf16.gmra.mxu1 %v2865_v11  ;;  %3578 = vmatmul.bf16.gmra.mxu0 %v15215_v5  ;;  %v13636_v11 = vld [vmem:[#allocation7 + $0x150] sm:$0xff] }
 0x35f   : > { %3142 = vmatmul.bf16.gmra.mxu2 %v15199_v51  ;;  %v15221_v61 = vadd.f32 %v3536_v13, %v3369_v41  ;;  %4446 = vmatpush.bf16.msra.mxu0 %v13652_v31  ;;  %v13651_v13 = vld [vmem:[#allocation7 + $0x1c8] sm:$0xff]  ;;  %v3421_v41 = vld [vmem:[#allocation2 + $0x170] sm:$0xff] }
 0x360   : > { %3978 = vmatpush.bf16.msra.mxu2 %v13636_v11 }
 0x361   : > { %4215 = vmatmul.bf16.vlgmr.msra.gmra.mxu3 %v14970_v1  ;;  %v13635_v1 = vld [vmem:[#allocation7 + $0x148] sm:$0xff] }
 0x362   : > { %v3103_v54 = vpop.f32.mrf.mxu2 }
 0x363   : > { %v3104_v47 = vadd.f32 %v3103_v54, %v2966_v53  ;;  %v2973_v39 = vpop.f32.mrf.mxu1  ;;  %v3541_v62 = vpop.f32.mrf.mxu0  ;;  %v3420_v54 = vld [vmem:[#allocation2 + $0x168] sm:$0xff]  ;;  %4447 = vmatpush.bf16.msra.mxu0 %v13651_v13 }
 0x364   : > { %v15223_v56 = vpop.f32.mrf.mxu3  ;;  %3979 = vmatpush.bf16.msra.mxu2 %v13635_v1  ;;  %v15230_v8 = vpack.c.bf16 %v3421_v41, %v3420_v54  ;;  %v3627_v54 = vld [vmem:[#allocation2 + $0x21] sm:$0xff] }
 0x365   : > { %v3370_v21 = vadd.f32 %v15174_v58, %v3104_v47  ;;  %v13634_v47 = vld [vmem:[#allocation7 + $0x140] sm:$0xff] }
 0x367   : > { %v15226_v28 = vadd.f32 %v3539_v57, %v3370_v21  ;;  %v13650_v57 = vld [vmem:[#allocation7 + $0x1c0] sm:$0xff] }
 0x368   : > { %3980 = vmatpush.bf16.msra.mxu2 %v13634_v47  ;;  %4448 = vmatpush.bf16.msra.mxu0 %v13650_v57 }
 0x36a   : > { %v3105_v6 = vpop.f32.mrf.mxu2 }
 0x36b   : > { %v3106_v46 = vadd.f32 %v3105_v6, %v2968_v18  ;;  %v2976_v29 = vpop.f32.mrf.mxu1  ;;  %v3544_v53 = vpop.f32.mrf.mxu0 }
 0x36c   : > { %v15233_v21 = vpop.f32.mrf.mxu3 }
 0x36d   : > { %v3371_v58 = vadd.f32 %v15179_v44, %v3106_v46  ;;  %v3423_v46 = vld [vmem:[#allocation2 + $0x188] sm:$0xff] }
 0x36e   : > { %3015 = vmatmul.bf16.gmra.mxu1 %v2866_v59  ;;  %3583 = vmatmul.bf16.gmra.mxu0 %v15230_v8 }
 0x36f   : > { %3147 = vmatmul.bf16.gmra.mxu2 %v15215_v5  ;;  %v15238_v18 = vadd.f32 %v3541_v62, %v3371_v58  ;;  %v3422_v62 = vld [vmem:[#allocation2 + $0x180] sm:$0xff] }
 0x370   : > { %v3626_v58 = vld [vmem:[#allocation2 + $0x19] sm:$0xff]  ;;  %v15245_v47 = vpack.c.bf16 %v3423_v46, %v3422_v62 }
 0x371   : > { %4220 = vmatmul.bf16.gmra.mxu3 %v14991_v4  ;;  %v3658_v57 = vpack.c.bf16 %v3627_v54, %v3626_v58  ;;  %v3860_v62 = vld [vmem:[#allocation2 + $0x1a] sm:$0xff]  ;;  %v3861_v58 = vld [vmem:[#allocation2 + $0x22] sm:$0xff] }
 0x372   : > { %v3108_v31 = vpop.f32.mrf.mxu2 }
 0x373   : > { %v3109_v11 = vadd.f32 %v3108_v31, %v2971_v40  ;;  %v2978_v1 = vpop.f32.mrf.mxu1  ;;  %v3546_v13 = vpop.f32.mrf.mxu0 }
 0x374   : > { %v15243_v6 = vpop.f32.mrf.mxu3 }
 0x375   : > { %v3372_v44 = vadd.f32 %v15190_v17, %v3109_v11  ;;  %v13664_v17 = vld [vmem:[#allocation7 + $0x230] sm:$0xff] }
 0x376   : > { %4676 = vmatpush.bf16.msrb.mxu1 %v13664_v17 }
 0x377   : > { %v15241_v41 = vadd.f32 %v3544_v53, %v3372_v44 }
 0x37a   : > { %v3110_v59 = vpop.f32.mrf.mxu2 }
 0x37b   : > { %v3111_v60 = vadd.f32 %v3110_v59, %v2973_v39  ;;  %v2981_v12 = vpop.f32.mrf.mxu1  ;;  %v3549_v4 = vpop.f32.mrf.mxu0 }
 0x37c   : > { %v15253_v39 = vpop.f32.mrf.mxu3 }
 0x37d   : > { %v3373_v40 = vadd.f32 %v15195_v14, %v3111_v60  ;;  %v3629_v14 = vld [vmem:[#allocation2 + $0x39] sm:$0xff] }
 0x37e   : > { %3588 = vmatmul.bf16.gmra.mxu0 %v15245_v47  ;;  %3747 = vmatmul.bf16.vlgmr.msra.gmra.mxu1 %v3658_v57 }
 0x37f   : > { %3152 = vmatmul.bf16.gmra.mxu2 %v15230_v8  ;;  %v15251_v53 = vadd.f32 %v3546_v13, %v3373_v40  ;;  %v3628_v13 = vld [vmem:[#allocation2 + $0x31] sm:$0xff] }
 0x380   : > { %v3659_v17 = vpack.c.bf16 %v3629_v14, %v3628_v13  ;;  %v3631_v14 = vld [vmem:[#allocation2 + $0x51] sm:$0xff] }
 0x381   : > { %4225 = vmatmul.bf16.gmra.mxu3 %v15013_v2 }
 0x382   : > { %v3113_v31 = vpop.f32.mrf.mxu2 }
 0x383   : > { %v3114_v11 = vadd.f32 %v3113_v31, %v2976_v29  ;;  %v2983_v44 = vpop.f32.mrf.mxu1  ;;  %v3551_v46 = vpop.f32.mrf.mxu0  ;;  %v3892_v29 = vpack.c.bf16 %v3861_v58, %v3860_v62  ;;  %v3863_v62 = vld [vmem:[#allocation2 + $0x3a] sm:$0xff] }
 0x384   : > { %v15258_v40 = vpop.f32.mrf.mxu3 }
 0x385   : > { %v3374_v54 = vadd.f32 %v15206_v10, %v3114_v11 }
 0x387   : > { %v15256_v60 = vadd.f32 %v3549_v4, %v3374_v54 }
 0x38a   : > { %v3115_v59 = vpop.f32.mrf.mxu2 }
 0x38b   : > { %v3116_v57 = vadd.f32 %v3115_v59, %v2978_v1  ;;  %v2986_v2 = vpop.f32.mrf.mxu1  ;;  %v3554_v38 = vpop.f32.mrf.mxu0 }
 0x38c   : > { %v3332_v59 = vpop.f32.mrf.mxu3 }
 0x38d   : > { %v3375_v22 = vadd.f32 %v15211_v32, %v3116_v57  ;;  %v3862_v32 = vld [vmem:[#allocation2 + $0x32] sm:$0xff] }
 0x38e   : > { %3752 = vmatmul.bf16.gmra.mxu1 %v3659_v17  ;;  %4449 = vmatmul.bf16.vlgmr.msra.gmra.mxu0 %v3659_v17 }
 0x38f   : > { %3981 = vmatmul.bf16.vlgmr.msra.gmra.mxu2 %v3892_v29  ;;  %v15262_v10 = vadd.f32 %v3551_v46, %v3375_v22  ;;  %v3630_v29 = vld [vmem:[#allocation2 + $0x49] sm:$0xff]  ;;  %v15268_v46 = vpack.c.bf16 %v3863_v62, %v3862_v32 }
 0x391   : > { %4230 = vmatmul.bf16.gmra.mxu3 %v15035_v55  ;;  %v3660_v55 = vpack.c.bf16 %v3631_v14, %v3630_v29  ;;  %v3865_v29 = vld [vmem:[#allocation2 + $0x52] sm:$0xff] }
 0x392   : > { %v3118_v4 = vpop.f32.mrf.mxu2 }
 0x393   : > { %v3119_v31 = vadd.f32 %v3118_v4, %v2981_v12  ;;  %v2988_v11 = vpop.f32.mrf.mxu1  ;;  %v3556_v1 = vpop.f32.mrf.mxu0 }
 0x395   : > { %v3376_v54 = vadd.f32 %v15223_v56, %v3119_v31  ;;  %v3335_v56 = vpop.f32.mrf.mxu3 }
 0x397   : > { %v15265_v43 = vadd.f32 %v3554_v38, %v3376_v54  ;;  %v13663_v38 = vld [vmem:[#allocation7 + $0x228] sm:$0xff] }
 0x398   : > { %4677 = vmatpush.bf16.msrb.mxu1 %v13663_v38 }
 0x39a   : > { %v3120_v13 = vpop.f32.mrf.mxu2 }
 0x39b   : > { %v3121_v58 = vadd.f32 %v3120_v13, %v2983_v44  ;;  %v2991_v57 = vpop.f32.mrf.mxu1  ;;  %v3559_v17 = vpop.f32.mrf.mxu0  ;;  %v3633_v13 = vld [vmem:[#allocation2 + $0x69] sm:$0xff] }
 0x39d   : > { %v3377_v22 = vadd.f32 %v15233_v21, %v3121_v58  ;;  %v3337_v32 = vpop.f32.mrf.mxu3  ;;  %v3864_v58 = vld [vmem:[#allocation2 + $0x4a] sm:$0xff] }
 0x39e   : > { %3757 = vmatmul.bf16.gmra.mxu1 %v3660_v55  ;;  %4454 = vmatmul.bf16.gmra.mxu0 %v3660_v55  ;;  %v15278_v52 = vpack.c.bf16 %v3865_v29, %v3864_v58  ;;  %v3866_v58 = vld [vmem:[#allocation2 + $0x62] sm:$0xff]  ;;  %v3867_v29 = vld [vmem:[#allocation2 + $0x6a] sm:$0xff] }
 0x39f   : > { %3986 = vmatmul.bf16.gmra.mxu2 %v15268_v46  ;;  %v15272_v12 = vadd.f32 %v3556_v1, %v3377_v22  ;;  %v3632_v1 = vld [vmem:[#allocation2 + $0x61] sm:$0xff] }
 0x3a0   : > { %v3661_v22 = vpack.c.bf16 %v3633_v13, %v3632_v1 }
 0x3a1   : > { %4235 = vmatmul.bf16.gmra.mxu3 %v15057_v15 }
 0x3a2   : > { %v3123_v44 = vpop.f32.mrf.mxu2 }
 0x3a3   : > { %v3124_v4 = vadd.f32 %v3123_v44, %v2986_v2  ;;  %v2993_v31 = vpop.f32.mrf.mxu1  ;;  %v3561_v54 = vpop.f32.mrf.mxu0 }
 0x3a5   : > { %v3378_v14 = vadd.f32 %v15243_v6, %v3124_v4  ;;  %v3340_v4 = vpop.f32.mrf.mxu3 }
 0x3a7   : > { %v15275_v21 = vadd.f32 %v3559_v17, %v3378_v14 }
 0x3aa   : > { %v3125_v62 = vpop.f32.mrf.mxu2 }
 0x3ab   : > { %v3126_v55 = vadd.f32 %v3125_v62, %v2988_v11  ;;  %v2996_v15 = vpop.f32.mrf.mxu1  ;;  %v3564_v45 = vpop.f32.mrf.mxu0 }
 0x3ad   : > { %v3379_v38 = vadd.f32 %v15253_v39, %v3126_v55  ;;  %v3635_v39 = vld [vmem:[#allocation2 + $0x81] sm:$0xff] }
 0x3ae   : > { %3762 = vmatmul.bf16.gmra.mxu1 %v3661_v22  ;;  %4459 = vmatmul.bf16.gmra.mxu0 %v3661_v22 }
 0x3af   : > { %3991 = vmatmul.bf16.gmra.mxu2 %v15278_v52  ;;  %v15282_v6 = vadd.f32 %v3561_v54, %v3379_v38  ;;  %v15287_v38 = vpack.c.bf16 %v3867_v29, %v3866_v58  ;;  %v3868_v29 = vld [vmem:[#allocation2 + $0x7a] sm:$0xff] }
 0x3b1   : > { %4240 = vmatmul.bf16.gmra.mxu3 %v15079_v0  ;;  %v3662_v0 = vpack.c.bf16 %v3635_v39, %v3634_v30  ;;  %v3637_v39 = vld [vmem:[#allocation2 + $0x99] sm:$0xff] }
 0x3b2   : > { %v3128_v2 = vpop.f32.mrf.mxu2 }
 0x3b3   : > { %v3129_v17 = vadd.f32 %v3128_v2, %v2991_v57  ;;  %v2998_v44 = vpop.f32.mrf.mxu1  ;;  %v3566_v11 = vpop.f32.mrf.mxu0 }
 0x3b4   : > { %v3342_v57 = vpop.f32.mrf.mxu3 }
 0x3b5   : > { %v3380_v14 = vadd.f32 %v15258_v40, %v3129_v17 }
 0x3b7   : > { %v15285_v13 = vadd.f32 %v3564_v45, %v3380_v14  ;;  %v13662_v45 = vld [vmem:[#allocation7 + $0x220] sm:$0xff] }
 0x3b8   : > { %4678 = vmatpush.bf16.msrb.mxu1 %v13662_v45 }
 0x3ba   : > { %v3130_v62 = vpop.f32.mrf.mxu2 }
 0x3bb   : > { %v3131_v55 = vadd.f32 %v3130_v62, %v2993_v31  ;;  %v3001_v1 = vpop.f32.mrf.mxu1  ;;  %v3569_v22 = vpop.f32.mrf.mxu0 }
 0x3bd   : > { %v3381_v54 = vadd.f32 %v3332_v59, %v3131_v55  ;;  %v3345_v59 = vpop.f32.mrf.mxu3  ;;  %v3869_v55 = vld [vmem:[#allocation2 + $0x82] sm:$0xff] }
 0x3be   : > { %3767 = vmatmul.bf16.gmra.mxu1 %v3662_v0  ;;  %4464 = vmatmul.bf16.gmra.mxu0 %v3662_v0 }
 0x3bf   : > { %3996 = vmatmul.bf16.gmra.mxu2 %v15287_v38  ;;  %v15291_v40 = vadd.f32 %v3566_v11, %v3381_v54  ;;  %v15295_v54 = vpack.c.bf16 %v3869_v55, %v3868_v29  ;;  %v3871_v29 = vld [vmem:[#allocation2 + $0x9a] sm:$0xff] }
 0x3c1   : > { %4245 = vmatmul.bf16.gmra.mxu3 %v15106_v63  ;;  %v3636_v63 = vld [vmem:[#allocation2 + $0x91] sm:$0xff] }
 0x3c2   : > { %v3133_v2 = vpop.f32.mrf.mxu2  ;;  %v3663_v50 = vpack.c.bf16 %v3637_v39, %v3636_v63  ;;  %v3639_v39 = vld [vmem:[#allocation2 + $0xb1] sm:$0xff]  ;;  %v3638_v63 = vld [vmem:[#allocation2 + $0xa9] sm:$0xff] }
 0x3c3   : > { %v3134_v31 = vadd.f32 %v3133_v2, %v2996_v15  ;;  %v3003_v17 = vpop.f32.mrf.mxu1  ;;  %v3571_v14 = vpop.f32.mrf.mxu0 }
 0x3c5   : > { %v3382_v62 = vadd.f32 %v3335_v56, %v3134_v31  ;;  %v3347_v15 = vpop.f32.mrf.mxu3 }
 0x3c7   : > { %v15293_v30 = vadd.f32 %v3569_v22, %v3382_v62 }
 0x3ca   : > { %v3135_v58 = vpop.f32.mrf.mxu2 }
 0x3cb   : > { %v3136_v0 = vadd.f32 %v3135_v58, %v2998_v44  ;;  %v3006_v19 = vpop.f32.mrf.mxu1  ;;  %v3574_v16 = vpop.f32.mrf.mxu0  ;;  %v3870_v58 = vld [vmem:[#allocation2 + $0x92] sm:$0xff] }
 0x3cd   : > { %v3383_v11 = vadd.f32 %v3337_v32, %v3136_v0  ;;  %v3350_v36 = vpop.f32.mrf.mxu3 }
 0x3ce   : > { %3772 = vmatmul.bf16.gmra.mxu1 %v3663_v50  ;;  %4469 = vmatmul.bf16.gmra.mxu0 %v3663_v50 }
 0x3cf   : > { %4001 = vmatmul.bf16.gmra.mxu2 %v15295_v54  ;;  %v15299_v56 = vadd.f32 %v3571_v14, %v3383_v11  ;;  %v15303_v11 = vpack.c.bf16 %v3871_v29, %v3870_v58  ;;  %v3641_v58 = vld [vmem:[#allocation2 + $0xc9] sm:$0xff] }
 0x3d1   : > { %4250 = vmatmul.bf16.gmra.mxu3 %v15129_v37  ;;  %v3664_v37 = vpack.c.bf16 %v3639_v39, %v3638_v63 }
 0x3d2   : > { %v3138_v22 = vpop.f32.mrf.mxu2 }
 0x3d3   : > { %v3139_v45 = vadd.f32 %v3138_v22, %v3001_v1  ;;  %v3008_v2 = vpop.f32.mrf.mxu1  ;;  %v3576_v44 = vpop.f32.mrf.mxu0 }
 0x3d5   : > { %v3384_v31 = vadd.f32 %v3340_v4, %v3139_v45  ;;  %v3352_v39 = vpop.f32.mrf.mxu3 }
 0x3d7   : > { %v15301_v62 = vadd.f32 %v3574_v16, %v3384_v31  ;;  %v13661_v16 = vld [vmem:[#allocation7 + $0x218] sm:$0xff] }
 0x3d8   : > { %4679 = vmatpush.bf16.msrb.mxu1 %v13661_v16 }
 0x3da   : > { %v3140_v32 = vpop.f32.mrf.mxu2 }
 0x3db   : > { %v3141_v55 = vadd.f32 %v3140_v32, %v3003_v17  ;;  %v3011_v50 = vpop.f32.mrf.mxu1  ;;  %v3579_v0 = vpop.f32.mrf.mxu0 }
 0x3dd   : > { %v3385_v14 = vadd.f32 %v3342_v57, %v3141_v55  ;;  %v13681_v57 = vld [vmem:[%s18557_s5 + $0x78] sm:$0xff] }
 0x3de   : > { %3777 = vmatmul.bf16.gmra.mxu1 %v3664_v37  ;;  %4474 = vmatmul.bf16.gmra.mxu0 %v3664_v37  ;;  %v3873_v55 = vld [vmem:[#allocation2 + $0xb2] sm:$0xff] }
 0x3df   : > { %4006 = vmatmul.bf16.gmra.mxu2 %v15303_v11  ;;  %v15307_v4 = vadd.f32 %v3576_v44, %v3385_v14  ;;  %v3640_v14 = vld [vmem:[#allocation2 + $0xc1] sm:$0xff] }
 0x3e0   : > { %5073 = vmatpush.bf16.msrb.mxu2 %v13681_v57 }
 0x3e1   : > { %4255 = vmatmul.bf16.gmra.mxu3 %v15151_v25  ;;  %v3872_v25 = vld [vmem:[#allocation2 + $0xaa] sm:$0xff] }
 0x3e2   : > { %v3143_v1 = vpop.f32.mrf.mxu2 }
 0x3e3   : > { %v3144_v17 = vadd.f32 %v3143_v1, %v3006_v19  ;;  %v3013_v22 = vpop.f32.mrf.mxu1  ;;  %v3581_v45 = vpop.f32.mrf.mxu0  ;;  %v3665_v19 = vpack.c.bf16 %v3641_v58, %v3640_v14  ;;  %v15314_v1 = vpack.c.bf16 %v3873_v55, %v3872_v25  ;;  %v3643_v58 = vld [vmem:[#allocation2 + $0xe1] sm:$0xff] }
 0x3e4   : > { %v3874_v55 = vld [vmem:[#allocation2 + $0xc2] sm:$0xff] }
 0x3e5   : > { %v3386_v31 = vadd.f32 %v3345_v59, %v3144_v17 }
 0x3e7   : > { %v15312_v32 = vadd.f32 %v3579_v0, %v3386_v31  ;;  %v3355_v0 = vpop.f32.mrf.mxu3 }
 0x3ea   : > { %v3145_v29 = vpop.f32.mrf.mxu2 }
 0x3eb   : > { %v3146_v44 = vadd.f32 %v3145_v29, %v3008_v2  ;;  %v3016_v63 = vpop.f32.mrf.mxu1  ;;  %v3584_v37 = vpop.f32.mrf.mxu0 }
 0x3ed   : > { %v3387_v16 = vadd.f32 %v3347_v15, %v3146_v44  ;;  %v3875_v44 = vld [vmem:[#allocation2 + $0xca] sm:$0xff] }
 0x3ee   : > { %3782 = vmatmul.bf16.gmra.mxu1 %v3665_v19  ;;  %4479 = vmatmul.bf16.gmra.mxu0 %v3665_v19 }
 0x3ef   : > { %4011 = vmatmul.bf16.gmra.mxu2 %v15314_v1  ;;  %v15318_v59 = vadd.f32 %v3581_v45, %v3387_v16  ;;  %v3357_v15 = vpop.f32.mrf.mxu3  ;;  %v3666_v45 = vpack.c.bf16 %v3643_v58, %v3642_v35 }
 0x3f1   : > { %4260 = vmatmul.bf16.gmra.mxu3 %v15167_v48  ;;  %18691 = vst [vmem:[#allocation49_spill] sm:$0xff] %v15318_v59  ;;  %v15323_v59 = vpack.c.bf16 %v3875_v44, %v3874_v55 }
 0x3f2   : > { %v3148_v17 = vpop.f32.mrf.mxu2 }
 0x3f3   : > { %v3149_v31 = vadd.f32 %v3148_v17, %v3011_v50  ;;  %v3018_v57 = vpop.f32.mrf.mxu1  ;;  %v3586_v2 = vpop.f32.mrf.mxu0 }
 0x3f5   : > { %v3388_v29 = vadd.f32 %v3350_v36, %v3149_v31  ;;  %v13660_v36 = vld [vmem:[#allocation7 + $0x210] sm:$0xff] }
 0x3f6   : > { %4680 = vmatpush.bf16.msrb.mxu1 %v13660_v36 }
 0x3f7   : > { %v15320_v33 = vadd.f32 %v3584_v37, %v3388_v29  ;;  %v4216_v29 = vpop.f32.mrf.mxu3 }
 0x3fa   : > { %v3150_v25 = vpop.f32.mrf.mxu2 }
 0x3fb   : > { %v3151_v14 = vadd.f32 %v3150_v25, %v3013_v22  ;;  %v3589_v19 = vpop.f32.mrf.mxu0  ;;  %v3748_v49 = vpop.f32.mrf.mxu1  ;;  %v3877_v25 = vld [vmem:[#allocation2 + $0xe2] sm:$0xff] }
 0x3fc   : > { %v3828_v48 = vadd.f32 %v3748_v49, %v15145_v34  ;;  %v13680_v34 = vld [vmem:[%s18557_s5 + $0x70] sm:$0xff] }
 0x3fd   : > { %v3389_v16 = vadd.f32 %v3352_v39, %v3151_v14  ;;  %5074 = vmatpush.bf16.msrb.mxu2 %v13680_v34  ;;  %v3644_v14 = vld [vmem:[#allocation2 + $0xf1] sm:$0xff] }
 0x3fe   : > { %3787 = vmatmul.bf16.gmra.mxu1 %v3666_v45  ;;  %4484 = vmatmul.bf16.gmra.mxu0 %v3666_v45 }
 0x3ff   : > { %4016 = vmatmul.bf16.gmra.mxu2 %v15323_v59  ;;  %v15327_v50 = vadd.f32 %v3586_v2, %v3389_v16  ;;  %v3876_v2 = vld [vmem:[#allocation2 + $0xda] sm:$0xff]  ;;  %v4218_v36 = vpop.f32.mrf.mxu3 }
 0x401   : > { %4265 = vmatmul.bf16.gmra.mxu3 %v15183_v7  ;;  %v3645_v7 = vld [vmem:[#allocation2 + $0xf9] sm:$0xff] }
 0x402   : > { %v3153_v22 = vpop.f32.mrf.mxu2  ;;  %v3667_v16 = vpack.c.bf16 %v3645_v7, %v3644_v14  ;;  %v3647_v7 = vld [vmem:[#allocation2 + $0x111] sm:$0xff] }
 0x403   : > { %v3154_v37 = vadd.f32 %v3153_v22, %v3016_v63  ;;  %v3591_v17 = vpop.f32.mrf.mxu0  ;;  %v3750_v31 = vpop.f32.mrf.mxu1 }
 0x404   : > { %v3829_v35 = vadd.f32 %v3750_v31, %v15156_v27 }
 0x405   : > { %v3390_v49 = vadd.f32 %v3355_v0, %v3154_v37  ;;  %v15336_v0 = vpack.c.bf16 %v3877_v25, %v3876_v2  ;;  %v3878_v2 = vld [vmem:[#allocation2 + $0xf2] sm:$0xff]  ;;  %v3879_v25 = vld [vmem:[#allocation2 + $0xfa] sm:$0xff] }
 0x407   : > { %v15333_v39 = vadd.f32 %v3589_v19, %v3390_v49 }
 0x40a   : > { %v3155_v58 = vpop.f32.mrf.mxu2 }
 0x40b   : > { %v3156_v55 = vadd.f32 %v3155_v58, %v3018_v57  ;;  %v3753_v44 = vpop.f32.mrf.mxu1  ;;  %v4450_v63 = vpop.f32.mrf.mxu0 }
 0x40c   : > { %v3830_v45 = vadd.f32 %v3753_v44, %v15161_v24 }
 0x40d   : > { %v3391_v27 = vadd.f32 %v3357_v15, %v3156_v55  ;;  %v4221_v15 = vpop.f32.mrf.mxu3 }
 0x40e   : > { %3792 = vmatmul.bf16.gmra.mxu1 %v3667_v16  ;;  %4489 = vmatmul.bf16.gmra.mxu0 %v3667_v16 }
 0x40f   : > { %4021 = vmatmul.bf16.gmra.mxu2 %v15336_v0  ;;  %v15340_v19 = vadd.f32 %v3591_v17, %v3391_v27  ;;  %v15346_v27 = vpack.c.bf16 %v3879_v25, %v3878_v2  ;;  %v3881_v2 = vld [vmem:[#allocation2 + $0x112] sm:$0xff] }
 0x411   : > { %4270 = vmatmul.bf16.gmra.mxu3 %v15199_v51  ;;  %v3646_v51 = vld [vmem:[#allocation2 + $0x109] sm:$0xff] }
 0x412   : > { %v3982_v22 = vpop.f32.mrf.mxu2  ;;  %v3668_v16 = vpack.c.bf16 %v3647_v7, %v3646_v51 }
 0x413   : > { %v4062_v57 = vadd.f32 %v3982_v22, %v3828_v48  ;;  %v3755_v37 = vpop.f32.mrf.mxu1  ;;  %v4452_v31 = vpop.f32.mrf.mxu0 }
 0x414   : > { %v3831_v49 = vadd.f32 %v3755_v37, %v15172_v9  ;;  %v13659_v9 = vld [vmem:[#allocation7 + $0x208] sm:$0xff] }
 0x415   : > { %v4296_v24 = vadd.f32 %v4216_v29, %v4062_v57  ;;  %4681 = vmatpush.bf16.msrb.mxu1 %v13659_v9 }
 0x417   : > { %v15343_v34 = vadd.f32 %v4450_v63, %v4296_v24  ;;  %v13679_v24 = vld [vmem:[%s18557_s5 + $0x68] sm:$0xff] }
 0x418   : > { %5075 = vmatpush.bf16.msrb.mxu2 %v13679_v24  ;;  %v3651_v24 = vld [vmem:[#allocation2 + $0x141] sm:$0xff] }
 0x41a   : > { %v3984_v58 = vpop.f32.mrf.mxu2 }
 0x41b   : > { %v4063_v55 = vadd.f32 %v3984_v58, %v3829_v35  ;;  %v3758_v44 = vpop.f32.mrf.mxu1  ;;  %v4455_v14 = vpop.f32.mrf.mxu0 }
 0x41c   : > { %v3832_v17 = vadd.f32 %v3758_v44, %v15177_v26  ;;  %v4223_v35 = vpop.f32.mrf.mxu3  ;;  %v3648_v44 = vld [vmem:[#allocation2 + $0x121] sm:$0xff] }
 0x41d   : > { %v4297_v48 = vadd.f32 %v4218_v36, %v4063_v55 }
 0x41e   : > { %3797 = vmatmul.bf16.gmra.mxu1 %v3668_v16  ;;  %4494 = vmatmul.bf16.gmra.mxu0 %v3668_v16 }
 0x41f   : > { %4026 = vmatmul.bf16.gmra.mxu2 %v15346_v27  ;;  %v15350_v29 = vadd.f32 %v4452_v31, %v4297_v48  ;;  %v3880_v31 = vld [vmem:[#allocation2 + $0x10a] sm:$0xff] }
 0x421   : > { %4275 = vmatmul.bf16.gmra.mxu3 %v15215_v5  ;;  %v3649_v5 = vld [vmem:[#allocation2 + $0x129] sm:$0xff] }
 0x422   : > { %v3987_v63 = vpop.f32.mrf.mxu2 }
 0x423   : > { %v4064_v22 = vadd.f32 %v3987_v63, %v3830_v45  ;;  %v3760_v57 = vpop.f32.mrf.mxu1  ;;  %v4457_v37 = vpop.f32.mrf.mxu0 }
 0x424   : > { %v3833_v26 = vadd.f32 %v3760_v57, %v15188_v3  ;;  %v4226_v45 = vpop.f32.mrf.mxu3  ;;  %v3669_v3 = vpack.c.bf16 %v3649_v5, %v3648_v44 }
 0x425   : > { %v4298_v36 = vadd.f32 %v4221_v15, %v4064_v22  ;;  %v15359_v15 = vpack.c.bf16 %v3881_v2, %v3880_v31  ;;  %v3883_v31 = vld [vmem:[#allocation2 + $0x12a] sm:$0xff] }
 0x427   : > { %v15356_v7 = vadd.f32 %v4455_v14, %v4298_v36 }
 0x42a   : > { %v3989_v58 = vpop.f32.mrf.mxu2 }
 0x42b   : > { %v4065_v25 = vadd.f32 %v3989_v58, %v3831_v49  ;;  %v3763_v55 = vpop.f32.mrf.mxu1  ;;  %v4460_v48 = vpop.f32.mrf.mxu0  ;;  %v3882_v58 = vld [vmem:[#allocation2 + $0x122] sm:$0xff] }
 0x42c   : > { %v3834_v51 = vadd.f32 %v3763_v55, %v15193_v42  ;;  %v4228_v42 = vpop.f32.mrf.mxu3  ;;  %v3650_v55 = vld [vmem:[#allocation2 + $0x139] sm:$0xff] }
 0x42d   : > { %v4299_v16 = vadd.f32 %v4223_v35, %v4065_v25 }
 0x42e   : > { %3802 = vmatmul.bf16.gmra.mxu1 %v3669_v3  ;;  %4499 = vmatmul.bf16.gmra.mxu0 %v3669_v3 }
 0x42f   : > { %4031 = vmatmul.bf16.gmra.mxu2 %v15359_v15  ;;  %v15363_v14 = vadd.f32 %v4457_v37, %v4299_v16  ;;  %v3670_v37 = vpack.c.bf16 %v3651_v24, %v3650_v55  ;;  %v3884_v24 = vld [vmem:[#allocation2 + $0x13a] sm:$0xff] }
 0x431   : > { %4280 = vmatmul.bf16.gmra.mxu3 %v15230_v8 }
 0x432   : > { %v3992_v9 = vpop.f32.mrf.mxu2 }
 0x433   : > { %v4066_v49 = vadd.f32 %v3992_v9, %v3832_v17  ;;  %v3765_v63 = vpop.f32.mrf.mxu1  ;;  %v4462_v35 = vpop.f32.mrf.mxu0  ;;  %v15369_v17 = vpack.c.bf16 %v3883_v31, %v3882_v58 }
 0x434   : > { %v3835_v22 = vadd.f32 %v3765_v63, %v15204_v20  ;;  %v13658_v20 = vld [vmem:[#allocation7 + $0x200] sm:$0xff]  ;;  %v4231_v3 = vpop.f32.mrf.mxu3  ;;  %v13678_v63 = vld [vmem:[%s18557_s5 + $0x60] sm:$0xff] }
 0x435   : > { %v4300_v57 = vadd.f32 %v4226_v45, %v4066_v49  ;;  %4682 = vmatpush.bf16.msrb.mxu1 %v13658_v20  ;;  %5076 = vmatpush.bf16.msrb.mxu2 %v13678_v63 }
 0x437   : > { %v15366_v36 = vadd.f32 %v4460_v48, %v4300_v57 }
 0x43a   : > { %v3994_v5 = vpop.f32.mrf.mxu2 }
 0x43b   : > { %v4067_v2 = vadd.f32 %v3994_v5, %v3833_v26  ;;  %v3768_v25 = vpop.f32.mrf.mxu1  ;;  %v4465_v26 = vpop.f32.mrf.mxu0  ;;  %v3885_v5 = vld [vmem:[#allocation2 + $0x142] sm:$0xff] }
 0x43c   : > { %v3836_v8 = vadd.f32 %v3768_v25, %v15209_v23 }
 0x43d   : > { %v4301_v44 = vadd.f32 %v4228_v42, %v4067_v2  ;;  %v4233_v42 = vpop.f32.mrf.mxu3 }
 0x43e   : > { %3807 = vmatmul.bf16.gmra.mxu1 %v3670_v37  ;;  %4504 = vmatmul.bf16.gmra.mxu0 %v3670_v37  ;;  %v15384_v37 = vpack.c.bf16 %v3885_v5, %v3884_v24  ;;  %v3654_v24 = vld [vmem:[#allocation2 + $0x169] sm:$0xff] }
 0x43f   : > { %4036 = vmatmul.bf16.gmra.mxu2 %v15369_v17  ;;  %v15373_v45 = vadd.f32 %v4462_v35, %v4301_v44 }
 0x441   : > { %4285 = vmatmul.bf16.gmra.mxu3 %v15245_v47  ;;  %v3653_v47 = vld [vmem:[#allocation2 + $0x159] sm:$0xff] }
 0x442   : > { %v3997_v16 = vpop.f32.mrf.mxu2 }
 0x443   : > { %v4068_v48 = vadd.f32 %v3997_v16, %v3834_v51  ;;  %v3770_v9 = vpop.f32.mrf.mxu1  ;;  %v3652_v51 = vld [vmem:[#allocation2 + $0x151] sm:$0xff]  ;;  %v4467_v2 = vpop.f32.mrf.mxu0 }
 0x444   : > { %v15376_v23 = vadd.f32 %v3770_v9, %v15221_v61  ;;  %v3671_v25 = vpack.c.bf16 %v3653_v47, %v3652_v51  ;;  %v3886_v47 = vld [vmem:[#allocation2 + $0x152] sm:$0xff] }
 0x445   : > { %v4302_v49 = vadd.f32 %v4231_v3, %v4068_v48  ;;  %v4236_v16 = vpop.f32.mrf.mxu3 }
 0x447   : > { %v15381_v57 = vadd.f32 %v4465_v26, %v4302_v49  ;;  %v3655_v49 = vld [vmem:[#allocation2 + $0x171] sm:$0xff] }
 0x44a   : > { %v3999_v35 = vpop.f32.mrf.mxu2 }
 0x44b   : > { %v4069_v58 = vadd.f32 %v3999_v35, %v3835_v22  ;;  %v3773_v31 = vpop.f32.mrf.mxu1  ;;  %v4470_v9 = vpop.f32.mrf.mxu0 }
 0x44c   : > { %v3838_v61 = vadd.f32 %v3773_v31, %v15226_v28  ;;  %v4125_v31 = vld [vmem:[#allocation2 + $0x1a0] sm:$0xff] }
 0x44d   : > { %v4303_v55 = vadd.f32 %v4233_v42, %v4069_v58  ;;  %v3887_v42 = vld [vmem:[#allocation2 + $0x15a] sm:$0xff]  ;;  %v3672_v58 = vpack.c.bf16 %v3655_v49, %v3654_v24 }
 0x44e   : > { %3812 = vmatmul.bf16.gmra.mxu1 %v3671_v25  ;;  %4509 = vmatmul.bf16.gmra.mxu0 %v3671_v25  ;;  %v3656_v49 = vld [vmem:[#allocation2 + $0x181] sm:$0xff] }
 0x44f   : > { %4041 = vmatmul.bf16.gmra.mxu2 %v15384_v37  ;;  %v15387_v44 = vadd.f32 %v4467_v2, %v4303_v55 }
 0x452   : > { %v4002_v20 = vpop.f32.mrf.mxu2 }
 0x453   : > { %v4070_v3 = vadd.f32 %v4002_v20, %v3836_v8  ;;  %v3775_v26 = vpop.f32.mrf.mxu1  ;;  %v15397_v8 = vpack.c.bf16 %v3887_v42, %v3886_v47 }
 0x454   : > { %v15390_v22 = vadd.f32 %v3775_v26, %v15238_v18  ;;  %v4124_v18 = vld [vmem:[#allocation2 + $0x198] sm:$0xff] }
 0x455   : > { %v4304_v48 = vadd.f32 %v4236_v16, %v4070_v3  ;;  %v4141_v51 = vpack.c.bf16 %v4125_v31, %v4124_v18  ;;  %v3657_v3 = vld [vmem:[#allocation2 + $0x189] sm:$0xff]  ;;  %v13673_v18 = vld [vmem:[%s18557_s5 + $0x38] sm:$0xff] }
 0x456   : > { %v3888_v16 = vld [vmem:[#allocation2 + $0x16a] sm:$0xff]  ;;  %v4358_v31 = vld [vmem:[#allocation2 + $0x199] sm:$0xff]  ;;  %5210 = vmatpush.bf16.msrb.mxu3 %v13673_v18 }
 0x457   : > { %v15392_v28 = vadd.f32 %v4470_v9, %v4304_v48  ;;  %4290 = vmatmul.bf16.gmra.mxu3 %v4141_v51  ;;  %v3889_v48 = vld [vmem:[#allocation2 + $0x172] sm:$0xff] }
 0x458   : > { %v15411_v42 = vpack.c.bf16 %v3889_v48, %v3888_v16  ;;  %v15431_v48 = vpop.f32.mrf.mxu0 }
 0x45a   : > { %v15394_v63 = vpop.f32.mrf.mxu2 }
 0x45b   : > { %v3778_v35 = vpop.f32.mrf.mxu1 }
 0x45c   : > { %v3840_v5 = vadd.f32 %v3778_v35, %v15241_v41  ;;  %v13677_v41 = vld [vmem:[%s18557_s5 + $0x58] sm:$0xff] }
 0x45d   : > { %5077 = vmatpush.bf16.msrb.mxu2 %v13677_v41 }
 0x45e   : > { %3817 = vmatmul.bf16.gmra.mxu1 %v3672_v58  ;;  %4514 = vmatmul.bf16.gmra.mxu0 %v3672_v58 }
 0x45f   : > { %4046 = vmatmul.bf16.gmra.mxu2 %v15397_v8 }
 0x460   : > { %v15445_v18 = vpop.f32.mrf.mxu0 }
 0x462   : > { %v4007_v2 = vpop.f32.mrf.mxu2 }
 0x463   : > { %v15400_v25 = vadd.f32 %v4007_v2, %v3838_v61  ;;  %v3780_v55 = vpop.f32.mrf.mxu1  ;;  %v3673_v61 = vpack.c.bf16 %v3657_v3, %v3656_v49  ;;  %v3890_v2 = vld [vmem:[#allocation2 + $0x182] sm:$0xff] }
 0x464   : > { %v15403_v20 = vadd.f32 %v3780_v55, %v15251_v53  ;;  %v3891_v55 = vld [vmem:[#allocation2 + $0x18a] sm:$0xff] }
 0x465   : > { %v15425_v16 = vpack.c.bf16 %v3891_v55, %v3890_v2 }
 0x46a   : > { %v15408_v26 = vpop.f32.mrf.mxu2 }
 0x46b   : > { %v3783_v9 = vpop.f32.mrf.mxu1 }
 0x46c   : > { %v3842_v47 = vadd.f32 %v3783_v9, %v15256_v60  ;;  %v4359_v60 = vld [vmem:[#allocation2 + $0x1a1] sm:$0xff] }
 0x46d   : > { %v4375_v41 = vpack.c.bf16 %v4359_v60, %v4358_v31 }
 0x46e   : > { %3822 = vmatmul.bf16.gmra.mxu1 %v3673_v61  ;;  %4519 = vmatmul.bf16.gmra.mxu0 %v3673_v61 }
 0x46f   : > { %4051 = vmatmul.bf16.gmra.mxu2 %v15411_v42 }
 0x472   : > { %v4012_v53 = vpop.f32.mrf.mxu2 }
 0x473   : > { %v15414_v35 = vadd.f32 %v4012_v53, %v3840_v5  ;;  %v3785_v24 = vpop.f32.mrf.mxu1 }
 0x474   : > { %v15417_v58 = vadd.f32 %v3785_v24, %v15262_v10  ;;  %v15428_v10 = vpop.f32.mrf.mxu3 }
 0x47a   : > { %v15422_v51 = vpop.f32.mrf.mxu2 }
 0x47b   : > { %v3788_v3 = vpop.f32.mrf.mxu1 }
 0x47c   : > { %v3844_v5 = vadd.f32 %v3788_v3, %v15265_v43  ;;  %v13676_v43 = vld [vmem:[%s18557_s5 + $0x50] sm:$0xff]  ;;  %v15456_v3 = vpop.f32.mrf.mxu0 }
 0x47d   : > { %5078 = vmatpush.bf16.msrb.mxu2 %v13676_v43 }
 0x47e   : > { %4683 = vmatmul.bf16.vlgmr.msrb.gmra.mxu1 %v15268_v46  ;;  %4524 = vmatmul.bf16.gmra.mxu0 %v4375_v41  ;;  %v15441_v46 = vpop.f32.mrf.mxu3 }
 0x47f   : > { %4056 = vmatmul.bf16.gmra.mxu2 %v15425_v16 }
 0x482   : > { %v4017_v9 = vpop.f32.mrf.mxu2 }
 0x483   : > { %v15433_v49 = vadd.f32 %v4017_v9, %v3842_v47  ;;  %v3790_v61 = vpop.f32.mrf.mxu1  ;;  %v13672_v9 = vld [vmem:[%s18557_s5 + $0x30] sm:$0xff] }
 0x484   : > { %v15436_v53 = vadd.f32 %v3790_v61, %v15272_v12  ;;  %5211 = vmatpush.bf16.msrb.mxu3 %v13672_v9  ;;  %v13675_v9 = vld [vmem:[%s18557_s5 + $0x48] sm:$0xff] }
 0x485   : > { %5079 = vmatpush.bf16.msrb.mxu2 %v13675_v9  ;;  %v13671_v9 = vld [vmem:[%s18557_s5 + $0x28] sm:$0xff] }
 0x486   : > { %18692 = vst [vmem:[#allocation50_spill] sm:$0xff] %v15436_v53  ;;  %v15449_v2 = vpop.f32.mrf.mxu3 }
 0x488   : > { %5212 = vmatpush.bf16.msrb.mxu3 %v13671_v9 }
 0x48a   : > { %v15443_v24 = vpop.f32.mrf.mxu2 }
 0x48b   : > { %v3793_v31 = vpop.f32.mrf.mxu1 }
 0x48c   : > { %v3846_v60 = vadd.f32 %v3793_v31, %v15275_v21 }
 0x48e   : > { %4688 = vmatmul.bf16.gmra.mxu1 %v15278_v52  ;;  %v15464_v43 = vpop.f32.mrf.mxu3 }
 0x492   : > { %v4022_v47 = vpop.f32.mrf.mxu2 }
 0x493   : > { %v15451_v12 = vadd.f32 %v4022_v47, %v3844_v5  ;;  %v3795_v55 = vpop.f32.mrf.mxu1  ;;  %v15467_v5 = vpop.f32.mrf.mxu0 }
 0x494   : > { %v15454_v41 = vadd.f32 %v3795_v55, %v15282_v6 }
 0x496   : > { %18693 = vst [vmem:[#allocation51_spill] sm:$0xff] %v15454_v41  ;;  %v15477_v41 = vpop.f32.mrf.mxu3 }
 0x49a   : > { %v15461_v61 = vpop.f32.mrf.mxu2 }
 0x49b   : > { %18694 = vst [vmem:[#allocation52_spill] sm:$0xff] %v15461_v61  ;;  %v3798_v21 = vpop.f32.mrf.mxu1 }
 0x49c   : > { %v3848_v52 = vadd.f32 %v3798_v21, %v15285_v13  ;;  %v15479_v13 = vpop.f32.mrf.mxu0 }
 0x49e   : > { %4693 = vmatmul.bf16.gmra.mxu1 %v15287_v38 }
 0x4a2   : > { %v4027_v6 = vpop.f32.mrf.mxu2 }
 0x4a3   : > { %v15469_v31 = vadd.f32 %v4027_v6, %v3846_v60  ;;  %v3800_v47 = vpop.f32.mrf.mxu1  ;;  %v15485_v60 = vpop.f32.mrf.mxu3 }
 0x4a4   : > { %v15472_v55 = vadd.f32 %v3800_v47, %v15291_v40  ;;  %v15487_v6 = vpop.f32.mrf.mxu0 }
 0x4a5   : > { %18695 = vst [vmem:[#allocation53_spill] sm:$0xff] %v15469_v31 }
 0x4a6   : > { %18696 = vst [vmem:[#allocation54_spill] sm:$0xff] %v15472_v55 }
 0x4aa   : > { %v15481_v21 = vpop.f32.mrf.mxu2 }
 0x4ab   : > { %18697 = vst [vmem:[#allocation55_spill] sm:$0xff] %v15481_v21  ;;  %v3803_v38 = vpop.f32.mrf.mxu1 }
 0x4ac   : > { %v3850_v61 = vadd.f32 %v3803_v38, %v15293_v30  ;;  %v15499_v30 = vpop.f32.mrf.mxu3  ;;  %v15502_v53 = vpop.f32.mrf.mxu0 }
 0x4ae   : > { %4698 = vmatmul.bf16.gmra.mxu1 %v15295_v54 }
 0x4b2   : > { %v4032_v40 = vpop.f32.mrf.mxu2 }
 0x4b3   : > { %v15489_v47 = vadd.f32 %v4032_v40, %v3848_v52  ;;  %v3805_v55 = vpop.f32.mrf.mxu1 }
 0x4b4   : > { %v15492_v31 = vadd.f32 %v3805_v55, %v15299_v56  ;;  %v13689_v56 = vld [vmem:[%s18557_s5 + $0xb8] sm:$0xff] }
 0x4b5   : > { %18698 = vst [vmem:[#allocation56_spill] sm:$0xff] %v15489_v47  ;;  %5412 = vmatpush.bf16.msrb.mxu0 %v13689_v56  ;;  %v13674_v56 = vld [vmem:[%s18557_s5 + $0x40] sm:$0xff] }
 0x4b6   : > { %18699 = vst [vmem:[#allocation57_spill] sm:$0xff] %v15492_v31  ;;  %5080 = vmatpush.bf16.msrb.mxu2 %v13674_v56  ;;  %v4960_v47 = vld [vmem:[#allocation2 + $0x1] sm:$0xff] }
 0x4ba   : > { %v15497_v21 = vpop.f32.mrf.mxu2 }
 0x4bb   : > { %18700 = vst [vmem:[#allocation58_spill] sm:$0xff] %v15497_v21  ;;  %v3808_v54 = vpop.f32.mrf.mxu1  ;;  %v13684_v21 = vld [vmem:[%s18557_s5 + $0x90] sm:$0xff] }
 0x4bc   : > { %v3852_v38 = vadd.f32 %v3808_v54, %v15301_v62  ;;  %v13670_v62 = vld [vmem:[%s18557_s5 + $0x20] sm:$0xff]  ;;  %v15519_v54 = vpop.f32.mrf.mxu3 }
 0x4bd   : > { %5213 = vmatpush.bf16.msrb.mxu3 %v13670_v62  ;;  %v13668_v62 = vld [vmem:[%s18557_s5 + $0x10] sm:$0xff] }
 0x4be   : > { %4703 = vmatmul.bf16.gmra.mxu1 %v15303_v11  ;;  %v13688_v11 = vld [vmem:[%s18557_s5 + $0xb0] sm:$0xff] }
 0x4bf   : > { %5413 = vmatpush.bf16.msrb.mxu0 %v13688_v11  ;;  %v13686_v11 = vld [vmem:[%s18557_s5 + $0xa0] sm:$0xff] }
 0x4c2   : > { %v4037_v52 = vpop.f32.mrf.mxu2 }
 0x4c3   : > { %v15508_v55 = vadd.f32 %v4037_v52, %v3850_v61  ;;  %v3810_v40 = vpop.f32.mrf.mxu1  ;;  %v15524_v61 = vpop.f32.mrf.mxu0  ;;  %v13687_v52 = vld [vmem:[%s18557_s5 + $0xa8] sm:$0xff] }
 0x4c4   : > { %v15511_v9 = vadd.f32 %v3810_v40, %v15307_v4  ;;  %v13669_v4 = vld [vmem:[%s18557_s5 + $0x18] sm:$0xff]  ;;  %5414 = vmatpush.bf16.msrb.mxu0 %v13687_v52  ;;  %v15542_v56 = vpop.f32.mrf.mxu3 }
 0x4c5   : > { %18701 = vst [vmem:[#allocation59_spill] sm:$0xff] %v15508_v55  ;;  %5214 = vmatpush.bf16.msrb.mxu3 %v13669_v4  ;;  %v13667_v4 = vld [vmem:[%s18557_s5 + $0x8] sm:$0xff] }
 0x4c6   : > { %18702 = vst [vmem:[#allocation60_spill] sm:$0xff] %v15511_v9 }
 0x4c7   : > { %18704 = vst [vmem:[#allocation62_spill] sm:$0xff] %v15542_v56  ;;  %v4896_v56 = vld [vmem:[#allocation2] sm:$0xff] }
 0x4c8   : > { %5415 = vmatpush.bf16.msrb.mxu0 %v13686_v11  ;;  %v13666_v11 = vld [vmem:[%s18557_s5] sm:$0xff] }
 0x4c9   : > { %5215 = vmatpush.bf16.msrb.mxu3 %v13668_v62 }
 0x4ca   : > { %v15532_v40 = vpop.f32.mrf.mxu2 }
 0x4cb   : > { %18703 = vst [vmem:[#allocation61_spill] sm:$0xff] %v15532_v40  ;;  %v3813_v9 = vpop.f32.mrf.mxu1 }
 0x4cc   : > { %v3854_v31 = vadd.f32 %v3813_v9, %v15312_v32  ;;  %v13685_v32 = vld [vmem:[%s18557_s5 + $0x98] sm:$0xff]  ;;  %v15550_v9 = vpop.f32.mrf.mxu0 }
 0x4cd   : > { %18705 = vst [vmem:[#allocation63_spill] sm:$0xff] %v15550_v9  ;;  %5216 = vmatpush.bf16.msrb.mxu3 %v13667_v4  ;;  %5416 = vmatpush.bf16.msrb.mxu0 %v13685_v32  ;;  %v4961_v9 = vld [vmem:[#allocation2 + $0x9] sm:$0xff]  ;;  %v15566_v32 = vpop.f32.mrf.mxu3 }
 0x4ce   : > { %4708 = vmatmul.bf16.gmra.mxu1 %v15314_v1  ;;  %v18707_v1 = vld [vmem:[#allocation49_spill] sm:$0xff]  ;;  %v4897_v4 = vld [vmem:[#allocation2 + $0x8] sm:$0xff] }
 0x4d1   : > { %5217 = vmatpush.bf16.msrb.mxu3 %v13666_v11  ;;  %5417 = vmatpush.bf16.msrb.mxu0 %v13684_v21  ;;  %v13682_v21 = vld [vmem:[%s18557_s5 + $0x80] sm:$0xff] }
 0x4d2   : > { %v4042_v52 = vpop.f32.mrf.mxu2 }
 0x4d3   : > { %v15552_v40 = vadd.f32 %v4042_v52, %v3852_v38  ;;  %v3815_v55 = vpop.f32.mrf.mxu1  ;;  %v4992_v38 = vpack.c.bf16 %v4961_v9, %v4960_v47  ;;  %v4928_v52 = vpack.c.bf16 %v4897_v4, %v4896_v56  ;;  %v5299_v47 = vld [vmem:[#allocation2 + $0x2] sm:$0xff]  ;;  %v5300_v56 = vld [vmem:[#allocation2 + $0xa] sm:$0xff] }
 0x4d4   : > { %v15555_v62 = vadd.f32 %v3815_v55, %v18707_v1  ;;  %v13683_v55 = vld [vmem:[%s18557_s5 + $0x88] sm:$0xff]  ;;  %v5331_v9 = vpack.c.bf16 %v5300_v56, %v5299_v47 }
 0x4d5   : > { %18706 = vst [vmem:[#allocation64_spill] sm:$0xff] %v15552_v40  ;;  %5081 = vmatmul.bf16.vlgmr.msrb.gmra.mxu2 %v4992_v38  ;;  %5218 = vmatmul.bf16.vlgmr.msrb.gmra.mxu3 %v4928_v52  ;;  %v15577_v4 = vpop.f32.mrf.mxu3 }
 0x4d6   : > { %18708 = vst [vmem:[#allocation49_spill] sm:$0xff] %v15555_v62  ;;  %v15570_v62 = vpop.f32.mrf.mxu0  ;;  %5418 = vmatpush.bf16.msrb.mxu0 %v13683_v55 }
 0x4da   : > { %v15568_v1 = vpop.f32.mrf.mxu2  ;;  %5419 = vmatpush.bf16.msrb.mxu0 %v13682_v21  ;;  %v13697_v21 = vld [vmem:[%s18557_s5 + $0xf8] sm:$0xff] }
 0x4db   : > { %18709 = vst [vmem:[#allocation65_spill] sm:$0xff] %v15568_v1  ;;  %v3818_v11 = vpop.f32.mrf.mxu1  ;;  %5646 = vmatpush.bf16.msra.mxu1 %v13697_v21 }
 0x4dc   : > { %v3856_v40 = vadd.f32 %v3818_v11, %v15320_v33 }
 0x4dd   : > { %5420 = vmatmul.bf16.vlgmr.msrb.gmra.mxu0 %v5331_v9  ;;  %v15595_v56 = vpop.f32.mrf.mxu3 }
 0x4de   : > { %4713 = vmatmul.bf16.gmra.mxu1 %v15323_v59  ;;  %v15584_v33 = vpop.f32.mrf.mxu0  ;;  %v13705_v59 = vld [vmem:[%s18557_s5 + $0x138] sm:$0xff] }
 0x4df   : > { %5880 = vmatpush.bf16.msra.mxu2 %v13705_v59  ;;  %v15614_v59 = vld [vmem:[%s18556_s4] ss:$0 sm:$0xff] }
 0x4e2   : > { %v4047_v38 = vpop.f32.mrf.mxu2 }
 0x4e3   : > { %v15579_v52 = vadd.f32 %v4047_v38, %v3854_v31  ;;  %v3820_v1 = vpop.f32.mrf.mxu1 }
 0x4e4   : > { %v15582_v55 = vadd.f32 %v3820_v1, %v15327_v50 }
 0x4e5   : > { %18710 = vst [vmem:[#allocation66_spill] sm:$0xff] %v15579_v52 }
 0x4e6   : > { %18711 = vst [vmem:[#allocation67_spill] sm:$0xff] %v15582_v55  ;;  %v15598_v50 = vpop.f32.mrf.mxu0 }
 0x4ea   : > { %v15586_v11 = vpop.f32.mrf.mxu2 }
 0x4eb   : > { %18712 = vst [vmem:[#allocation68_spill] sm:$0xff] %v15586_v11  ;;  %v3823_v47 = vpop.f32.mrf.mxu1  ;;  %v15605_v11 = vpop.f32.mrf.mxu3 }
 0x4ec   : > { %v3858_v31 = vadd.f32 %v3823_v47, %v15333_v39  ;;  %18715 = vst [vmem:[#allocation71_spill] sm:$0xff] %v15605_v11 }
 0x4ee   : > { %4718 = vmatmul.bf16.gmra.mxu1 %v15336_v0  ;;  %v15607_v52 = vpop.f32.mrf.mxu0 }
 0x4ef   : > { %18716 = vst [vmem:[#allocation72_spill] sm:$0xff] %v15607_v52 }
 0x4f2   : > { %v4052_v1 = vpop.f32.mrf.mxu2 }
 0x4f3   : > { %v15600_v9 = vadd.f32 %v4052_v1, %v3856_v40  ;;  %v3825_v38 = vpop.f32.mrf.mxu1  ;;  %v15619_v47 = vpop.f32.mrf.mxu3 }
 0x4f4   : > { %v15603_v55 = vadd.f32 %v3825_v38, %v15340_v19 }
 0x4f5   : > { %18713 = vst [vmem:[#allocation69_spill] sm:$0xff] %v15600_v9 }
 0x4f6   : > { %18714 = vst [vmem:[#allocation70_spill] sm:$0xff] %v15603_v55  ;;  %v15621_v38 = vpop.f32.mrf.mxu0 }
 0x4f7   : > { %18718 = vst [vmem:[#allocation74_spill] sm:$0xff] %v15621_v38 }
 0x4fa   : > { %v15609_v39 = vpop.f32.mrf.mxu2 }
 0x4fb   : > { %18717 = vst [vmem:[#allocation73_spill] sm:$0xff] %v15609_v39  ;;  %v4684_v0 = vpop.f32.mrf.mxu1 }
 0x4fc   : > { %v4764_v21 = vadd.f32 %v4684_v0, %v15343_v34  ;;  %v13696_v0 = vld [vmem:[%s18557_s5 + $0xf0] sm:$0xff] }
 0x4fd   : > { %5647 = vmatpush.bf16.msra.mxu1 %v13696_v0 }
 0x4fe   : > { %v4800_v40 = vadd.f32 %v15614_v59, %v4764_v21  ;;  %4723 = vmatmul.bf16.gmra.mxu1 %v15346_v27  ;;  %v13704_v27 = vld [vmem:[%s18557_s5 + $0x130] sm:$0xff]  ;;  %v15633_v21 = vpop.f32.mrf.mxu3 }
 0x4ff   : > { %18720 = vst [vmem:[#allocation76_spill] sm:$0xff] %v15633_v21  ;;  %5881 = vmatpush.bf16.msra.mxu2 %v13704_v27 }
 0x500   : > { %v4832_v19 = vmax.f32 %v4800_v40, 0.0 }
 0x502   : > { %4864 = vst [vmem:[#allocation2 + $0x19] sm:$0xff] %v4832_v19  ;;  %v4057_v1 = vpop.f32.mrf.mxu2 }
 0x503   : > { %v15623_v55 = vadd.f32 %v4057_v1, %v3858_v31  ;;  %v4686_v39 = vpop.f32.mrf.mxu1 }
 0x504   : > { %v4765_v9 = vadd.f32 %v4686_v39, %v15350_v29  ;;  %v15636_v29 = vpop.f32.mrf.mxu0 }
 0x505   : > { %18719 = vst [vmem:[#allocation75_spill] sm:$0xff] %v15623_v55 }
 0x506   : > { %v4801_v52 = vadd.f32 %v15614_v59, %v4765_v9 }
 0x508   : > { %v4833_v11 = vmax.f32 %v4801_v52, 0.0 }
 0x509   : > { %v4898_v9 = vld [vmem:[#allocation2 + $0x18] sm:$0xff] }
 0x50a   : > { %4865 = vst [vmem:[#allocation2 + $0x21] sm:$0xff] %v4833_v11  ;;  %v4993_v34 = vpack.c.bf16 %v4833_v11, %v4832_v19 }
 0x50b   : > { %v4689_v31 = vpop.f32.mrf.mxu1 }
 0x50c   : > { %v4766_v40 = vadd.f32 %v4689_v31, %v15356_v7  ;;  %5086 = vmatmul.bf16.gmra.mxu2 %v4993_v34  ;;  %v15644_v34 = vpop.f32.mrf.mxu3 }
 0x50e   : > { %v4802_v52 = vadd.f32 %v15614_v59, %v4766_v40  ;;  %4728 = vmatmul.bf16.gmra.mxu1 %v15359_v15  ;;  %v15647_v15 = vpop.f32.mrf.mxu0 }
 0x510   : > { %v4834_v11 = vmax.f32 %v4802_v52, 0.0 }
 0x511   : > { %v4899_v39 = vld [vmem:[#allocation2 + $0x20] sm:$0xff] }
 0x512   : > { %v5301_v19 = vld [vmem:[#allocation2 + $0x1a] sm:$0xff]  ;;  %v5302_v1 = vld [vmem:[#allocation2 + $0x22] sm:$0xff]  ;;  %4866 = vst [vmem:[#allocation2 + $0x31] sm:$0xff] %v4834_v11  ;;  %v15640_v55 = vpack.c.bf16 %v4899_v39, %v4898_v9 }
 0x513   : > { %v5332_v21 = vpack.c.bf16 %v5302_v1, %v5301_v19  ;;  %v4691_v38 = vpop.f32.mrf.mxu1 }
 0x514   : > { %v4767_v7 = vadd.f32 %v4691_v38, %v15363_v14  ;;  %5223 = vmatmul.bf16.gmra.mxu3 %v15640_v55  ;;  %v15652_v14 = vpop.f32.mrf.mxu3 }
 0x515   : > { %5425 = vmatmul.bf16.gmra.mxu0 %v5332_v21 }
 0x516   : > { %v4803_v27 = vadd.f32 %v15614_v59, %v4767_v7  ;;  %v15654_v39 = vpop.f32.mrf.mxu0 }
 0x517   : > { %18721 = vst [vmem:[#allocation77_spill] sm:$0xff] %v15654_v39 }
 0x518   : > { %v4835_v0 = vmax.f32 %v4803_v27, 0.0 }
 0x519   : > { %v4900_v21 = vld [vmem:[#allocation2 + $0x30] sm:$0xff] }
 0x51a   : > { %4867 = vst [vmem:[#allocation2 + $0x39] sm:$0xff] %v4835_v0  ;;  %v4994_v31 = vpack.c.bf16 %v4835_v0, %v4834_v11 }
 0x51b   : > { %v4694_v40 = vpop.f32.mrf.mxu1 }
 0x51c   : > { %v4768_v52 = vadd.f32 %v4694_v40, %v15366_v36  ;;  %5091 = vmatmul.bf16.gmra.mxu2 %v4994_v31  ;;  %v15661_v40 = vpop.f32.mrf.mxu3 }
 0x51d   : > { %18722 = vst [vmem:[#allocation78_spill] sm:$0xff] %v15661_v40 }
 0x51e   : > { %v4804_v9 = vadd.f32 %v15614_v59, %v4768_v52  ;;  %4733 = vmatmul.bf16.gmra.mxu1 %v15369_v17 }
 0x520   : > { %v4836_v38 = vmax.f32 %v4804_v9, 0.0  ;;  %v13703_v9 = vld [vmem:[%s18557_s5 + $0x128] sm:$0xff] }
 0x521   : > { %v4901_v19 = vld [vmem:[#allocation2 + $0x38] sm:$0xff]  ;;  %5882 = vmatpush.bf16.msra.mxu2 %v13703_v9 }
 0x522   : > { %v5303_v1 = vld [vmem:[#allocation2 + $0x32] sm:$0xff]  ;;  %v5304_v7 = vld [vmem:[#allocation2 + $0x3a] sm:$0xff]  ;;  %4868 = vst [vmem:[#allocation2 + $0x49] sm:$0xff] %v4836_v38  ;;  %v15656_v27 = vpack.c.bf16 %v4901_v19, %v4900_v21  ;;  %v13695_v21 = vld [vmem:[%s18557_s5 + $0xe8] sm:$0xff]  ;;  %v15669_v19 = vpop.f32.mrf.mxu0 }
 0x523   : > { %v5333_v11 = vpack.c.bf16 %v5304_v7, %v5303_v1  ;;  %v4696_v0 = vpop.f32.mrf.mxu1  ;;  %18723 = vst [vmem:[#allocation79_spill] sm:$0xff] %v15669_v19  ;;  %5648 = vmatpush.bf16.msra.mxu1 %v13695_v21  ;;  %v4071_v21 = vadd.f32 %v15394_v63, %v15376_v23 }
 0x524   : > { %v4769_v36 = vadd.f32 %v4696_v0, %v15373_v45  ;;  %5228 = vmatmul.bf16.gmra.mxu3 %v15656_v27  ;;  %v15676_v19 = vpop.f32.mrf.mxu3 }
 0x525   : > { %5430 = vmatmul.bf16.gmra.mxu0 %v5333_v11 }
 0x526   : > { %v4805_v17 = vadd.f32 %v15614_v59, %v4769_v36 }
 0x528   : > { %v4837_v31 = vmax.f32 %v4805_v17, 0.0 }
 0x529   : > { %v4902_v11 = vld [vmem:[#allocation2 + $0x48] sm:$0xff] }
 0x52a   : > { %4869 = vst [vmem:[#allocation2 + $0x51] sm:$0xff] %v4837_v31  ;;  %v4995_v52 = vpack.c.bf16 %v4837_v31, %v4836_v38 }
 0x52b   : > { %v4699_v45 = vpop.f32.mrf.mxu1 }
 0x52c   : > { %v4770_v1 = vadd.f32 %v4699_v45, %v15381_v57  ;;  %5096 = vmatmul.bf16.gmra.mxu2 %v4995_v52  ;;  %v15680_v52 = vpop.f32.mrf.mxu0 }
 0x52e   : > { %v4806_v7 = vadd.f32 %v15614_v59, %v4770_v1  ;;  %4738 = vmatmul.bf16.gmra.mxu1 %v15384_v37 }
 0x530   : > { %v4838_v38 = vmax.f32 %v4806_v7, 0.0 }
 0x531   : > { %v4903_v0 = vld [vmem:[#allocation2 + $0x50] sm:$0xff] }
 0x532   : > { %v5305_v36 = vld [vmem:[#allocation2 + $0x4a] sm:$0xff]  ;;  %v5306_v17 = vld [vmem:[#allocation2 + $0x52] sm:$0xff]  ;;  %4870 = vst [vmem:[#allocation2 + $0x61] sm:$0xff] %v4838_v38  ;;  %v15674_v31 = vpack.c.bf16 %v4903_v0, %v4902_v11  ;;  %v15686_v11 = vpop.f32.mrf.mxu3 }
 0x533   : > { %v5334_v40 = vpack.c.bf16 %v5306_v17, %v5305_v36  ;;  %v4701_v39 = vpop.f32.mrf.mxu1 }
 0x534   : > { %v4771_v57 = vadd.f32 %v4701_v39, %v15387_v44  ;;  %5233 = vmatmul.bf16.gmra.mxu3 %v15674_v31  ;;  %v4305_v44 = vadd.f32 %v15428_v10, %v4071_v21 }
 0x535   : > { %5435 = vmatmul.bf16.gmra.mxu0 %v5334_v40  ;;  %v15691_v40 = vpop.f32.mrf.mxu0 }
 0x536   : > { %v4807_v37 = vadd.f32 %v15614_v59, %v4771_v57 }
 0x538   : > { %v4839_v9 = vmax.f32 %v4807_v37, 0.0 }
 0x539   : > { %v4904_v36 = vld [vmem:[#allocation2 + $0x60] sm:$0xff] }
 0x53a   : > { %4871 = vst [vmem:[#allocation2 + $0x69] sm:$0xff] %v4839_v9  ;;  %v4996_v45 = vpack.c.bf16 %v4839_v9, %v4838_v38  ;;  %v4539_v38 = vadd.f32 %v15431_v48, %v4305_v44  ;;  %v15700_v21 = vpop.f32.mrf.mxu3  ;;  %v4073_v48 = vadd.f32 %v15408_v26, %v15390_v22 }
 0x53b   : > { %v4704_v1 = vpop.f32.mrf.mxu1 }
 0x53c   : > { %v4772_v7 = vadd.f32 %v4704_v1, %v15392_v28  ;;  %5101 = vmatmul.bf16.gmra.mxu2 %v4996_v45 }
 0x53d   : > { %v15702_v1 = vpop.f32.mrf.mxu0 }
 0x53e   : > { %v4808_v39 = vadd.f32 %v15614_v59, %v4772_v7  ;;  %4743 = vmatmul.bf16.gmra.mxu1 %v15397_v8  ;;  %v4306_v8 = vadd.f32 %v15441_v46, %v15400_v25  ;;  %v13694_v25 = vld [vmem:[%s18557_s5 + $0xe0] sm:$0xff] }
 0x53f   : > { %5649 = vmatpush.bf16.msra.mxu1 %v13694_v25  ;;  %v4075_v25 = vadd.f32 %v15422_v51, %v15403_v20  ;;  %v13690_v20 = vld [vmem:[%s18557_s5 + $0xc0] sm:$0xff] }
 0x540   : > { %v4840_v0 = vmax.f32 %v4808_v39, 0.0  ;;  %v4540_v7 = vadd.f32 %v15445_v18, %v4306_v8  ;;  %v13702_v39 = vld [vmem:[%s18557_s5 + $0x120] sm:$0xff] }
 0x541   : > { %v4905_v17 = vld [vmem:[#allocation2 + $0x68] sm:$0xff]  ;;  %5883 = vmatpush.bf16.msra.mxu2 %v13702_v39 }
 0x542   : > { %v5307_v23 = vld [vmem:[#allocation2 + $0x62] sm:$0xff]  ;;  %v5308_v63 = vld [vmem:[#allocation2 + $0x6a] sm:$0xff]  ;;  %4872 = vst [vmem:[#allocation2 + $0x79] sm:$0xff] %v4840_v0  ;;  %v15694_v28 = vpack.c.bf16 %v4905_v17, %v4904_v36  ;;  %v4307_v17 = vadd.f32 %v15449_v2, %v4073_v48  ;;  %v15716_v26 = vpop.f32.mrf.mxu3  ;;  %v13693_v2 = vld [vmem:[%s18557_s5 + $0xd8] sm:$0xff] }
 0x543   : > { %v5335_v57 = vpack.c.bf16 %v5308_v63, %v5307_v23  ;;  %v4706_v37 = vpop.f32.mrf.mxu1  ;;  %5650 = vmatpush.bf16.msra.mxu1 %v13693_v2 }
 0x544   : > { %v4773_v9 = vadd.f32 %v4706_v37, %v4539_v38  ;;  %5238 = vmatmul.bf16.gmra.mxu3 %v15694_v28  ;;  %v4541_v37 = vadd.f32 %v15456_v3, %v4307_v17  ;;  %v13692_v3 = vld [vmem:[%s18557_s5 + $0xd0] sm:$0xff] }
 0x545   : > { %5440 = vmatmul.bf16.gmra.mxu0 %v5335_v57  ;;  %v15718_v23 = vpop.f32.mrf.mxu0 }
 0x546   : > { %v4809_v10 = vadd.f32 %v15614_v59, %v4773_v9 }
 0x547   : > { %5651 = vmatpush.bf16.msra.mxu1 %v13692_v3 }
 0x548   : > { %v4841_v45 = vmax.f32 %v4809_v10, 0.0 }
 0x54a   : > { %4873 = vst [vmem:[#allocation2 + $0x81] sm:$0xff] %v4841_v45  ;;  %v4997_v44 = vpack.c.bf16 %v4841_v45, %v4840_v0  ;;  %v4906_v0 = vld [vmem:[#allocation2 + $0x78] sm:$0xff]  ;;  %v4308_v45 = vadd.f32 %v15464_v43, %v15414_v35  ;;  %v15735_v39 = vpop.f32.mrf.mxu3  ;;  %v13691_v35 = vld [vmem:[%s18557_s5 + $0xc8] sm:$0xff] }
 0x54b   : > { %v4709_v46 = vpop.f32.mrf.mxu1  ;;  %5652 = vmatpush.bf16.msra.mxu1 %v13691_v35  ;;  %v4077_v35 = vadd.f32 %v15443_v24, %v15417_v58 }
 0x54c   : > { %v4774_v36 = vadd.f32 %v4709_v46, %v4540_v7  ;;  %5106 = vmatmul.bf16.gmra.mxu2 %v4997_v44  ;;  %v15733_v44 = vpop.f32.mrf.mxu2  ;;  %v4542_v46 = vadd.f32 %v15467_v5, %v4308_v45 }
 0x54d   : > { %v15743_v43 = vpop.f32.mrf.mxu0 }
 0x54e   : > { %v4810_v22 = vadd.f32 %v15614_v59, %v4774_v36  ;;  %4748 = vmatmul.bf16.gmra.mxu1 %v15411_v42 }
 0x54f   : > { %5653 = vmatpush.bf16.msra.mxu1 %v13690_v20 }
 0x550   : > { %v4842_v18 = vmax.f32 %v4810_v22, 0.0 }
 0x551   : > { %v4907_v63 = vld [vmem:[#allocation2 + $0x80] sm:$0xff] }
 0x552   : > { %v5309_v38 = vld [vmem:[#allocation2 + $0x7a] sm:$0xff]  ;;  %v5310_v57 = vld [vmem:[#allocation2 + $0x82] sm:$0xff]  ;;  %4874 = vst [vmem:[#allocation2 + $0x91] sm:$0xff] %v4842_v18  ;;  %v15721_v9 = vpack.c.bf16 %v4907_v63, %v4906_v0  ;;  %v4309_v0 = vadd.f32 %v15477_v41, %v4075_v25 }
 0x553   : > { %v5336_v8 = vpack.c.bf16 %v5310_v57, %v5309_v38  ;;  %v4711_v42 = vpop.f32.mrf.mxu1 }
 0x554   : > { %v4775_v10 = vadd.f32 %v4711_v42, %v4541_v37  ;;  %5243 = vmatmul.bf16.gmra.mxu3 %v15721_v9  ;;  %v4543_v2 = vadd.f32 %v15479_v13, %v4309_v0 }
 0x555   : > { %5445 = vmatmul.bf16.gmra.mxu0 %v5336_v8 }
 0x556   : > { %v4811_v48 = vadd.f32 %v15614_v59, %v4775_v10 }
 0x558   : > { %v4843_v7 = vmax.f32 %v4811_v48, 0.0  ;;  %v5082_v37 = vpop.f32.mrf.mxu2  ;;  %v5219_v8 = vpop.f32.mrf.mxu3 }
 0x559   : > { %v4908_v5 = vld [vmem:[#allocation2 + $0x90] sm:$0xff]  ;;  %v5220_v10 = vadd.f32 %v5219_v8, %v5082_v37  ;;  %v13713_v8 = vld [vmem:[%s18557_s5 + $0x178] sm:$0xff] }
 0x55a   : > { %4875 = vst [vmem:[#allocation2 + $0x99] sm:$0xff] %v4843_v7  ;;  %v4998_v36 = vpack.c.bf16 %v4843_v7, %v4842_v18  ;;  %v5421_v45 = vpop.f32.mrf.mxu0  ;;  %v4310_v7 = vadd.f32 %v15485_v60, %v15433_v49  ;;  %v4311_v49 = vadd.f32 %v15499_v30, %v4077_v35  ;;  %6114 = vmatpush.bf16.msra.mxu3 %v13713_v8  ;;  %v18730_v8 = vld [vmem:[#allocation55_spill] sm:$0xff] }
 0x55b   : > { %v4714_v17 = vpop.f32.mrf.mxu1  ;;  %v15755_v3 = vadd.f32 %v5421_v45, %v5220_v10  ;;  %v18725_v45 = vld [vmem:[#allocation52_spill] sm:$0xff] }
 0x55c   : > { %v4776_v22 = vadd.f32 %v4714_v17, %v4542_v46  ;;  %5111 = vmatmul.bf16.gmra.mxu2 %v4998_v36  ;;  %v4592_v46 = vld [vmem:[#allocation2 + $0x19a] sm:$0xff]  ;;  %v4593_v36 = vld [vmem:[#allocation2 + $0x1a2] sm:$0xff]  ;;  %v4544_v17 = vadd.f32 %v15487_v6, %v4310_v7 }
 0x55e   : > { %v4812_v63 = vadd.f32 %v15614_v59, %v4776_v22  ;;  %4753 = vmatmul.bf16.gmra.mxu1 %v15425_v16  ;;  %v4609_v22 = vpack.c.bf16 %v4593_v36, %v4592_v46 }
 0x560   : > { %v4844_v51 = vmax.f32 %v4812_v63, 0.0  ;;  %v13701_v63 = vld [vmem:[%s18557_s5 + $0x118] sm:$0xff] }
 0x561   : > { %v4909_v18 = vld [vmem:[#allocation2 + $0x98] sm:$0xff]  ;;  %5884 = vmatpush.bf16.msra.mxu2 %v13701_v63 }
 0x562   : > { %v5311_v38 = vld [vmem:[#allocation2 + $0x92] sm:$0xff]  ;;  %v5312_v57 = vld [vmem:[#allocation2 + $0x9a] sm:$0xff]  ;;  %4876 = vst [vmem:[#allocation2 + $0xa9] sm:$0xff] %v4844_v51  ;;  %v15752_v41 = vpack.c.bf16 %v4909_v18, %v4908_v5 }
 0x563   : > { %v5337_v42 = vpack.c.bf16 %v5312_v57, %v5311_v38  ;;  %v4716_v16 = vpop.f32.mrf.mxu1 }
 0x564   : > { %v4777_v48 = vadd.f32 %v4716_v16, %v4543_v2  ;;  %5248 = vmatmul.bf16.gmra.mxu3 %v15752_v41 }
 0x565   : > { %5450 = vmatmul.bf16.gmra.mxu0 %v5337_v42  ;;  %v4312_v42 = vadd.f32 %v15519_v54, %v15451_v12 }
 0x566   : > { %v4813_v25 = vadd.f32 %v15614_v59, %v4777_v48 }
 0x567   : > { %v4546_v7 = vadd.f32 %v15524_v61, %v4312_v42 }
 0x568   : > { %v4845_v13 = vmax.f32 %v4813_v25, 0.0 }
 0x569   : > { %v4910_v58 = vld [vmem:[#allocation2 + $0xa8] sm:$0xff] }
 0x56a   : > { %4877 = vst [vmem:[#allocation2 + $0xb1] sm:$0xff] %v4845_v13  ;;  %v4999_v0 = vpack.c.bf16 %v4845_v13, %v4844_v51  ;;  %v4545_v51 = vadd.f32 %v15502_v53, %v4311_v49  ;;  %v18724_v53 = vld [vmem:[#allocation50_spill] sm:$0xff] }
 0x56b   : > { %v4719_v20 = vpop.f32.mrf.mxu1  ;;  %v4079_v48 = vadd.f32 %v18725_v45, %v18724_v53  ;;  %v18726_v13 = vld [vmem:[#allocation62_spill] sm:$0xff] }
 0x56c   : > { %v4778_v5 = vadd.f32 %v4719_v20, %v4544_v17  ;;  %5116 = vmatmul.bf16.gmra.mxu2 %v4999_v0  ;;  %v18727_v20 = vld [vmem:[#allocation63_spill] sm:$0xff] }
 0x56d   : > { %v4313_v35 = vadd.f32 %v18726_v13, %v4079_v48  ;;  %v15804_v48 = vpop.f32.mrf.mxu3 }
 0x56e   : > { %v4814_v60 = vadd.f32 %v15614_v59, %v4778_v5  ;;  %4758 = vmatmul.bf16.gmra.mxu1 %v4609_v22 }
 0x56f   : > { %v4547_v5 = vadd.f32 %v18727_v20, %v4313_v35 }
 0x570   : > { %v4846_v18 = vmax.f32 %v4814_v60, 0.0 }
 0x571   : > { %v4911_v24 = vld [vmem:[#allocation2 + $0xb0] sm:$0xff] }
 0x572   : > { %v5313_v38 = vld [vmem:[#allocation2 + $0xaa] sm:$0xff]  ;;  %v5314_v6 = vld [vmem:[#allocation2 + $0xb2] sm:$0xff]  ;;  %4878 = vst [vmem:[#allocation2 + $0xc1] sm:$0xff] %v4846_v18  ;;  %v15769_v57 = vpack.c.bf16 %v4911_v24, %v4910_v58 }
 0x573   : > { %v5338_v37 = vpack.c.bf16 %v5314_v6, %v5313_v38  ;;  %v4721_v2 = vpop.f32.mrf.mxu1  ;;  %v18728_v58 = vld [vmem:[#allocation53_spill] sm:$0xff]  ;;  %v15791_v38 = vpop.f32.mrf.mxu2 }
 0x574   : > { %v4779_v30 = vadd.f32 %v4721_v2, %v4545_v51  ;;  %5253 = vmatmul.bf16.gmra.mxu3 %v15769_v57  ;;  %v4314_v24 = vadd.f32 %v15566_v32, %v18728_v58  ;;  %v15793_v51 = vpop.f32.mrf.mxu0  ;;  %v18732_v58 = vld [vmem:[#allocation54_spill] sm:$0xff] }
 0x575   : > { %5455 = vmatmul.bf16.gmra.mxu0 %v5338_v37  ;;  %v18729_v37 = vld [vmem:[#allocation51_spill] sm:$0xff] }
 0x576   : > { %v4815_v10 = vadd.f32 %v15614_v59, %v4779_v30  ;;  %v4081_v2 = vadd.f32 %v18730_v8, %v18729_v37  ;;  %v4548_v30 = vadd.f32 %v15570_v62, %v4314_v24  ;;  %v18733_v24 = vld [vmem:[#allocation58_spill] sm:$0xff] }
 0x578   : > { %v4847_v16 = vmax.f32 %v4815_v10, 0.0  ;;  %v13700_v10 = vld [vmem:[%s18557_s5 + $0x110] sm:$0xff]  ;;  %v4315_v53 = vadd.f32 %v15577_v4, %v4081_v2 }
 0x579   : > { %v4912_v54 = vld [vmem:[#allocation2 + $0xc0] sm:$0xff]  ;;  %5885 = vmatpush.bf16.msra.mxu2 %v13700_v10  ;;  %v13712_v4 = vld [vmem:[%s18557_s5 + $0x170] sm:$0xff] }
 0x57a   : > { %4879 = vst [vmem:[#allocation2 + $0xc9] sm:$0xff] %v4847_v16  ;;  %v5000_v25 = vpack.c.bf16 %v4847_v16, %v4846_v18  ;;  %6115 = vmatpush.bf16.msra.mxu3 %v13712_v4 }
 0x57b   : > { %v4724_v46 = vpop.f32.mrf.mxu1 }
 0x57c   : > { %v4780_v36 = vadd.f32 %v4724_v46, %v4546_v7  ;;  %5121 = vmatmul.bf16.gmra.mxu2 %v5000_v25 }
 0x57e   : > { %v4816_v17 = vadd.f32 %v15614_v59, %v4780_v36  ;;  %5654 = vmatmul.bf16.vlgmr.msra.gmra.mxu1 %v15640_v55 }
 0x580   : > { %v4848_v12 = vmax.f32 %v4816_v17, 0.0  ;;  %v4549_v17 = vadd.f32 %v15584_v33, %v4315_v53 }
 0x581   : > { %v4913_v22 = vld [vmem:[#allocation2 + $0xc8] sm:$0xff] }
 0x582   : > { %v5315_v0 = vld [vmem:[#allocation2 + $0xc2] sm:$0xff]  ;;  %v5316_v63 = vld [vmem:[#allocation2 + $0xca] sm:$0xff]  ;;  %4880 = vst [vmem:[#allocation2 + $0xd9] sm:$0xff] %v4848_v12  ;;  %v15785_v49 = vpack.c.bf16 %v4913_v22, %v4912_v54 }
 0x583   : > { %v5339_v61 = vpack.c.bf16 %v5316_v63, %v5315_v0  ;;  %v4726_v60 = vpop.f32.mrf.mxu1  ;;  %v18731_v0 = vld [vmem:[#allocation56_spill] sm:$0xff] }
 0x584   : > { %v4781_v18 = vadd.f32 %v4726_v60, %v4547_v5  ;;  %5258 = vmatmul.bf16.gmra.mxu3 %v15785_v49  ;;  %v4316_v63 = vadd.f32 %v15595_v56, %v18731_v0  ;;  %v18734_v56 = vld [vmem:[#allocation71_spill] sm:$0xff] }
 0x585   : > { %5460 = vmatmul.bf16.gmra.mxu0 %v5339_v61 }
 0x586   : > { %v4817_v55 = vadd.f32 %v15614_v59, %v4781_v18 }
 0x588   : > { %v4849_v6 = vmax.f32 %v4817_v55, 0.0  ;;  %v4083_v55 = vadd.f32 %v18733_v24, %v18732_v58  ;;  %v18738_v58 = vld [vmem:[#allocation61_spill] sm:$0xff] }
 0x589   : > { %v4914_v62 = vld [vmem:[#allocation2 + $0xd8] sm:$0xff] }
 0x58a   : > { %4881 = vst [vmem:[#allocation2 + $0xe1] sm:$0xff] %v4849_v6  ;;  %v5001_v42 = vpack.c.bf16 %v4849_v6, %v4848_v12  ;;  %v4550_v6 = vadd.f32 %v15598_v50, %v4316_v63 }
 0x58b   : > { %v4729_v16 = vpop.f32.mrf.mxu1 }
 0x58c   : > { %v4782_v32 = vadd.f32 %v4729_v16, %v4548_v30  ;;  %5126 = vmatmul.bf16.gmra.mxu2 %v5001_v42  ;;  %v4317_v42 = vadd.f32 %v18734_v56, %v4083_v55  ;;  %v18740_v56 = vld [vmem:[#allocation76_spill] sm:$0xff] }
 0x58e   : > { %v4818_v45 = vadd.f32 %v15614_v59, %v4782_v32  ;;  %5659 = vmatmul.bf16.gmra.mxu1 %v15656_v27 }
 0x58f   : > { %v5087_v7 = vpop.f32.mrf.mxu2 }
 0x590   : > { %v4850_v25 = vmax.f32 %v4818_v45, 0.0 }
 0x591   : > { %v4915_v36 = vld [vmem:[#allocation2 + $0xe0] sm:$0xff] }
 0x592   : > { %v5426_v46 = vpop.f32.mrf.mxu0  ;;  %v5317_v13 = vld [vmem:[#allocation2 + $0xda] sm:$0xff]  ;;  %v5318_v35 = vld [vmem:[#allocation2 + $0xe2] sm:$0xff]  ;;  %4882 = vst [vmem:[#allocation2 + $0xf1] sm:$0xff] %v4850_v25  ;;  %v15807_v12 = vpack.c.bf16 %v4915_v36, %v4914_v62 }
 0x593   : > { %v5340_v54 = vpack.c.bf16 %v5318_v35, %v5317_v13  ;;  %v4731_v27 = vpop.f32.mrf.mxu1 }
 0x594   : > { %v4783_v22 = vadd.f32 %v4731_v27, %v4549_v17  ;;  %5263 = vmatmul.bf16.gmra.mxu3 %v15807_v12 }
 0x595   : > { %5465 = vmatmul.bf16.gmra.mxu0 %v5340_v54 }
 0x596   : > { %v4819_v20 = vadd.f32 %v15614_v59, %v4783_v22 }
 0x597   : > { %v5224_v5 = vpop.f32.mrf.mxu3  ;;  %v5089_v33 = vpop.f32.mrf.mxu2 }
 0x598   : > { %v4851_v61 = vmax.f32 %v4819_v20, 0.0  ;;  %v5225_v60 = vadd.f32 %v5224_v5, %v5087_v7 }
 0x599   : > { %v4916_v7 = vld [vmem:[#allocation2 + $0xf0] sm:$0xff] }
 0x59a   : > { %v5428_v18 = vpop.f32.mrf.mxu0  ;;  %4883 = vst [vmem:[#allocation2 + $0xf9] sm:$0xff] %v4851_v61  ;;  %v5002_v37 = vpack.c.bf16 %v4851_v61, %v4850_v25  ;;  %v15819_v8 = vadd.f32 %v5426_v46, %v5225_v60  ;;  %v18735_v46 = vld [vmem:[#allocation72_spill] sm:$0xff]  ;;  %v18737_v60 = vld [vmem:[#allocation57_spill] sm:$0xff] }
 0x59b   : > { %v4734_v2 = vpop.f32.mrf.mxu1  ;;  %v4551_v13 = vadd.f32 %v18735_v46, %v4317_v42  ;;  %v4085_v24 = vadd.f32 %v18738_v58, %v18737_v60  ;;  %v18742_v58 = vld [vmem:[#allocation60_spill] sm:$0xff] }
 0x59c   : > { %v4784_v30 = vadd.f32 %v4734_v2, %v4550_v6  ;;  %5131 = vmatmul.bf16.gmra.mxu2 %v5002_v37  ;;  %v13699_v37 = vld [vmem:[%s18557_s5 + $0x108] sm:$0xff] }
 0x59d   : > { %5886 = vmatpush.bf16.msra.mxu2 %v13699_v37  ;;  %v4319_v42 = vadd.f32 %v18740_v56, %v4085_v24  ;;  %v18743_v24 = vld [vmem:[#allocation65_spill] sm:$0xff] }
 0x59e   : > { %v4820_v10 = vadd.f32 %v15614_v59, %v4784_v30  ;;  %5664 = vmatmul.bf16.gmra.mxu1 %v15674_v31  ;;  %v18736_v31 = vld [vmem:[#allocation59_spill] sm:$0xff] }
 0x59f   : > { %v5226_v16 = vpop.f32.mrf.mxu3  ;;  %v5092_v32 = vpop.f32.mrf.mxu2  ;;  %v4318_v22 = vadd.f32 %v15619_v47, %v18736_v31  ;;  %v4553_v46 = vadd.f32 %v15636_v29, %v4319_v42 }
 0x5a0   : > { %v4852_v53 = vmax.f32 %v4820_v10, 0.0  ;;  %v5227_v45 = vadd.f32 %v5226_v16, %v5089_v33 }
 0x5a1   : > { %v4917_v36 = vld [vmem:[#allocation2 + $0xf8] sm:$0xff] }
 0x5a2   : > { %v5431_v62 = vpop.f32.mrf.mxu0  ;;  %v5319_v50 = vld [vmem:[#allocation2 + $0xf2] sm:$0xff]  ;;  %v5320_v25 = vld [vmem:[#allocation2 + $0xfa] sm:$0xff]  ;;  %4884 = vst [vmem:[#allocation2 + $0x109] sm:$0xff] %v4852_v53  ;;  %v15825_v35 = vpack.c.bf16 %v4917_v36, %v4916_v7  ;;  %v15827_v54 = vadd.f32 %v5428_v18, %v5227_v45 }
 0x5a3   : > { %v5341_v17 = vpack.c.bf16 %v5320_v25, %v5319_v50  ;;  %v4736_v4 = vpop.f32.mrf.mxu1  ;;  %v18739_v18 = vld [vmem:[#allocation74_spill] sm:$0xff] }
 0x5a4   : > { %v4785_v27 = vadd.f32 %v4736_v4, %v4551_v13  ;;  %5268 = vmatmul.bf16.gmra.mxu3 %v15825_v35  ;;  %v4552_v55 = vadd.f32 %v18739_v18, %v4318_v22  ;;  %v13711_v4 = vld [vmem:[%s18557_s5 + $0x168] sm:$0xff] }
 0x5a5   : > { %5470 = vmatmul.bf16.gmra.mxu0 %v5341_v17  ;;  %6116 = vmatpush.bf16.msra.mxu3 %v13711_v4  ;;  %v18741_v22 = vld [vmem:[#allocation64_spill] sm:$0xff]  ;;  %v18746_v4 = vld [vmem:[#allocation78_spill] sm:$0xff] }
 0x5a6   : > { %v4821_v0 = vadd.f32 %v15614_v59, %v4785_v27 }
 0x5a7   : > { %v5229_v63 = vpop.f32.mrf.mxu3  ;;  %v5094_v20 = vpop.f32.mrf.mxu2 }
 0x5a8   : > { %v4853_v5 = vmax.f32 %v4821_v0, 0.0  ;;  %v5230_v33 = vadd.f32 %v5229_v63, %v5092_v32  ;;  %v4320_v0 = vadd.f32 %v15644_v34, %v18741_v22 }
 0x5a9   : > { %v4918_v7 = vld [vmem:[#allocation2 + $0x108] sm:$0xff] }
 0x5aa   : > { %v5433_v61 = vpop.f32.mrf.mxu0  ;;  %4885 = vst [vmem:[#allocation2 + $0x111] sm:$0xff] %v4853_v5  ;;  %v5003_v6 = vpack.c.bf16 %v4853_v5, %v4852_v53  ;;  %v15839_v2 = vadd.f32 %v5431_v62, %v5230_v33  ;;  %v4554_v18 = vadd.f32 %v15647_v15, %v4320_v0 }
 0x5ab   : > { %v4739_v47 = vpop.f32.mrf.mxu1 }
 0x5ac   : > { %v4786_v30 = vadd.f32 %v4739_v47, %v4552_v55  ;;  %5136 = vmatmul.bf16.gmra.mxu2 %v5003_v6 }
 0x5ae   : > { %v4822_v10 = vadd.f32 %v15614_v59, %v4786_v30  ;;  %5669 = vmatmul.bf16.gmra.mxu1 %v15694_v28 }
 0x5af   : > { %v5231_v16 = vpop.f32.mrf.mxu3  ;;  %v5097_v32 = vpop.f32.mrf.mxu2 }
 0x5b0   : > { %v4854_v45 = vmax.f32 %v4822_v10, 0.0  ;;  %v5232_v53 = vadd.f32 %v5231_v16, %v5094_v20 }
 0x5b1   : > { %v4919_v50 = vld [vmem:[#allocation2 + $0x110] sm:$0xff] }
 0x5b2   : > { %v5436_v36 = vpop.f32.mrf.mxu0  ;;  %v5321_v25 = vld [vmem:[#allocation2 + $0x10a] sm:$0xff]  ;;  %v5322_v62 = vld [vmem:[#allocation2 + $0x112] sm:$0xff]  ;;  %4886 = vst [vmem:[#allocation2 + $0x121] sm:$0xff] %v4854_v45  ;;  %v15845_v13 = vpack.c.bf16 %v4919_v50, %v4918_v7  ;;  %v15850_v28 = vadd.f32 %v5433_v61, %v5232_v53  ;;  %v4087_v61 = vadd.f32 %v18743_v24, %v18742_v58  ;;  %v18749_v24 = vld [vmem:[#allocation79_spill] sm:$0xff] }
 0x5b3   : > { %v5342_v17 = vpack.c.bf16 %v5322_v62, %v5321_v25  ;;  %v4741_v27 = vpop.f32.mrf.mxu1 }
 0x5b4   : > { %v4787_v31 = vadd.f32 %v4741_v27, %v4553_v46  ;;  %5273 = vmatmul.bf16.gmra.mxu3 %v15845_v13  ;;  %v4321_v34 = vadd.f32 %v15652_v14, %v4087_v61 }
 0x5b5   : > { %5475 = vmatmul.bf16.gmra.mxu0 %v5342_v17 }
 0x5b6   : > { %v4823_v29 = vadd.f32 %v15614_v59, %v4787_v31 }
 0x5b7   : > { %v5234_v63 = vpop.f32.mrf.mxu3  ;;  %v5099_v20 = vpop.f32.mrf.mxu2 }
 0x5b8   : > { %v4855_v5 = vmax.f32 %v4823_v29, 0.0  ;;  %v5235_v33 = vadd.f32 %v5234_v63, %v5097_v32 }
 0x5b9   : > { %v4920_v32 = vld [vmem:[#allocation2 + $0x120] sm:$0xff] }
 0x5ba   : > { %v5438_v60 = vpop.f32.mrf.mxu0  ;;  %4887 = vst [vmem:[#allocation2 + $0x129] sm:$0xff] %v4855_v5  ;;  %v5004_v55 = vpack.c.bf16 %v4855_v5, %v4854_v45  ;;  %v15859_v6 = vadd.f32 %v5436_v36, %v5235_v33  ;;  %v18744_v36 = vld [vmem:[#allocation77_spill] sm:$0xff]  ;;  %v18748_v33 = vld [vmem:[#allocation68_spill] sm:$0xff] }
 0x5bb   : > { %v4744_v37 = vpop.f32.mrf.mxu1  ;;  %v4555_v50 = vadd.f32 %v18744_v36, %v4321_v34  ;;  %v18747_v5 = vld [vmem:[#allocation49_spill] sm:$0xff] }
 0x5bc   : > { %v4788_v47 = vadd.f32 %v4744_v37, %v4554_v18  ;;  %5141 = vmatmul.bf16.gmra.mxu2 %v5004_v55  ;;  %v13698_v55 = vld [vmem:[%s18557_s5 + $0x100] sm:$0xff]  ;;  %v13720_v37 = vld [vmem:[%s18557_s5 + $0x1b0] sm:$0xff] }
 0x5bd   : > { %5887 = vmatpush.bf16.msra.mxu2 %v13698_v55 }
 0x5be   : > { %v4824_v30 = vadd.f32 %v15614_v59, %v4788_v47  ;;  %5674 = vmatmul.bf16.gmra.mxu1 %v15721_v9  ;;  %v18745_v9 = vld [vmem:[#allocation66_spill] sm:$0xff] }
 0x5bf   : > { %v5236_v56 = vpop.f32.mrf.mxu3  ;;  %v5102_v42 = vpop.f32.mrf.mxu2  ;;  %v4322_v27 = vadd.f32 %v18746_v4, %v18745_v9  ;;  %v13718_v9 = vld [vmem:[%s18557_s5 + $0x1a0] sm:$0xff] }
 0x5c0   : > { %v4856_v10 = vmax.f32 %v4824_v30, 0.0  ;;  %v5237_v16 = vadd.f32 %v5236_v56, %v5099_v20  ;;  %v13721_v20 = vld [vmem:[%s18557_s5 + $0x1b8] sm:$0xff] }
 0x5c1   : > { %v4921_v7 = vld [vmem:[#allocation2 + $0x128] sm:$0xff]  ;;  %v4556_v61 = vadd.f32 %v18749_v24, %v4322_v27  ;;  %6348 = vmatpush.bf16.msra.mxu0 %v13721_v20  ;;  %v18752_v24 = vld [vmem:[#allocation73_spill] sm:$0xff] }
 0x5c2   : > { %v5441_v53 = vpop.f32.mrf.mxu0  ;;  %v5323_v15 = vld [vmem:[#allocation2 + $0x122] sm:$0xff]  ;;  %v5324_v45 = vld [vmem:[#allocation2 + $0x12a] sm:$0xff]  ;;  %4888 = vst [vmem:[#allocation2 + $0x139] sm:$0xff] %v4856_v10  ;;  %v15865_v25 = vpack.c.bf16 %v4921_v7, %v4920_v32  ;;  %v15867_v14 = vadd.f32 %v5438_v60, %v5237_v16  ;;  %v4089_v60 = vadd.f32 %v18748_v33, %v18747_v5  ;;  %v13709_v33 = vld [vmem:[%s18557_s5 + $0x158] sm:$0xff] }
 0x5c3   : > { %v5343_v62 = vpack.c.bf16 %v5324_v45, %v5323_v15  ;;  %v4746_v46 = vpop.f32.mrf.mxu1 }
 0x5c4   : > { %v4789_v17 = vadd.f32 %v4746_v46, %v4555_v50  ;;  %5278 = vmatmul.bf16.gmra.mxu3 %v15865_v25  ;;  %v4323_v56 = vadd.f32 %v15676_v19, %v4089_v60  ;;  %v13717_v60 = vld [vmem:[%s18557_s5 + $0x198] sm:$0xff] }
 0x5c5   : > { %5480 = vmatmul.bf16.gmra.mxu0 %v5343_v62 }
 0x5c6   : > { %v4825_v31 = vadd.f32 %v15614_v59, %v4789_v17  ;;  %6349 = vmatpush.bf16.msra.mxu0 %v13720_v37  ;;  %v4557_v36 = vadd.f32 %v15680_v52, %v4323_v56  ;;  %v13710_v17 = vld [vmem:[%s18557_s5 + $0x160] sm:$0xff]  ;;  %v13708_v37 = vld [vmem:[%s18557_s5 + $0x150] sm:$0xff] }
 0x5c7   : > { %v5239_v22 = vpop.f32.mrf.mxu3  ;;  %v5104_v0 = vpop.f32.mrf.mxu2  ;;  %6117 = vmatpush.bf16.msra.mxu3 %v13710_v17  ;;  %v13716_v56 = vld [vmem:[%s18557_s5 + $0x190] sm:$0xff] }
 0x5c8   : > { %v4857_v29 = vmax.f32 %v4825_v31, 0.0  ;;  %v5240_v63 = vadd.f32 %v5239_v22, %v5102_v42  ;;  %v18750_v31 = vld [vmem:[#allocation69_spill] sm:$0xff] }
 0x5c9   : > { %v4922_v15 = vld [vmem:[#allocation2 + $0x138] sm:$0xff]  ;;  %v4324_v22 = vadd.f32 %v15686_v11, %v18750_v31 }
 0x5ca   : > { %v5443_v58 = vpop.f32.mrf.mxu0  ;;  %4889 = vst [vmem:[#allocation2 + $0x141] sm:$0xff] %v4857_v29  ;;  %v5005_v18 = vpack.c.bf16 %v4857_v29, %v4856_v10  ;;  %v15885_v47 = vadd.f32 %v5441_v53, %v5240_v63  ;;  %v13719_v53 = vld [vmem:[%s18557_s5 + $0x1a8] sm:$0xff] }
 0x5cb   : > { %v4749_v34 = vpop.f32.mrf.mxu1  ;;  %6350 = vmatpush.bf16.msra.mxu0 %v13719_v53  ;;  %v4558_v11 = vadd.f32 %v15691_v40, %v4324_v22  ;;  %6118 = vmatpush.bf16.msra.mxu3 %v13709_v33  ;;  %v13737_v22 = vld [vmem:[%s18557_s5 + $0x238] sm:$0xff] }
 0x5cc   : > { %v4790_v30 = vadd.f32 %v4749_v34, %v4556_v61  ;;  %5146 = vmatmul.bf16.gmra.mxu2 %v5005_v18 }
 0x5cd   : > { %6816 = vmatpush.bf16.msrb.mxu2 %v13737_v22 }
 0x5ce   : > { %v4826_v42 = vadd.f32 %v15614_v59, %v4790_v30  ;;  %5679 = vmatmul.bf16.gmra.mxu1 %v15752_v41 }
 0x5cf   : > { %v5241_v10 = vpop.f32.mrf.mxu3  ;;  %v5107_v16 = vpop.f32.mrf.mxu2  ;;  %6351 = vmatpush.bf16.msra.mxu0 %v13718_v9  ;;  %6119 = vmatpush.bf16.msra.mxu3 %v13708_v37  ;;  %v13706_v9 = vld [vmem:[%s18557_s5 + $0x140] sm:$0xff] }
 0x5d0   : > { %v4858_v32 = vmax.f32 %v4826_v42, 0.0  ;;  %v5242_v7 = vadd.f32 %v5241_v10, %v5104_v0 }
 0x5d1   : > { %v4923_v50 = vld [vmem:[#allocation2 + $0x140] sm:$0xff] }
 0x5d2   : > { %v5446_v45 = vpop.f32.mrf.mxu0  ;;  %v5325_v19 = vld [vmem:[#allocation2 + $0x13a] sm:$0xff]  ;;  %v5326_v62 = vld [vmem:[#allocation2 + $0x142] sm:$0xff]  ;;  %4890 = vst [vmem:[#allocation2 + $0x151] sm:$0xff] %v4858_v32  ;;  %v15894_v46 = vpack.c.bf16 %v4923_v50, %v4922_v15  ;;  %v15902_v4 = vadd.f32 %v5443_v58, %v5242_v7 }
 0x5d3   : > { %v5344_v41 = vpack.c.bf16 %v5326_v62, %v5325_v19  ;;  %v4751_v27 = vpop.f32.mrf.mxu1  ;;  %v18751_v58 = vld [vmem:[#allocation67_spill] sm:$0xff]  ;;  %6352 = vmatpush.bf16.msra.mxu0 %v13717_v60 }
 0x5d4   : > { %v4791_v52 = vadd.f32 %v4751_v27, %v4557_v36  ;;  %5283 = vmatmul.bf16.gmra.mxu3 %v15894_v46  ;;  %v4091_v61 = vadd.f32 %v18752_v24, %v18751_v58  ;;  %v13715_v15 = vld [vmem:[%s18557_s5 + $0x188] sm:$0xff]  ;;  %v13729_v58 = vld [vmem:[%s18557_s5 + $0x1f8] sm:$0xff] }
 0x5d5   : > { %5485 = vmatmul.bf16.gmra.mxu0 %v5344_v41  ;;  %6582 = vmatpush.bf16.msrb.mxu1 %v13729_v58 }
 0x5d6   : > { %v4827_v0 = vadd.f32 %v15614_v59, %v4791_v52  ;;  %v4325_v10 = vadd.f32 %v15700_v21, %v4091_v61 }
 0x5d7   : > { %v5244_v29 = vpop.f32.mrf.mxu3  ;;  %v5109_v63 = vpop.f32.mrf.mxu2  ;;  %6353 = vmatpush.bf16.msra.mxu0 %v13716_v56  ;;  %v13983_v56 = vld [vmem:[%s18556_s4] ss:$0 sm:$0xff] }
 0x5d8   : > { %v4859_v20 = vmax.f32 %v4827_v0, 0.0  ;;  %v5245_v5 = vadd.f32 %v5244_v29, %v5107_v16  ;;  %v13707_v16 = vld [vmem:[%s18557_s5 + $0x148] sm:$0xff]  ;;  %v4559_v50 = vadd.f32 %v15702_v1, %v4325_v10  ;;  %v13714_v1 = vld [vmem:[%s18557_s5 + $0x180] sm:$0xff] }
 0x5d9   : > { %v4924_v36 = vld [vmem:[#allocation2 + $0x150] sm:$0xff]  ;;  %6120 = vmatpush.bf16.msra.mxu3 %v13707_v16  ;;  %v18753_v0 = vld [vmem:[#allocation75_spill] sm:$0xff] }
 0x5da   : > { %v5448_v18 = vpop.f32.mrf.mxu0  ;;  %4891 = vst [vmem:[#allocation2 + $0x159] sm:$0xff] %v4859_v20  ;;  %v5006_v55 = vpack.c.bf16 %v4859_v20, %v4858_v32  ;;  %v15920_v34 = vadd.f32 %v5446_v45, %v5245_v5  ;;  %v4326_v29 = vadd.f32 %v15716_v26, %v18753_v0 }
 0x5db   : > { %v4754_v30 = vpop.f32.mrf.mxu1  ;;  %6354 = vmatpush.bf16.msra.mxu0 %v13715_v15 }
 0x5dc   : > { %v4792_v42 = vadd.f32 %v4754_v30, %v4558_v11  ;;  %5151 = vmatmul.bf16.gmra.mxu2 %v5006_v55  ;;  %v4560_v24 = vadd.f32 %v15718_v23, %v4326_v29 }
 0x5dd   : > { %6121 = vmatpush.bf16.msra.mxu3 %v13706_v9 }
 0x5de   : > { %v4828_v40 = vadd.f32 %v15614_v59, %v4792_v42  ;;  %5684 = vmatmul.bf16.gmra.mxu1 %v15769_v57 }
 0x5df   : > { %v5246_v32 = vpop.f32.mrf.mxu3  ;;  %v5112_v7 = vpop.f32.mrf.mxu2  ;;  %6355 = vmatpush.bf16.msra.mxu0 %v13714_v1 }
 0x5e0   : > { %v4860_v53 = vmax.f32 %v4828_v40, 0.0  ;;  %v5247_v45 = vadd.f32 %v5246_v32, %v5109_v63 }
 0x5e1   : > { %v4925_v19 = vld [vmem:[#allocation2 + $0x158] sm:$0xff] }
 0x5e2   : > { %v5451_v21 = vpop.f32.mrf.mxu0  ;;  %v5327_v57 = vld [vmem:[#allocation2 + $0x152] sm:$0xff]  ;;  %v5328_v62 = vld [vmem:[#allocation2 + $0x15a] sm:$0xff]  ;;  %4892 = vst [vmem:[#allocation2 + $0x169] sm:$0xff] %v4860_v53  ;;  %v15935_v41 = vpack.c.bf16 %v4925_v19, %v4924_v36  ;;  %v15940_v27 = vadd.f32 %v5448_v18, %v5247_v45 }
 0x5e3   : > { %v5345_v17 = vpack.c.bf16 %v5328_v62, %v5327_v57  ;;  %v4756_v52 = vpop.f32.mrf.mxu1  ;;  %v18754_v18 = vld [vmem:[#allocation70_spill] sm:$0xff] }
 0x5e4   : > { %v4793_v31 = vadd.f32 %v4756_v52, %v4559_v50  ;;  %5288 = vmatmul.bf16.gmra.mxu3 %v15935_v41  ;;  %v4093_v11 = vadd.f32 %v15733_v44, %v18754_v18 }
 0x5e5   : > { %5490 = vmatmul.bf16.gmra.mxu0 %v5345_v17  ;;  %v5768_v17 = vld [vmem:[#allocation2 + $0x21] sm:$0xff] }
 0x5e6   : > { %v4829_v63 = vadd.f32 %v15614_v59, %v4793_v31  ;;  %v4327_v30 = vadd.f32 %v15735_v39, %v4093_v11  ;;  %v5767_v31 = vld [vmem:[#allocation2 + $0x19] sm:$0xff] }
 0x5e7   : > { %v5249_v20 = vpop.f32.mrf.mxu3  ;;  %v5114_v5 = vpop.f32.mrf.mxu2 }
 0x5e8   : > { %v4861_v33 = vmax.f32 %v4829_v63, 0.0  ;;  %v5250_v60 = vadd.f32 %v5249_v20, %v5112_v7  ;;  %v4561_v45 = vadd.f32 %v15743_v43, %v4327_v30  ;;  %v5799_v43 = vpack.c.bf16 %v5768_v17, %v5767_v31  ;;  %v6001_v20 = vld [vmem:[#allocation2 + $0x1a] sm:$0xff] }
 0x5e9   : > { %v4926_v16 = vld [vmem:[#allocation2 + $0x168] sm:$0xff]  ;;  %v5770_v30 = vld [vmem:[#allocation2 + $0x39] sm:$0xff] }
 0x5ea   : > { %v5453_v61 = vpop.f32.mrf.mxu0  ;;  %4893 = vst [vmem:[#allocation2 + $0x171] sm:$0xff] %v4861_v33  ;;  %v5007_v26 = vpack.c.bf16 %v4861_v33, %v4860_v53  ;;  %v15958_v59 = vadd.f32 %v5451_v21, %v5250_v60  ;;  %v6236_v33 = vld [vmem:[#allocation2 + $0x38] sm:$0xff] }
 0x5eb   : > { %v4759_v55 = vpop.f32.mrf.mxu1 }
 0x5ec   : > { %v4794_v37 = vadd.f32 %v4759_v55, %v4560_v24  ;;  %5156 = vmatmul.bf16.gmra.mxu2 %v5007_v26 }
 0x5ee   : > { %v4830_v42 = vadd.f32 %v13983_v56, %v4794_v37  ;;  %5689 = vmatmul.bf16.gmra.mxu1 %v15785_v49 }
 0x5ef   : > { %v5251_v23 = vpop.f32.mrf.mxu3  ;;  %v5117_v10 = vpop.f32.mrf.mxu2 }
 0x5f0   : > { %v4862_v44 = vmax.f32 %v4830_v42, 0.0  ;;  %v5252_v40 = vadd.f32 %v5251_v23, %v5114_v5  ;;  %v6002_v5 = vld [vmem:[#allocation2 + $0x22] sm:$0xff]  ;;  %v13728_v42 = vld [vmem:[%s18557_s5 + $0x1f0] sm:$0xff] }
 0x5f1   : > { %v4927_v7 = vld [vmem:[#allocation2 + $0x170] sm:$0xff]  ;;  %v6033_v18 = vpack.c.bf16 %v6002_v5, %v6001_v20  ;;  %6583 = vmatpush.bf16.msrb.mxu1 %v13728_v42 }
 0x5f2   : > { %v5456_v32 = vpop.f32.mrf.mxu0  ;;  %v5329_v15 = vld [vmem:[#allocation2 + $0x16a] sm:$0xff]  ;;  %v5330_v53 = vld [vmem:[#allocation2 + $0x172] sm:$0xff]  ;;  %4894 = vst [vmem:[#allocation2 + $0x181] sm:$0xff] %v4862_v44  ;;  %v15966_v39 = vpack.c.bf16 %v4927_v7, %v4926_v16  ;;  %v15968_v21 = vadd.f32 %v5453_v61, %v5252_v40 }
 0x5f3   : > { %v5346_v36 = vpack.c.bf16 %v5330_v53, %v5329_v15  ;;  %v4761_v50 = vpop.f32.mrf.mxu1  ;;  %v6235_v61 = vld [vmem:[#allocation2 + $0x30] sm:$0xff]  ;;  %v6004_v53 = vld [vmem:[#allocation2 + $0x3a] sm:$0xff] }
 0x5f4   : > { %v4795_v19 = vadd.f32 %v4761_v50, %v4561_v45  ;;  %5293 = vmatmul.bf16.gmra.mxu3 %v15966_v39  ;;  %v6267_v11 = vpack.c.bf16 %v6236_v33, %v6235_v61  ;;  %v6003_v15 = vld [vmem:[#allocation2 + $0x32] sm:$0xff] }
 0x5f5   : > { %5495 = vmatmul.bf16.gmra.mxu0 %v5346_v36  ;;  %v6238_v45 = vld [vmem:[#allocation2 + $0x50] sm:$0xff] }
 0x5f6   : > { %v4831_v49 = vadd.f32 %v13983_v56, %v4795_v19 }
 0x5f7   : > { %v5254_v57 = vpop.f32.mrf.mxu3  ;;  %v5119_v62 = vpop.f32.mrf.mxu2 }
 0x5f8   : > { %v4863_v9 = vmax.f32 %v4831_v49, 0.0  ;;  %v5255_v52 = vadd.f32 %v5254_v57, %v5117_v10  ;;  %v5769_v10 = vld [vmem:[#allocation2 + $0x31] sm:$0xff]  ;;  %v6237_v49 = vld [vmem:[#allocation2 + $0x48] sm:$0xff]  ;;  %v6034_v57 = vpack.c.bf16 %v6004_v53, %v6003_v15 }
 0x5f9   : > { %v15987_v44 = vpack.c.bf16 %v5770_v30, %v5769_v10  ;;  %v5774_v10 = vld [vmem:[#allocation2 + $0x69] sm:$0xff]  ;;  %v5773_v53 = vld [vmem:[#allocation2 + $0x61] sm:$0xff] }
 0x5fa   : > { %v5458_v1 = vpop.f32.mrf.mxu0  ;;  %4895 = vst [vmem:[#allocation2 + $0x189] sm:$0xff] %v4863_v9  ;;  %v15971_v22 = vadd.f32 %v5456_v32, %v5255_v52 }
 0x5fb   : > { %v5655_v0 = vpop.f32.mrf.mxu1 }
 0x5fc   : > { %v15974_v29 = vadd.f32 %v5655_v0, %v15755_v3  ;;  %5888 = vmatmul.bf16.vlgmr.msra.gmra.mxu2 %v5799_v43  ;;  %v13736_v3 = vld [vmem:[%s18557_s5 + $0x230] sm:$0xff] }
 0x5fd   : > { %6817 = vmatpush.bf16.msrb.mxu2 %v13736_v3  ;;  %v5771_v0 = vld [vmem:[#allocation2 + $0x49] sm:$0xff]  ;;  %v6239_v3 = vld [vmem:[#allocation2 + $0x60] sm:$0xff] }
 0x5fe   : > { %5694 = vmatmul.bf16.gmra.mxu1 %v15807_v12 }
 0x5ff   : > { %v5256_v63 = vpop.f32.mrf.mxu3  ;;  %v5122_v60 = vpop.f32.mrf.mxu2 }
 0x600   : > { %v5257_v58 = vadd.f32 %v5256_v63, %v5119_v62  ;;  %v6268_v62 = vpack.c.bf16 %v6238_v45, %v6237_v49  ;;  %v16021_v45 = vpack.c.bf16 %v5774_v10, %v5773_v53  ;;  %v6007_v49 = vld [vmem:[#allocation2 + $0x62] sm:$0xff] }
 0x602   : > { %v5461_v24 = vpop.f32.mrf.mxu0  ;;  %v15977_v26 = vadd.f32 %v5458_v1, %v5257_v58  ;;  %v5772_v1 = vld [vmem:[#allocation2 + $0x51] sm:$0xff] }
 0x603   : > { %v15979_v55 = vpop.f32.mrf.mxu1  ;;  %v16001_v63 = vpack.c.bf16 %v5772_v1, %v5771_v0  ;;  %v6006_v58 = vld [vmem:[#allocation2 + $0x52] sm:$0xff] }
 0x604   : > { %6122 = vmatmul.bf16.vlgmr.msra.gmra.mxu3 %v6033_v18  ;;  %v6241_v1 = vld [vmem:[#allocation2 + $0x78] sm:$0xff] }
 0x605   : > { %6356 = vmatmul.bf16.vlgmr.msra.gmra.mxu0 %v6267_v11 }
 0x607   : > { %v5259_v12 = vpop.f32.mrf.mxu3  ;;  %v5124_v37 = vpop.f32.mrf.mxu2 }
 0x608   : > { %v5260_v56 = vadd.f32 %v5259_v12, %v5122_v60  ;;  %v6005_v60 = vld [vmem:[#allocation2 + $0x4a] sm:$0xff] }
 0x609   : > { %v6035_v12 = vpack.c.bf16 %v6006_v58, %v6005_v60  ;;  %v5776_v60 = vld [vmem:[#allocation2 + $0x81] sm:$0xff] }
 0x60a   : > { %v5463_v23 = vpop.f32.mrf.mxu0  ;;  %v15989_v40 = vadd.f32 %v5461_v24, %v5260_v56  ;;  %v6240_v24 = vld [vmem:[#allocation2 + $0x68] sm:$0xff] }
 0x60b   : > { %v5660_v16 = vpop.f32.mrf.mxu1 }
 0x60c   : > { %v15992_v32 = vadd.f32 %v5660_v16, %v15819_v8  ;;  %5893 = vmatmul.bf16.gmra.mxu2 %v15987_v44 }
 0x60e   : > { %5699 = vmatmul.bf16.gmra.mxu1 %v15825_v35 }
 0x60f   : > { %v5261_v7 = vpop.f32.mrf.mxu3  ;;  %v5127_v36 = vpop.f32.mrf.mxu2 }
 0x610   : > { %v5262_v50 = vadd.f32 %v5261_v7, %v5124_v37  ;;  %v6269_v37 = vpack.c.bf16 %v6240_v24, %v6239_v3  ;;  %v13727_v7 = vld [vmem:[%s18557_s5 + $0x1e8] sm:$0xff] }
 0x611   : > { %6584 = vmatpush.bf16.msrb.mxu1 %v13727_v7 }
 0x612   : > { %v5466_v19 = vpop.f32.mrf.mxu0  ;;  %v15996_v17 = vadd.f32 %v5463_v23, %v5262_v50 }
 0x613   : > { %v5662_v9 = vpop.f32.mrf.mxu1 }
 0x614   : > { %v15999_v8 = vadd.f32 %v5662_v9, %v15827_v54  ;;  %6127 = vmatmul.bf16.gmra.mxu3 %v6034_v57  ;;  %v6008_v57 = vld [vmem:[#allocation2 + $0x6a] sm:$0xff] }
 0x615   : > { %6361 = vmatmul.bf16.gmra.mxu0 %v6268_v62  ;;  %v6242_v62 = vld [vmem:[#allocation2 + $0x80] sm:$0xff] }
 0x617   : > { %v5264_v52 = vpop.f32.mrf.mxu3  ;;  %v5129_v35 = vpop.f32.mrf.mxu2 }
 0x618   : > { %v5265_v31 = vadd.f32 %v5264_v52, %v5127_v36 }
 0x61a   : > { %v5468_v43 = vpop.f32.mrf.mxu0  ;;  %v16003_v20 = vadd.f32 %v5466_v19, %v5265_v31  ;;  %v6036_v31 = vpack.c.bf16 %v6008_v57, %v6007_v49  ;;  %v5778_v57 = vld [vmem:[#allocation2 + $0x99] sm:$0xff] }
 0x61b   : > { %v5665_v5 = vpop.f32.mrf.mxu1 }
 0x61c   : > { %v16006_v33 = vadd.f32 %v5665_v5, %v15839_v2  ;;  %5898 = vmatmul.bf16.gmra.mxu2 %v16001_v63 }
 0x61e   : > { %5704 = vmatmul.bf16.gmra.mxu1 %v15845_v13  ;;  %v13735_v13 = vld [vmem:[%s18557_s5 + $0x228] sm:$0xff] }
 0x61f   : > { %v5266_v54 = vpop.f32.mrf.mxu3  ;;  %v5132_v61 = vpop.f32.mrf.mxu2  ;;  %6818 = vmatpush.bf16.msrb.mxu2 %v13735_v13  ;;  %v6244_v13 = vld [vmem:[#allocation2 + $0x98] sm:$0xff] }
 0x620   : > { %v5267_v18 = vadd.f32 %v5266_v54, %v5129_v35 }
 0x622   : > { %v5471_v11 = vpop.f32.mrf.mxu0  ;;  %v16010_v30 = vadd.f32 %v5468_v43, %v5267_v18  ;;  %v6270_v43 = vpack.c.bf16 %v6242_v62, %v6241_v1 }
 0x623   : > { %v5667_v56 = vpop.f32.mrf.mxu1 }
 0x624   : > { %v16013_v2 = vadd.f32 %v5667_v56, %v15850_v28  ;;  %6132 = vmatmul.bf16.gmra.mxu3 %v6035_v12  ;;  %v6010_v56 = vld [vmem:[#allocation2 + $0x82] sm:$0xff] }
 0x625   : > { %6366 = vmatmul.bf16.gmra.mxu0 %v6269_v37  ;;  %v6009_v37 = vld [vmem:[#allocation2 + $0x7a] sm:$0xff] }
 0x626   : > { %v6037_v7 = vpack.c.bf16 %v6010_v56, %v6009_v37 }
 0x627   : > { %v5269_v42 = vpop.f32.mrf.mxu3  ;;  %v5134_v23 = vpop.f32.mrf.mxu2 }
 0x628   : > { %v5270_v16 = vadd.f32 %v5269_v42, %v5132_v61  ;;  %v5775_v61 = vld [vmem:[#allocation2 + $0x79] sm:$0xff] }
 0x629   : > { %v16035_v18 = vpack.c.bf16 %v5776_v60, %v5775_v61  ;;  %v6246_v60 = vld [vmem:[#allocation2 + $0xb0] sm:$0xff]  ;;  %v13725_v61 = vld [vmem:[%s18557_s5 + $0x1d8] sm:$0xff] }
 0x62a   : > { %v5473_v15 = vpop.f32.mrf.mxu0  ;;  %v16023_v28 = vadd.f32 %v5471_v11, %v5270_v16  ;;  %v6243_v16 = vld [vmem:[#allocation2 + $0x90] sm:$0xff] }
 0x62b   : > { %v5670_v36 = vpop.f32.mrf.mxu1 }
 0x62c   : > { %v16026_v50 = vadd.f32 %v5670_v36, %v15859_v6  ;;  %5903 = vmatmul.bf16.gmra.mxu2 %v16021_v45 }
 0x62e   : > { %5709 = vmatmul.bf16.gmra.mxu1 %v15865_v25 }
 0x62f   : > { %v5271_v19 = vpop.f32.mrf.mxu3  ;;  %v5137_v9 = vpop.f32.mrf.mxu2 }
 0x630   : > { %v5272_v52 = vadd.f32 %v5271_v19, %v5134_v23 }
 0x632   : > { %v5476_v35 = vpop.f32.mrf.mxu0  ;;  %v16030_v0 = vadd.f32 %v5473_v15, %v5272_v52  ;;  %v6271_v15 = vpack.c.bf16 %v6244_v13, %v6243_v16  ;;  %v5780_v16 = vld [vmem:[#allocation2 + $0xb1] sm:$0xff] }
 0x633   : > { %v5672_v5 = vpop.f32.mrf.mxu1 }
 0x634   : > { %v16033_v6 = vadd.f32 %v5672_v5, %v15867_v14  ;;  %6137 = vmatmul.bf16.gmra.mxu3 %v6036_v31 }
 0x635   : > { %6371 = vmatmul.bf16.gmra.mxu0 %v6270_v43 }
 0x637   : > { %v5274_v54 = vpop.f32.mrf.mxu3  ;;  %v5139_v25 = vpop.f32.mrf.mxu2 }
 0x638   : > { %v5275_v58 = vadd.f32 %v5274_v54, %v5137_v9  ;;  %v13726_v9 = vld [vmem:[%s18557_s5 + $0x1e0] sm:$0xff]  ;;  %v6011_v54 = vld [vmem:[#allocation2 + $0x92] sm:$0xff] }
 0x639   : > { %6585 = vmatpush.bf16.msrb.mxu1 %v13726_v9 }
 0x63a   : > { %v5478_v24 = vpop.f32.mrf.mxu0  ;;  %v16037_v11 = vadd.f32 %v5476_v35, %v5275_v58  ;;  %v5777_v35 = vld [vmem:[#allocation2 + $0x91] sm:$0xff] }
 0x63b   : > { %v5675_v3 = vpop.f32.mrf.mxu1  ;;  %v16055_v1 = vpack.c.bf16 %v5778_v57, %v5777_v35  ;;  %v6014_v35 = vld [vmem:[#allocation2 + $0xb2] sm:$0xff] }
 0x63c   : > { %v16040_v12 = vadd.f32 %v5675_v3, %v15885_v47  ;;  %5908 = vmatmul.bf16.gmra.mxu2 %v16035_v18 }
 0x63d   : > { %6586 = vmatpush.bf16.msrb.mxu1 %v13725_v61 }
 0x63e   : > { %5714 = vmatmul.bf16.gmra.mxu1 %v15894_v46  ;;  %v13734_v46 = vld [vmem:[%s18557_s5 + $0x220] sm:$0xff] }
 0x63f   : > { %v5276_v14 = vpop.f32.mrf.mxu3  ;;  %v5142_v42 = vpop.f32.mrf.mxu2  ;;  %6819 = vmatpush.bf16.msrb.mxu2 %v13734_v46  ;;  %v5779_v46 = vld [vmem:[#allocation2 + $0xa9] sm:$0xff] }
 0x640   : > { %v5277_v23 = vadd.f32 %v5276_v14, %v5139_v25  ;;  %v6012_v25 = vld [vmem:[#allocation2 + $0x9a] sm:$0xff]  ;;  %v6245_v14 = vld [vmem:[#allocation2 + $0xa8] sm:$0xff] }
 0x641   : > { %v16067_v37 = vpack.c.bf16 %v6012_v25, %v6011_v54 }
 0x642   : > { %v5481_v10 = vpop.f32.mrf.mxu0  ;;  %v16044_v53 = vadd.f32 %v5478_v24, %v5277_v23 }
 0x643   : > { %v5677_v36 = vpop.f32.mrf.mxu1 }
 0x644   : > { %v16047_v47 = vadd.f32 %v5677_v36, %v15902_v4  ;;  %6142 = vmatmul.bf16.gmra.mxu3 %v6037_v7 }
 0x645   : > { %6376 = vmatmul.bf16.gmra.mxu0 %v6271_v15  ;;  %v13723_v15 = vld [vmem:[%s18557_s5 + $0x1c8] sm:$0xff] }
 0x647   : > { %v5279_v19 = vpop.f32.mrf.mxu3  ;;  %v5144_v49 = vpop.f32.mrf.mxu2 }
 0x648   : > { %v5280_v62 = vadd.f32 %v5279_v19, %v5142_v42  ;;  %v13724_v42 = vld [vmem:[%s18557_s5 + $0x1d0] sm:$0xff] }
 0x649   : > { %6587 = vmatpush.bf16.msrb.mxu1 %v13724_v42 }
 0x64a   : > { %v5483_v52 = vpop.f32.mrf.mxu0  ;;  %v16057_v4 = vadd.f32 %v5481_v10, %v5280_v62  ;;  %v13722_v62 = vld [vmem:[%s18557_s5 + $0x1c0] sm:$0xff] }
 0x64b   : > { %v5680_v31 = vpop.f32.mrf.mxu1 }
 0x64c   : > { %v16060_v43 = vadd.f32 %v5680_v31, %v15920_v34  ;;  %5913 = vmatmul.bf16.gmra.mxu2 %v16055_v1  ;;  %v6272_v34 = vpack.c.bf16 %v6246_v60, %v6245_v14  ;;  %v6248_v31 = vld [vmem:[#allocation2 + $0xc8] sm:$0xff]  ;;  %v6247_v60 = vld [vmem:[#allocation2 + $0xc0] sm:$0xff] }
 0x64d   : > { %6588 = vmatpush.bf16.msrb.mxu1 %v13723_v15 }
 0x64e   : > { %5719 = vmatmul.bf16.gmra.mxu1 %v15935_v41 }
 0x64f   : > { %v5281_v5 = vpop.f32.mrf.mxu3  ;;  %v5147_v58 = vpop.f32.mrf.mxu2 }
 0x650   : > { %v5282_v24 = vadd.f32 %v5281_v5, %v5144_v49 }
 0x651   : > { %6589 = vmatpush.bf16.msrb.mxu1 %v13722_v62 }
 0x652   : > { %v5486_v3 = vpop.f32.mrf.mxu0  ;;  %v16069_v56 = vadd.f32 %v5483_v52, %v5282_v24  ;;  %v6013_v52 = vld [vmem:[#allocation2 + $0xaa] sm:$0xff] }
 0x653   : > { %v5682_v13 = vpop.f32.mrf.mxu1 }
 0x654   : > { %v16072_v41 = vadd.f32 %v5682_v13, %v15940_v27  ;;  %6147 = vmatmul.bf16.gmra.mxu3 %v16067_v37  ;;  %v16081_v27 = vpack.c.bf16 %v5780_v16, %v5779_v46  ;;  %v5782_v13 = vld [vmem:[#allocation2 + $0xc9] sm:$0xff]  ;;  %v5781_v16 = vld [vmem:[#allocation2 + $0xc1] sm:$0xff] }
 0x655   : > { %6381 = vmatmul.bf16.gmra.mxu0 %v6272_v34 }
 0x657   : > { %v5284_v23 = vpop.f32.mrf.mxu3  ;;  %v5149_v10 = vpop.f32.mrf.mxu2 }
 0x658   : > { %v5285_v7 = vadd.f32 %v5284_v23, %v5147_v58  ;;  %v16093_v58 = vpack.c.bf16 %v6014_v35, %v6013_v52  ;;  %v6016_v52 = vld [vmem:[#allocation2 + $0xca] sm:$0xff]  ;;  %v6250_v35 = vld [vmem:[#allocation2 + $0xe0] sm:$0xff] }
 0x65a   : > { %v5488_v36 = vpop.f32.mrf.mxu0  ;;  %v16083_v19 = vadd.f32 %v5486_v3, %v5285_v7  ;;  %v16104_v7 = vpack.c.bf16 %v5782_v13, %v5781_v16 }
 0x65b   : > { %v5685_v49 = vpop.f32.mrf.mxu1 }
 0x65c   : > { %v16086_v57 = vadd.f32 %v5685_v49, %v15958_v59  ;;  %5918 = vmatmul.bf16.gmra.mxu2 %v16081_v27  ;;  %v6273_v59 = vpack.c.bf16 %v6248_v31, %v6247_v60  ;;  %v13753_v60 = vld [vmem:[%s18559_s7 + $0x78] sm:$0xff] }
 0x65d   : > { %7310 = vmatpush.bf16.msrb.mxu3 %v13753_v60 }
 0x65e   : > { %5724 = vmatmul.bf16.gmra.mxu1 %v15966_v39  ;;  %v13733_v39 = vld [vmem:[%s18557_s5 + $0x218] sm:$0xff] }
 0x65f   : > { %v5286_v9 = vpop.f32.mrf.mxu3  ;;  %v5152_v5 = vpop.f32.mrf.mxu2  ;;  %6820 = vmatpush.bf16.msrb.mxu2 %v13733_v39 }
 0x660   : > { %v5287_v54 = vadd.f32 %v5286_v9, %v5149_v10  ;;  %v5564_v10 = vld [vmem:[#allocation2 + $0x188] sm:$0xff] }
 0x661   : > { %v6015_v9 = vld [vmem:[#allocation2 + $0xc2] sm:$0xff] }
 0x662   : > { %v5491_v25 = vpop.f32.mrf.mxu0  ;;  %v16095_v24 = vadd.f32 %v5488_v36, %v5287_v54  ;;  %v5563_v36 = vld [vmem:[#allocation2 + $0x180] sm:$0xff] }
 0x663   : > { %v5687_v61 = vpop.f32.mrf.mxu1  ;;  %v16111_v49 = vpack.c.bf16 %v5564_v10, %v5563_v36 }
 0x664   : > { %v16098_v3 = vadd.f32 %v5687_v61, %v15968_v21  ;;  %6152 = vmatmul.bf16.gmra.mxu3 %v16093_v58 }
 0x665   : > { %6386 = vmatmul.bf16.gmra.mxu0 %v6273_v59 }
 0x667   : > { %v5289_v14 = vpop.f32.mrf.mxu3  ;;  %v5154_v34 = vpop.f32.mrf.mxu2 }
 0x668   : > { %v5290_v42 = vadd.f32 %v5289_v14, %v5152_v5 }
 0x66a   : > { %v5493_v23 = vpop.f32.mrf.mxu0  ;;  %v16106_v15 = vadd.f32 %v5491_v25, %v5290_v42  ;;  %v6249_v25 = vld [vmem:[#allocation2 + $0xd8] sm:$0xff]  ;;  %v5784_v42 = vld [vmem:[#allocation2 + $0xe1] sm:$0xff] }
 0x66b   : > { %v5690_v21 = vpop.f32.mrf.mxu1  ;;  %v6274_v59 = vpack.c.bf16 %v6250_v35, %v6249_v25  ;;  %v6018_v35 = vld [vmem:[#allocation2 + $0xe2] sm:$0xff] }
 0x66c   : > { %v16109_v46 = vadd.f32 %v5690_v21, %v15971_v22  ;;  %5923 = vmatmul.bf16.gmra.mxu2 %v16104_v7  ;;  %v16118_v22 = vpack.c.bf16 %v6016_v52, %v6015_v9  ;;  %v5783_v21 = vld [vmem:[#allocation2 + $0xd9] sm:$0xff] }
 0x66d   : > { %v16126_v36 = vpack.c.bf16 %v5784_v42, %v5783_v21  ;;  %v6017_v52 = vld [vmem:[#allocation2 + $0xda] sm:$0xff] }
 0x66e   : > { %5729 = vmatmul.bf16.gmra.mxu1 %v16111_v49 }
 0x66f   : > { %v5291_v62 = vpop.f32.mrf.mxu3  ;;  %v5157_v31 = vpop.f32.mrf.mxu2 }
 0x670   : > { %v5292_v5 = vadd.f32 %v5291_v62, %v5154_v34 }
 0x672   : > { %v5496_v54 = vpop.f32.mrf.mxu0  ;;  %v16120_v61 = vadd.f32 %v5493_v23, %v5292_v5  ;;  %v6252_v5 = vld [vmem:[#allocation2 + $0xf8] sm:$0xff] }
 0x673   : > { %v5692_v39 = vpop.f32.mrf.mxu1 }
 0x674   : > { %v16123_v14 = vadd.f32 %v5692_v39, %v15977_v26  ;;  %6157 = vmatmul.bf16.gmra.mxu3 %v16118_v22  ;;  %v6251_v39 = vld [vmem:[#allocation2 + $0xf0] sm:$0xff] }
 0x675   : > { %6391 = vmatmul.bf16.gmra.mxu0 %v6274_v59 }
 0x677   : > { %v5294_v34 = vpop.f32.mrf.mxu3  ;;  %v5159_v13 = vpop.f32.mrf.mxu2 }
 0x678   : > { %v5295_v10 = vadd.f32 %v5294_v34, %v5157_v31  ;;  %v5222_v31 = vadd.f32 %v15804_v48, %v15791_v38  ;;  %v16138_v34 = vpack.c.bf16 %v6018_v35, %v6017_v52  ;;  %v13732_v38 = vld [vmem:[%s18557_s5 + $0x210] sm:$0xff] }
 0x679   : > { %6821 = vmatpush.bf16.msrb.mxu2 %v13732_v38  ;;  %v6253_v38 = vld [vmem:[#allocation2 + $0x108] sm:$0xff] }
 0x67a   : > { %v5498_v16 = vpop.f32.mrf.mxu0  ;;  %v16128_v62 = vadd.f32 %v5496_v54, %v5295_v10 }
 0x67b   : > { %v5695_v23 = vpop.f32.mrf.mxu1 }
 0x67c   : > { %v16131_v9 = vadd.f32 %v5695_v23, %v15989_v40  ;;  %5928 = vmatmul.bf16.gmra.mxu2 %v16126_v36  ;;  %v6275_v40 = vpack.c.bf16 %v6252_v5, %v6251_v39  ;;  %v6254_v39 = vld [vmem:[#allocation2 + $0x110] sm:$0xff] }
 0x67e   : > { %6590 = vmatmul.bf16.vlgmr.msrb.gmra.mxu1 %v15987_v44  ;;  %v5502_v44 = vadd.f32 %v15793_v51, %v5222_v31  ;;  %v5785_v51 = vld [vmem:[#allocation2 + $0xf1] sm:$0xff] }
 0x67f   : > { %v5296_v26 = vpop.f32.mrf.mxu3  ;;  %v5889_v25 = vpop.f32.mrf.mxu2  ;;  %v6019_v31 = vld [vmem:[#allocation2 + $0xf2] sm:$0xff] }
 0x680   : > { %v5297_v60 = vadd.f32 %v5296_v26, %v5159_v13  ;;  %v5969_v54 = vadd.f32 %v5889_v25, %v15974_v29  ;;  %v5736_v48 = vadd.f32 %v15979_v55, %v5502_v44 }
 0x682   : > { %v6357_v59 = vpop.f32.mrf.mxu0  ;;  %v16140_v42 = vadd.f32 %v5498_v16, %v5297_v60  ;;  %v5786_v16 = vld [vmem:[#allocation2 + $0xf9] sm:$0xff] }
 0x683   : > { %v5697_v10 = vpop.f32.mrf.mxu1  ;;  %v16151_v35 = vpack.c.bf16 %v5786_v16, %v5785_v51  ;;  %v6020_v60 = vld [vmem:[#allocation2 + $0xfa] sm:$0xff] }
 0x684   : > { %v16144_v21 = vadd.f32 %v5697_v10, %v15996_v17  ;;  %6162 = vmatmul.bf16.gmra.mxu3 %v16138_v34 }
 0x685   : > { %6396 = vmatmul.bf16.gmra.mxu0 %v6275_v40 }
 0x687   : > { %v6123_v29 = vpop.f32.mrf.mxu3  ;;  %v5891_v13 = vpop.f32.mrf.mxu2 }
 0x688   : > { %v6203_v23 = vadd.f32 %v6123_v29, %v5969_v54  ;;  %v5970_v26 = vadd.f32 %v5891_v13, %v5736_v48  ;;  %v6276_v48 = vpack.c.bf16 %v6254_v39, %v6253_v38 }
 0x68a   : > { %v6359_v52 = vpop.f32.mrf.mxu0  ;;  %v16153_v17 = vadd.f32 %v6357_v59, %v6203_v23  ;;  %v13752_v59 = vld [vmem:[%s18559_s7 + $0x70] sm:$0xff] }
 0x68b   : > { %v5700_v5 = vpop.f32.mrf.mxu1  ;;  %7311 = vmatpush.bf16.msrb.mxu3 %v13752_v59  ;;  %v5788_v23 = vld [vmem:[#allocation2 + $0x111] sm:$0xff] }
 0x68c   : > { %v16156_v25 = vadd.f32 %v5700_v5, %v16003_v20  ;;  %5933 = vmatmul.bf16.gmra.mxu2 %v16151_v35  ;;  %v16164_v20 = vpack.c.bf16 %v6020_v60, %v6019_v31 }
 0x68e   : > { %6595 = vmatmul.bf16.gmra.mxu1 %v16001_v63 }
 0x68f   : > { %v6125_v55 = vpop.f32.mrf.mxu3  ;;  %v5894_v54 = vpop.f32.mrf.mxu2 }
 0x690   : > { %v6204_v40 = vadd.f32 %v6125_v55, %v5970_v26  ;;  %v5971_v10 = vadd.f32 %v5894_v54, %v15992_v32  ;;  %v5787_v55 = vld [vmem:[#allocation2 + $0x109] sm:$0xff] }
 0x691   : > { %v16173_v31 = vpack.c.bf16 %v5788_v23, %v5787_v55  ;;  %v6021_v54 = vld [vmem:[#allocation2 + $0x10a] sm:$0xff] }
 0x692   : > { %v6362_v44 = vpop.f32.mrf.mxu0  ;;  %v16166_v29 = vadd.f32 %v6359_v52, %v6204_v40  ;;  %v6022_v40 = vld [vmem:[#allocation2 + $0x112] sm:$0xff] }
 0x693   : > { %v5702_v63 = vpop.f32.mrf.mxu1 }
 0x694   : > { %v16169_v13 = vadd.f32 %v5702_v63, %v16010_v30  ;;  %6167 = vmatmul.bf16.gmra.mxu3 %v16164_v20  ;;  %v6255_v63 = vld [vmem:[#allocation2 + $0x120] sm:$0xff] }
 0x695   : > { %6401 = vmatmul.bf16.gmra.mxu0 %v6276_v48 }
 0x697   : > { %v6128_v32 = vpop.f32.mrf.mxu3  ;;  %v5896_v16 = vpop.f32.mrf.mxu2 }
 0x698   : > { %v6205_v26 = vadd.f32 %v6128_v32, %v5971_v10  ;;  %v5972_v51 = vadd.f32 %v5896_v16, %v15999_v8  ;;  %v6256_v10 = vld [vmem:[#allocation2 + $0x128] sm:$0xff] }
 0x699   : > { %v6277_v32 = vpack.c.bf16 %v6256_v10, %v6255_v63  ;;  %v6024_v63 = vld [vmem:[#allocation2 + $0x12a] sm:$0xff] }
 0x69a   : > { %v6364_v5 = vpop.f32.mrf.mxu0  ;;  %v16175_v52 = vadd.f32 %v6362_v44, %v6205_v26  ;;  %v6043_v44 = vpack.c.bf16 %v6022_v40, %v6021_v54 }
 0x69b   : > { %v5705_v60 = vpop.f32.mrf.mxu1 }
 0x69c   : > { %v16178_v39 = vadd.f32 %v5705_v60, %v16023_v28  ;;  %5938 = vmatmul.bf16.gmra.mxu2 %v16173_v31 }
 0x69e   : > { %6600 = vmatmul.bf16.gmra.mxu1 %v16021_v45  ;;  %v13731_v45 = vld [vmem:[%s18557_s5 + $0x208] sm:$0xff] }
 0x69f   : > { %v6130_v30 = vpop.f32.mrf.mxu3  ;;  %v5899_v38 = vpop.f32.mrf.mxu2  ;;  %6822 = vmatpush.bf16.msrb.mxu2 %v13731_v45 }
 0x6a0   : > { %v6206_v8 = vadd.f32 %v6130_v30, %v5972_v51  ;;  %v5973_v59 = vadd.f32 %v5899_v38, %v16006_v33  ;;  %v5790_v33 = vld [vmem:[#allocation2 + $0x129] sm:$0xff]  ;;  %v5789_v30 = vld [vmem:[#allocation2 + $0x121] sm:$0xff] }
 0x6a1   : > { %v16192_v54 = vpack.c.bf16 %v5790_v33, %v5789_v30 }
 0x6a2   : > { %v6367_v48 = vpop.f32.mrf.mxu0  ;;  %v16183_v16 = vadd.f32 %v6364_v5, %v6206_v8  ;;  %v6023_v8 = vld [vmem:[#allocation2 + $0x122] sm:$0xff] }
 0x6a3   : > { %v5707_v28 = vpop.f32.mrf.mxu1  ;;  %v6044_v45 = vpack.c.bf16 %v6024_v63, %v6023_v8 }
 0x6a4   : > { %v16186_v23 = vadd.f32 %v5707_v28, %v16030_v0  ;;  %6172 = vmatmul.bf16.gmra.mxu3 %v6043_v44  ;;  %v6257_v28 = vld [vmem:[#allocation2 + $0x138] sm:$0xff] }
 0x6a5   : > { %6406 = vmatmul.bf16.gmra.mxu0 %v6277_v32 }
 0x6a7   : > { %v6133_v26 = vpop.f32.mrf.mxu3  ;;  %v5901_v51 = vpop.f32.mrf.mxu2 }
 0x6a8   : > { %v6207_v55 = vadd.f32 %v6133_v26, %v5973_v59  ;;  %v5974_v60 = vadd.f32 %v5901_v51, %v16013_v2  ;;  %v6258_v59 = vld [vmem:[#allocation2 + $0x140] sm:$0xff] }
 0x6aa   : > { %v6369_v5 = vpop.f32.mrf.mxu0  ;;  %v16194_v40 = vadd.f32 %v6367_v48, %v6207_v55  ;;  %v13751_v48 = vld [vmem:[%s18559_s7 + $0x68] sm:$0xff] }
 0x6ab   : > { %v5710_v0 = vpop.f32.mrf.mxu1  ;;  %7312 = vmatpush.bf16.msrb.mxu3 %v13751_v48 }
 0x6ac   : > { %v16197_v10 = vadd.f32 %v5710_v0, %v16037_v11  ;;  %5943 = vmatmul.bf16.gmra.mxu2 %v16192_v54  ;;  %v6278_v11 = vpack.c.bf16 %v6258_v59, %v6257_v28  ;;  %v6026_v28 = vld [vmem:[#allocation2 + $0x142] sm:$0xff] }
 0x6ae   : > { %6605 = vmatmul.bf16.gmra.mxu1 %v16035_v18 }
 0x6af   : > { %v6135_v38 = vpop.f32.mrf.mxu3  ;;  %v5904_v44 = vpop.f32.mrf.mxu2 }
 0x6b0   : > { %v6208_v2 = vadd.f32 %v6135_v38, %v5974_v60  ;;  %v5975_v32 = vadd.f32 %v5904_v44, %v16026_v50  ;;  %v5792_v50 = vld [vmem:[#allocation2 + $0x141] sm:$0xff]  ;;  %v5791_v38 = vld [vmem:[#allocation2 + $0x139] sm:$0xff] }
 0x6b1   : > { %v16211_v44 = vpack.c.bf16 %v5792_v50, %v5791_v38 }
 0x6b2   : > { %v16205_v26 = vadd.f32 %v6369_v5, %v6208_v2  ;;  %v6372_v18 = vpop.f32.mrf.mxu0  ;;  %v6025_v2 = vld [vmem:[#allocation2 + $0x13a] sm:$0xff] }
 0x6b3   : > { %v5712_v51 = vpop.f32.mrf.mxu1 }
 0x6b4   : > { %v16208_v33 = vadd.f32 %v5712_v51, %v16044_v53  ;;  %6177 = vmatmul.bf16.gmra.mxu3 %v6044_v45  ;;  %v6045_v51 = vpack.c.bf16 %v6026_v28, %v6025_v2 }
 0x6b5   : > { %6411 = vmatmul.bf16.gmra.mxu0 %v6278_v11  ;;  %v6259_v11 = vld [vmem:[#allocation2 + $0x150] sm:$0xff] }
 0x6b7   : > { %v6138_v55 = vpop.f32.mrf.mxu3  ;;  %v5906_v60 = vpop.f32.mrf.mxu2 }
 0x6b8   : > { %v6209_v30 = vadd.f32 %v6138_v55, %v5975_v32  ;;  %v5976_v0 = vadd.f32 %v5906_v60, %v16033_v6  ;;  %v6260_v32 = vld [vmem:[#allocation2 + $0x158] sm:$0xff] }
 0x6ba   : > { %v16213_v8 = vadd.f32 %v6372_v18, %v6209_v30  ;;  %v6374_v53 = vpop.f32.mrf.mxu0  ;;  %v6279_v18 = vpack.c.bf16 %v6260_v32, %v6259_v11 }
 0x6bb   : > { %v5715_v5 = vpop.f32.mrf.mxu1 }
 0x6bc   : > { %v16216_v63 = vadd.f32 %v5715_v5, %v16057_v4  ;;  %5948 = vmatmul.bf16.gmra.mxu2 %v16211_v44 }
 0x6be   : > { %6610 = vmatmul.bf16.gmra.mxu1 %v16055_v1  ;;  %v13730_v1 = vld [vmem:[%s18557_s5 + $0x200] sm:$0xff] }
 0x6bf   : > { %v6140_v59 = vpop.f32.mrf.mxu3  ;;  %v5909_v48 = vpop.f32.mrf.mxu2  ;;  %6823 = vmatpush.bf16.msrb.mxu2 %v13730_v1 }
 0x6c0   : > { %v6210_v6 = vadd.f32 %v6140_v59, %v5976_v0  ;;  %v5977_v45 = vadd.f32 %v5909_v48, %v16040_v12  ;;  %v5794_v0 = vld [vmem:[#allocation2 + $0x159] sm:$0xff] }
 0x6c1   : > { %v6027_v48 = vld [vmem:[#allocation2 + $0x152] sm:$0xff] }
 0x6c2   : > { %v16221_v55 = vadd.f32 %v6374_v53, %v6210_v6  ;;  %v6377_v5 = vpop.f32.mrf.mxu0  ;;  %v5793_v53 = vld [vmem:[#allocation2 + $0x151] sm:$0xff]  ;;  %v6028_v6 = vld [vmem:[#allocation2 + $0x15a] sm:$0xff] }
 0x6c3   : > { %v5717_v4 = vpop.f32.mrf.mxu1  ;;  %v16232_v59 = vpack.c.bf16 %v5794_v0, %v5793_v53  ;;  %v5796_v0 = vld [vmem:[#allocation2 + $0x171] sm:$0xff] }
 0x6c4   : > { %v16224_v60 = vadd.f32 %v5717_v4, %v16069_v56  ;;  %6182 = vmatmul.bf16.gmra.mxu3 %v6045_v51  ;;  %v6261_v51 = vld [vmem:[#allocation2 + $0x168] sm:$0xff]  ;;  %v6046_v4 = vpack.c.bf16 %v6028_v6, %v6027_v48 }
 0x6c5   : > { %6416 = vmatmul.bf16.gmra.mxu0 %v6279_v18  ;;  %v13750_v18 = vld [vmem:[%s18559_s7 + $0x60] sm:$0xff]  ;;  %v6029_v6 = vld [vmem:[#allocation2 + $0x16a] sm:$0xff] }
 0x6c6   : > { %7313 = vmatpush.bf16.msrb.mxu3 %v13750_v18 }
 0x6c7   : > { %v6143_v50 = vpop.f32.mrf.mxu3  ;;  %v5911_v30 = vpop.f32.mrf.mxu2 }
 0x6c8   : > { %v6211_v12 = vadd.f32 %v6143_v50, %v5977_v45  ;;  %v16230_v38 = vadd.f32 %v5911_v30, %v16047_v47  ;;  %v6262_v47 = vld [vmem:[#allocation2 + $0x170] sm:$0xff] }
 0x6ca   : > { %v16234_v56 = vadd.f32 %v6377_v5, %v6211_v12  ;;  %v5795_v5 = vld [vmem:[#allocation2 + $0x169] sm:$0xff] }
 0x6cb   : > { %v5720_v2 = vpop.f32.mrf.mxu1  ;;  %v16255_v53 = vpack.c.bf16 %v5796_v0, %v5795_v5  ;;  %v6266_v5 = vld [vmem:[#allocation2 + $0x1a0] sm:$0xff] }
 0x6cc   : > { %v16237_v28 = vadd.f32 %v5720_v2, %v16083_v19  ;;  %5953 = vmatmul.bf16.gmra.mxu2 %v16232_v59  ;;  %v6280_v19 = vpack.c.bf16 %v6262_v47, %v6261_v51  ;;  %v6030_v47 = vld [vmem:[#allocation2 + $0x172] sm:$0xff] }
 0x6ce   : > { %6615 = vmatmul.bf16.gmra.mxu1 %v16081_v27 }
 0x6cf   : > { %v16241_v32 = vpop.f32.mrf.mxu3  ;;  %v5914_v45 = vpop.f32.mrf.mxu2 }
 0x6d0   : > { %v5979_v11 = vadd.f32 %v5914_v45, %v16060_v43 }
 0x6d3   : > { %v5722_v1 = vpop.f32.mrf.mxu1 }
 0x6d4   : > { %v16248_v50 = vadd.f32 %v5722_v1, %v16095_v24  ;;  %6187 = vmatmul.bf16.gmra.mxu3 %v6046_v4 }
 0x6d5   : > { %6421 = vmatmul.bf16.gmra.mxu0 %v6280_v19  ;;  %v5798_v19 = vld [vmem:[#allocation2 + $0x189] sm:$0xff] }
 0x6d7   : > { %v6148_v27 = vpop.f32.mrf.mxu3  ;;  %v5916_v30 = vpop.f32.mrf.mxu2 }
 0x6d8   : > { %v16250_v12 = vadd.f32 %v6148_v27, %v5979_v11  ;;  %v16253_v43 = vadd.f32 %v5916_v30, %v16072_v41  ;;  %v6047_v41 = vpack.c.bf16 %v6030_v47, %v6029_v6  ;;  %v5797_v27 = vld [vmem:[#allocation2 + $0x181] sm:$0xff]  ;;  %v6032_v6 = vld [vmem:[#allocation2 + $0x18a] sm:$0xff] }
 0x6d9   : > { %v16274_v30 = vpack.c.bf16 %v5798_v19, %v5797_v27  ;;  %v6704_v19 = vld [vmem:[#allocation2 + $0x3a] sm:$0xff] }
 0x6db   : > { %v5725_v2 = vpop.f32.mrf.mxu1 }
 0x6dc   : > { %v16258_v48 = vadd.f32 %v5725_v2, %v16106_v15  ;;  %5958 = vmatmul.bf16.gmra.mxu2 %v16255_v53  ;;  %v6031_v2 = vld [vmem:[#allocation2 + $0x182] sm:$0xff] }
 0x6de   : > { %6620 = vmatmul.bf16.gmra.mxu1 %v16104_v7 }
 0x6df   : > { %v16262_v24 = vpop.f32.mrf.mxu3  ;;  %v5919_v45 = vpop.f32.mrf.mxu2 }
 0x6e0   : > { %v5981_v11 = vadd.f32 %v5919_v45, %v16086_v57 }
 0x6e3   : > { %v5727_v51 = vpop.f32.mrf.mxu1 }
 0x6e4   : > { %v16266_v18 = vadd.f32 %v5727_v51, %v16120_v61  ;;  %6192 = vmatmul.bf16.gmra.mxu3 %v6047_v41  ;;  %v6265_v61 = vld [vmem:[#allocation2 + $0x198] sm:$0xff] }
 0x6e5   : > { %6426 = vmatmul.bf16.gmra.mxu0 %v16111_v49  ;;  %v6282_v45 = vpack.c.bf16 %v6266_v5, %v6265_v61 }
 0x6e7   : > { %v6153_v15 = vpop.f32.mrf.mxu3  ;;  %v5921_v4 = vpop.f32.mrf.mxu2 }
 0x6e8   : > { %v16269_v1 = vadd.f32 %v6153_v15, %v5981_v11  ;;  %v16272_v7 = vadd.f32 %v5921_v4, %v16098_v3  ;;  %v13749_v11 = vld [vmem:[%s18559_s7 + $0x58] sm:$0xff] }
 0x6e9   : > { %7314 = vmatpush.bf16.msrb.mxu3 %v13749_v11  ;;  %v6703_v4 = vld [vmem:[#allocation2 + $0x32] sm:$0xff] }
 0x6eb   : > { %v5730_v57 = vpop.f32.mrf.mxu1 }
 0x6ec   : > { %v16277_v0 = vadd.f32 %v5730_v57, %v16128_v62  ;;  %5963 = vmatmul.bf16.gmra.mxu2 %v16274_v30  ;;  %v6048_v62 = vpack.c.bf16 %v6032_v6, %v6031_v2  ;;  %v6735_v57 = vpack.c.bf16 %v6704_v19, %v6703_v4 }
 0x6ee   : > { %6625 = vmatmul.bf16.gmra.mxu1 %v16126_v36 }
 0x6ef   : > { %v16281_v49 = vpop.f32.mrf.mxu3  ;;  %v5924_v47 = vpop.f32.mrf.mxu2 }
 0x6f0   : > { %v5983_v3 = vadd.f32 %v5924_v47, %v16109_v46 }
 0x6f3   : > { %v5732_v41 = vpop.f32.mrf.mxu1 }
 0x6f4   : > { %v16288_v51 = vadd.f32 %v5732_v41, %v16140_v42  ;;  %6197 = vmatmul.bf16.gmra.mxu3 %v6048_v62  ;;  %v13745_v42 = vld [vmem:[%s18559_s7 + $0x38] sm:$0xff]  ;;  %v6705_v62 = vld [vmem:[#allocation2 + $0x4a] sm:$0xff] }
 0x6f5   : > { %6431 = vmatmul.bf16.gmra.mxu0 %v6282_v45 }
 0x6f6   : > { %7447 = vmatpush.bf16.msrb.mxu0 %v13745_v42 }
 0x6f7   : > { %v6158_v36 = vpop.f32.mrf.mxu3  ;;  %v5926_v15 = vpop.f32.mrf.mxu2 }
 0x6f8   : > { %v16290_v27 = vadd.f32 %v6158_v36, %v5983_v3  ;;  %v16293_v46 = vadd.f32 %v5926_v15, %v16123_v14  ;;  %v16305_v3 = vpop.f32.mrf.mxu0 }
 0x6fb   : > { %v6591_v61 = vpop.f32.mrf.mxu1 }
 0x6fc   : > { %v16296_v5 = vadd.f32 %v6591_v61, %v16153_v17  ;;  %6824 = vmatmul.bf16.vlgmr.msrb.gmra.mxu2 %v6735_v57 }
 0x6fe   : > { %6630 = vmatmul.bf16.gmra.mxu1 %v16151_v35  ;;  %v6706_v35 = vld [vmem:[#allocation2 + $0x52] sm:$0xff] }
 0x6ff   : > { %v16302_v2 = vpop.f32.mrf.mxu3  ;;  %v5929_v6 = vpop.f32.mrf.mxu2  ;;  %v6736_v15 = vpack.c.bf16 %v6706_v35, %v6705_v62 }
 0x700   : > { %v5985_v47 = vadd.f32 %v5929_v6, %v16131_v9  ;;  %v16318_v19 = vpop.f32.mrf.mxu0 }
 0x703   : > { %v6593_v14 = vpop.f32.mrf.mxu1 }
 0x704   : > { %v16308_v45 = vadd.f32 %v6593_v14, %v16166_v29  ;;  %v6707_v14 = vld [vmem:[#allocation2 + $0x62] sm:$0xff] }
 0x707   : > { %v6163_v17 = vpop.f32.mrf.mxu3  ;;  %v5931_v11 = vpop.f32.mrf.mxu2 }
 0x708   : > { %v16310_v41 = vadd.f32 %v6163_v17, %v5985_v47  ;;  %v16313_v36 = vadd.f32 %v5931_v11, %v16144_v21  ;;  %v13748_v21 = vld [vmem:[%s18559_s7 + $0x50] sm:$0xff]  ;;  %v16330_v11 = vpop.f32.mrf.mxu0 }
 0x709   : > { %7315 = vmatpush.bf16.msrb.mxu3 %v13748_v21  ;;  %v6708_v17 = vld [vmem:[#allocation2 + $0x6a] sm:$0xff] }
 0x70b   : > { %v6596_v4 = vpop.f32.mrf.mxu1 }
 0x70c   : > { %v16316_v9 = vadd.f32 %v6596_v4, %v16175_v52  ;;  %6829 = vmatmul.bf16.gmra.mxu2 %v6736_v15 }
 0x70e   : > { %6635 = vmatmul.bf16.gmra.mxu1 %v16173_v31 }
 0x70f   : > { %v16321_v29 = vpop.f32.mrf.mxu3  ;;  %v5934_v57 = vpop.f32.mrf.mxu2 }
 0x710   : > { %v5987_v61 = vadd.f32 %v5934_v57, %v16156_v25  ;;  %v6737_v25 = vpack.c.bf16 %v6708_v17, %v6707_v14 }
 0x713   : > { %v6598_v42 = vpop.f32.mrf.mxu1 }
 0x714   : > { %v16328_v6 = vadd.f32 %v6598_v42, %v16183_v16  ;;  %v13744_v16 = vld [vmem:[%s18559_s7 + $0x30] sm:$0xff] }
 0x715   : > { %7448 = vmatpush.bf16.msrb.mxu0 %v13744_v16 }
 0x717   : > { %v6168_v52 = vpop.f32.mrf.mxu3  ;;  %v5936_v47 = vpop.f32.mrf.mxu2 }
 0x718   : > { %v16332_v31 = vadd.f32 %v6168_v52, %v5987_v61  ;;  %v16335_v62 = vadd.f32 %v5936_v47, %v16169_v13  ;;  %v16347_v13 = vpop.f32.mrf.mxu0  ;;  %v6709_v47 = vld [vmem:[#allocation2 + $0x7a] sm:$0xff] }
 0x71b   : > { %v6601_v35 = vpop.f32.mrf.mxu1 }
 0x71c   : > { %v16338_v15 = vadd.f32 %v6601_v35, %v16194_v40  ;;  %6834 = vmatmul.bf16.gmra.mxu2 %v6737_v25 }
 0x71e   : > { %6640 = vmatmul.bf16.gmra.mxu1 %v16192_v54  ;;  %v6710_v54 = vld [vmem:[#allocation2 + $0x82] sm:$0xff] }
 0x71f   : > { %v16344_v4 = vpop.f32.mrf.mxu3  ;;  %v5939_v57 = vpop.f32.mrf.mxu2  ;;  %v6738_v25 = vpack.c.bf16 %v6710_v54, %v6709_v47 }
 0x720   : > { %18755 = vst [vmem:[#allocation50_spill] sm:$0xff] %v16344_v4  ;;  %v5989_v61 = vadd.f32 %v5939_v57, %v16178_v39  ;;  %v16357_v4 = vpop.f32.mrf.mxu0 }
 0x723   : > { %v6603_v21 = vpop.f32.mrf.mxu1 }
 0x724   : > { %v16350_v42 = vadd.f32 %v6603_v21, %v16205_v26 }
 0x727   : > { %v6173_v40 = vpop.f32.mrf.mxu3  ;;  %v5941_v52 = vpop.f32.mrf.mxu2 }
 0x728   : > { %v16352_v14 = vadd.f32 %v6173_v40, %v5989_v61  ;;  %v16355_v17 = vadd.f32 %v5941_v52, %v16186_v23  ;;  %v13747_v23 = vld [vmem:[%s18559_s7 + $0x48] sm:$0xff]  ;;  %v16372_v40 = vpop.f32.mrf.mxu0 }
 0x729   : > { %7316 = vmatpush.bf16.msrb.mxu3 %v13747_v23 }
 0x72b   : > { %v6606_v35 = vpop.f32.mrf.mxu1 }
 0x72c   : > { %v16360_v39 = vadd.f32 %v6606_v35, %v16213_v8  ;;  %6839 = vmatmul.bf16.gmra.mxu2 %v6738_v25  ;;  %v6212_v25 = vadd.f32 %v16241_v32, %v16230_v38  ;;  %v13761_v38 = vld [vmem:[%s18559_s7 + $0xb8] sm:$0xff] }
 0x72d   : > { %7649 = vmatpush.bf16.msra.mxu1 %v13761_v38 }
 0x72e   : > { %6645 = vmatmul.bf16.gmra.mxu1 %v16211_v44 }
 0x72f   : > { %v16363_v26 = vpop.f32.mrf.mxu3  ;;  %v5944_v16 = vpop.f32.mrf.mxu2 }
 0x730   : > { %18756 = vst [vmem:[#allocation52_spill] sm:$0xff] %v16363_v26  ;;  %v5991_v57 = vadd.f32 %v5944_v16, %v16197_v10 }
 0x733   : > { %v6608_v61 = vpop.f32.mrf.mxu1 }
 0x734   : > { %v16370_v21 = vadd.f32 %v6608_v61, %v16221_v55  ;;  %v13743_v55 = vld [vmem:[%s18559_s7 + $0x28] sm:$0xff] }
 0x735   : > { %7449 = vmatpush.bf16.msrb.mxu0 %v13743_v55 }
 0x737   : > { %v6178_v8 = vpop.f32.mrf.mxu3  ;;  %v5946_v52 = vpop.f32.mrf.mxu2 }
 0x738   : > { %v16374_v47 = vadd.f32 %v6178_v8, %v5991_v57  ;;  %v16377_v44 = vadd.f32 %v5946_v52, %v16208_v33  ;;  %v16391_v33 = vpop.f32.mrf.mxu0 }
 0x73a   : > { %18757 = vst [vmem:[#allocation62_spill] sm:$0xff] %v16374_v47 }
 0x73b   : > { %18758 = vst [vmem:[#allocation63_spill] sm:$0xff] %v16377_v44  ;;  %v6611_v54 = vpop.f32.mrf.mxu1 }
 0x73c   : > { %v16380_v10 = vadd.f32 %v6611_v54, %v16234_v56  ;;  %6844 = vmatmul.bf16.gmra.mxu2 %v16067_v37  ;;  %v6446_v56 = vadd.f32 %v16305_v3, %v6212_v25  ;;  %v13759_v54 = vld [vmem:[%s18559_s7 + $0xa8] sm:$0xff] }
 0x73e   : > { %6650 = vmatmul.bf16.gmra.mxu1 %v16232_v59 }
 0x73f   : > { %v16389_v35 = vpop.f32.mrf.mxu3  ;;  %v5949_v16 = vpop.f32.mrf.mxu2 }
 0x740   : > { %18759 = vst [vmem:[#allocation53_spill] sm:$0xff] %v16389_v35  ;;  %v5993_v57 = vadd.f32 %v5949_v16, %v16216_v63  ;;  %v16405_v52 = vpop.f32.mrf.mxu0  ;;  %v13760_v63 = vld [vmem:[%s18559_s7 + $0xb0] sm:$0xff]  ;;  %v13746_v16 = vld [vmem:[%s18559_s7 + $0x40] sm:$0xff] }
 0x741   : > { %7650 = vmatpush.bf16.msra.mxu1 %v13760_v63  ;;  %7317 = vmatpush.bf16.msrb.mxu3 %v13746_v16 }
 0x743   : > { %v6613_v37 = vpop.f32.mrf.mxu1 }
 0x744   : > { %v16395_v23 = vadd.f32 %v6613_v37, %v6446_v56  ;;  %v13757_v37 = vld [vmem:[%s18559_s7 + $0x98] sm:$0xff] }
 0x745   : > { %7651 = vmatpush.bf16.msra.mxu1 %v13759_v54  ;;  %v13740_v54 = vld [vmem:[%s18559_s7 + $0x10] sm:$0xff] }
 0x747   : > { %v6183_v59 = vpop.f32.mrf.mxu3  ;;  %v5951_v32 = vpop.f32.mrf.mxu2 }
 0x748   : > { %v16400_v61 = vadd.f32 %v6183_v59, %v5993_v57  ;;  %v16403_v8 = vadd.f32 %v5951_v32, %v16224_v60  ;;  %v16431_v56 = vpop.f32.mrf.mxu0 }
 0x74a   : > { %18760 = vst [vmem:[#allocation51_spill] sm:$0xff] %v16400_v61 }
 0x74b   : > { %18761 = vst [vmem:[#allocation55_spill] sm:$0xff] %v16403_v8  ;;  %v16410_v3 = vpop.f32.mrf.mxu1 }
 0x74c   : > { %6849 = vmatmul.bf16.gmra.mxu2 %v16093_v58  ;;  %v13742_v58 = vld [vmem:[%s18559_s7 + $0x20] sm:$0xff] }
 0x74d   : > { %7450 = vmatpush.bf16.msrb.mxu0 %v13742_v58  ;;  %v7198_v58 = vld [vmem:[#allocation2 + $0x9] sm:$0xff] }
 0x74e   : > { %6655 = vmatmul.bf16.gmra.mxu1 %v16255_v53  ;;  %v13758_v53 = vld [vmem:[%s18559_s7 + $0xa0] sm:$0xff] }
 0x74f   : > { %v16417_v60 = vpop.f32.mrf.mxu3  ;;  %v5954_v25 = vpop.f32.mrf.mxu2  ;;  %7652 = vmatpush.bf16.msra.mxu1 %v13758_v53 }
 0x750   : > { %18762 = vst [vmem:[#allocation56_spill] sm:$0xff] %v16417_v60  ;;  %v5995_v55 = vadd.f32 %v5954_v25, %v16237_v28  ;;  %v13741_v28 = vld [vmem:[%s18559_s7 + $0x18] sm:$0xff]  ;;  %v13756_v25 = vld [vmem:[%s18559_s7 + $0x90] sm:$0xff] }
 0x751   : > { %7451 = vmatpush.bf16.msrb.mxu0 %v13741_v28  ;;  %v16456_v28 = vpop.f32.mrf.mxu0 }
 0x753   : > { %v16429_v57 = vpop.f32.mrf.mxu1  ;;  %7653 = vmatpush.bf16.msra.mxu1 %v13757_v37  ;;  %v13755_v37 = vld [vmem:[%s18559_s7 + $0x88] sm:$0xff] }
 0x755   : > { %7452 = vmatpush.bf16.msrb.mxu0 %v13740_v54  ;;  %v13738_v54 = vld [vmem:[%s18559_s7] sm:$0xff] }
 0x757   : > { %v6188_v38 = vpop.f32.mrf.mxu3  ;;  %v5956_v59 = vpop.f32.mrf.mxu2  ;;  %7654 = vmatpush.bf16.msra.mxu1 %v13756_v25  ;;  %v7133_v25 = vld [vmem:[#allocation2] sm:$0xff] }
 0x758   : > { %v16439_v32 = vadd.f32 %v6188_v38, %v5995_v55  ;;  %v16442_v63 = vadd.f32 %v5956_v59, %v16248_v50  ;;  %v13739_v50 = vld [vmem:[%s18559_s7 + $0x8] sm:$0xff] }
 0x759   : > { %v7197_v55 = vld [vmem:[#allocation2 + $0x1] sm:$0xff]  ;;  %7453 = vmatpush.bf16.msrb.mxu0 %v13739_v50 }
 0x75a   : > { %18763 = vst [vmem:[#allocation54_spill] sm:$0xff] %v16439_v32  ;;  %v7229_v53 = vpack.c.bf16 %v7198_v58, %v7197_v55  ;;  %v7134_v50 = vld [vmem:[#allocation2 + $0x8] sm:$0xff] }
 0x75b   : > { %18764 = vst [vmem:[#allocation58_spill] sm:$0xff] %v16442_v63  ;;  %v16450_v16 = vpop.f32.mrf.mxu1  ;;  %7655 = vmatpush.bf16.msra.mxu1 %v13755_v37  ;;  %v7165_v58 = vpack.c.bf16 %v7134_v50, %v7133_v25 }
 0x75c   : > { %6854 = vmatmul.bf16.gmra.mxu2 %v16118_v22  ;;  %7318 = vmatmul.bf16.vlgmr.msrb.gmra.mxu3 %v7229_v53 }
 0x75d   : > { %7454 = vmatpush.bf16.msrb.mxu0 %v13738_v54  ;;  %v16478_v54 = vpop.f32.mrf.mxu0 }
 0x75e   : > { %6660 = vmatmul.bf16.gmra.mxu1 %v16274_v30  ;;  %v13754_v30 = vld [vmem:[%s18559_s7 + $0x80] sm:$0xff] }
 0x75f   : > { %v16462_v38 = vpop.f32.mrf.mxu3  ;;  %v5959_v22 = vpop.f32.mrf.mxu2  ;;  %7656 = vmatpush.bf16.msra.mxu1 %v13754_v30 }
 0x760   : > { %18765 = vst [vmem:[#allocation71_spill] sm:$0xff] %v16462_v38  ;;  %v5997_v59 = vadd.f32 %v5959_v22, %v16258_v48  ;;  %7455 = vmatmul.bf16.vlgmr.msrb.gmra.mxu0 %v7165_v58  ;;  %v6499_v38 = vld [vmem:[#allocation2 + $0x199] sm:$0xff]  ;;  %v6500_v48 = vld [vmem:[#allocation2 + $0x1a1] sm:$0xff] }
 0x761   : > { %v6516_v32 = vpack.c.bf16 %v6500_v48, %v6499_v38  ;;  %v7537_v48 = vld [vmem:[#allocation2 + $0xa] sm:$0xff] }
 0x763   : > { %v16471_v55 = vpop.f32.mrf.mxu1 }
 0x765   : > { %v16492_v38 = vpop.f32.mrf.mxu0 }
 0x767   : > { %v6193_v53 = vpop.f32.mrf.mxu3  ;;  %v5961_v37 = vpop.f32.mrf.mxu2 }
 0x768   : > { %v16473_v22 = vadd.f32 %v6193_v53, %v5997_v59  ;;  %v16476_v63 = vadd.f32 %v5961_v37, %v16266_v18  ;;  %v13769_v59 = vld [vmem:[%s18559_s7 + $0xf8] sm:$0xff]  ;;  %v7536_v53 = vld [vmem:[#allocation2 + $0x2] sm:$0xff] }
 0x769   : > { %v13777_v18 = vld [vmem:[%s18559_s7 + $0x138] sm:$0xff]  ;;  %7883 = vmatpush.bf16.msra.mxu2 %v13769_v59 }
 0x76a   : > { %18766 = vst [vmem:[#allocation72_spill] sm:$0xff] %v16473_v22  ;;  %8117 = vmatpush.bf16.msra.mxu3 %v13777_v18  ;;  %v16509_v18 = vld [vmem:[%s18558_s6] ss:$0 sm:$0xff]  ;;  %v6722_v22 = vld [vmem:[#allocation2 + $0x112] sm:$0xff] }
 0x76b   : > { %18767 = vst [vmem:[#allocation59_spill] sm:$0xff] %v16476_v63  ;;  %v16480_v60 = vpop.f32.mrf.mxu1 }
 0x76c   : > { %6859 = vmatmul.bf16.gmra.mxu2 %v16138_v34 }
 0x76d   : > { %v16504_v59 = vpop.f32.mrf.mxu0 }
 0x76e   : > { %6665 = vmatmul.bf16.gmra.mxu1 %v6516_v32  ;;  %18771 = vst [vmem:[#allocation76_spill] sm:$0xff] %v16504_v59 }
 0x76f   : > { %v16483_v25 = vpop.f32.mrf.mxu3  ;;  %v5964_v30 = vpop.f32.mrf.mxu2 }
 0x770   : > { %18768 = vst [vmem:[#allocation57_spill] sm:$0xff] %v16483_v25  ;;  %v5999_v50 = vadd.f32 %v5964_v30, %v16277_v0  ;;  %v7568_v30 = vpack.c.bf16 %v7537_v48, %v7536_v53 }
 0x773   : > { %v16494_v58 = vpop.f32.mrf.mxu1 }
 0x777   : > { %v6198_v34 = vpop.f32.mrf.mxu3  ;;  %v5966_v32 = vpop.f32.mrf.mxu2 }
 0x778   : > { %v16496_v37 = vadd.f32 %v6198_v34, %v5999_v50  ;;  %v16499_v0 = vadd.f32 %v5966_v32, %v16288_v51  ;;  %v18772_v32 = vld [vmem:[#allocation18_spill] sm:$0xff] }
 0x77a   : > { %18769 = vst [vmem:[#allocation61_spill] sm:$0xff] %v16496_v37  ;;  %v6721_v37 = vld [vmem:[#allocation2 + $0x10a] sm:$0xff] }
 0x77b   : > { %18770 = vst [vmem:[#allocation74_spill] sm:$0xff] %v16499_v0  ;;  %v16501_v25 = vpop.f32.mrf.mxu1 }
 0x77c   : > { %6864 = vmatmul.bf16.gmra.mxu2 %v16164_v20  ;;  %v16518_v20 = vpop.f32.mrf.mxu0 }
 0x77d   : > { %18774 = vst [vmem:[#allocation60_spill] sm:$0xff] %v16518_v20 }
 0x77e   : > { %7657 = vmatmul.bf16.vlgmr.msra.gmra.mxu1 %v7568_v30 }
 0x77f   : > { %v6825_v63 = vpop.f32.mrf.mxu2 }
 0x780   : > { %v6905_v50 = vadd.f32 %v6825_v63, %v16296_v5  ;;  %v6744_v5 = vpack.c.bf16 %v6722_v22, %v6721_v37  ;;  %v13776_v22 = vld [vmem:[%s18559_s7 + $0x130] sm:$0xff] }
 0x781   : > { %8118 = vmatpush.bf16.msra.mxu3 %v13776_v22 }
 0x782   : > { %v6941_v34 = vadd.f32 %v16509_v18, %v6905_v50  ;;  %v18775_v50 = vld [vmem:[#allocation19_spill] sm:$0xff] }
 0x783   : > { %v16513_v51 = vpop.f32.mrf.mxu1 }
 0x784   : > { %v7005_v53 = vadd.f32 %v6941_v34, %v18772_v32 }
 0x786   : > { %v16516_v48 = vmax.f32 %v7005_v53, 0.0 }
 0x787   : > { %v6827_v0 = vpop.f32.mrf.mxu2 }
 0x788   : > { %18773 = vst [vmem:[#allocation64_spill] sm:$0xff] %v16516_v48  ;;  %v6906_v30 = vadd.f32 %v6827_v0, %v16308_v45  ;;  %v13768_v45 = vld [vmem:[%s18559_s7 + $0xf0] sm:$0xff] }
 0x789   : > { %7101 = vst [vmem:[#allocation2 + $0x19] sm:$0xff] %v16516_v48  ;;  %7884 = vmatpush.bf16.msra.mxu2 %v13768_v45 }
 0x78a   : > { %v6942_v8 = vadd.f32 %v16509_v18, %v6906_v30 }
 0x78b   : > { %v16523_v63 = vpop.f32.mrf.mxu1 }
 0x78c   : > { %v7006_v61 = vadd.f32 %v6942_v8, %v18775_v50  ;;  %6869 = vmatmul.bf16.gmra.mxu2 %v6744_v5  ;;  %v16538_v8 = vpop.f32.mrf.mxu0  ;;  %v6723_v50 = vld [vmem:[#allocation2 + $0x122] sm:$0xff] }
 0x78d   : > { %18777 = vst [vmem:[#allocation77_spill] sm:$0xff] %v16538_v8  ;;  %v18781_v8 = vld [vmem:[#allocation21_spill] sm:$0xff] }
 0x78e   : > { %v16526_v34 = vmax.f32 %v7006_v61, 0.0 }
 0x78f   : > { %v6830_v32 = vpop.f32.mrf.mxu2 }
 0x790   : > { %18776 = vst [vmem:[#allocation65_spill] sm:$0xff] %v16526_v34  ;;  %v6907_v53 = vadd.f32 %v6830_v32, %v16316_v9  ;;  %v7230_v35 = vpack.c.bf16 %v16526_v34, %v16516_v48  ;;  %v18778_v9 = vld [vmem:[#allocation20_spill] sm:$0xff]  ;;  %v7135_v5 = vld [vmem:[#allocation2 + $0x18] sm:$0xff] }
 0x791   : > { %7102 = vst [vmem:[#allocation2 + $0x21] sm:$0xff] %v16526_v34  ;;  %v6724_v32 = vld [vmem:[#allocation2 + $0x12a] sm:$0xff] }
 0x792   : > { %v6943_v61 = vadd.f32 %v16509_v18, %v6907_v53  ;;  %7323 = vmatmul.bf16.gmra.mxu3 %v7230_v35 }
 0x793   : > { %v16541_v37 = vpop.f32.mrf.mxu1 }
 0x794   : > { %v7007_v0 = vadd.f32 %v6943_v61, %v18778_v9  ;;  %v6745_v61 = vpack.c.bf16 %v6724_v32, %v6723_v50  ;;  %v16552_v9 = vpop.f32.mrf.mxu0  ;;  %v6725_v32 = vld [vmem:[#allocation2 + $0x13a] sm:$0xff] }
 0x795   : > { %18780 = vst [vmem:[#allocation78_spill] sm:$0xff] %v16552_v9 }
 0x796   : > { %v16544_v30 = vmax.f32 %v7007_v0, 0.0 }
 0x797   : > { %v6832_v34 = vpop.f32.mrf.mxu2 }
 0x798   : > { %18779 = vst [vmem:[#allocation66_spill] sm:$0xff] %v16544_v30  ;;  %v7136_v48 = vld [vmem:[#allocation2 + $0x20] sm:$0xff]  ;;  %v6908_v53 = vadd.f32 %v6832_v34, %v16328_v6 }
 0x799   : > { %v7538_v44 = vld [vmem:[#allocation2 + $0x1a] sm:$0xff]  ;;  %v7539_v20 = vld [vmem:[#allocation2 + $0x22] sm:$0xff]  ;;  %7103 = vst [vmem:[#allocation2 + $0x31] sm:$0xff] %v16544_v30  ;;  %v16548_v35 = vpack.c.bf16 %v7136_v48, %v7135_v5 }
 0x79a   : > { %v7569_v45 = vpack.c.bf16 %v7539_v20, %v7538_v44  ;;  %v6944_v22 = vadd.f32 %v16509_v18, %v6908_v53  ;;  %v18784_v34 = vld [vmem:[#allocation22_spill] sm:$0xff]  ;;  %v6726_v53 = vld [vmem:[#allocation2 + $0x142] sm:$0xff] }
 0x79b   : > { %7460 = vmatmul.bf16.gmra.mxu0 %v16548_v35  ;;  %v16554_v0 = vpop.f32.mrf.mxu1 }
 0x79c   : > { %7662 = vmatmul.bf16.gmra.mxu1 %v7569_v45  ;;  %v7008_v47 = vadd.f32 %v6944_v22, %v18781_v8  ;;  %6874 = vmatmul.bf16.gmra.mxu2 %v6745_v61  ;;  %v16567_v50 = vpop.f32.mrf.mxu0 }
 0x79d   : > { %18785 = vst [vmem:[#allocation79_spill] sm:$0xff] %v16567_v50 }
 0x79e   : > { %v16557_v59 = vmax.f32 %v7008_v47, 0.0 }
 0x79f   : > { %v6835_v26 = vpop.f32.mrf.mxu2 }
 0x7a0   : > { %18782 = vst [vmem:[#allocation49_spill] sm:$0xff] %v16557_v59  ;;  %v6909_v6 = vadd.f32 %v6835_v26, %v16338_v15  ;;  %v7231_v44 = vpack.c.bf16 %v16557_v59, %v16544_v30  ;;  %v7137_v47 = vld [vmem:[#allocation2 + $0x30] sm:$0xff] }
 0x7a1   : > { %7104 = vst [vmem:[#allocation2 + $0x39] sm:$0xff] %v16557_v59  ;;  %v18787_v59 = vld [vmem:[#allocation23_spill] sm:$0xff] }
 0x7a2   : > { %v6945_v48 = vadd.f32 %v16509_v18, %v6909_v6  ;;  %7328 = vmatmul.bf16.gmra.mxu3 %v7231_v44 }
 0x7a3   : > { %v16564_v20 = vpop.f32.mrf.mxu1 }
 0x7a4   : > { %18783 = vst [vmem:[#allocation68_spill] sm:$0xff] %v16564_v20  ;;  %v7009_v5 = vadd.f32 %v6945_v48, %v18784_v34  ;;  %v6746_v34 = vpack.c.bf16 %v6726_v53, %v6725_v32  ;;  %v16582_v9 = vpop.f32.mrf.mxu0  ;;  %v13767_v32 = vld [vmem:[%s18559_s7 + $0xe8] sm:$0xff] }
 0x7a5   : > { %18789 = vst [vmem:[#allocation73_spill] sm:$0xff] %v16582_v9  ;;  %7885 = vmatpush.bf16.msra.mxu2 %v13767_v32 }
 0x7a6   : > { %v16569_v8 = vmax.f32 %v7009_v5, 0.0 }
 0x7a7   : > { %v6837_v45 = vpop.f32.mrf.mxu2 }
 0x7a8   : > { %18786 = vst [vmem:[#allocation69_spill] sm:$0xff] %v16569_v8  ;;  %v7138_v22 = vld [vmem:[#allocation2 + $0x38] sm:$0xff]  ;;  %v6910_v61 = vadd.f32 %v6837_v45, %v16350_v42  ;;  %v18791_v45 = vld [vmem:[#allocation24_spill] sm:$0xff] }
 0x7a9   : > { %v7540_v15 = vld [vmem:[#allocation2 + $0x32] sm:$0xff]  ;;  %v7541_v26 = vld [vmem:[#allocation2 + $0x3a] sm:$0xff]  ;;  %7105 = vst [vmem:[#allocation2 + $0x49] sm:$0xff] %v16569_v8  ;;  %v16573_v6 = vpack.c.bf16 %v7138_v22, %v7137_v47 }
 0x7aa   : > { %v7570_v44 = vpack.c.bf16 %v7541_v26, %v7540_v15  ;;  %v6946_v48 = vadd.f32 %v16509_v18, %v6910_v61  ;;  %v6727_v15 = vld [vmem:[#allocation2 + $0x152] sm:$0xff]  ;;  %v6728_v26 = vld [vmem:[#allocation2 + $0x15a] sm:$0xff] }
 0x7ab   : > { %7465 = vmatmul.bf16.gmra.mxu0 %v16573_v6  ;;  %v16577_v5 = vpop.f32.mrf.mxu1 }
 0x7ac   : > { %7667 = vmatmul.bf16.gmra.mxu1 %v7570_v44  ;;  %v7010_v30 = vadd.f32 %v6946_v48, %v18787_v59  ;;  %6879 = vmatmul.bf16.gmra.mxu2 %v6746_v34  ;;  %v13775_v59 = vld [vmem:[%s18559_s7 + $0x128] sm:$0xff] }
 0x7ad   : > { %8119 = vmatpush.bf16.msra.mxu3 %v13775_v59 }
 0x7ae   : > { %v16580_v50 = vmax.f32 %v7010_v30, 0.0 }
 0x7af   : > { %v6840_v20 = vpop.f32.mrf.mxu2 }
 0x7b0   : > { %18788 = vst [vmem:[#allocation67_spill] sm:$0xff] %v16580_v50  ;;  %v6911_v42 = vadd.f32 %v6840_v20, %v16360_v39  ;;  %v7232_v47 = vpack.c.bf16 %v16580_v50, %v16569_v8  ;;  %v7139_v22 = vld [vmem:[#allocation2 + $0x48] sm:$0xff] }
 0x7b1   : > { %7106 = vst [vmem:[#allocation2 + $0x51] sm:$0xff] %v16580_v50  ;;  %v16604_v50 = vpop.f32.mrf.mxu0 }
 0x7b2   : > { %v6947_v30 = vadd.f32 %v16509_v18, %v6911_v42  ;;  %7333 = vmatmul.bf16.gmra.mxu3 %v7232_v47 }
 0x7b3   : > { %v16595_v53 = vpop.f32.mrf.mxu1 }
 0x7b4   : > { %18790 = vst [vmem:[#allocation75_spill] sm:$0xff] %v16595_v53  ;;  %v7011_v39 = vadd.f32 %v6947_v30, %v18791_v45  ;;  %v6747_v30 = vpack.c.bf16 %v6728_v26, %v6727_v15  ;;  %v18796_v26 = vld [vmem:[#allocation26_spill] sm:$0xff] }
 0x7b6   : > { %v16598_v20 = vmax.f32 %v7011_v39, 0.0  ;;  %v18793_v39 = vld [vmem:[#allocation25_spill] sm:$0xff] }
 0x7b7   : > { %v6842_v61 = vpop.f32.mrf.mxu2 }
 0x7b8   : > { %18792 = vst [vmem:[#allocation70_spill] sm:$0xff] %v16598_v20  ;;  %v7140_v44 = vld [vmem:[#allocation2 + $0x50] sm:$0xff]  ;;  %v6912_v42 = vadd.f32 %v6842_v61, %v16370_v21 }
 0x7b9   : > { %v7542_v48 = vld [vmem:[#allocation2 + $0x4a] sm:$0xff]  ;;  %v7543_v34 = vld [vmem:[#allocation2 + $0x52] sm:$0xff]  ;;  %7107 = vst [vmem:[#allocation2 + $0x61] sm:$0xff] %v16598_v20  ;;  %v16602_v47 = vpack.c.bf16 %v7140_v44, %v7139_v22  ;;  %v16618_v44 = vpop.f32.mrf.mxu0 }
 0x7ba   : > { %v7571_v32 = vpack.c.bf16 %v7543_v34, %v7542_v48  ;;  %v6948_v59 = vadd.f32 %v16509_v18, %v6912_v42  ;;  %18795 = vst [vmem:[#allocation19_spill] sm:$0xff] %v16618_v44  ;;  %v6729_v42 = vld [vmem:[#allocation2 + $0x16a] sm:$0xff] }
 0x7bb   : > { %7470 = vmatmul.bf16.gmra.mxu0 %v16602_v47  ;;  %v16608_v45 = vpop.f32.mrf.mxu1 }
 0x7bc   : > { %7672 = vmatmul.bf16.gmra.mxu1 %v7571_v32  ;;  %v7012_v8 = vadd.f32 %v6948_v59, %v18793_v39  ;;  %6884 = vmatmul.bf16.gmra.mxu2 %v6747_v30  ;;  %v6730_v32 = vld [vmem:[#allocation2 + $0x172] sm:$0xff] }
 0x7be   : > { %v16611_v9 = vmax.f32 %v7012_v8, 0.0 }
 0x7bf   : > { %v6845_v53 = vpop.f32.mrf.mxu2 }
 0x7c0   : > { %18794 = vst [vmem:[#allocation18_spill] sm:$0xff] %v16611_v9  ;;  %v6913_v21 = vadd.f32 %v6845_v53, %v16380_v10  ;;  %v7233_v22 = vpack.c.bf16 %v16611_v9, %v16598_v20  ;;  %v7141_v8 = vld [vmem:[#allocation2 + $0x60] sm:$0xff] }
 0x7c1   : > { %7108 = vst [vmem:[#allocation2 + $0x69] sm:$0xff] %v16611_v9  ;;  %v18798_v20 = vld [vmem:[#allocation27_spill] sm:$0xff] }
 0x7c2   : > { %v6949_v61 = vadd.f32 %v16509_v18, %v6913_v21  ;;  %7338 = vmatmul.bf16.gmra.mxu3 %v7233_v22 }
 0x7c3   : > { %v16620_v15 = vpop.f32.mrf.mxu1 }
 0x7c4   : > { %v7013_v48 = vadd.f32 %v6949_v61, %v18796_v26  ;;  %v6748_v61 = vpack.c.bf16 %v6730_v32, %v6729_v42  ;;  %v6214_v32 = vadd.f32 %v16262_v24, %v16253_v43  ;;  %v18800_v24 = vld [vmem:[#allocation28_spill] sm:$0xff] }
 0x7c6   : > { %v16623_v34 = vmax.f32 %v7013_v48, 0.0  ;;  %v6447_v48 = vadd.f32 %v16318_v19, %v16250_v12  ;;  %v6448_v43 = vadd.f32 %v16330_v11, %v6214_v32 }
 0x7c7   : > { %v6847_v59 = vpop.f32.mrf.mxu2 }
 0x7c8   : > { %18797 = vst [vmem:[#allocation20_spill] sm:$0xff] %v16623_v34  ;;  %v7142_v30 = vld [vmem:[#allocation2 + $0x68] sm:$0xff]  ;;  %v6914_v39 = vadd.f32 %v6847_v59, %v16395_v23  ;;  %v13766_v23 = vld [vmem:[%s18559_s7 + $0xe0] sm:$0xff]  ;;  %v6681_v59 = vadd.f32 %v16410_v3, %v6447_v48  ;;  %v13765_v3 = vld [vmem:[%s18559_s7 + $0xd8] sm:$0xff] }
 0x7c9   : > { %v7544_v10 = vld [vmem:[#allocation2 + $0x62] sm:$0xff]  ;;  %v7545_v53 = vld [vmem:[#allocation2 + $0x6a] sm:$0xff]  ;;  %7109 = vst [vmem:[#allocation2 + $0x79] sm:$0xff] %v16623_v34  ;;  %v16627_v21 = vpack.c.bf16 %v7142_v30, %v7141_v8  ;;  %v16639_v8 = vpop.f32.mrf.mxu0  ;;  %7886 = vmatpush.bf16.msra.mxu2 %v13766_v23 }
 0x7ca   : > { %v7572_v22 = vpack.c.bf16 %v7545_v53, %v7544_v10  ;;  %v6950_v9 = vadd.f32 %v16509_v18, %v6914_v39  ;;  %v13764_v53 = vld [vmem:[%s18559_s7 + $0xd0] sm:$0xff]  ;;  %v6731_v23 = vld [vmem:[#allocation2 + $0x182] sm:$0xff] }
 0x7cb   : > { %7475 = vmatmul.bf16.gmra.mxu0 %v16627_v21  ;;  %v16631_v26 = vpop.f32.mrf.mxu1 }
 0x7cc   : > { %7677 = vmatmul.bf16.gmra.mxu1 %v7572_v22  ;;  %v7014_v44 = vadd.f32 %v6950_v9, %v18798_v20  ;;  %6889 = vmatmul.bf16.gmra.mxu2 %v6748_v61  ;;  %v13774_v9 = vld [vmem:[%s18559_s7 + $0x120] sm:$0xff]  ;;  %v6682_v22 = vadd.f32 %v16429_v57, %v6448_v43  ;;  %v13763_v57 = vld [vmem:[%s18559_s7 + $0xc8] sm:$0xff] }
 0x7cd   : > { %7887 = vmatpush.bf16.msra.mxu2 %v13765_v3  ;;  %8120 = vmatpush.bf16.msra.mxu3 %v13774_v9 }
 0x7ce   : > { %v16642_v30 = vmax.f32 %v7014_v44, 0.0 }
 0x7cf   : > { %v6850_v42 = vpop.f32.mrf.mxu2 }
 0x7d0   : > { %18799 = vst [vmem:[#allocation21_spill] sm:$0xff] %v16642_v30  ;;  %v6915_v12 = vadd.f32 %v6850_v42, %v6681_v59  ;;  %v7234_v19 = vpack.c.bf16 %v16642_v30, %v16623_v34  ;;  %v7143_v48 = vld [vmem:[#allocation2 + $0x78] sm:$0xff]  ;;  %v6732_v59 = vld [vmem:[#allocation2 + $0x18a] sm:$0xff] }
 0x7d1   : > { %7110 = vst [vmem:[#allocation2 + $0x81] sm:$0xff] %v16642_v30  ;;  %v16663_v39 = vpop.f32.mrf.mxu0  ;;  %7888 = vmatpush.bf16.msra.mxu2 %v13764_v53  ;;  %v6749_v43 = vpack.c.bf16 %v6732_v59, %v6731_v23  ;;  %v18802_v53 = vld [vmem:[#allocation29_spill] sm:$0xff] }
 0x7d2   : > { %v6951_v20 = vadd.f32 %v16509_v18, %v6915_v12  ;;  %7343 = vmatmul.bf16.gmra.mxu3 %v7234_v19 }
 0x7d3   : > { %v16656_v44 = vpop.f32.mrf.mxu1 }
 0x7d4   : > { %v7015_v10 = vadd.f32 %v6951_v20, %v18800_v24 }
 0x7d5   : > { %7889 = vmatpush.bf16.msra.mxu2 %v13763_v57  ;;  %v18804_v57 = vld [vmem:[#allocation30_spill] sm:$0xff] }
 0x7d6   : > { %v16666_v61 = vmax.f32 %v7015_v10, 0.0  ;;  %v6449_v10 = vadd.f32 %v16347_v13, %v16269_v1  ;;  %v6216_v1 = vadd.f32 %v16281_v49, %v16272_v7 }
 0x7d7   : > { %v6852_v42 = vpop.f32.mrf.mxu2 }
 0x7d8   : > { %18801 = vst [vmem:[#allocation22_spill] sm:$0xff] %v16666_v61  ;;  %v7144_v12 = vld [vmem:[#allocation2 + $0x80] sm:$0xff]  ;;  %v6916_v32 = vadd.f32 %v6852_v42, %v6682_v22  ;;  %v6683_v42 = vadd.f32 %v16450_v16, %v6449_v10 }
 0x7d9   : > { %v7546_v19 = vld [vmem:[#allocation2 + $0x7a] sm:$0xff]  ;;  %v7547_v11 = vld [vmem:[#allocation2 + $0x82] sm:$0xff]  ;;  %7111 = vst [vmem:[#allocation2 + $0x91] sm:$0xff] %v16666_v61  ;;  %v16669_v9 = vpack.c.bf16 %v7144_v12, %v7143_v48  ;;  %v16685_v12 = vpop.f32.mrf.mxu3  ;;  %v16689_v23 = vpop.f32.mrf.mxu0 }
 0x7da   : > { %v7573_v3 = vpack.c.bf16 %v7547_v11, %v7546_v19  ;;  %v6952_v20 = vadd.f32 %v16509_v18, %v6916_v32  ;;  %v13762_v48 = vld [vmem:[%s18559_s7 + $0xc0] sm:$0xff] }
 0x7db   : > { %7480 = vmatmul.bf16.gmra.mxu0 %v16669_v9  ;;  %v16676_v24 = vpop.f32.mrf.mxu1  ;;  %7890 = vmatpush.bf16.msra.mxu2 %v13762_v48  ;;  %v6734_v10 = vld [vmem:[#allocation2 + $0x1a2] sm:$0xff] }
 0x7dc   : > { %7682 = vmatmul.bf16.gmra.mxu1 %v7573_v3  ;;  %v7016_v22 = vadd.f32 %v6952_v20, %v18802_v53  ;;  %6894 = vmatmul.bf16.gmra.mxu2 %v6749_v43  ;;  %v6450_v3 = vadd.f32 %v16357_v4, %v6216_v1  ;;  %v6733_v43 = vld [vmem:[#allocation2 + $0x19a] sm:$0xff] }
 0x7de   : > { %v16687_v19 = vmax.f32 %v7016_v22, 0.0  ;;  %v6684_v53 = vadd.f32 %v16471_v55, %v6450_v3  ;;  %v6451_v3 = vadd.f32 %v16372_v40, %v16290_v27  ;;  %v13773_v27 = vld [vmem:[%s18559_s7 + $0x118] sm:$0xff] }
 0x7df   : > { %v6855_v59 = vpop.f32.mrf.mxu2  ;;  %8121 = vmatpush.bf16.msra.mxu3 %v13773_v27 }
 0x7e0   : > { %18803 = vst [vmem:[#allocation23_spill] sm:$0xff] %v16687_v19  ;;  %v6917_v13 = vadd.f32 %v6855_v59, %v6683_v42  ;;  %v7235_v11 = vpack.c.bf16 %v16687_v19, %v16666_v61  ;;  %v7145_v49 = vld [vmem:[#allocation2 + $0x90] sm:$0xff] }
 0x7e1   : > { %7112 = vst [vmem:[#allocation2 + $0x99] sm:$0xff] %v16687_v19  ;;  %v7319_v22 = vpop.f32.mrf.mxu3 }
 0x7e2   : > { %v6953_v32 = vadd.f32 %v16509_v18, %v6917_v13  ;;  %7348 = vmatmul.bf16.gmra.mxu3 %v7235_v11  ;;  %v6750_v13 = vpack.c.bf16 %v6734_v10, %v6733_v43  ;;  %v7456_v11 = vpop.f32.mrf.mxu0  ;;  %v6685_v10 = vadd.f32 %v16480_v60, %v6451_v3 }
 0x7e3   : > { %v16697_v16 = vpop.f32.mrf.mxu1 }
 0x7e4   : > { %v7017_v20 = vadd.f32 %v6953_v32, %v18804_v57  ;;  %v7457_v32 = vadd.f32 %v7456_v11, %v7319_v22 }
 0x7e6   : > { %v16702_v7 = vmax.f32 %v7017_v20, 0.0  ;;  %v18806_v20 = vld [vmem:[#allocation31_spill] sm:$0xff] }
 0x7e7   : > { %v6857_v48 = vpop.f32.mrf.mxu2 }
 0x7e8   : > { %18805 = vst [vmem:[#allocation24_spill] sm:$0xff] %v16702_v7  ;;  %v7146_v42 = vld [vmem:[#allocation2 + $0x98] sm:$0xff]  ;;  %v6918_v61 = vadd.f32 %v6857_v48, %v6684_v53 }
 0x7e9   : > { %v7548_v59 = vld [vmem:[#allocation2 + $0x92] sm:$0xff]  ;;  %v7549_v19 = vld [vmem:[#allocation2 + $0x9a] sm:$0xff]  ;;  %7113 = vst [vmem:[#allocation2 + $0xa9] sm:$0xff] %v16702_v7  ;;  %v16705_v4 = vpack.c.bf16 %v7146_v42, %v7145_v49  ;;  %v18808_v42 = vld [vmem:[#allocation32_spill] sm:$0xff] }
 0x7ea   : > { %v7574_v1 = vpack.c.bf16 %v7549_v19, %v7548_v59  ;;  %v6954_v57 = vadd.f32 %v16509_v18, %v6918_v61  ;;  %v6218_v19 = vadd.f32 %v16302_v2, %v16293_v46 }
 0x7eb   : > { %7485 = vmatmul.bf16.gmra.mxu0 %v16705_v4  ;;  %v16709_v55 = vpop.f32.mrf.mxu1 }
 0x7ec   : > { %7687 = vmatmul.bf16.gmra.mxu1 %v7574_v1  ;;  %v7018_v43 = vadd.f32 %v6954_v57, %v18806_v20  ;;  %6899 = vmatmul.bf16.gmra.mxu2 %v6750_v13  ;;  %v6452_v48 = vadd.f32 %v16391_v33, %v6218_v19  ;;  %v13785_v33 = vld [vmem:[%s18559_s7 + $0x178] sm:$0xff]  ;;  %v6453_v19 = vadd.f32 %v16405_v52, %v16310_v41 }
 0x7ed   : > { %8351 = vmatpush.bf16.msra.mxu0 %v13785_v33 }
 0x7ee   : > { %v16715_v53 = vmax.f32 %v7018_v43, 0.0  ;;  %v6686_v2 = vadd.f32 %v16494_v58, %v6452_v48 }
 0x7ef   : > { %v6860_v49 = vpop.f32.mrf.mxu2 }
 0x7f0   : > { %18807 = vst [vmem:[#allocation25_spill] sm:$0xff] %v16715_v53  ;;  %v6919_v61 = vadd.f32 %v6860_v49, %v6685_v10  ;;  %v7236_v22 = vpack.c.bf16 %v16715_v53, %v16702_v7  ;;  %v7147_v13 = vld [vmem:[#allocation2 + $0xa8] sm:$0xff] }
 0x7f1   : > { %7114 = vst [vmem:[#allocation2 + $0xb1] sm:$0xff] %v16715_v53 }
 0x7f2   : > { %v6955_v40 = vadd.f32 %v16509_v18, %v6919_v61  ;;  %7353 = vmatmul.bf16.gmra.mxu3 %v7236_v22  ;;  %v18810_v61 = vld [vmem:[#allocation33_spill] sm:$0xff] }
 0x7f3   : > { %v16726_v60 = vpop.f32.mrf.mxu1 }
 0x7f4   : > { %v7019_v46 = vadd.f32 %v6955_v40, %v18808_v42  ;;  %v6687_v40 = vadd.f32 %v16501_v25, %v6453_v19  ;;  %v16770_v19 = vpop.f32.mrf.mxu3 }
 0x7f6   : > { %v16731_v59 = vmax.f32 %v7019_v46, 0.0  ;;  %v6220_v46 = vadd.f32 %v16321_v29, %v16313_v36 }
 0x7f7   : > { %v6862_v11 = vpop.f32.mrf.mxu2 }
 0x7f8   : > { %18809 = vst [vmem:[#allocation26_spill] sm:$0xff] %v16731_v59  ;;  %v7148_v1 = vld [vmem:[#allocation2 + $0xb0] sm:$0xff]  ;;  %v6920_v20 = vadd.f32 %v6862_v11, %v6686_v2 }
 0x7f9   : > { %v7550_v57 = vld [vmem:[#allocation2 + $0xaa] sm:$0xff]  ;;  %v7551_v3 = vld [vmem:[#allocation2 + $0xb2] sm:$0xff]  ;;  %7115 = vst [vmem:[#allocation2 + $0xc1] sm:$0xff] %v16731_v59  ;;  %v16734_v43 = vpack.c.bf16 %v7148_v1, %v7147_v13 }
 0x7fa   : > { %v7575_v10 = vpack.c.bf16 %v7551_v3, %v7550_v57  ;;  %v6956_v49 = vadd.f32 %v16509_v18, %v6920_v20 }
 0x7fb   : > { %7490 = vmatmul.bf16.gmra.mxu0 %v16734_v43  ;;  %v7658_v58 = vpop.f32.mrf.mxu1 }
 0x7fc   : > { %7692 = vmatmul.bf16.gmra.mxu1 %v7575_v10  ;;  %v7020_v22 = vadd.f32 %v6956_v49, %v18810_v61  ;;  %7891 = vmatmul.bf16.vlgmr.msra.gmra.mxu2 %v16548_v35  ;;  %v16745_v27 = vadd.f32 %v7658_v58, %v7457_v32  ;;  %v6454_v35 = vadd.f32 %v16431_v56, %v6220_v46  ;;  %v18812_v32 = vld [vmem:[#allocation34_spill] sm:$0xff] }
 0x7fd   : > { %v6455_v56 = vadd.f32 %v16456_v28, %v16332_v31  ;;  %v18816_v46 = vld [vmem:[#allocation50_spill] sm:$0xff] }
 0x7fe   : > { %v16748_v48 = vmax.f32 %v7020_v22, 0.0  ;;  %v6688_v25 = vadd.f32 %v16513_v51, %v6454_v35  ;;  %v18814_v51 = vld [vmem:[#allocation35_spill] sm:$0xff]  ;;  %v18817_v35 = vld [vmem:[#allocation36_spill] sm:$0xff] }
 0x7ff   : > { %v6865_v42 = vpop.f32.mrf.mxu2  ;;  %v6689_v61 = vadd.f32 %v16523_v63, %v6455_v56  ;;  %v13772_v63 = vld [vmem:[%s18559_s7 + $0x110] sm:$0xff] }
 0x800   : > { %18811 = vst [vmem:[#allocation27_spill] sm:$0xff] %v16748_v48  ;;  %v6921_v2 = vadd.f32 %v6865_v42, %v6687_v40  ;;  %v7237_v41 = vpack.c.bf16 %v16748_v48, %v16731_v59  ;;  %v7149_v1 = vld [vmem:[#allocation2 + $0xc0] sm:$0xff]  ;;  %v16775_v40 = vpop.f32.mrf.mxu0  ;;  %8122 = vmatpush.bf16.msra.mxu3 %v13772_v63 }
 0x801   : > { %7116 = vst [vmem:[#allocation2 + $0xc9] sm:$0xff] %v16748_v48 }
 0x802   : > { %v6957_v52 = vadd.f32 %v16509_v18, %v6921_v2  ;;  %7358 = vmatmul.bf16.gmra.mxu3 %v7237_v41  ;;  %v6222_v2 = vadd.f32 %v18816_v46, %v16335_v62  ;;  %v18819_v46 = vld [vmem:[#allocation37_spill] sm:$0xff] }
 0x803   : > { %v16780_v31 = vpop.f32.mrf.mxu1 }
 0x804   : > { %v7021_v13 = vadd.f32 %v6957_v52, %v18812_v32  ;;  %v6456_v52 = vadd.f32 %v16478_v54, %v6222_v2 }
 0x806   : > { %v16759_v11 = vmax.f32 %v7021_v13, 0.0  ;;  %v6690_v13 = vadd.f32 %v16541_v37, %v6456_v52  ;;  %v13784_v37 = vld [vmem:[%s18559_s7 + $0x170] sm:$0xff] }
 0x807   : > { %v6867_v57 = vpop.f32.mrf.mxu2  ;;  %8352 = vmatpush.bf16.msra.mxu0 %v13784_v37 }
 0x808   : > { %18813 = vst [vmem:[#allocation28_spill] sm:$0xff] %v16759_v11  ;;  %v7150_v36 = vld [vmem:[#allocation2 + $0xc8] sm:$0xff]  ;;  %v6922_v20 = vadd.f32 %v6867_v57, %v6688_v25 }
 0x809   : > { %v7552_v29 = vld [vmem:[#allocation2 + $0xc2] sm:$0xff]  ;;  %v7553_v3 = vld [vmem:[#allocation2 + $0xca] sm:$0xff]  ;;  %7117 = vst [vmem:[#allocation2 + $0xd9] sm:$0xff] %v16759_v11  ;;  %v16762_v10 = vpack.c.bf16 %v7150_v36, %v7149_v1 }
 0x80a   : > { %v7576_v33 = vpack.c.bf16 %v7553_v3, %v7552_v29  ;;  %v6958_v49 = vadd.f32 %v16509_v18, %v6922_v20 }
 0x80b   : > { %7495 = vmatmul.bf16.gmra.mxu0 %v16762_v10 }
 0x80c   : > { %7697 = vmatmul.bf16.gmra.mxu1 %v7576_v33  ;;  %v7022_v58 = vadd.f32 %v6958_v49, %v18814_v51  ;;  %7896 = vmatmul.bf16.gmra.mxu2 %v16573_v6 }
 0x80e   : > { %v16773_v22 = vmax.f32 %v7022_v58, 0.0 }
 0x80f   : > { %v6870_v42 = vpop.f32.mrf.mxu2 }
 0x810   : > { %18815 = vst [vmem:[#allocation29_spill] sm:$0xff] %v16773_v22  ;;  %v6923_v41 = vadd.f32 %v6870_v42, %v6689_v61  ;;  %v7238_v28 = vpack.c.bf16 %v16773_v22, %v16759_v11  ;;  %v7151_v1 = vld [vmem:[#allocation2 + $0xd8] sm:$0xff]  ;;  %v6457_v42 = vadd.f32 %v16492_v38, %v16352_v14 }
 0x811   : > { %7118 = vst [vmem:[#allocation2 + $0xe1] sm:$0xff] %v16773_v22  ;;  %v8020_v7 = vld [vmem:[#allocation2 + $0xd9] sm:$0xff] }
 0x812   : > { %v6959_v6 = vadd.f32 %v16509_v18, %v6923_v41  ;;  %7363 = vmatmul.bf16.gmra.mxu3 %v7238_v28  ;;  %v6691_v28 = vadd.f32 %v16554_v0, %v6457_v42  ;;  %v18822_v0 = vld [vmem:[#allocation76_spill] sm:$0xff] }
 0x814   : > { %v7023_v62 = vadd.f32 %v6959_v6, %v18817_v35  ;;  %v18821_v35 = vld [vmem:[#allocation52_spill] sm:$0xff] }
 0x815   : > { %v7324_v32 = vpop.f32.mrf.mxu3 }
 0x816   : > { %v16791_v25 = vmax.f32 %v7023_v62, 0.0  ;;  %v6224_v62 = vadd.f32 %v18821_v35, %v16355_v17 }
 0x817   : > { %v6872_v57 = vpop.f32.mrf.mxu2 }
 0x818   : > { %18818 = vst [vmem:[#allocation30_spill] sm:$0xff] %v16791_v25  ;;  %v7461_v36 = vpop.f32.mrf.mxu0  ;;  %v7152_v29 = vld [vmem:[#allocation2 + $0xe0] sm:$0xff]  ;;  %v6924_v33 = vadd.f32 %v6872_v57, %v6690_v13  ;;  %v6458_v57 = vadd.f32 %v18822_v0, %v6224_v62 }
 0x819   : > { %v7554_v3 = vld [vmem:[#allocation2 + $0xda] sm:$0xff]  ;;  %v7555_v20 = vld [vmem:[#allocation2 + $0xe2] sm:$0xff]  ;;  %7119 = vst [vmem:[#allocation2 + $0xf1] sm:$0xff] %v16791_v25  ;;  %v7663_v49 = vpop.f32.mrf.mxu1  ;;  %v16794_v56 = vpack.c.bf16 %v7152_v29, %v7151_v1  ;;  %v7462_v51 = vadd.f32 %v7461_v36, %v7324_v32 }
 0x81a   : > { %v7577_v54 = vpack.c.bf16 %v7555_v20, %v7554_v3  ;;  %v6960_v58 = vadd.f32 %v16509_v18, %v6924_v33  ;;  %v18823_v36 = vld [vmem:[#allocation38_spill] sm:$0xff]  ;;  %v18824_v20 = vld [vmem:[#allocation68_spill] sm:$0xff] }
 0x81b   : > { %7500 = vmatmul.bf16.gmra.mxu0 %v16794_v56  ;;  %v16801_v61 = vadd.f32 %v7663_v49, %v7462_v51  ;;  %v6692_v17 = vadd.f32 %v18824_v20, %v6458_v57  ;;  %v18826_v62 = vld [vmem:[#allocation62_spill] sm:$0xff]  ;;  %v18831_v20 = vld [vmem:[#allocation53_spill] sm:$0xff] }
 0x81c   : > { %7702 = vmatmul.bf16.gmra.mxu1 %v7577_v54  ;;  %v7024_v2 = vadd.f32 %v6960_v58, %v18819_v46  ;;  %7901 = vmatmul.bf16.gmra.mxu2 %v16602_v47 }
 0x81d   : > { %v7326_v41 = vpop.f32.mrf.mxu3 }
 0x81e   : > { %v16808_v63 = vmax.f32 %v7024_v2, 0.0 }
 0x81f   : > { %v6875_v6 = vpop.f32.mrf.mxu2 }
 0x820   : > { %18820 = vst [vmem:[#allocation31_spill] sm:$0xff] %v16808_v63  ;;  %v7463_v52 = vpop.f32.mrf.mxu0  ;;  %v6925_v32 = vadd.f32 %v6875_v6, %v6691_v28  ;;  %v7239_v14 = vpack.c.bf16 %v16808_v63, %v16791_v25  ;;  %v7153_v49 = vld [vmem:[#allocation2 + $0xf0] sm:$0xff] }
 0x821   : > { %7120 = vst [vmem:[#allocation2 + $0xf9] sm:$0xff] %v16808_v63  ;;  %v7665_v13 = vpop.f32.mrf.mxu1  ;;  %v7464_v1 = vadd.f32 %v7463_v52, %v7326_v41 }
 0x822   : > { %v6961_v38 = vadd.f32 %v16509_v18, %v6925_v32  ;;  %7368 = vmatmul.bf16.gmra.mxu3 %v7239_v14  ;;  %v18827_v32 = vld [vmem:[#allocation60_spill] sm:$0xff] }
 0x823   : > { %v16816_v47 = vadd.f32 %v7665_v13, %v7464_v1  ;;  %v6459_v13 = vadd.f32 %v18827_v32, %v18826_v62  ;;  %v18828_v1 = vld [vmem:[#allocation39_spill] sm:$0xff] }
 0x824   : > { %v7025_v29 = vadd.f32 %v6961_v38, %v18823_v36 }
 0x825   : > { %v7329_v3 = vpop.f32.mrf.mxu3  ;;  %v6693_v0 = vadd.f32 %v16577_v5, %v6459_v13 }
 0x826   : > { %v16821_v33 = vmax.f32 %v7025_v29, 0.0 }
 0x827   : > { %v6877_v54 = vpop.f32.mrf.mxu2 }
 0x828   : > { %18825 = vst [vmem:[#allocation32_spill] sm:$0xff] %v16821_v33  ;;  %v7466_v51 = vpop.f32.mrf.mxu0  ;;  %v7154_v37 = vld [vmem:[#allocation2 + $0xf8] sm:$0xff]  ;;  %v6926_v46 = vadd.f32 %v6877_v54, %v6692_v17 }
 0x829   : > { %v7556_v58 = vld [vmem:[#allocation2 + $0xf2] sm:$0xff]  ;;  %v7557_v42 = vld [vmem:[#allocation2 + $0xfa] sm:$0xff]  ;;  %7121 = vst [vmem:[#allocation2 + $0x109] sm:$0xff] %v16821_v33  ;;  %v7668_v2 = vpop.f32.mrf.mxu1  ;;  %v16824_v41 = vpack.c.bf16 %v7154_v37, %v7153_v49  ;;  %v7467_v6 = vadd.f32 %v7466_v51, %v7329_v3  ;;  %v18830_v3 = vld [vmem:[#allocation63_spill] sm:$0xff] }
 0x82a   : > { %v7578_v28 = vpack.c.bf16 %v7557_v42, %v7556_v58  ;;  %v6962_v52 = vadd.f32 %v16509_v18, %v6926_v46  ;;  %v6226_v17 = vadd.f32 %v18831_v20, %v18830_v3  ;;  %v18832_v42 = vld [vmem:[#allocation77_spill] sm:$0xff] }
 0x82b   : > { %7505 = vmatmul.bf16.gmra.mxu0 %v16824_v41  ;;  %v16828_v35 = vadd.f32 %v7668_v2, %v7467_v6  ;;  %v18833_v2 = vld [vmem:[#allocation40_spill] sm:$0xff] }
 0x82c   : > { %7707 = vmatmul.bf16.gmra.mxu1 %v7578_v28  ;;  %v7026_v14 = vadd.f32 %v6962_v52, %v18828_v1  ;;  %7906 = vmatmul.bf16.gmra.mxu2 %v16627_v21  ;;  %v13771_v21 = vld [vmem:[%s18559_s7 + $0x108] sm:$0xff]  ;;  %v6460_v46 = vadd.f32 %v18832_v42, %v6226_v17 }
 0x82d   : > { %v7331_v38 = vpop.f32.mrf.mxu3  ;;  %8123 = vmatpush.bf16.msra.mxu3 %v13771_v21  ;;  %v18834_v52 = vld [vmem:[#allocation75_spill] sm:$0xff] }
 0x82e   : > { %v16835_v57 = vmax.f32 %v7026_v14, 0.0  ;;  %v6694_v62 = vadd.f32 %v18834_v52, %v6460_v46  ;;  %v18836_v21 = vld [vmem:[#allocation51_spill] sm:$0xff]  ;;  %v18838_v46 = vld [vmem:[#allocation41_spill] sm:$0xff] }
 0x82f   : > { %v6880_v36 = vpop.f32.mrf.mxu2 }
 0x830   : > { %18829 = vst [vmem:[#allocation33_spill] sm:$0xff] %v16835_v57  ;;  %v7468_v29 = vpop.f32.mrf.mxu0  ;;  %v6927_v49 = vadd.f32 %v6880_v36, %v6693_v0  ;;  %v7240_v37 = vpack.c.bf16 %v16835_v57, %v16821_v33  ;;  %v7155_v13 = vld [vmem:[#allocation2 + $0x108] sm:$0xff]  ;;  %v8484_v33 = vld [vmem:[#allocation2 + $0xc0] sm:$0xff] }
 0x831   : > { %7122 = vst [vmem:[#allocation2 + $0x111] sm:$0xff] %v16835_v57  ;;  %v7670_v54 = vpop.f32.mrf.mxu1  ;;  %v7469_v51 = vadd.f32 %v7468_v29, %v7331_v38 }
 0x832   : > { %v6963_v5 = vadd.f32 %v16509_v18, %v6927_v49  ;;  %7373 = vmatmul.bf16.gmra.mxu3 %v7240_v37 }
 0x833   : > { %v16846_v58 = vadd.f32 %v7670_v54, %v7469_v51  ;;  %v13783_v54 = vld [vmem:[%s18559_s7 + $0x168] sm:$0xff] }
 0x834   : > { %v7027_v28 = vadd.f32 %v6963_v5, %v18833_v2  ;;  %8353 = vmatpush.bf16.msra.mxu0 %v13783_v54  ;;  %v18837_v5 = vld [vmem:[#allocation78_spill] sm:$0xff] }
 0x835   : > { %v7334_v6 = vpop.f32.mrf.mxu3  ;;  %v6461_v42 = vadd.f32 %v18837_v5, %v18836_v21  ;;  %v18843_v54 = vld [vmem:[#allocation42_spill] sm:$0xff] }
 0x836   : > { %v16851_v32 = vmax.f32 %v7027_v28, 0.0 }
 0x837   : > { %v6882_v1 = vpop.f32.mrf.mxu2 }
 0x838   : > { %18835 = vst [vmem:[#allocation34_spill] sm:$0xff] %v16851_v32  ;;  %v7471_v14 = vpop.f32.mrf.mxu0  ;;  %v7156_v38 = vld [vmem:[#allocation2 + $0x110] sm:$0xff]  ;;  %v6928_v29 = vadd.f32 %v6882_v1, %v6694_v62  ;;  %v18840_v1 = vld [vmem:[#allocation55_spill] sm:$0xff] }
 0x839   : > { %v7558_v0 = vld [vmem:[#allocation2 + $0x10a] sm:$0xff]  ;;  %v7559_v36 = vld [vmem:[#allocation2 + $0x112] sm:$0xff]  ;;  %7123 = vst [vmem:[#allocation2 + $0x121] sm:$0xff] %v16851_v32  ;;  %v7673_v3 = vpop.f32.mrf.mxu1  ;;  %v16854_v20 = vpack.c.bf16 %v7156_v38, %v7155_v13  ;;  %v7472_v49 = vadd.f32 %v7471_v14, %v7334_v6  ;;  %v6695_v6 = vadd.f32 %v16608_v45, %v6461_v42  ;;  %v18842_v45 = vld [vmem:[#allocation79_spill] sm:$0xff] }
 0x83a   : > { %v7579_v17 = vpack.c.bf16 %v7559_v36, %v7558_v0  ;;  %v6964_v51 = vadd.f32 %v16509_v18, %v6928_v29  ;;  %v18841_v14 = vld [vmem:[#allocation56_spill] sm:$0xff] }
 0x83b   : > { %7510 = vmatmul.bf16.gmra.mxu0 %v16854_v20  ;;  %v16861_v37 = vadd.f32 %v7673_v3, %v7472_v49  ;;  %v6228_v38 = vadd.f32 %v18841_v14, %v18840_v1 }
 0x83c   : > { %7712 = vmatmul.bf16.gmra.mxu1 %v7579_v17  ;;  %v7028_v2 = vadd.f32 %v6964_v51, %v18838_v46  ;;  %7911 = vmatmul.bf16.gmra.mxu2 %v16669_v9 }
 0x83d   : > { %v7336_v28 = vpop.f32.mrf.mxu3  ;;  %v6462_v49 = vadd.f32 %v18842_v45, %v6228_v38 }
 0x83e   : > { %v16868_v52 = vmax.f32 %v7028_v2, 0.0 }
 0x83f   : > { %v6885_v62 = vpop.f32.mrf.mxu2  ;;  %v6696_v5 = vadd.f32 %v16620_v15, %v6462_v49  ;;  %v18847_v49 = vld [vmem:[#allocation43_spill] sm:$0xff] }
 0x840   : > { %18839 = vst [vmem:[#allocation35_spill] sm:$0xff] %v16868_v52  ;;  %v7473_v13 = vpop.f32.mrf.mxu0  ;;  %v6929_v0 = vadd.f32 %v6885_v62, %v6695_v6  ;;  %v7241_v3 = vpack.c.bf16 %v16868_v52, %v16851_v32  ;;  %v7157_v46 = vld [vmem:[#allocation2 + $0x120] sm:$0xff]  ;;  %v8017_v32 = vld [vmem:[#allocation2 + $0xb1] sm:$0xff] }
 0x841   : > { %7124 = vst [vmem:[#allocation2 + $0x129] sm:$0xff] %v16868_v52  ;;  %v7675_v36 = vpop.f32.mrf.mxu1  ;;  %v7474_v29 = vadd.f32 %v7473_v13, %v7336_v28 }
 0x842   : > { %v6965_v9 = vadd.f32 %v16509_v18, %v6929_v0  ;;  %7378 = vmatmul.bf16.gmra.mxu3 %v7241_v3  ;;  %v18845_v3 = vld [vmem:[#allocation54_spill] sm:$0xff] }
 0x843   : > { %v16876_v17 = vadd.f32 %v7675_v36, %v7474_v29 }
 0x844   : > { %v7029_v51 = vadd.f32 %v6965_v9, %v18843_v54  ;;  %v18846_v9 = vld [vmem:[#allocation73_spill] sm:$0xff] }
 0x845   : > { %v7339_v21 = vpop.f32.mrf.mxu3  ;;  %v6463_v45 = vadd.f32 %v18846_v9, %v18845_v3 }
 0x846   : > { %v16881_v42 = vmax.f32 %v7029_v51, 0.0 }
 0x847   : > { %v6887_v2 = vpop.f32.mrf.mxu2 }
 0x848   : > { %18844 = vst [vmem:[#allocation50_spill] sm:$0xff] %v16881_v42  ;;  %v7476_v28 = vpop.f32.mrf.mxu0  ;;  %v7158_v6 = vld [vmem:[#allocation2 + $0x128] sm:$0xff]  ;;  %v6930_v1 = vadd.f32 %v6887_v2, %v6696_v5  ;;  %v6697_v5 = vadd.f32 %v16631_v26, %v6463_v45  ;;  %v18849_v2 = vld [vmem:[#allocation58_spill] sm:$0xff] }
 0x849   : > { %v7560_v62 = vld [vmem:[#allocation2 + $0x122] sm:$0xff]  ;;  %v7561_v13 = vld [vmem:[#allocation2 + $0x12a] sm:$0xff]  ;;  %7125 = vst [vmem:[#allocation2 + $0x139] sm:$0xff] %v16881_v42  ;;  %v7678_v14 = vpop.f32.mrf.mxu1  ;;  %v16884_v0 = vpack.c.bf16 %v7158_v6, %v7157_v46  ;;  %v7477_v36 = vadd.f32 %v7476_v28, %v7339_v21  ;;  %v13793_v21 = vld [vmem:[%s18559_s7 + $0x1b8] sm:$0xff] }
 0x84a   : > { %v7580_v38 = vpack.c.bf16 %v7561_v13, %v7560_v62  ;;  %v6966_v29 = vadd.f32 %v16509_v18, %v6930_v1  ;;  %v18850_v28 = vld [vmem:[#allocation71_spill] sm:$0xff]  ;;  %8585 = vmatpush.bf16.msrb.mxu1 %v13793_v21  ;;  %v18851_v45 = vld [vmem:[#allocation44_spill] sm:$0xff] }
 0x84b   : > { %7515 = vmatmul.bf16.gmra.mxu0 %v16884_v0  ;;  %v16888_v15 = vadd.f32 %v7678_v14, %v7477_v36  ;;  %v6230_v6 = vadd.f32 %v18850_v28, %v18849_v2  ;;  %v13770_v26 = vld [vmem:[%s18559_s7 + $0x100] sm:$0xff]  ;;  %v13791_v2 = vld [vmem:[%s18559_s7 + $0x1a8] sm:$0xff] }
 0x84c   : > { %7717 = vmatmul.bf16.gmra.mxu1 %v7580_v38  ;;  %v7030_v54 = vadd.f32 %v6966_v29, %v18847_v49  ;;  %7916 = vmatmul.bf16.gmra.mxu2 %v16705_v4  ;;  %v13792_v29 = vld [vmem:[%s18559_s7 + $0x1b0] sm:$0xff] }
 0x84d   : > { %v7341_v51 = vpop.f32.mrf.mxu3  ;;  %8124 = vmatpush.bf16.msra.mxu3 %v13770_v26  ;;  %v6464_v9 = vadd.f32 %v16604_v50, %v6230_v6  ;;  %v13782_v26 = vld [vmem:[%s18559_s7 + $0x160] sm:$0xff] }
 0x84e   : > { %v16895_v46 = vmax.f32 %v7030_v54, 0.0  ;;  %8586 = vmatpush.bf16.msrb.mxu1 %v13792_v29  ;;  %v13790_v29 = vld [vmem:[%s18559_s7 + $0x1a0] sm:$0xff]  ;;  %8354 = vmatpush.bf16.msra.mxu0 %v13782_v26 }
 0x84f   : > { %v6890_v62 = vpop.f32.mrf.mxu2 }
 0x850   : > { %18848 = vst [vmem:[#allocation36_spill] sm:$0xff] %v16895_v46  ;;  %v7478_v13 = vpop.f32.mrf.mxu0  ;;  %v6931_v1 = vadd.f32 %v6890_v62, %v6697_v5  ;;  %v7242_v4 = vpack.c.bf16 %v16895_v46, %v16881_v42  ;;  %v7159_v21 = vld [vmem:[#allocation2 + $0x138] sm:$0xff] }
 0x851   : > { %7126 = vst [vmem:[#allocation2 + $0x141] sm:$0xff] %v16895_v46  ;;  %v7680_v14 = vpop.f32.mrf.mxu1  ;;  %v7479_v38 = vadd.f32 %v7478_v13, %v7341_v51  ;;  %v6698_v51 = vadd.f32 %v16656_v44, %v6464_v9  ;;  %v8012_v46 = vld [vmem:[#allocation2 + $0x79] sm:$0xff] }
 0x852   : > { %v6967_v36 = vadd.f32 %v16509_v18, %v6931_v1  ;;  %7383 = vmatmul.bf16.gmra.mxu3 %v7242_v4  ;;  %8587 = vmatpush.bf16.msrb.mxu1 %v13791_v2  ;;  %v8028_v34 = vld [vmem:[#allocation2 + $0x139] sm:$0xff] }
 0x853   : > { %v16912_v3 = vadd.f32 %v7680_v14, %v7479_v38 }
 0x854   : > { %v7031_v49 = vadd.f32 %v6967_v36, %v18851_v45  ;;  %v18853_v45 = vld [vmem:[#allocation72_spill] sm:$0xff] }
 0x855   : > { %v7344_v54 = vpop.f32.mrf.mxu3 }
 0x856   : > { %v16917_v5 = vmax.f32 %v7031_v49, 0.0  ;;  %v18854_v49 = vld [vmem:[#allocation19_spill] sm:$0xff]  ;;  %8588 = vmatpush.bf16.msrb.mxu1 %v13790_v29  ;;  %v13788_v29 = vld [vmem:[%s18559_s7 + $0x190] sm:$0xff] }
 0x857   : > { %v6892_v28 = vpop.f32.mrf.mxu2 }
 0x858   : > { %18852 = vst [vmem:[#allocation37_spill] sm:$0xff] %v16917_v5  ;;  %v7481_v62 = vpop.f32.mrf.mxu0  ;;  %v7160_v13 = vld [vmem:[#allocation2 + $0x140] sm:$0xff]  ;;  %v6932_v50 = vadd.f32 %v6892_v28, %v6698_v51  ;;  %v18855_v51 = vld [vmem:[#allocation45_spill] sm:$0xff] }
 0x859   : > { %v7562_v1 = vld [vmem:[#allocation2 + $0x13a] sm:$0xff]  ;;  %v7563_v14 = vld [vmem:[#allocation2 + $0x142] sm:$0xff]  ;;  %7127 = vst [vmem:[#allocation2 + $0x151] sm:$0xff] %v16917_v5  ;;  %v7683_v6 = vpop.f32.mrf.mxu1  ;;  %v16923_v38 = vpack.c.bf16 %v7160_v13, %v7159_v21  ;;  %v7482_v44 = vadd.f32 %v7481_v62, %v7344_v54  ;;  %v6465_v54 = vadd.f32 %v18854_v49, %v18853_v45 }
 0x85a   : > { %v7581_v4 = vpack.c.bf16 %v7563_v14, %v7562_v1  ;;  %v6968_v36 = vadd.f32 %v16509_v18, %v6932_v50  ;;  %v13781_v62 = vld [vmem:[%s18559_s7 + $0x158] sm:$0xff]  ;;  %v18857_v1 = vld [vmem:[#allocation59_spill] sm:$0xff]  ;;  %v16962_v45 = vld [vmem:[%s18558_s6] ss:$0 sm:$0xff] }
 0x85b   : > { %7520 = vmatmul.bf16.gmra.mxu0 %v16923_v38  ;;  %v16933_v9 = vadd.f32 %v7683_v6, %v7482_v44  ;;  %v6699_v18 = vadd.f32 %v16676_v24, %v6465_v54  ;;  %v13789_v13 = vld [vmem:[%s18559_s7 + $0x198] sm:$0xff] }
 0x85c   : > { %7722 = vmatmul.bf16.gmra.mxu1 %v7581_v4  ;;  %v7032_v21 = vadd.f32 %v6968_v36, %v18855_v51  ;;  %7921 = vmatmul.bf16.gmra.mxu2 %v16734_v43  ;;  %v18858_v14 = vld [vmem:[#allocation57_spill] sm:$0xff] }
 0x85d   : > { %v7346_v2 = vpop.f32.mrf.mxu3  ;;  %v6232_v50 = vadd.f32 %v18858_v14, %v18857_v1  ;;  %8355 = vmatpush.bf16.msra.mxu0 %v13781_v62  ;;  %v13780_v36 = vld [vmem:[%s18559_s7 + $0x150] sm:$0xff]  ;;  %8589 = vmatpush.bf16.msrb.mxu1 %v13789_v13  ;;  %v13779_v62 = vld [vmem:[%s18559_s7 + $0x148] sm:$0xff] }
 0x85e   : > { %v16940_v28 = vmax.f32 %v7032_v21, 0.0  ;;  %v18859_v21 = vld [vmem:[#allocation17_spill] sm:$0xff]  ;;  %v13787_v13 = vld [vmem:[%s18559_s7 + $0x188] sm:$0xff] }
 0x85f   : > { %v6895_v6 = vpop.f32.mrf.mxu2  ;;  %v6466_v51 = vadd.f32 %v16639_v8, %v6232_v50 }
 0x860   : > { %18856 = vst [vmem:[#allocation52_spill] sm:$0xff] %v16940_v28  ;;  %v7483_v4 = vpop.f32.mrf.mxu0  ;;  %v6933_v43 = vadd.f32 %v6895_v6, %v6699_v18  ;;  %v7243_v26 = vpack.c.bf16 %v16940_v28, %v16917_v5  ;;  %v7161_v6 = vld [vmem:[#allocation2 + $0x150] sm:$0xff] }
 0x861   : > { %7128 = vst [vmem:[#allocation2 + $0x159] sm:$0xff] %v16940_v28  ;;  %v7685_v44 = vpop.f32.mrf.mxu1  ;;  %v7484_v24 = vadd.f32 %v7483_v4, %v7346_v2  ;;  %8356 = vmatpush.bf16.msra.mxu0 %v13780_v36  ;;  %8590 = vmatpush.bf16.msrb.mxu1 %v13788_v29  ;;  %v6700_v1 = vadd.f32 %v16697_v16, %v6466_v51  ;;  %v13801_v16 = vld [vmem:[%s18559_s7 + $0x1f8] sm:$0xff]  ;;  %v13778_v51 = vld [vmem:[%s18559_s7 + $0x140] sm:$0xff] }
 0x862   : > { %v6969_v49 = vadd.f32 %v16962_v45, %v6933_v43  ;;  %7388 = vmatmul.bf16.gmra.mxu3 %v7243_v26  ;;  %8819 = vmatpush.bf16.msrb.mxu2 %v13801_v16 }
 0x863   : > { %v16965_v54 = vadd.f32 %v7685_v44, %v7484_v24 }
 0x864   : > { %v7033_v2 = vadd.f32 %v6969_v49, %v18859_v21  ;;  %v13786_v21 = vld [vmem:[%s18559_s7 + $0x180] sm:$0xff] }
 0x865   : > { %v7349_v18 = vpop.f32.mrf.mxu3  ;;  %8357 = vmatpush.bf16.msra.mxu0 %v13779_v62  ;;  %8591 = vmatpush.bf16.msrb.mxu1 %v13787_v13  ;;  %v18861_v62 = vld [vmem:[#allocation61_spill] sm:$0xff] }
 0x866   : > { %v16976_v14 = vmax.f32 %v7033_v2, 0.0  ;;  %v6467_v13 = vadd.f32 %v16663_v39, %v18861_v62 }
 0x867   : > { %v6897_v4 = vpop.f32.mrf.mxu2 }
 0x868   : > { %18860 = vst [vmem:[#allocation76_spill] sm:$0xff] %v16976_v14  ;;  %v7486_v8 = vpop.f32.mrf.mxu0  ;;  %v7162_v50 = vld [vmem:[#allocation2 + $0x158] sm:$0xff]  ;;  %v6934_v24 = vadd.f32 %v6897_v4, %v6700_v1 }
 0x869   : > { %v7564_v43 = vld [vmem:[#allocation2 + $0x152] sm:$0xff]  ;;  %v7565_v44 = vld [vmem:[#allocation2 + $0x15a] sm:$0xff]  ;;  %7129 = vst [vmem:[#allocation2 + $0x169] sm:$0xff] %v16976_v14  ;;  %v7688_v26 = vpop.f32.mrf.mxu1  ;;  %v16979_v36 = vpack.c.bf16 %v7162_v50, %v7161_v6  ;;  %v7487_v49 = vadd.f32 %v7486_v8, %v7349_v18  ;;  %8358 = vmatpush.bf16.msra.mxu0 %v13778_v51  ;;  %8592 = vmatpush.bf16.msrb.mxu1 %v13786_v21 }
 0x86a   : > { %v7582_v29 = vpack.c.bf16 %v7565_v44, %v7564_v43  ;;  %v6970_v2 = vadd.f32 %v16962_v45, %v6934_v24  ;;  %v13809_v18 = vld [vmem:[%s18559_s7 + $0x238] sm:$0xff]  ;;  %v6701_v50 = vadd.f32 %v16709_v55, %v6467_v13 }
 0x86b   : > { %7525 = vmatmul.bf16.gmra.mxu0 %v16979_v36  ;;  %v16995_v1 = vadd.f32 %v7688_v26, %v7487_v49  ;;  %v18862_v6 = vld [vmem:[#allocation46_spill] sm:$0xff]  ;;  %9053 = vmatpush.bf16.msrb.mxu3 %v13809_v18 }
 0x86c   : > { %7727 = vmatmul.bf16.gmra.mxu1 %v7582_v29  ;;  %v7034_v4 = vadd.f32 %v6970_v2, %v18862_v6  ;;  %7926 = vmatmul.bf16.gmra.mxu2 %v16762_v10  ;;  %v18864_v26 = vld [vmem:[#allocation74_spill] sm:$0xff]  ;;  %v18865_v2 = vld [vmem:[#allocation47_spill] sm:$0xff] }
 0x86d   : > { %v7351_v8 = vpop.f32.mrf.mxu3  ;;  %v6234_v29 = vadd.f32 %v16685_v12, %v18864_v26  ;;  %v18866_v18 = vmax.f32 %v18865_v2, 0.0 }
 0x86e   : > { %v17002_v43 = vmax.f32 %v7034_v4, 0.0 }
 0x86f   : > { %v6900_v44 = vpop.f32.mrf.mxu2  ;;  %v6468_v55 = vadd.f32 %v16689_v23, %v6234_v29 }
 0x870   : > { %18863 = vst [vmem:[#allocation38_spill] sm:$0xff] %v17002_v43  ;;  %v7488_v24 = vpop.f32.mrf.mxu0  ;;  %v6935_v39 = vadd.f32 %v6900_v44, %v6701_v50  ;;  %v7244_v10 = vpack.c.bf16 %v17002_v43, %v16976_v14  ;;  %v7163_v4 = vld [vmem:[#allocation2 + $0x168] sm:$0xff] }
 0x871   : > { %7130 = vst [vmem:[#allocation2 + $0x171] sm:$0xff] %v17002_v43  ;;  %v7690_v49 = vpop.f32.mrf.mxu1  ;;  %v7489_v16 = vadd.f32 %v7488_v24, %v7351_v8  ;;  %v6702_v13 = vadd.f32 %v16726_v60, %v6468_v55  ;;  %v8008_v43 = vld [vmem:[#allocation2 + $0x49] sm:$0xff] }
 0x872   : > { %v6971_v51 = vadd.f32 %v16962_v45, %v6935_v39  ;;  %7393 = vmatmul.bf16.gmra.mxu3 %v7244_v10 }
 0x873   : > { %v17010_v21 = vadd.f32 %v7690_v49, %v7489_v16 }
 0x874   : > { %v17015_v62 = vadd.f32 %v6971_v51, %v18866_v18  ;;  %v18868_v51 = vld [vmem:[#allocation48_spill] sm:$0xff] }
 0x875   : > { %v7354_v12 = vpop.f32.mrf.mxu3  ;;  %v18869_v55 = vmax.f32 %v18868_v51, 0.0 }
 0x876   : > { %18867 = vst [vmem:[#allocation68_spill] sm:$0xff] %v17015_v62  ;;  %v18614_v6 = vmax.f32 %v17015_v62, 0.0 }
 0x877   : > { %v6902_v8 = vpop.f32.mrf.mxu2 }
 0x878   : > { %v7491_v50 = vpop.f32.mrf.mxu0  ;;  %v7164_v44 = vld [vmem:[#allocation2 + $0x170] sm:$0xff]  ;;  %7131 = vst [vmem:[#allocation2 + $0x181] sm:$0xff] %v18614_v6  ;;  %v6936_v39 = vadd.f32 %v6902_v8, %v6702_v13  ;;  %v8005_v13 = vld [vmem:[#allocation2 + $0x21] sm:$0xff] }
 0x879   : > { %v7566_v24 = vld [vmem:[#allocation2 + $0x16a] sm:$0xff]  ;;  %v7567_v26 = vld [vmem:[#allocation2 + $0x172] sm:$0xff]  ;;  %v7693_v23 = vpop.f32.mrf.mxu1  ;;  %v17021_v29 = vpack.c.bf16 %v7164_v44, %v7163_v4  ;;  %v7492_v16 = vadd.f32 %v7491_v50, %v7354_v12 }
 0x87a   : > { %v7583_v49 = vpack.c.bf16 %v7567_v26, %v7566_v24  ;;  %v6972_v10 = vadd.f32 %v16962_v45, %v6936_v39  ;;  %v8004_v12 = vld [vmem:[#allocation2 + $0x19] sm:$0xff] }
 0x87b   : > { %7530 = vmatmul.bf16.gmra.mxu0 %v17021_v29  ;;  %v17025_v60 = vadd.f32 %v7693_v23, %v7492_v16  ;;  %v8036_v26 = vpack.c.bf16 %v8005_v13, %v8004_v12  ;;  %v8239_v23 = vld [vmem:[#allocation2 + $0x22] sm:$0xff] }
 0x87c   : > { %7732 = vmatmul.bf16.gmra.mxu1 %v7583_v49  ;;  %v17029_v2 = vadd.f32 %v6972_v10, %v18869_v55  ;;  %7931 = vmatmul.bf16.gmra.mxu2 %v16794_v56  ;;  %v8238_v56 = vld [vmem:[#allocation2 + $0x1a] sm:$0xff]  ;;  %v8472_v55 = vld [vmem:[#allocation2 + $0x30] sm:$0xff] }
 0x87d   : > { %v7356_v18 = vpop.f32.mrf.mxu3  ;;  %v8473_v49 = vld [vmem:[#allocation2 + $0x38] sm:$0xff] }
 0x87e   : > { %18870 = vst [vmem:[#allocation62_spill] sm:$0xff] %v17029_v2  ;;  %v18616_v4 = vmax.f32 %v17029_v2, 0.0  ;;  %v8270_v2 = vpack.c.bf16 %v8239_v23, %v8238_v56  ;;  %v8241_v23 = vld [vmem:[#allocation2 + $0x3a] sm:$0xff] }
 0x87f   : > { %v7892_v44 = vpop.f32.mrf.mxu2 }
 0x880   : > { %v7493_v8 = vpop.f32.mrf.mxu0  ;;  %7132 = vst [vmem:[#allocation2 + $0x189] sm:$0xff] %v18616_v4  ;;  %v17036_v50 = vadd.f32 %v7892_v44, %v16745_v27  ;;  %v8504_v4 = vpack.c.bf16 %v8473_v49, %v8472_v55  ;;  %v13800_v27 = vld [vmem:[%s18559_s7 + $0x1f0] sm:$0xff]  ;;  %v8007_v44 = vld [vmem:[#allocation2 + $0x39] sm:$0xff]  ;;  %v8474_v55 = vld [vmem:[#allocation2 + $0x48] sm:$0xff] }
 0x881   : > { %v7695_v45 = vpop.f32.mrf.mxu1  ;;  %v7494_v24 = vadd.f32 %v7493_v8, %v7356_v18  ;;  %v13808_v18 = vld [vmem:[%s18559_s7 + $0x230] sm:$0xff]  ;;  %8820 = vmatpush.bf16.msrb.mxu2 %v13800_v27 }
 0x882   : > { %8125 = vmatmul.bf16.vlgmr.msra.gmra.mxu3 %v8036_v26 }
 0x883   : > { %v17038_v39 = vadd.f32 %v7695_v45, %v7494_v24  ;;  %9054 = vmatpush.bf16.msrb.mxu3 %v13808_v18  ;;  %v8006_v24 = vld [vmem:[#allocation2 + $0x31] sm:$0xff] }
 0x885   : > { %v7359_v16 = vpop.f32.mrf.mxu3 }
 0x887   : > { %v17040_v51 = vpop.f32.mrf.mxu2  ;;  %v7801_v63 = vld [vmem:[#allocation2 + $0x188] sm:$0xff] }
 0x888   : > { %v7496_v10 = vpop.f32.mrf.mxu0 }
 0x889   : > { %v7698_v6 = vpop.f32.mrf.mxu1  ;;  %v7497_v62 = vadd.f32 %v7496_v10, %v7359_v16 }
 0x88b   : > { %8359 = vmatmul.bf16.vlgmr.msra.gmra.mxu0 %v8270_v2  ;;  %v17048_v13 = vadd.f32 %v7698_v6, %v7497_v62  ;;  %v8240_v6 = vld [vmem:[#allocation2 + $0x32] sm:$0xff] }
 0x88c   : > { %8593 = vmatmul.bf16.vlgmr.msrb.gmra.mxu1 %v8504_v4  ;;  %7936 = vmatmul.bf16.gmra.mxu2 %v16824_v41  ;;  %v17054_v4 = vpack.c.bf16 %v8007_v44, %v8006_v24  ;;  %v8475_v41 = vld [vmem:[#allocation2 + $0x50] sm:$0xff] }
 0x88d   : > { %v7361_v8 = vpop.f32.mrf.mxu3  ;;  %v8009_v24 = vld [vmem:[#allocation2 + $0x51] sm:$0xff] }
 0x88f   : > { %v7897_v45 = vpop.f32.mrf.mxu2 }
 0x890   : > { %v7498_v12 = vpop.f32.mrf.mxu0  ;;  %v17052_v56 = vadd.f32 %v7897_v45, %v16801_v61  ;;  %v8271_v61 = vpack.c.bf16 %v8241_v23, %v8240_v6  ;;  %v8505_v45 = vpack.c.bf16 %v8475_v41, %v8474_v55  ;;  %v8242_v23 = vld [vmem:[#allocation2 + $0x4a] sm:$0xff]  ;;  %v8243_v41 = vld [vmem:[#allocation2 + $0x52] sm:$0xff] }
 0x891   : > { %v7700_v26 = vpop.f32.mrf.mxu1  ;;  %v7499_v2 = vadd.f32 %v7498_v12, %v7361_v8 }
 0x892   : > { %8130 = vmatmul.bf16.gmra.mxu3 %v17054_v4 }
 0x893   : > { %v17057_v62 = vadd.f32 %v7700_v26, %v7499_v2 }
 0x895   : > { %v7364_v49 = vpop.f32.mrf.mxu3 }
 0x897   : > { %v7899_v10 = vpop.f32.mrf.mxu2 }
 0x898   : > { %v7501_v16 = vpop.f32.mrf.mxu0  ;;  %v17060_v18 = vadd.f32 %v7899_v10, %v16816_v47  ;;  %v17068_v10 = vpack.c.bf16 %v8009_v24, %v8008_v43  ;;  %v13799_v43 = vld [vmem:[%s18559_s7 + $0x1e8] sm:$0xff] }
 0x899   : > { %v7703_v27 = vpop.f32.mrf.mxu1  ;;  %v7502_v8 = vadd.f32 %v7501_v16, %v7364_v49  ;;  %v8477_v49 = vld [vmem:[#allocation2 + $0x68] sm:$0xff]  ;;  %8821 = vmatpush.bf16.msrb.mxu2 %v13799_v43  ;;  %v8478_v43 = vld [vmem:[#allocation2 + $0x78] sm:$0xff] }
 0x89b   : > { %8364 = vmatmul.bf16.gmra.mxu0 %v8271_v61  ;;  %v17062_v44 = vadd.f32 %v7703_v27, %v7502_v8  ;;  %v8476_v27 = vld [vmem:[#allocation2 + $0x60] sm:$0xff] }
 0x89c   : > { %8598 = vmatmul.bf16.gmra.mxu1 %v8505_v45  ;;  %7941 = vmatmul.bf16.gmra.mxu2 %v16854_v20  ;;  %v8506_v8 = vpack.c.bf16 %v8477_v49, %v8476_v27  ;;  %v8244_v27 = vld [vmem:[#allocation2 + $0x62] sm:$0xff] }
 0x89d   : > { %v7366_v12 = vpop.f32.mrf.mxu3 }
 0x89f   : > { %v7902_v2 = vpop.f32.mrf.mxu2 }
 0x8a0   : > { %v7503_v26 = vpop.f32.mrf.mxu0  ;;  %v17066_v28 = vadd.f32 %v7902_v2, %v16828_v35  ;;  %v8272_v35 = vpack.c.bf16 %v8243_v41, %v8242_v23  ;;  %v8010_v23 = vld [vmem:[#allocation2 + $0x61] sm:$0xff] }
 0x8a1   : > { %v7705_v14 = vpop.f32.mrf.mxu1  ;;  %v7504_v47 = vadd.f32 %v7503_v26, %v7366_v12  ;;  %v8011_v26 = vld [vmem:[#allocation2 + $0x69] sm:$0xff] }
 0x8a2   : > { %8135 = vmatmul.bf16.gmra.mxu3 %v17068_v10 }
 0x8a3   : > { %v17071_v6 = vadd.f32 %v7705_v14, %v7504_v47  ;;  %v13807_v14 = vld [vmem:[%s18559_s7 + $0x228] sm:$0xff] }
 0x8a4   : > { %9055 = vmatpush.bf16.msrb.mxu3 %v13807_v14 }
 0x8a5   : > { %v7369_v20 = vpop.f32.mrf.mxu3 }
 0x8a7   : > { %v7904_v55 = vpop.f32.mrf.mxu2 }
 0x8a8   : > { %v7506_v16 = vpop.f32.mrf.mxu0  ;;  %v17074_v45 = vadd.f32 %v7904_v55, %v16846_v58 }
 0x8a9   : > { %v7708_v61 = vpop.f32.mrf.mxu1  ;;  %v7507_v12 = vadd.f32 %v7506_v16, %v7369_v20  ;;  %v17088_v16 = vpack.c.bf16 %v8011_v26, %v8010_v23  ;;  %v8013_v23 = vld [vmem:[#allocation2 + $0x81] sm:$0xff] }
 0x8ab   : > { %8369 = vmatmul.bf16.gmra.mxu0 %v8272_v35  ;;  %v17082_v24 = vadd.f32 %v7708_v61, %v7507_v12  ;;  %v8245_v61 = vld [vmem:[#allocation2 + $0x6a] sm:$0xff] }
 0x8ac   : > { %8603 = vmatmul.bf16.gmra.mxu1 %v8506_v8  ;;  %7946 = vmatmul.bf16.gmra.mxu2 %v16884_v0  ;;  %v8479_v0 = vld [vmem:[#allocation2 + $0x80] sm:$0xff] }
 0x8ad   : > { %v7371_v58 = vpop.f32.mrf.mxu3 }
 0x8af   : > { %v7907_v47 = vpop.f32.mrf.mxu2 }
 0x8b0   : > { %v7508_v2 = vpop.f32.mrf.mxu0  ;;  %v17086_v49 = vadd.f32 %v7907_v47, %v16861_v37  ;;  %v8273_v37 = vpack.c.bf16 %v8245_v61, %v8244_v27  ;;  %v8507_v47 = vpack.c.bf16 %v8479_v0, %v8478_v43  ;;  %v8246_v61 = vld [vmem:[#allocation2 + $0x7a] sm:$0xff]  ;;  %v8247_v0 = vld [vmem:[#allocation2 + $0x82] sm:$0xff] }
 0x8b1   : > { %v7710_v41 = vpop.f32.mrf.mxu1  ;;  %v7509_v20 = vadd.f32 %v7508_v2, %v7371_v58 }
 0x8b2   : > { %8140 = vmatmul.bf16.gmra.mxu3 %v17088_v16 }
 0x8b3   : > { %v17091_v55 = vadd.f32 %v7710_v41, %v7509_v20 }
 0x8b5   : > { %v7374_v35 = vpop.f32.mrf.mxu3 }
 0x8b7   : > { %v7909_v12 = vpop.f32.mrf.mxu2 }
 0x8b8   : > { %v7511_v8 = vpop.f32.mrf.mxu0  ;;  %v17094_v5 = vadd.f32 %v7909_v12, %v16876_v17  ;;  %v17102_v12 = vpack.c.bf16 %v8013_v23, %v8012_v46 }
 0x8b9   : > { %v7713_v14 = vpop.f32.mrf.mxu1  ;;  %v7512_v58 = vadd.f32 %v7511_v8, %v7374_v35  ;;  %v8481_v35 = vld [vmem:[#allocation2 + $0x98] sm:$0xff] }
 0x8bb   : > { %8374 = vmatmul.bf16.gmra.mxu0 %v8273_v37  ;;  %v17096_v26 = vadd.f32 %v7713_v14, %v7512_v58  ;;  %v8480_v14 = vld [vmem:[#allocation2 + $0x90] sm:$0xff] }
 0x8bc   : > { %8608 = vmatmul.bf16.gmra.mxu1 %v8507_v47  ;;  %7951 = vmatmul.bf16.gmra.mxu2 %v16923_v38  ;;  %v8508_v58 = vpack.c.bf16 %v8481_v35, %v8480_v14 }
 0x8bd   : > { %v7376_v2 = vpop.f32.mrf.mxu3 }
 0x8bf   : > { %v7912_v20 = vpop.f32.mrf.mxu2 }
 0x8c0   : > { %v7513_v41 = vpop.f32.mrf.mxu0  ;;  %v17100_v52 = vadd.f32 %v7912_v20, %v16888_v15  ;;  %v17110_v15 = vpack.c.bf16 %v8247_v0, %v8246_v61  ;;  %v8015_v20 = vld [vmem:[#allocation2 + $0x99] sm:$0xff]  ;;  %v8014_v0 = vld [vmem:[#allocation2 + $0x91] sm:$0xff] }
 0x8c1   : > { %v7715_v42 = vpop.f32.mrf.mxu1  ;;  %v7514_v17 = vadd.f32 %v7513_v41, %v7376_v2  ;;  %v13806_v2 = vld [vmem:[%s18559_s7 + $0x220] sm:$0xff] }
 0x8c2   : > { %8145 = vmatmul.bf16.gmra.mxu3 %v17102_v12 }
 0x8c3   : > { %v17105_v27 = vadd.f32 %v7715_v42, %v7514_v17  ;;  %v13798_v42 = vld [vmem:[%s18559_s7 + $0x1e0] sm:$0xff]  ;;  %9056 = vmatpush.bf16.msrb.mxu3 %v13806_v2 }
 0x8c4   : > { %8822 = vmatpush.bf16.msrb.mxu2 %v13798_v42 }
 0x8c5   : > { %v7379_v38 = vpop.f32.mrf.mxu3 }
 0x8c7   : > { %v7914_v43 = vpop.f32.mrf.mxu2 }
 0x8c8   : > { %v7516_v8 = vpop.f32.mrf.mxu0  ;;  %v17108_v47 = vadd.f32 %v7914_v43, %v16912_v3  ;;  %v13797_v3 = vld [vmem:[%s18559_s7 + $0x1d8] sm:$0xff]  ;;  %v17128_v43 = vpack.c.bf16 %v8015_v20, %v8014_v0 }
 0x8c9   : > { %v7718_v37 = vpop.f32.mrf.mxu1  ;;  %v7517_v46 = vadd.f32 %v7516_v8, %v7379_v38  ;;  %8823 = vmatpush.bf16.msrb.mxu2 %v13797_v3 }
 0x8cb   : > { %8379 = vmatmul.bf16.gmra.mxu0 %v17110_v15  ;;  %v17119_v23 = vadd.f32 %v7718_v37, %v7517_v46  ;;  %v13795_v37 = vld [vmem:[%s18559_s7 + $0x1c8] sm:$0xff]  ;;  %v8249_v46 = vld [vmem:[#allocation2 + $0x9a] sm:$0xff] }
 0x8cc   : > { %8613 = vmatmul.bf16.gmra.mxu1 %v8508_v58  ;;  %7956 = vmatmul.bf16.gmra.mxu2 %v16979_v36  ;;  %v13796_v36 = vld [vmem:[%s18559_s7 + $0x1d0] sm:$0xff] }
 0x8cd   : > { %v7381_v41 = vpop.f32.mrf.mxu3  ;;  %8824 = vmatpush.bf16.msrb.mxu2 %v13796_v36  ;;  %v8248_v58 = vld [vmem:[#allocation2 + $0x92] sm:$0xff] }
 0x8cf   : > { %v7917_v61 = vpop.f32.mrf.mxu2 }
 0x8d0   : > { %v7518_v17 = vpop.f32.mrf.mxu0  ;;  %v17126_v38 = vadd.f32 %v7917_v61, %v16933_v9  ;;  %v8483_v9 = vld [vmem:[#allocation2 + $0xb0] sm:$0xff]  ;;  %v17142_v61 = vpack.c.bf16 %v8249_v46, %v8248_v58 }
 0x8d1   : > { %v7720_v35 = vpop.f32.mrf.mxu1  ;;  %v7519_v8 = vadd.f32 %v7518_v17, %v7381_v41  ;;  %v8482_v41 = vld [vmem:[#allocation2 + $0xa8] sm:$0xff]  ;;  %8825 = vmatpush.bf16.msrb.mxu2 %v13795_v37 }
 0x8d2   : > { %8150 = vmatmul.bf16.gmra.mxu3 %v17128_v43  ;;  %v8509_v0 = vpack.c.bf16 %v8483_v9, %v8482_v41  ;;  %v8016_v58 = vld [vmem:[#allocation2 + $0xa9] sm:$0xff] }
 0x8d3   : > { %v17134_v14 = vadd.f32 %v7720_v35, %v7519_v8  ;;  %v13794_v8 = vld [vmem:[%s18559_s7 + $0x1c0] sm:$0xff] }
 0x8d5   : > { %v7384_v42 = vpop.f32.mrf.mxu3  ;;  %8826 = vmatpush.bf16.msrb.mxu2 %v13794_v8 }
 0x8d7   : > { %v7919_v3 = vpop.f32.mrf.mxu2 }
 0x8d8   : > { %v7521_v2 = vpop.f32.mrf.mxu0  ;;  %v17140_v17 = vadd.f32 %v7919_v3, %v16965_v54 }
 0x8d9   : > { %v7723_v20 = vpop.f32.mrf.mxu1  ;;  %v7522_v35 = vadd.f32 %v7521_v2, %v7384_v42  ;;  %v17154_v2 = vpack.c.bf16 %v8017_v32, %v8016_v58  ;;  %v13805_v58 = vld [vmem:[%s18559_s7 + $0x218] sm:$0xff] }
 0x8da   : > { %9057 = vmatpush.bf16.msrb.mxu3 %v13805_v58 }
 0x8db   : > { %8384 = vmatmul.bf16.gmra.mxu0 %v17142_v61  ;;  %v17148_v36 = vadd.f32 %v7723_v20, %v7522_v35  ;;  %v8250_v20 = vld [vmem:[#allocation2 + $0xaa] sm:$0xff] }
 0x8dc   : > { %8618 = vmatmul.bf16.gmra.mxu1 %v8509_v0  ;;  %7961 = vmatmul.bf16.gmra.mxu2 %v17021_v29  ;;  %v8251_v0 = vld [vmem:[#allocation2 + $0xb2] sm:$0xff]  ;;  %v8485_v35 = vld [vmem:[#allocation2 + $0xc8] sm:$0xff] }
 0x8dd   : > { %v7386_v37 = vpop.f32.mrf.mxu3  ;;  %v8510_v32 = vpack.c.bf16 %v8485_v35, %v8484_v33 }
 0x8df   : > { %v7922_v3 = vpop.f32.mrf.mxu2 }
 0x8e0   : > { %v7523_v54 = vpop.f32.mrf.mxu0  ;;  %v17152_v9 = vadd.f32 %v7922_v3, %v16995_v1  ;;  %v17162_v1 = vpack.c.bf16 %v8251_v0, %v8250_v20  ;;  %v8018_v20 = vld [vmem:[#allocation2 + $0xc1] sm:$0xff] }
 0x8e1   : > { %v7725_v46 = vpop.f32.mrf.mxu1  ;;  %v7524_v42 = vadd.f32 %v7523_v54, %v7386_v37  ;;  %v7800_v54 = vld [vmem:[#allocation2 + $0x180] sm:$0xff] }
 0x8e2   : > { %8155 = vmatmul.bf16.gmra.mxu3 %v17154_v2  ;;  %v17165_v3 = vpack.c.bf16 %v7801_v63, %v7800_v54  ;;  %v8487_v54 = vld [vmem:[#allocation2 + $0xe0] sm:$0xff] }
 0x8e3   : > { %v17157_v41 = vadd.f32 %v7725_v46, %v7524_v42 }
 0x8e5   : > { %v7389_v29 = vpop.f32.mrf.mxu3 }
 0x8e7   : > { %v7924_v57 = vpop.f32.mrf.mxu2 }
 0x8e8   : > { %v7526_v8 = vpop.f32.mrf.mxu0  ;;  %v17160_v22 = vadd.f32 %v7924_v57, %v17010_v21  ;;  %v8019_v21 = vld [vmem:[#allocation2 + $0xc9] sm:$0xff] }
 0x8e9   : > { %v7728_v25 = vpop.f32.mrf.mxu1  ;;  %v7527_v37 = vadd.f32 %v7526_v8, %v7389_v29  ;;  %v17176_v29 = vpack.c.bf16 %v8019_v21, %v8018_v20 }
 0x8eb   : > { %8389 = vmatmul.bf16.gmra.mxu0 %v17162_v1  ;;  %v17170_v46 = vadd.f32 %v7728_v25, %v7527_v37  ;;  %v13825_v25 = vld [vmem:[%s18561_s9 + $0x78] sm:$0xff]  ;;  %v8253_v37 = vld [vmem:[#allocation2 + $0xca] sm:$0xff] }
 0x8ec   : > { %8623 = vmatmul.bf16.gmra.mxu1 %v8510_v32  ;;  %7966 = vmatmul.bf16.gmra.mxu2 %v17165_v3  ;;  %v8252_v32 = vld [vmem:[#allocation2 + $0xc2] sm:$0xff] }
 0x8ed   : > { %v7391_v57 = vpop.f32.mrf.mxu3  ;;  %9451 = vmatpush.bf16.msrb.mxu0 %v13825_v25  ;;  %v17187_v21 = vpack.c.bf16 %v8253_v37, %v8252_v32  ;;  %v8021_v25 = vld [vmem:[#allocation2 + $0xe1] sm:$0xff] }
 0x8ee   : > { %v17196_v32 = vpack.c.bf16 %v8021_v25, %v8020_v7  ;;  %v8254_v37 = vld [vmem:[#allocation2 + $0xda] sm:$0xff] }
 0x8ef   : > { %v7927_v33 = vpop.f32.mrf.mxu2 }
 0x8f0   : > { %v7528_v42 = vpop.f32.mrf.mxu0  ;;  %v17174_v35 = vadd.f32 %v7927_v33, %v17025_v60  ;;  %v8486_v60 = vld [vmem:[#allocation2 + $0xd8] sm:$0xff] }
 0x8f1   : > { %v7730_v0 = vpop.f32.mrf.mxu1  ;;  %v7529_v63 = vadd.f32 %v7528_v42, %v7391_v57  ;;  %v8511_v42 = vpack.c.bf16 %v8487_v54, %v8486_v60  ;;  %v8255_v54 = vld [vmem:[#allocation2 + $0xe2] sm:$0xff]  ;;  %v7459_v60 = vadd.f32 %v16775_v40, %v16770_v19  ;;  %v13804_v19 = vld [vmem:[%s18559_s7 + $0x210] sm:$0xff] }
 0x8f2   : > { %8160 = vmatmul.bf16.gmra.mxu3 %v17176_v29 }
 0x8f3   : > { %v17182_v8 = vadd.f32 %v7730_v0, %v7529_v63  ;;  %v7739_v25 = vadd.f32 %v16780_v31, %v7459_v60  ;;  %9058 = vmatpush.bf16.msrb.mxu3 %v13804_v19  ;;  %v8022_v31 = vld [vmem:[#allocation2 + $0xf1] sm:$0xff]  ;;  %v8490_v19 = vld [vmem:[#allocation2 + $0x108] sm:$0xff] }
 0x8f5   : > { %v7394_v58 = vpop.f32.mrf.mxu3 }
 0x8f7   : > { %v7929_v48 = vpop.f32.mrf.mxu2 }
 0x8f8   : > { %v7531_v11 = vpop.f32.mrf.mxu0  ;;  %v17185_v57 = vadd.f32 %v7929_v48, %v17038_v39 }
 0x8f9   : > { %v7733_v33 = vpop.f32.mrf.mxu1  ;;  %v7532_v20 = vadd.f32 %v7531_v11, %v7394_v58  ;;  %v8489_v58 = vld [vmem:[#allocation2 + $0xf8] sm:$0xff] }
 0x8fb   : > { %8394 = vmatmul.bf16.gmra.mxu0 %v17187_v21  ;;  %v17190_v0 = vadd.f32 %v7733_v33, %v7532_v20 }
 0x8fc   : > { %8628 = vmatmul.bf16.gmra.mxu1 %v8511_v42  ;;  %8827 = vmatmul.bf16.vlgmr.msrb.gmra.mxu2 %v17054_v4 }
 0x8fd   : > { %v7396_v63 = vpop.f32.mrf.mxu3 }
 0x8ff   : > { %v7932_v53 = vpop.f32.mrf.mxu2 }
 0x900   : > { %v7533_v59 = vpop.f32.mrf.mxu0  ;;  %v17194_v48 = vadd.f32 %v7932_v53, %v17048_v13  ;;  %v8488_v53 = vld [vmem:[#allocation2 + $0xf0] sm:$0xff]  ;;  %v17207_v13 = vpack.c.bf16 %v8255_v54, %v8254_v37 }
 0x901   : > { %v7735_v30 = vpop.f32.mrf.mxu1  ;;  %v7534_v39 = vadd.f32 %v7533_v59, %v7396_v63 }
 0x902   : > { %8165 = vmatmul.bf16.gmra.mxu3 %v17196_v32 }
 0x903   : > { %v17199_v11 = vadd.f32 %v7735_v30, %v7534_v39  ;;  %v8512_v30 = vpack.c.bf16 %v8489_v58, %v8488_v53  ;;  %v8023_v39 = vld [vmem:[#allocation2 + $0xf9] sm:$0xff] }
 0x904   : > { %v8257_v53 = vld [vmem:[#allocation2 + $0xfa] sm:$0xff] }
 0x905   : > { %v8126_v4 = vpop.f32.mrf.mxu3 }
 0x906   : > { %v8206_v33 = vadd.f32 %v8126_v4, %v17036_v50  ;;  %v7973_v50 = vadd.f32 %v17040_v51, %v7739_v25  ;;  %v13824_v51 = vld [vmem:[%s18561_s9 + $0x70] sm:$0xff] }
 0x907   : > { %v7934_v42 = vpop.f32.mrf.mxu2  ;;  %9452 = vmatpush.bf16.msrb.mxu0 %v13824_v51 }
 0x908   : > { %v8360_v20 = vpop.f32.mrf.mxu0  ;;  %v17205_v59 = vadd.f32 %v7934_v42, %v17057_v62  ;;  %v17221_v42 = vpack.c.bf16 %v8023_v39, %v8022_v31 }
 0x909   : > { %v8594_v7 = vpop.f32.mrf.mxu1  ;;  %v8440_v63 = vadd.f32 %v8360_v20, %v8206_v33  ;;  %v8256_v20 = vld [vmem:[#allocation2 + $0xf2] sm:$0xff] }
 0x90a   : > { %v17233_v39 = vpack.c.bf16 %v8257_v53, %v8256_v20 }
 0x90b   : > { %8399 = vmatmul.bf16.gmra.mxu0 %v17207_v13  ;;  %v17214_v40 = vadd.f32 %v8594_v7, %v8440_v63  ;;  %v8491_v7 = vld [vmem:[#allocation2 + $0x110] sm:$0xff] }
 0x90c   : > { %8633 = vmatmul.bf16.gmra.mxu1 %v8512_v30  ;;  %8832 = vmatmul.bf16.gmra.mxu2 %v17068_v10 }
 0x90d   : > { %v8128_v62 = vpop.f32.mrf.mxu3 }
 0x90e   : > { %v8207_v37 = vadd.f32 %v8128_v62, %v7973_v50 }
 0x90f   : > { %v7937_v54 = vpop.f32.mrf.mxu2 }
 0x910   : > { %v8362_v58 = vpop.f32.mrf.mxu0  ;;  %v17219_v4 = vadd.f32 %v7937_v54, %v17062_v44 }
 0x911   : > { %v8596_v60 = vpop.f32.mrf.mxu1  ;;  %v8441_v33 = vadd.f32 %v8362_v58, %v8207_v37  ;;  %v8513_v37 = vpack.c.bf16 %v8491_v7, %v8490_v19 }
 0x912   : > { %8170 = vmatmul.bf16.gmra.mxu3 %v17221_v42 }
 0x913   : > { %v17227_v10 = vadd.f32 %v8596_v60, %v8441_v33 }
 0x915   : > { %v8131_v30 = vpop.f32.mrf.mxu3 }
 0x916   : > { %v8208_v44 = vadd.f32 %v8131_v30, %v17052_v56  ;;  %v8025_v56 = vld [vmem:[#allocation2 + $0x111] sm:$0xff] }
 0x917   : > { %v7939_v63 = vpop.f32.mrf.mxu2 }
 0x918   : > { %v8365_v25 = vpop.f32.mrf.mxu0  ;;  %v17231_v50 = vadd.f32 %v7939_v63, %v17071_v6  ;;  %v8024_v6 = vld [vmem:[#allocation2 + $0x109] sm:$0xff] }
 0x919   : > { %v8599_v62 = vpop.f32.mrf.mxu1  ;;  %v8442_v54 = vadd.f32 %v8365_v25, %v8208_v44  ;;  %v17243_v7 = vpack.c.bf16 %v8025_v56, %v8024_v6  ;;  %v8258_v63 = vld [vmem:[#allocation2 + $0x10a] sm:$0xff] }
 0x91a   : > { %v8493_v25 = vld [vmem:[#allocation2 + $0x128] sm:$0xff] }
 0x91b   : > { %8404 = vmatmul.bf16.gmra.mxu0 %v17233_v39  ;;  %v17236_v58 = vadd.f32 %v8599_v62, %v8442_v54  ;;  %v8492_v54 = vld [vmem:[#allocation2 + $0x120] sm:$0xff] }
 0x91c   : > { %8638 = vmatmul.bf16.gmra.mxu1 %v8513_v37  ;;  %8837 = vmatmul.bf16.gmra.mxu2 %v17088_v16  ;;  %v8259_v16 = vld [vmem:[#allocation2 + $0x112] sm:$0xff]  ;;  %v8514_v56 = vpack.c.bf16 %v8493_v25, %v8492_v54  ;;  %v8261_v54 = vld [vmem:[#allocation2 + $0x12a] sm:$0xff] }
 0x91d   : > { %v8133_v31 = vpop.f32.mrf.mxu3 }
 0x91e   : > { %v8209_v60 = vadd.f32 %v8133_v31, %v17060_v18 }
 0x91f   : > { %v7942_v33 = vpop.f32.mrf.mxu2 }
 0x920   : > { %v8367_v51 = vpop.f32.mrf.mxu0  ;;  %v17241_v30 = vadd.f32 %v7942_v33, %v17082_v24 }
 0x921   : > { %v8601_v20 = vpop.f32.mrf.mxu1  ;;  %v8443_v53 = vadd.f32 %v8367_v51, %v8209_v60  ;;  %v8280_v60 = vpack.c.bf16 %v8259_v16, %v8258_v63  ;;  %v13803_v51 = vld [vmem:[%s18559_s7 + $0x208] sm:$0xff] }
 0x922   : > { %8175 = vmatmul.bf16.gmra.mxu3 %v17243_v7  ;;  %v8026_v63 = vld [vmem:[#allocation2 + $0x121] sm:$0xff] }
 0x923   : > { %v17246_v44 = vadd.f32 %v8601_v20, %v8443_v53  ;;  %9059 = vmatpush.bf16.msrb.mxu3 %v13803_v51  ;;  %v8027_v20 = vld [vmem:[#allocation2 + $0x129] sm:$0xff]  ;;  %v8494_v51 = vld [vmem:[#allocation2 + $0x138] sm:$0xff] }
 0x925   : > { %v8136_v19 = vpop.f32.mrf.mxu3 }
 0x926   : > { %v8210_v18 = vadd.f32 %v8136_v19, %v17066_v28 }
 0x927   : > { %v7944_v62 = vpop.f32.mrf.mxu2 }
 0x928   : > { %v8370_v37 = vpop.f32.mrf.mxu0  ;;  %v17250_v24 = vadd.f32 %v7944_v62, %v17091_v55  ;;  %v17262_v62 = vpack.c.bf16 %v8027_v20, %v8026_v63 }
 0x929   : > { %v8604_v31 = vpop.f32.mrf.mxu1  ;;  %v8444_v33 = vadd.f32 %v8370_v37, %v8210_v18  ;;  %v13823_v37 = vld [vmem:[%s18561_s9 + $0x68] sm:$0xff] }
 0x92a   : > { %9453 = vmatpush.bf16.msrb.mxu0 %v13823_v37 }
 0x92b   : > { %8409 = vmatmul.bf16.gmra.mxu0 %v8280_v60  ;;  %v17255_v6 = vadd.f32 %v8604_v31, %v8444_v33  ;;  %v8495_v31 = vld [vmem:[#allocation2 + $0x140] sm:$0xff] }
 0x92c   : > { %8643 = vmatmul.bf16.gmra.mxu1 %v8514_v56  ;;  %8842 = vmatmul.bf16.gmra.mxu2 %v17102_v12 }
 0x92d   : > { %v8138_v28 = vpop.f32.mrf.mxu3 }
 0x92e   : > { %v8211_v55 = vadd.f32 %v8138_v28, %v17074_v45  ;;  %v8260_v45 = vld [vmem:[#allocation2 + $0x122] sm:$0xff] }
 0x92f   : > { %v7947_v53 = vpop.f32.mrf.mxu2 }
 0x930   : > { %v8372_v19 = vpop.f32.mrf.mxu0  ;;  %v17260_v16 = vadd.f32 %v7947_v53, %v17096_v26  ;;  %v8515_v53 = vpack.c.bf16 %v8495_v31, %v8494_v51 }
 0x931   : > { %v8606_v25 = vpop.f32.mrf.mxu1  ;;  %v8445_v18 = vadd.f32 %v8372_v19, %v8211_v55  ;;  %v8281_v55 = vpack.c.bf16 %v8261_v54, %v8260_v45 }
 0x932   : > { %8180 = vmatmul.bf16.gmra.mxu3 %v17262_v62 }
 0x933   : > { %v17268_v12 = vadd.f32 %v8606_v25, %v8445_v18  ;;  %v8029_v18 = vld [vmem:[#allocation2 + $0x141] sm:$0xff] }
 0x934   : > { %v17281_v54 = vpack.c.bf16 %v8029_v18, %v8028_v34 }
 0x935   : > { %v8141_v60 = vpop.f32.mrf.mxu3 }
 0x936   : > { %v8212_v26 = vadd.f32 %v8141_v60, %v17086_v49 }
 0x937   : > { %v7949_v56 = vpop.f32.mrf.mxu2 }
 0x938   : > { %v8375_v33 = vpop.f32.mrf.mxu0  ;;  %v17272_v28 = vadd.f32 %v7949_v56, %v17105_v27 }
 0x939   : > { %v8609_v20 = vpop.f32.mrf.mxu1  ;;  %v8446_v19 = vadd.f32 %v8375_v33, %v8212_v26  ;;  %v8262_v26 = vld [vmem:[#allocation2 + $0x13a] sm:$0xff] }
 0x93a   : > { %v8497_v33 = vld [vmem:[#allocation2 + $0x158] sm:$0xff] }
 0x93b   : > { %8414 = vmatmul.bf16.gmra.mxu0 %v8281_v55  ;;  %v17274_v63 = vadd.f32 %v8609_v20, %v8446_v19 }
 0x93c   : > { %8648 = vmatmul.bf16.gmra.mxu1 %v8515_v53  ;;  %8847 = vmatmul.bf16.gmra.mxu2 %v17128_v43  ;;  %v8263_v43 = vld [vmem:[#allocation2 + $0x142] sm:$0xff]  ;;  %v8496_v53 = vld [vmem:[#allocation2 + $0x150] sm:$0xff] }
 0x93d   : > { %v8143_v25 = vpop.f32.mrf.mxu3  ;;  %v8282_v19 = vpack.c.bf16 %v8263_v43, %v8262_v26  ;;  %v8030_v26 = vld [vmem:[#allocation2 + $0x151] sm:$0xff] }
 0x93e   : > { %v8213_v49 = vadd.f32 %v8143_v25, %v17094_v5  ;;  %v8516_v25 = vpack.c.bf16 %v8497_v33, %v8496_v53 }
 0x93f   : > { %v7952_v37 = vpop.f32.mrf.mxu2 }
 0x940   : > { %v8377_v60 = vpop.f32.mrf.mxu0  ;;  %v17279_v27 = vadd.f32 %v7952_v37, %v17119_v23 }
 0x941   : > { %v8611_v56 = vpop.f32.mrf.mxu1  ;;  %v8447_v45 = vadd.f32 %v8377_v60, %v8213_v49  ;;  %v13802_v49 = vld [vmem:[%s18559_s7 + $0x200] sm:$0xff] }
 0x942   : > { %8185 = vmatmul.bf16.gmra.mxu3 %v17281_v54  ;;  %v8031_v60 = vld [vmem:[#allocation2 + $0x159] sm:$0xff] }
 0x943   : > { %v17284_v31 = vadd.f32 %v8611_v56, %v8447_v45  ;;  %9060 = vmatpush.bf16.msrb.mxu3 %v13802_v49  ;;  %v17304_v33 = vpack.c.bf16 %v8031_v60, %v8030_v26  ;;  %v8033_v60 = vld [vmem:[#allocation2 + $0x171] sm:$0xff] }
 0x945   : > { %v8146_v51 = vpop.f32.mrf.mxu3 }
 0x946   : > { %v8214_v5 = vadd.f32 %v8146_v51, %v17100_v52  ;;  %v13822_v51 = vld [vmem:[%s18561_s9 + $0x60] sm:$0xff] }
 0x947   : > { %v7954_v20 = vpop.f32.mrf.mxu2  ;;  %9454 = vmatpush.bf16.msrb.mxu0 %v13822_v51  ;;  %v8032_v51 = vld [vmem:[#allocation2 + $0x169] sm:$0xff] }
 0x948   : > { %v8380_v55 = vpop.f32.mrf.mxu0  ;;  %v17288_v23 = vadd.f32 %v7954_v20, %v17134_v14 }
 0x949   : > { %v8448_v34 = vadd.f32 %v8380_v55, %v8214_v5  ;;  %v8614_v18 = vpop.f32.mrf.mxu1  ;;  %v8265_v5 = vld [vmem:[#allocation2 + $0x15a] sm:$0xff] }
 0x94b   : > { %8419 = vmatmul.bf16.gmra.mxu0 %v8282_v19  ;;  %v17293_v37 = vadd.f32 %v8614_v18, %v8448_v34 }
 0x94c   : > { %8653 = vmatmul.bf16.gmra.mxu1 %v8516_v25  ;;  %8852 = vmatmul.bf16.gmra.mxu2 %v17154_v2  ;;  %v8264_v2 = vld [vmem:[#allocation2 + $0x152] sm:$0xff]  ;;  %v8498_v25 = vld [vmem:[#allocation2 + $0x168] sm:$0xff] }
 0x94d   : > { %v8148_v52 = vpop.f32.mrf.mxu3  ;;  %v8283_v34 = vpack.c.bf16 %v8265_v5, %v8264_v2  ;;  %v17325_v2 = vpack.c.bf16 %v8033_v60, %v8032_v51  ;;  %v8266_v5 = vld [vmem:[#allocation2 + $0x16a] sm:$0xff]  ;;  %v8034_v60 = vld [vmem:[#allocation2 + $0x181] sm:$0xff] }
 0x94e   : > { %v17297_v14 = vadd.f32 %v8148_v52, %v17108_v47  ;;  %v8499_v47 = vld [vmem:[#allocation2 + $0x170] sm:$0xff]  ;;  %v8503_v51 = vld [vmem:[#allocation2 + $0x1a0] sm:$0xff] }
 0x94f   : > { %v7957_v56 = vpop.f32.mrf.mxu2  ;;  %v8517_v18 = vpack.c.bf16 %v8499_v47, %v8498_v25  ;;  %v8267_v47 = vld [vmem:[#allocation2 + $0x172] sm:$0xff] }
 0x950   : > { %v17299_v45 = vpop.f32.mrf.mxu0  ;;  %v17302_v43 = vadd.f32 %v7957_v56, %v17148_v36 }
 0x952   : > { %8190 = vmatmul.bf16.gmra.mxu3 %v17304_v33 }
 0x955   : > { %v8151_v20 = vpop.f32.mrf.mxu3 }
 0x956   : > { %v8216_v55 = vadd.f32 %v8151_v20, %v17126_v38 }
 0x957   : > { %v7959_v53 = vpop.f32.mrf.mxu2 }
 0x958   : > { %v8385_v19 = vpop.f32.mrf.mxu0  ;;  %v17312_v36 = vadd.f32 %v7959_v53, %v17157_v41 }
 0x959   : > { %v17314_v49 = vadd.f32 %v8385_v19, %v8216_v55  ;;  %v8284_v19 = vpack.c.bf16 %v8267_v47, %v8266_v5  ;;  %v8269_v5 = vld [vmem:[#allocation2 + $0x18a] sm:$0xff] }
 0x95b   : > { %8424 = vmatmul.bf16.gmra.mxu0 %v8283_v34  ;;  %v8035_v34 = vld [vmem:[#allocation2 + $0x189] sm:$0xff] }
 0x95c   : > { %8658 = vmatmul.bf16.gmra.mxu1 %v8517_v18  ;;  %8857 = vmatmul.bf16.gmra.mxu2 %v17176_v29 }
 0x95d   : > { %v8153_v52 = vpop.f32.mrf.mxu3 }
 0x95e   : > { %v17318_v56 = vadd.f32 %v8153_v52, %v17140_v17 }
 0x95f   : > { %v7962_v38 = vpop.f32.mrf.mxu2 }
 0x960   : > { %v17320_v26 = vpop.f32.mrf.mxu0  ;;  %v17323_v41 = vadd.f32 %v7962_v38, %v17170_v46  ;;  %v17344_v38 = vpack.c.bf16 %v8035_v34, %v8034_v60  ;;  %v8941_v60 = vld [vmem:[#allocation2 + $0x3a] sm:$0xff] }
 0x962   : > { %8195 = vmatmul.bf16.gmra.mxu3 %v17325_v2 }
 0x965   : > { %v8156_v20 = vpop.f32.mrf.mxu3 }
 0x966   : > { %v8218_v29 = vadd.f32 %v8156_v20, %v17152_v9 }
 0x967   : > { %v7964_v55 = vpop.f32.mrf.mxu2 }
 0x968   : > { %v8390_v53 = vpop.f32.mrf.mxu0  ;;  %v17330_v17 = vadd.f32 %v7964_v55, %v17182_v8 }
 0x969   : > { %v17332_v25 = vadd.f32 %v8390_v53, %v8218_v29 }
 0x96b   : > { %8429 = vmatmul.bf16.gmra.mxu0 %v8284_v19 }
 0x96c   : > { %8663 = vmatmul.bf16.gmra.mxu1 %v17165_v3  ;;  %8862 = vmatmul.bf16.gmra.mxu2 %v17196_v32  ;;  %v13821_v3 = vld [vmem:[%s18561_s9 + $0x58] sm:$0xff] }
 0x96d   : > { %v8158_v46 = vpop.f32.mrf.mxu3  ;;  %9455 = vmatpush.bf16.msrb.mxu0 %v13821_v3  ;;  %v8502_v32 = vld [vmem:[#allocation2 + $0x198] sm:$0xff] }
 0x96e   : > { %v17337_v18 = vadd.f32 %v8158_v46, %v17160_v22  ;;  %v8268_v22 = vld [vmem:[#allocation2 + $0x182] sm:$0xff]  ;;  %v8519_v29 = vpack.c.bf16 %v8503_v51, %v8502_v32  ;;  %v17362_v51 = vpop.f32.mrf.mxu1 }
 0x96f   : > { %v7967_v52 = vpop.f32.mrf.mxu2  ;;  %v8285_v19 = vpack.c.bf16 %v8269_v5, %v8268_v22 }
 0x970   : > { %v17339_v9 = vpop.f32.mrf.mxu0  ;;  %v17342_v8 = vadd.f32 %v7967_v52, %v17190_v0  ;;  %v8940_v52 = vld [vmem:[#allocation2 + $0x32] sm:$0xff] }
 0x971   : > { %v8972_v22 = vpack.c.bf16 %v8941_v60, %v8940_v52 }
 0x972   : > { %8200 = vmatmul.bf16.gmra.mxu3 %v17344_v38 }
 0x975   : > { %v8161_v47 = vpop.f32.mrf.mxu3 }
 0x976   : > { %v8220_v20 = vadd.f32 %v8161_v47, %v17174_v35 }
 0x977   : > { %v7969_v55 = vpop.f32.mrf.mxu2 }
 0x978   : > { %v8395_v0 = vpop.f32.mrf.mxu0  ;;  %v17352_v53 = vadd.f32 %v7969_v55, %v17199_v11  ;;  %v17373_v55 = vpop.f32.mrf.mxu1 }
 0x979   : > { %v17354_v46 = vadd.f32 %v8395_v0, %v8220_v20 }
 0x97b   : > { %8434 = vmatmul.bf16.gmra.mxu0 %v8285_v19  ;;  %v8942_v19 = vld [vmem:[#allocation2 + $0x4a] sm:$0xff] }
 0x97c   : > { %8668 = vmatmul.bf16.gmra.mxu1 %v8519_v29  ;;  %8867 = vmatmul.bf16.gmra.mxu2 %v17221_v42 }
 0x97d   : > { %v8163_v34 = vpop.f32.mrf.mxu3 }
 0x97e   : > { %v17358_v3 = vadd.f32 %v8163_v34, %v17185_v57 }
 0x97f   : > { %v8828_v32 = vpop.f32.mrf.mxu2 }
 0x980   : > { %v17360_v35 = vpop.f32.mrf.mxu0  ;;  %v17365_v11 = vadd.f32 %v8828_v32, %v17214_v40  ;;  %v8943_v40 = vld [vmem:[#allocation2 + $0x52] sm:$0xff] }
 0x981   : > { %v13820_v32 = vld [vmem:[%s18561_s9 + $0x50] sm:$0xff] }
 0x982   : > { %9061 = vmatmul.bf16.vlgmr.msrb.gmra.mxu3 %v8972_v22  ;;  %9456 = vmatpush.bf16.msrb.mxu0 %v13820_v32 }
 0x985   : > { %v8166_v5 = vpop.f32.mrf.mxu3 }
 0x986   : > { %v8222_v47 = vadd.f32 %v8166_v5, %v17194_v48 }
 0x987   : > { %v8830_v20 = vpop.f32.mrf.mxu2 }
 0x988   : > { %v8400_v42 = vpop.f32.mrf.mxu0  ;;  %v17369_v29 = vadd.f32 %v8830_v20, %v17227_v10  ;;  %v8973_v10 = vpack.c.bf16 %v8943_v40, %v8942_v19  ;;  %v8945_v19 = vld [vmem:[#allocation2 + $0x6a] sm:$0xff] }
 0x989   : > { %v17371_v57 = vadd.f32 %v8400_v42, %v8222_v47 }
 0x98c   : > { %8872 = vmatmul.bf16.gmra.mxu2 %v17243_v7  ;;  %v17387_v7 = vpop.f32.mrf.mxu1 }
 0x98d   : > { %v8168_v0 = vpop.f32.mrf.mxu3 }
 0x98e   : > { %v17377_v34 = vadd.f32 %v8168_v0, %v17205_v59  ;;  %v8944_v0 = vld [vmem:[#allocation2 + $0x62] sm:$0xff] }
 0x98f   : > { %v8833_v48 = vpop.f32.mrf.mxu2 }
 0x990   : > { %v17379_v52 = vpop.f32.mrf.mxu0  ;;  %v17382_v60 = vadd.f32 %v8833_v48, %v17236_v58 }
 0x992   : > { %9066 = vmatmul.bf16.gmra.mxu3 %v8973_v10 }
 0x994   : > { %v17396_v40 = vpop.f32.mrf.mxu1 }
 0x995   : > { %v8171_v22 = vpop.f32.mrf.mxu3 }
 0x996   : > { %v8224_v5 = vadd.f32 %v8171_v22, %v17219_v4 }
 0x997   : > { %v8835_v47 = vpop.f32.mrf.mxu2 }
 0x998   : > { %v8405_v59 = vpop.f32.mrf.mxu0  ;;  %v17391_v42 = vadd.f32 %v8835_v47, %v17246_v44  ;;  %v8974_v44 = vpack.c.bf16 %v8945_v19, %v8944_v0 }
 0x999   : > { %v17393_v20 = vadd.f32 %v8405_v59, %v8224_v5 }
 0x99b   : > { %18871 = vst [vmem:[#allocation60_spill] sm:$0xff] %v17393_v20 }
 0x99c   : > { %8877 = vmatmul.bf16.gmra.mxu2 %v17262_v62  ;;  %v17407_v47 = vpop.f32.mrf.mxu1 }
 0x99d   : > { %v8173_v58 = vpop.f32.mrf.mxu3 }
 0x99e   : > { %v17399_v48 = vadd.f32 %v8173_v58, %v17231_v50 }
 0x99f   : > { %v8838_v4 = vpop.f32.mrf.mxu2 }
 0x9a0   : > { %v17401_v10 = vpop.f32.mrf.mxu0  ;;  %v17404_v32 = vadd.f32 %v8838_v4, %v17255_v6  ;;  %v13819_v4 = vld [vmem:[%s18561_s9 + $0x48] sm:$0xff] }
 0x9a1   : > { %9457 = vmatpush.bf16.msrb.mxu0 %v13819_v4  ;;  %v8449_v4 = vadd.f32 %v17299_v45, %v17297_v14 }
 0x9a2   : > { %9071 = vmatmul.bf16.gmra.mxu3 %v8974_v44 }
 0x9a5   : > { %v8176_v22 = vpop.f32.mrf.mxu3 }
 0x9a6   : > { %v8226_v5 = vadd.f32 %v8176_v22, %v17241_v30 }
 0x9a7   : > { %v8840_v59 = vpop.f32.mrf.mxu2 }
 0x9a8   : > { %v8410_v62 = vpop.f32.mrf.mxu0  ;;  %v17410_v20 = vadd.f32 %v8840_v59, %v17268_v12  ;;  %v17426_v12 = vpop.f32.mrf.mxu1 }
 0x9a9   : > { %v17412_v50 = vadd.f32 %v8410_v62, %v8226_v5 }
 0x9ac   : > { %8882 = vmatmul.bf16.gmra.mxu2 %v17281_v54 }
 0x9ad   : > { %v8178_v58 = vpop.f32.mrf.mxu3 }
 0x9ae   : > { %v17416_v6 = vadd.f32 %v8178_v58, %v17250_v24 }
 0x9af   : > { %v8843_v19 = vpop.f32.mrf.mxu2 }
 0x9b0   : > { %v17418_v0 = vpop.f32.mrf.mxu0  ;;  %v17421_v30 = vadd.f32 %v8843_v19, %v17274_v63  ;;  %v17435_v63 = vpop.f32.mrf.mxu1 }
 0x9b2   : > { %9076 = vmatmul.bf16.gmra.mxu3 %v17110_v15 }
 0x9b5   : > { %v8181_v54 = vpop.f32.mrf.mxu3 }
 0x9b6   : > { %v8228_v44 = vadd.f32 %v8181_v54, %v17260_v16 }
 0x9b7   : > { %v8845_v22 = vpop.f32.mrf.mxu2 }
 0x9b8   : > { %v8415_v24 = vpop.f32.mrf.mxu0  ;;  %v17431_v5 = vadd.f32 %v8845_v22, %v17284_v31  ;;  %v13833_v31 = vld [vmem:[%s18561_s9 + $0xb8] sm:$0xff]  ;;  %v17458_v54 = vpop.f32.mrf.mxu1 }
 0x9b9   : > { %v17433_v62 = vadd.f32 %v8415_v24, %v8228_v44  ;;  %9790 = vmatpush.bf16.msra.mxu2 %v13833_v31  ;;  %v8683_v44 = vadd.f32 %v17362_v51, %v8449_v4  ;;  %v13830_v51 = vld [vmem:[%s18561_s9 + $0xa0] sm:$0xff] }
 0x9bb   : > { %18872 = vst [vmem:[#allocation39_spill] sm:$0xff] %v17433_v62 }
 0x9bc   : > { %8887 = vmatmul.bf16.gmra.mxu2 %v17304_v33 }
 0x9bd   : > { %v8183_v59 = vpop.f32.mrf.mxu3 }
 0x9be   : > { %v17439_v58 = vadd.f32 %v8183_v59, %v17272_v28  ;;  %v13817_v28 = vld [vmem:[%s18561_s9 + $0x38] sm:$0xff] }
 0x9bf   : > { %v8848_v19 = vpop.f32.mrf.mxu2  ;;  %9588 = vmatpush.bf16.msra.mxu1 %v13817_v28  ;;  %v13814_v28 = vld [vmem:[%s18561_s9 + $0x20] sm:$0xff] }
 0x9c0   : > { %18873 = vst [vmem:[#allocation63_spill] sm:$0xff] %v17439_v58  ;;  %v17441_v15 = vpop.f32.mrf.mxu0  ;;  %v17444_v16 = vadd.f32 %v8848_v19, %v17293_v37  ;;  %v13832_v37 = vld [vmem:[%s18561_s9 + $0xb0] sm:$0xff]  ;;  %v13831_v19 = vld [vmem:[%s18561_s9 + $0xa8] sm:$0xff] }
 0x9c1   : > { %18874 = vst [vmem:[#allocation53_spill] sm:$0xff] %v17441_v15  ;;  %9791 = vmatpush.bf16.msra.mxu2 %v13832_v37 }
 0x9c2   : > { %9081 = vmatmul.bf16.gmra.mxu3 %v17142_v61  ;;  %v13816_v61 = vld [vmem:[%s18561_s9 + $0x30] sm:$0xff] }
 0x9c3   : > { %9589 = vmatpush.bf16.msra.mxu1 %v13816_v61  ;;  %v13828_v61 = vld [vmem:[%s18561_s9 + $0x90] sm:$0xff] }
 0x9c5   : > { %v8186_v33 = vpop.f32.mrf.mxu3  ;;  %9792 = vmatpush.bf16.msra.mxu2 %v13831_v19  ;;  %v13812_v19 = vld [vmem:[%s18561_s9 + $0x10] sm:$0xff] }
 0x9c6   : > { %v8230_v24 = vadd.f32 %v8186_v33, %v17279_v27  ;;  %v13815_v27 = vld [vmem:[%s18561_s9 + $0x28] sm:$0xff] }
 0x9c7   : > { %v8850_v45 = vpop.f32.mrf.mxu2  ;;  %9590 = vmatpush.bf16.msra.mxu1 %v13815_v27 }
 0x9c8   : > { %v8420_v14 = vpop.f32.mrf.mxu0  ;;  %v17465_v22 = vadd.f32 %v8850_v45, %v8683_v44  ;;  %v17489_v44 = vpop.f32.mrf.mxu1 }
 0x9c9   : > { %v17467_v59 = vadd.f32 %v8420_v14, %v8230_v24  ;;  %9793 = vmatpush.bf16.msra.mxu2 %v13830_v51  ;;  %v13813_v24 = vld [vmem:[%s18561_s9 + $0x18] sm:$0xff] }
 0x9cb   : > { %18875 = vst [vmem:[#allocation77_spill] sm:$0xff] %v17467_v59  ;;  %9591 = vmatpush.bf16.msra.mxu1 %v13814_v28 }
 0x9cc   : > { %8892 = vmatmul.bf16.gmra.mxu2 %v17325_v2  ;;  %v13818_v2 = vld [vmem:[%s18561_s9 + $0x40] sm:$0xff] }
 0x9cd   : > { %v8188_v31 = vpop.f32.mrf.mxu3  ;;  %9458 = vmatpush.bf16.msrb.mxu0 %v13818_v2  ;;  %v13826_v2 = vld [vmem:[%s18561_s9 + $0x80] sm:$0xff] }
 0x9ce   : > { %v17480_v4 = vadd.f32 %v8188_v31, %v17288_v23  ;;  %v13829_v23 = vld [vmem:[%s18561_s9 + $0x98] sm:$0xff]  ;;  %v13827_v31 = vld [vmem:[%s18561_s9 + $0x88] sm:$0xff] }
 0x9cf   : > { %v17487_v33 = vpop.f32.mrf.mxu2  ;;  %9794 = vmatpush.bf16.msra.mxu2 %v13829_v23  ;;  %9592 = vmatpush.bf16.msra.mxu1 %v13813_v24 }
 0x9d0   : > { %18876 = vst [vmem:[#allocation40_spill] sm:$0xff] %v17480_v4  ;;  %v17485_v37 = vpop.f32.mrf.mxu0  ;;  %v17515_v28 = vpop.f32.mrf.mxu1 }
 0x9d1   : > { %18877 = vst [vmem:[#allocation75_spill] sm:$0xff] %v17485_v37 }
 0x9d2   : > { %9086 = vmatmul.bf16.gmra.mxu3 %v17162_v1 }
 0x9d3   : > { %9795 = vmatpush.bf16.msra.mxu2 %v13828_v61  ;;  %9593 = vmatpush.bf16.msra.mxu1 %v13812_v19  ;;  %v13810_v61 = vld [vmem:[%s18561_s9] sm:$0xff]  ;;  %v9339_v19 = vld [vmem:[#allocation2 + $0x9] sm:$0xff] }
 0x9d5   : > { %v8191_v14 = vpop.f32.mrf.mxu3 }
 0x9d6   : > { %v8232_v45 = vadd.f32 %v8191_v14, %v17302_v43  ;;  %v13811_v43 = vld [vmem:[%s18561_s9 + $0x8] sm:$0xff] }
 0x9d7   : > { %v17508_v1 = vpop.f32.mrf.mxu2  ;;  %9796 = vmatpush.bf16.msra.mxu2 %v13827_v31  ;;  %9594 = vmatpush.bf16.msra.mxu1 %v13811_v43  ;;  %v9275_v43 = vld [vmem:[#allocation2 + $0x8] sm:$0xff] }
 0x9d8   : > { %v8425_v27 = vpop.f32.mrf.mxu0 }
 0x9d9   : > { %v17510_v51 = vadd.f32 %v8425_v27, %v8232_v45  ;;  %v9274_v27 = vld [vmem:[#allocation2] sm:$0xff] }
 0x9db   : > { %18878 = vst [vmem:[#allocation51_spill] sm:$0xff] %v17510_v51  ;;  %9797 = vmatpush.bf16.msra.mxu2 %v13826_v2  ;;  %9595 = vmatpush.bf16.msra.mxu1 %v13810_v61  ;;  %v9306_v51 = vpack.c.bf16 %v9275_v43, %v9274_v27 }
 0x9dc   : > { %8897 = vmatmul.bf16.gmra.mxu2 %v17344_v38  ;;  %v9338_v38 = vld [vmem:[#allocation2 + $0x1] sm:$0xff] }
 0x9dd   : > { %v8193_v23 = vpop.f32.mrf.mxu3  ;;  %v9370_v31 = vpack.c.bf16 %v9339_v19, %v9338_v38 }
 0x9de   : > { %v17525_v24 = vadd.f32 %v8193_v23, %v17312_v36  ;;  %v17535_v36 = vpop.f32.mrf.mxu1  ;;  %9596 = vmatmul.bf16.vlgmr.msra.gmra.mxu1 %v9306_v51  ;;  %v8736_v23 = vld [vmem:[#allocation2 + $0x199] sm:$0xff] }
 0x9df   : > { %v17532_v45 = vpop.f32.mrf.mxu2  ;;  %9459 = vmatmul.bf16.vlgmr.msrb.gmra.mxu0 %v9370_v31 }
 0x9e0   : > { %18879 = vst [vmem:[#allocation78_spill] sm:$0xff] %v17525_v24  ;;  %v17530_v14 = vpop.f32.mrf.mxu0  ;;  %v8737_v24 = vld [vmem:[#allocation2 + $0x1a1] sm:$0xff] }
 0x9e1   : > { %18880 = vst [vmem:[#allocation41_spill] sm:$0xff] %v17530_v14  ;;  %v8753_v61 = vpack.c.bf16 %v8737_v24, %v8736_v23  ;;  %v9677_v24 = vld [vmem:[#allocation2 + $0x2] sm:$0xff] }
 0x9e2   : > { %9091 = vmatmul.bf16.gmra.mxu3 %v17187_v21  ;;  %v13841_v21 = vld [vmem:[%s18561_s9 + $0xf8] sm:$0xff] }
 0x9e3   : > { %10024 = vmatpush.bf16.msra.mxu3 %v13841_v21 }
 0x9e5   : > { %v8196_v37 = vpop.f32.mrf.mxu3 }
 0x9e6   : > { %v8234_v14 = vadd.f32 %v8196_v37, %v17323_v41  ;;  %v17545_v19 = vpop.f32.mrf.mxu1 }
 0x9e7   : > { %v17538_v2 = vpop.f32.mrf.mxu2 }
 0x9e8   : > { %v8430_v4 = vpop.f32.mrf.mxu0 }
 0x9e9   : > { %v17540_v59 = vadd.f32 %v8430_v4, %v8234_v14  ;;  %v13849_v4 = vld [vmem:[%s18561_s9 + $0x138] sm:$0xff]  ;;  %v9678_v14 = vld [vmem:[#allocation2 + $0xa] sm:$0xff] }
 0x9ea   : > { %10258 = vmatpush.bf16.msra.mxu0 %v13849_v4 }
 0x9eb   : > { %18881 = vst [vmem:[#allocation55_spill] sm:$0xff] %v17540_v59  ;;  %v13848_v59 = vld [vmem:[%s18561_s9 + $0x130] sm:$0xff] }
 0x9ec   : > { %8902 = vmatmul.bf16.gmra.mxu2 %v8753_v61  ;;  %v9709_v61 = vpack.c.bf16 %v9678_v14, %v9677_v24 }
 0x9ed   : > { %v8198_v38 = vpop.f32.mrf.mxu3 }
 0x9ee   : > { %v17548_v51 = vadd.f32 %v8198_v38, %v17330_v17  ;;  %v17563_v21 = vpop.f32.mrf.mxu1  ;;  %10259 = vmatpush.bf16.msra.mxu0 %v13848_v59 }
 0x9ef   : > { %v17552_v41 = vpop.f32.mrf.mxu2 }
 0x9f0   : > { %18882 = vst [vmem:[#allocation56_spill] sm:$0xff] %v17548_v51  ;;  %v17550_v27 = vpop.f32.mrf.mxu0 }
 0x9f1   : > { %18883 = vst [vmem:[#allocation79_spill] sm:$0xff] %v17550_v27 }
 0x9f2   : > { %9096 = vmatmul.bf16.gmra.mxu3 %v17207_v13 }
 0x9f5   : > { %v8201_v37 = vpop.f32.mrf.mxu3 }
 0x9f6   : > { %v8236_v31 = vadd.f32 %v8201_v37, %v17342_v8  ;;  %v17571_v51 = vpop.f32.mrf.mxu1  ;;  %v17576_v8 = vld [vmem:[%s18560_s8] ss:$0 sm:$0xff] }
 0x9f7   : > { %v17559_v17 = vpop.f32.mrf.mxu2  ;;  %18886 = vst [vmem:[#allocation73_spill] sm:$0xff] %v17571_v51  ;;  %v8960_v51 = vld [vmem:[#allocation2 + $0x122] sm:$0xff] }
 0x9f8   : > { %v8435_v43 = vpop.f32.mrf.mxu0 }
 0x9f9   : > { %v17561_v23 = vadd.f32 %v8435_v43, %v8236_v31 }
 0x9fb   : > { %18884 = vst [vmem:[#allocation42_spill] sm:$0xff] %v17561_v23 }
 0x9fc   : > { %9798 = vmatmul.bf16.vlgmr.msra.gmra.mxu2 %v9709_v61  ;;  %v8958_v61 = vld [vmem:[#allocation2 + $0x10a] sm:$0xff] }
 0x9fd   : > { %v8203_v13 = vpop.f32.mrf.mxu3 }
 0x9fe   : > { %v17566_v38 = vadd.f32 %v8203_v13, %v17352_v53  ;;  %v17585_v31 = vpop.f32.mrf.mxu1  ;;  %v8959_v13 = vld [vmem:[#allocation2 + $0x112] sm:$0xff] }
 0x9ff   : > { %v17568_v27 = vpop.f32.mrf.mxu2  ;;  %18887 = vst [vmem:[#allocation43_spill] sm:$0xff] %v17585_v31 }
 0xa00   : > { %18885 = vst [vmem:[#allocation54_spill] sm:$0xff] %v17566_v38 }
 0xa02   : > { %9101 = vmatmul.bf16.gmra.mxu3 %v17233_v39  ;;  %v13840_v39 = vld [vmem:[%s18561_s9 + $0xf0] sm:$0xff] }
 0xa03   : > { %10025 = vmatpush.bf16.msra.mxu3 %v13840_v39 }
 0xa05   : > { %v9062_v4 = vpop.f32.mrf.mxu3 }
 0xa06   : > { %v9142_v37 = vadd.f32 %v9062_v4, %v17365_v11  ;;  %v8981_v4 = vpack.c.bf16 %v8959_v13, %v8958_v61  ;;  %v17595_v58 = vpop.f32.mrf.mxu1 }
 0xa07   : > { %v17579_v24 = vpop.f32.mrf.mxu2  ;;  %18888 = vst [vmem:[#allocation58_spill] sm:$0xff] %v17595_v58 }
 0xa08   : > { %v9178_v14 = vadd.f32 %v17576_v8, %v9142_v37 }
 0xa0a   : > { %v9210_v53 = vmax.f32 %v9178_v14, 0.0 }
 0xa0c   : > { %9242 = vst [vmem:[#allocation2 + $0x19] sm:$0xff] %v9210_v53 }
 0xa0d   : > { %v9064_v43 = vpop.f32.mrf.mxu3 }
 0xa0e   : > { %v9143_v38 = vadd.f32 %v9064_v43, %v17369_v29 }
 0xa0f   : > { %v17588_v23 = vpop.f32.mrf.mxu2 }
 0xa10   : > { %v9179_v11 = vadd.f32 %v17576_v8, %v9143_v38 }
 0xa12   : > { %v9211_v37 = vmax.f32 %v9179_v11, 0.0  ;;  %9106 = vmatmul.bf16.gmra.mxu3 %v8981_v4 }
 0xa13   : > { %v9276_v43 = vld [vmem:[#allocation2 + $0x18] sm:$0xff] }
 0xa14   : > { %9243 = vst [vmem:[#allocation2 + $0x21] sm:$0xff] %v9211_v37  ;;  %v9371_v14 = vpack.c.bf16 %v9211_v37, %v9210_v53 }
 0xa15   : > { %v9067_v31 = vpop.f32.mrf.mxu3 }
 0xa16   : > { %v9144_v15 = vadd.f32 %v9067_v31, %v17382_v60  ;;  %9464 = vmatmul.bf16.gmra.mxu0 %v9371_v14  ;;  %v8961_v60 = vld [vmem:[#allocation2 + $0x12a] sm:$0xff] }
 0xa17   : > { %v17597_v29 = vpop.f32.mrf.mxu2  ;;  %v8982_v14 = vpack.c.bf16 %v8961_v60, %v8960_v51 }
 0xa18   : > { %v9180_v38 = vadd.f32 %v17576_v8, %v9144_v15 }
 0xa1a   : > { %v9212_v39 = vmax.f32 %v9180_v38, 0.0  ;;  %v17607_v38 = vpop.f32.mrf.mxu1 }
 0xa1b   : > { %v9277_v61 = vld [vmem:[#allocation2 + $0x20] sm:$0xff]  ;;  %18889 = vst [vmem:[#allocation71_spill] sm:$0xff] %v17607_v38 }
 0xa1c   : > { %v9679_v13 = vld [vmem:[#allocation2 + $0x1a] sm:$0xff]  ;;  %v9680_v53 = vld [vmem:[#allocation2 + $0x22] sm:$0xff]  ;;  %9244 = vst [vmem:[#allocation2 + $0x31] sm:$0xff] %v9212_v39  ;;  %v17600_v11 = vpack.c.bf16 %v9277_v61, %v9276_v43 }
 0xa1d   : > { %v9710_v4 = vpack.c.bf16 %v9680_v53, %v9679_v13  ;;  %v9069_v37 = vpop.f32.mrf.mxu3 }
 0xa1e   : > { %v9145_v31 = vadd.f32 %v9069_v37, %v17391_v42  ;;  %9601 = vmatmul.bf16.gmra.mxu1 %v17600_v11 }
 0xa1f   : > { %9803 = vmatmul.bf16.gmra.mxu2 %v9710_v4  ;;  %v17604_v59 = vpop.f32.mrf.mxu2 }
 0xa20   : > { %v9181_v15 = vadd.f32 %v17576_v8, %v9145_v31 }
 0xa22   : > { %v9213_v58 = vmax.f32 %v9181_v15, 0.0  ;;  %9111 = vmatmul.bf16.gmra.mxu3 %v8982_v14  ;;  %v17613_v62 = vpop.f32.mrf.mxu1 }
 0xa23   : > { %v9278_v37 = vld [vmem:[#allocation2 + $0x30] sm:$0xff]  ;;  %18890 = vst [vmem:[#allocation44_spill] sm:$0xff] %v17613_v62 }
 0xa24   : > { %9245 = vst [vmem:[#allocation2 + $0x39] sm:$0xff] %v9213_v58  ;;  %v9372_v43 = vpack.c.bf16 %v9213_v58, %v9212_v39  ;;  %v8962_v39 = vld [vmem:[#allocation2 + $0x13a] sm:$0xff] }
 0xa25   : > { %v9072_v61 = vpop.f32.mrf.mxu3 }
 0xa26   : > { %v9146_v13 = vadd.f32 %v9072_v61, %v17404_v32  ;;  %9469 = vmatmul.bf16.gmra.mxu0 %v9372_v43  ;;  %v13839_v32 = vld [vmem:[%s18561_s9 + $0xe8] sm:$0xff] }
 0xa27   : > { %v17610_v53 = vpop.f32.mrf.mxu2  ;;  %v8963_v43 = vld [vmem:[#allocation2 + $0x142] sm:$0xff]  ;;  %10026 = vmatpush.bf16.msra.mxu3 %v13839_v32 }
 0xa28   : > { %v9182_v42 = vadd.f32 %v17576_v8, %v9146_v13 }
 0xa2a   : > { %v9214_v4 = vmax.f32 %v9182_v42, 0.0  ;;  %v17628_v62 = vpop.f32.mrf.mxu1 }
 0xa2b   : > { %v9279_v31 = vld [vmem:[#allocation2 + $0x38] sm:$0xff]  ;;  %18892 = vst [vmem:[#allocation19_spill] sm:$0xff] %v17628_v62 }
 0xa2c   : > { %v9681_v51 = vld [vmem:[#allocation2 + $0x32] sm:$0xff]  ;;  %v9682_v60 = vld [vmem:[#allocation2 + $0x3a] sm:$0xff]  ;;  %9246 = vst [vmem:[#allocation2 + $0x49] sm:$0xff] %v9214_v4  ;;  %v17615_v15 = vpack.c.bf16 %v9279_v31, %v9278_v37  ;;  %v8983_v37 = vpack.c.bf16 %v8963_v43, %v8962_v39 }
 0xa2d   : > { %v9711_v14 = vpack.c.bf16 %v9682_v60, %v9681_v51  ;;  %v9074_v58 = vpop.f32.mrf.mxu3  ;;  %v13847_v60 = vld [vmem:[%s18561_s9 + $0x128] sm:$0xff]  ;;  %v8964_v62 = vld [vmem:[#allocation2 + $0x152] sm:$0xff] }
 0xa2e   : > { %v9147_v61 = vadd.f32 %v9074_v58, %v17410_v20  ;;  %9606 = vmatmul.bf16.gmra.mxu1 %v17615_v15  ;;  %10260 = vmatpush.bf16.msra.mxu0 %v13847_v60 }
 0xa2f   : > { %9808 = vmatmul.bf16.gmra.mxu2 %v9711_v14  ;;  %v17622_v13 = vpop.f32.mrf.mxu2 }
 0xa30   : > { %18891 = vst [vmem:[#allocation72_spill] sm:$0xff] %v17622_v13  ;;  %v9183_v42 = vadd.f32 %v17576_v8, %v9147_v61  ;;  %v8965_v13 = vld [vmem:[#allocation2 + $0x15a] sm:$0xff] }
 0xa32   : > { %v9215_v31 = vmax.f32 %v9183_v42, 0.0  ;;  %9116 = vmatmul.bf16.gmra.mxu3 %v8983_v37 }
 0xa33   : > { %v9280_v43 = vld [vmem:[#allocation2 + $0x48] sm:$0xff] }
 0xa34   : > { %9247 = vst [vmem:[#allocation2 + $0x51] sm:$0xff] %v9215_v31  ;;  %v9373_v51 = vpack.c.bf16 %v9215_v31, %v9214_v4 }
 0xa35   : > { %v9077_v20 = vpop.f32.mrf.mxu3 }
 0xa36   : > { %v9148_v58 = vadd.f32 %v9077_v20, %v17421_v30  ;;  %9474 = vmatmul.bf16.gmra.mxu0 %v9373_v51  ;;  %v17638_v51 = vpop.f32.mrf.mxu1 }
 0xa37   : > { %v17631_v14 = vpop.f32.mrf.mxu2  ;;  %18894 = vst [vmem:[#allocation59_spill] sm:$0xff] %v17638_v51 }
 0xa38   : > { %18893 = vst [vmem:[#allocation45_spill] sm:$0xff] %v17631_v14  ;;  %v9184_v32 = vadd.f32 %v17576_v8, %v9148_v58  ;;  %v8984_v58 = vpack.c.bf16 %v8965_v13, %v8964_v62 }
 0xa3a   : > { %v9216_v39 = vmax.f32 %v9184_v32, 0.0 }
 0xa3b   : > { %v9281_v61 = vld [vmem:[#allocation2 + $0x50] sm:$0xff] }
 0xa3c   : > { %v9683_v42 = vld [vmem:[#allocation2 + $0x4a] sm:$0xff]  ;;  %v9684_v4 = vld [vmem:[#allocation2 + $0x52] sm:$0xff]  ;;  %9248 = vst [vmem:[#allocation2 + $0x61] sm:$0xff] %v9216_v39  ;;  %v17634_v37 = vpack.c.bf16 %v9281_v61, %v9280_v43 }
 0xa3d   : > { %v9712_v31 = vpack.c.bf16 %v9684_v4, %v9683_v42  ;;  %v9079_v38 = vpop.f32.mrf.mxu3 }
 0xa3e   : > { %v9149_v30 = vadd.f32 %v9079_v38, %v17431_v5  ;;  %9611 = vmatmul.bf16.gmra.mxu1 %v17634_v37  ;;  %v17647_v38 = vpop.f32.mrf.mxu1 }
 0xa3f   : > { %9813 = vmatmul.bf16.gmra.mxu2 %v9712_v31  ;;  %v17640_v60 = vpop.f32.mrf.mxu2 }
 0xa40   : > { %18895 = vst [vmem:[#allocation57_spill] sm:$0xff] %v17640_v60  ;;  %v9185_v20 = vadd.f32 %v17576_v8, %v9149_v30 }
 0xa42   : > { %v9217_v32 = vmax.f32 %v9185_v20, 0.0  ;;  %9121 = vmatmul.bf16.gmra.mxu3 %v8984_v58  ;;  %v8966_v20 = vld [vmem:[#allocation2 + $0x16a] sm:$0xff]  ;;  %v8967_v58 = vld [vmem:[#allocation2 + $0x172] sm:$0xff] }
 0xa43   : > { %v9282_v51 = vld [vmem:[#allocation2 + $0x60] sm:$0xff] }
 0xa44   : > { %9249 = vst [vmem:[#allocation2 + $0x69] sm:$0xff] %v9217_v32  ;;  %v9374_v43 = vpack.c.bf16 %v9217_v32, %v9216_v39 }
 0xa45   : > { %v9082_v61 = vpop.f32.mrf.mxu3 }
 0xa46   : > { %v9150_v42 = vadd.f32 %v9082_v61, %v17444_v16  ;;  %9479 = vmatmul.bf16.gmra.mxu0 %v9374_v43  ;;  %v13838_v16 = vld [vmem:[%s18561_s9 + $0xe0] sm:$0xff] }
 0xa47   : > { %v17644_v4 = vpop.f32.mrf.mxu2  ;;  %10027 = vmatpush.bf16.msra.mxu3 %v13838_v16  ;;  %v8451_v16 = vadd.f32 %v17320_v26, %v17318_v56  ;;  %v13836_v56 = vld [vmem:[%s18561_s9 + $0xd0] sm:$0xff]  ;;  %v17679_v26 = vpop.f32.mrf.mxu0 }
 0xa48   : > { %v9186_v5 = vadd.f32 %v17576_v8, %v9150_v42 }
 0xa4a   : > { %v9218_v31 = vmax.f32 %v9186_v5, 0.0 }
 0xa4b   : > { %v9283_v60 = vld [vmem:[#allocation2 + $0x68] sm:$0xff] }
 0xa4c   : > { %v9685_v14 = vld [vmem:[#allocation2 + $0x62] sm:$0xff]  ;;  %v9686_v30 = vld [vmem:[#allocation2 + $0x6a] sm:$0xff]  ;;  %9250 = vst [vmem:[#allocation2 + $0x79] sm:$0xff] %v9218_v31  ;;  %v17649_v62 = vpack.c.bf16 %v9283_v60, %v9282_v51  ;;  %v8985_v51 = vpack.c.bf16 %v8967_v58, %v8966_v20  ;;  %v17659_v60 = vpop.f32.mrf.mxu1 }
 0xa4d   : > { %v9713_v13 = vpack.c.bf16 %v9686_v30, %v9685_v14  ;;  %v9084_v39 = vpop.f32.mrf.mxu3  ;;  %v8684_v14 = vadd.f32 %v17373_v55, %v17314_v49  ;;  %v13846_v30 = vld [vmem:[%s18561_s9 + $0x120] sm:$0xff]  ;;  %v13837_v49 = vld [vmem:[%s18561_s9 + $0xd8] sm:$0xff] }
 0xa4e   : > { %v9151_v32 = vadd.f32 %v9084_v39, %v17465_v22  ;;  %9616 = vmatmul.bf16.gmra.mxu1 %v17649_v62  ;;  %10261 = vmatpush.bf16.msra.mxu0 %v13846_v30 }
 0xa4f   : > { %9818 = vmatmul.bf16.gmra.mxu2 %v9713_v13  ;;  %v17656_v43 = vpop.f32.mrf.mxu2  ;;  %v8918_v5 = vadd.f32 %v17487_v33, %v8684_v14  ;;  %10028 = vmatpush.bf16.msra.mxu3 %v13837_v49 }
 0xa50   : > { %v9187_v61 = vadd.f32 %v17576_v8, %v9151_v32 }
 0xa52   : > { %v9219_v42 = vmax.f32 %v9187_v61, 0.0  ;;  %9126 = vmatmul.bf16.gmra.mxu3 %v8985_v51 }
 0xa53   : > { %v9284_v58 = vld [vmem:[#allocation2 + $0x78] sm:$0xff]  ;;  %10029 = vmatpush.bf16.msra.mxu3 %v13836_v56  ;;  %v13834_v56 = vld [vmem:[%s18561_s9 + $0xc0] sm:$0xff] }
 0xa54   : > { %9251 = vst [vmem:[#allocation2 + $0x81] sm:$0xff] %v9219_v42  ;;  %v9375_v22 = vpack.c.bf16 %v9219_v42, %v9218_v31  ;;  %v8685_v31 = vadd.f32 %v17387_v7, %v8451_v16  ;;  %v17681_v32 = vpop.f32.mrf.mxu1  ;;  %v13835_v7 = vld [vmem:[%s18561_s9 + $0xc8] sm:$0xff] }
 0xa55   : > { %v9087_v13 = vpop.f32.mrf.mxu3  ;;  %v8969_v16 = vld [vmem:[#allocation2 + $0x18a] sm:$0xff] }
 0xa56   : > { %v9152_v39 = vadd.f32 %v9087_v13, %v8918_v5  ;;  %9484 = vmatmul.bf16.gmra.mxu0 %v9375_v22  ;;  %v8919_v42 = vadd.f32 %v17508_v1, %v8685_v31  ;;  %v8968_v13 = vld [vmem:[#allocation2 + $0x182] sm:$0xff]  ;;  %v8686_v31 = vadd.f32 %v17396_v40, %v17332_v25 }
 0xa57   : > { %v17672_v55 = vpop.f32.mrf.mxu2  ;;  %10030 = vmatpush.bf16.msra.mxu3 %v13835_v7  ;;  %v8453_v7 = vadd.f32 %v17339_v9, %v17337_v18 }
 0xa58   : > { %v9188_v33 = vadd.f32 %v17576_v8, %v9152_v39 }
 0xa5a   : > { %v9220_v20 = vmax.f32 %v9188_v33, 0.0  ;;  %v8986_v33 = vpack.c.bf16 %v8969_v16, %v8968_v13  ;;  %v8687_v16 = vadd.f32 %v17407_v47, %v8453_v7 }
 0xa5b   : > { %v9285_v61 = vld [vmem:[#allocation2 + $0x80] sm:$0xff]  ;;  %10031 = vmatpush.bf16.msra.mxu3 %v13834_v56 }
 0xa5c   : > { %v9687_v51 = vld [vmem:[#allocation2 + $0x7a] sm:$0xff]  ;;  %v9688_v14 = vld [vmem:[#allocation2 + $0x82] sm:$0xff]  ;;  %9252 = vst [vmem:[#allocation2 + $0x91] sm:$0xff] %v9220_v20  ;;  %v17684_v5 = vpack.c.bf16 %v9285_v61, %v9284_v58  ;;  %v9460_v61 = vpop.f32.mrf.mxu0  ;;  %v8921_v56 = vadd.f32 %v17538_v2, %v8687_v16 }
 0xa5d   : > { %v9714_v22 = vpack.c.bf16 %v9688_v14, %v9687_v51  ;;  %v9089_v30 = vpop.f32.mrf.mxu3  ;;  %v9597_v51 = vpop.f32.mrf.mxu1  ;;  %v8920_v14 = vadd.f32 %v17532_v45, %v8686_v31  ;;  %v8971_v45 = vld [vmem:[#allocation2 + $0x1a2] sm:$0xff] }
 0xa5e   : > { %v9153_v39 = vadd.f32 %v9089_v30, %v8919_v42  ;;  %9621 = vmatmul.bf16.gmra.mxu1 %v17684_v5 }
 0xa5f   : > { %9823 = vmatmul.bf16.gmra.mxu2 %v9714_v22  ;;  %v17690_v49 = vpop.f32.mrf.mxu2  ;;  %v9598_v22 = vadd.f32 %v9597_v51, %v9460_v61 }
 0xa60   : > { %v9189_v1 = vadd.f32 %v17576_v8, %v9153_v39 }
 0xa62   : > { %v9221_v58 = vmax.f32 %v9189_v1, 0.0  ;;  %9131 = vmatmul.bf16.gmra.mxu3 %v8986_v33  ;;  %v8970_v33 = vld [vmem:[#allocation2 + $0x19a] sm:$0xff] }
 0xa63   : > { %v9286_v1 = vld [vmem:[#allocation2 + $0x90] sm:$0xff] }
 0xa64   : > { %9253 = vst [vmem:[#allocation2 + $0x99] sm:$0xff] %v9221_v58  ;;  %v9376_v42 = vpack.c.bf16 %v9221_v58, %v9220_v20 }
 0xa65   : > { %v9092_v30 = vpop.f32.mrf.mxu3 }
 0xa66   : > { %v9154_v13 = vadd.f32 %v9092_v30, %v8920_v14  ;;  %9489 = vmatmul.bf16.gmra.mxu0 %v9376_v42  ;;  %v8987_v14 = vpack.c.bf16 %v8971_v45, %v8970_v33  ;;  %v8688_v30 = vadd.f32 %v17426_v12, %v17354_v46 }
 0xa67   : > { %v17701_v25 = vpop.f32.mrf.mxu2 }
 0xa68   : > { %v9190_v40 = vadd.f32 %v17576_v8, %v9154_v13  ;;  %v8922_v2 = vadd.f32 %v17552_v41, %v8688_v30 }
 0xa6a   : > { %v9222_v39 = vmax.f32 %v9190_v40, 0.0  ;;  %v13845_v40 = vld [vmem:[%s18561_s9 + $0x118] sm:$0xff] }
 0xa6b   : > { %v9287_v31 = vld [vmem:[#allocation2 + $0x98] sm:$0xff]  ;;  %10262 = vmatpush.bf16.msra.mxu0 %v13845_v40 }
 0xa6c   : > { %v9689_v20 = vld [vmem:[#allocation2 + $0x92] sm:$0xff]  ;;  %v9690_v58 = vld [vmem:[#allocation2 + $0x9a] sm:$0xff]  ;;  %9254 = vst [vmem:[#allocation2 + $0xa9] sm:$0xff] %v9222_v39  ;;  %v17706_v61 = vpack.c.bf16 %v9287_v31, %v9286_v1  ;;  %v8455_v1 = vadd.f32 %v17360_v35, %v17358_v3 }
 0xa6d   : > { %v9715_v18 = vpack.c.bf16 %v9690_v58, %v9689_v20  ;;  %v9094_v9 = vpop.f32.mrf.mxu3 }
 0xa6e   : > { %v9155_v51 = vadd.f32 %v9094_v9, %v8921_v56  ;;  %9626 = vmatmul.bf16.gmra.mxu1 %v17706_v61  ;;  %v8689_v12 = vadd.f32 %v17435_v63, %v8455_v1 }
 0xa6f   : > { %9828 = vmatmul.bf16.gmra.mxu2 %v9715_v18  ;;  %v17709_v47 = vpop.f32.mrf.mxu2 }
 0xa70   : > { %v9191_v42 = vadd.f32 %v17576_v8, %v9155_v51  ;;  %v8923_v56 = vadd.f32 %v17559_v17, %v8689_v12 }
 0xa72   : > { %v9223_v7 = vmax.f32 %v9191_v42, 0.0  ;;  %9136 = vmatmul.bf16.gmra.mxu3 %v8987_v14  ;;  %v8690_v42 = vadd.f32 %v17458_v54, %v17371_v57  ;;  %v17739_v57 = vpop.f32.mrf.mxu0 }
 0xa73   : > { %v9288_v31 = vld [vmem:[#allocation2 + $0xa8] sm:$0xff] }
 0xa74   : > { %9255 = vst [vmem:[#allocation2 + $0xb1] sm:$0xff] %v9223_v7  ;;  %v9377_v13 = vpack.c.bf16 %v9223_v7, %v9222_v39  ;;  %v8924_v17 = vadd.f32 %v17568_v27, %v8690_v42 }
 0xa75   : > { %v9097_v16 = vpop.f32.mrf.mxu3 }
 0xa76   : > { %v9156_v33 = vadd.f32 %v9097_v16, %v8922_v2  ;;  %9494 = vmatmul.bf16.gmra.mxu0 %v9377_v13  ;;  %v8457_v13 = vadd.f32 %v17379_v52, %v17377_v34 }
 0xa77   : > { %v17720_v45 = vpop.f32.mrf.mxu2 }
 0xa78   : > { %v9192_v46 = vadd.f32 %v17576_v8, %v9156_v33 }
 0xa7a   : > { %v9224_v41 = vmax.f32 %v9192_v46, 0.0 }
 0xa7b   : > { %v9289_v39 = vld [vmem:[#allocation2 + $0xb0] sm:$0xff] }
 0xa7c   : > { %v9691_v20 = vld [vmem:[#allocation2 + $0xaa] sm:$0xff]  ;;  %v9692_v58 = vld [vmem:[#allocation2 + $0xb2] sm:$0xff]  ;;  %9256 = vst [vmem:[#allocation2 + $0xc1] sm:$0xff] %v9224_v41  ;;  %v17725_v18 = vpack.c.bf16 %v9289_v39, %v9288_v31 }
 0xa7d   : > { %v9716_v3 = vpack.c.bf16 %v9692_v58, %v9691_v20  ;;  %v9099_v35 = vpop.f32.mrf.mxu3  ;;  %v18896_v31 = vld [vmem:[#allocation60_spill] sm:$0xff]  ;;  %v17749_v58 = vpop.f32.mrf.mxu1 }
 0xa7e   : > { %v9157_v9 = vadd.f32 %v9099_v35, %v8923_v56  ;;  %9631 = vmatmul.bf16.gmra.mxu1 %v17725_v18  ;;  %v8692_v39 = vadd.f32 %v17515_v28, %v18896_v31  ;;  %v13844_v35 = vld [vmem:[%s18561_s9 + $0x110] sm:$0xff] }
 0xa7f   : > { %9833 = vmatmul.bf16.gmra.mxu2 %v9716_v3  ;;  %v9799_v51 = vpop.f32.mrf.mxu2  ;;  %10263 = vmatpush.bf16.msra.mxu0 %v13844_v35 }
 0xa80   : > { %v9193_v14 = vadd.f32 %v17576_v8, %v9157_v9  ;;  %v17729_v63 = vadd.f32 %v9799_v51, %v9598_v22  ;;  %v8691_v22 = vadd.f32 %v17489_v44, %v8457_v13  ;;  %v8926_v56 = vadd.f32 %v17588_v23, %v8692_v39 }
 0xa81   : > { %v8459_v51 = vadd.f32 %v17401_v10, %v17399_v48  ;;  %v8461_v39 = vadd.f32 %v17418_v0, %v17416_v6 }
 0xa82   : > { %v9225_v30 = vmax.f32 %v9193_v14, 0.0  ;;  %10032 = vmatmul.bf16.vlgmr.msra.gmra.mxu3 %v17600_v11  ;;  %v8925_v27 = vadd.f32 %v17579_v24, %v8691_v22 }
 0xa83   : > { %v9290_v33 = vld [vmem:[#allocation2 + $0xc0] sm:$0xff]  ;;  %v8693_v42 = vadd.f32 %v17535_v36, %v8459_v51 }
 0xa84   : > { %9257 = vst [vmem:[#allocation2 + $0xc9] sm:$0xff] %v9225_v30  ;;  %v9378_v7 = vpack.c.bf16 %v9225_v30, %v9224_v41 }
 0xa85   : > { %v9102_v2 = vpop.f32.mrf.mxu3 }
 0xa86   : > { %v9158_v40 = vadd.f32 %v9102_v2, %v8924_v17  ;;  %9499 = vmatmul.bf16.gmra.mxu0 %v9378_v7 }
 0xa88   : > { %v9194_v16 = vadd.f32 %v17576_v8, %v9158_v40 }
 0xa8a   : > { %v9226_v1 = vmax.f32 %v9194_v16, 0.0  ;;  %v8927_v16 = vadd.f32 %v17597_v29, %v8693_v42 }
 0xa8b   : > { %v9291_v54 = vld [vmem:[#allocation2 + $0xc8] sm:$0xff] }
 0xa8c   : > { %v9693_v11 = vld [vmem:[#allocation2 + $0xc2] sm:$0xff]  ;;  %v9694_v46 = vld [vmem:[#allocation2 + $0xca] sm:$0xff]  ;;  %9258 = vst [vmem:[#allocation2 + $0xd9] sm:$0xff] %v9226_v1  ;;  %v17742_v12 = vpack.c.bf16 %v9291_v54, %v9290_v33 }
 0xa8d   : > { %v9717_v41 = vpack.c.bf16 %v9694_v46, %v9693_v11  ;;  %v9104_v34 = vpop.f32.mrf.mxu3  ;;  %v8694_v11 = vadd.f32 %v17545_v19, %v17412_v50 }
 0xa8e   : > { %v9159_v52 = vadd.f32 %v9104_v34, %v8925_v27  ;;  %9636 = vmatmul.bf16.gmra.mxu1 %v17742_v12 }
 0xa8f   : > { %9838 = vmatmul.bf16.gmra.mxu2 %v9717_v41  ;;  %v8928_v34 = vadd.f32 %v17604_v59, %v8694_v11 }
 0xa90   : > { %v9195_v44 = vadd.f32 %v17576_v8, %v9159_v52 }
 0xa92   : > { %v9227_v20 = vmax.f32 %v9195_v44, 0.0  ;;  %10037 = vmatmul.bf16.gmra.mxu3 %v17615_v15  ;;  %v17758_v15 = vpop.f32.mrf.mxu2 }
 0xa93   : > { %v9465_v24 = vpop.f32.mrf.mxu0  ;;  %v9292_v30 = vld [vmem:[#allocation2 + $0xd8] sm:$0xff] }
 0xa94   : > { %9259 = vst [vmem:[#allocation2 + $0xe1] sm:$0xff] %v9227_v20  ;;  %v9379_v3 = vpack.c.bf16 %v9227_v20, %v9226_v1 }
 0xa95   : > { %v9107_v9 = vpop.f32.mrf.mxu3 }
 0xa96   : > { %v9160_v14 = vadd.f32 %v9107_v9, %v8926_v56  ;;  %9504 = vmatmul.bf16.gmra.mxu0 %v9379_v3 }
 0xa98   : > { %v9196_v28 = vadd.f32 %v17576_v8, %v9160_v14 }
 0xa9a   : > { %v9228_v23 = vmax.f32 %v9196_v28, 0.0 }
 0xa9b   : > { %v9602_v17 = vpop.f32.mrf.mxu1  ;;  %v9293_v7 = vld [vmem:[#allocation2 + $0xe0] sm:$0xff]  ;;  %v9467_v40 = vpop.f32.mrf.mxu0 }
 0xa9c   : > { %v9695_v2 = vld [vmem:[#allocation2 + $0xda] sm:$0xff]  ;;  %v9696_v13 = vld [vmem:[#allocation2 + $0xe2] sm:$0xff]  ;;  %9260 = vst [vmem:[#allocation2 + $0xf1] sm:$0xff] %v9228_v23  ;;  %v9603_v48 = vadd.f32 %v9602_v17, %v9465_v24  ;;  %v17762_v10 = vpack.c.bf16 %v9293_v7, %v9292_v30  ;;  %v8695_v24 = vadd.f32 %v17563_v21, %v8461_v39 }
 0xa9d   : > { %v9718_v22 = vpack.c.bf16 %v9696_v13, %v9695_v2  ;;  %v9109_v1 = vpop.f32.mrf.mxu3  ;;  %v18897_v7 = vld [vmem:[#allocation39_spill] sm:$0xff]  ;;  %v18898_v2 = vld [vmem:[#allocation73_spill] sm:$0xff] }
 0xa9e   : > { %v9161_v33 = vadd.f32 %v9109_v1, %v8927_v16  ;;  %9641 = vmatmul.bf16.gmra.mxu1 %v17762_v10  ;;  %v8929_v28 = vadd.f32 %v17610_v53, %v8695_v24  ;;  %v8696_v13 = vadd.f32 %v18898_v2, %v18897_v7 }
 0xa9f   : > { %9843 = vmatmul.bf16.gmra.mxu2 %v9718_v22  ;;  %v18899_v22 = vld [vmem:[#allocation72_spill] sm:$0xff] }
 0xaa0   : > { %v9197_v36 = vadd.f32 %v17576_v8, %v9161_v33  ;;  %v8930_v1 = vadd.f32 %v18899_v22, %v8696_v13 }
 0xaa2   : > { %v9804_v54 = vpop.f32.mrf.mxu2  ;;  %v9229_v46 = vmax.f32 %v9197_v36, 0.0  ;;  %10042 = vmatmul.bf16.gmra.mxu3 %v17634_v37 }
 0xaa3   : > { %v17768_v27 = vadd.f32 %v9804_v54, %v9603_v48  ;;  %v9604_v29 = vpop.f32.mrf.mxu1  ;;  %v9470_v41 = vpop.f32.mrf.mxu0  ;;  %v9294_v3 = vld [vmem:[#allocation2 + $0xf0] sm:$0xff]  ;;  %v13843_v54 = vld [vmem:[%s18561_s9 + $0x108] sm:$0xff] }
 0xaa4   : > { %9261 = vst [vmem:[#allocation2 + $0xf9] sm:$0xff] %v9229_v46  ;;  %v9605_v52 = vadd.f32 %v9604_v29, %v9467_v40  ;;  %v9380_v44 = vpack.c.bf16 %v9229_v46, %v9228_v23  ;;  %v18900_v46 = vld [vmem:[#allocation63_spill] sm:$0xff]  ;;  %v18901_v29 = vld [vmem:[#allocation53_spill] sm:$0xff]  ;;  %10264 = vmatpush.bf16.msra.mxu0 %v13843_v54  ;;  %v18907_v54 = vld [vmem:[#allocation40_spill] sm:$0xff] }
 0xaa5   : > { %v9112_v31 = vpop.f32.mrf.mxu3 }
 0xaa6   : > { %v9162_v20 = vadd.f32 %v9112_v31, %v8928_v34  ;;  %9509 = vmatmul.bf16.gmra.mxu0 %v9380_v44  ;;  %v18902_v44 = vld [vmem:[#allocation43_spill] sm:$0xff] }
 0xaa8   : > { %v9198_v50 = vadd.f32 %v17576_v8, %v9162_v20 }
 0xaaa   : > { %v9806_v19 = vpop.f32.mrf.mxu2  ;;  %v9230_v56 = vmax.f32 %v9198_v50, 0.0 }
 0xaab   : > { %v17776_v37 = vadd.f32 %v9806_v19, %v9605_v52  ;;  %v9607_v35 = vpop.f32.mrf.mxu1  ;;  %v9295_v59 = vld [vmem:[#allocation2 + $0xf8] sm:$0xff]  ;;  %v9472_v14 = vpop.f32.mrf.mxu0 }
 0xaac   : > { %v9697_v9 = vld [vmem:[#allocation2 + $0xf2] sm:$0xff]  ;;  %v9698_v51 = vld [vmem:[#allocation2 + $0xfa] sm:$0xff]  ;;  %9262 = vst [vmem:[#allocation2 + $0x109] sm:$0xff] %v9230_v56  ;;  %v9608_v6 = vadd.f32 %v9607_v35, %v9470_v41  ;;  %v17779_v0 = vpack.c.bf16 %v9295_v59, %v9294_v3  ;;  %v8463_v41 = vadd.f32 %v18901_v29, %v18900_v46 }
 0xaad   : > { %v9719_v42 = vpack.c.bf16 %v9698_v51, %v9697_v9  ;;  %v9114_v23 = vpop.f32.mrf.mxu3  ;;  %v18903_v59 = vld [vmem:[#allocation45_spill] sm:$0xff] }
 0xaae   : > { %v9163_v30 = vadd.f32 %v9114_v23, %v8929_v28  ;;  %9646 = vmatmul.bf16.gmra.mxu1 %v17779_v0  ;;  %v8697_v31 = vadd.f32 %v18902_v44, %v8463_v41 }
 0xaaf   : > { %9848 = vmatmul.bf16.gmra.mxu2 %v9719_v42 }
 0xab0   : > { %v9199_v21 = vadd.f32 %v17576_v8, %v9163_v30  ;;  %v8931_v9 = vadd.f32 %v18903_v59, %v8697_v31 }
 0xab2   : > { %v9809_v17 = vpop.f32.mrf.mxu2  ;;  %v9231_v40 = vmax.f32 %v9199_v21, 0.0  ;;  %10047 = vmatmul.bf16.gmra.mxu3 %v17649_v62  ;;  %v18904_v21 = vld [vmem:[#allocation77_spill] sm:$0xff] }
 0xab3   : > { %v17785_v16 = vadd.f32 %v9809_v17, %v9608_v6  ;;  %v9609_v53 = vpop.f32.mrf.mxu1  ;;  %v9475_v48 = vpop.f32.mrf.mxu0  ;;  %v9296_v50 = vld [vmem:[#allocation2 + $0x108] sm:$0xff]  ;;  %v18905_v17 = vld [vmem:[#allocation58_spill] sm:$0xff] }
 0xab4   : > { %9263 = vst [vmem:[#allocation2 + $0x111] sm:$0xff] %v9231_v40  ;;  %v9610_v33 = vadd.f32 %v9609_v53, %v9472_v14  ;;  %v9381_v36 = vpack.c.bf16 %v9231_v40, %v9230_v56  ;;  %v8698_v7 = vadd.f32 %v18905_v17, %v18904_v21 }
 0xab5   : > { %v9117_v11 = vpop.f32.mrf.mxu3 }
 0xab6   : > { %v9164_v34 = vadd.f32 %v9117_v11, %v8930_v1  ;;  %9514 = vmatmul.bf16.gmra.mxu0 %v9381_v36  ;;  %v18908_v11 = vld [vmem:[#allocation75_spill] sm:$0xff] }
 0xab7   : > { %v8465_v46 = vadd.f32 %v18908_v11, %v18907_v54  ;;  %v18912_v54 = vld [vmem:[#allocation78_spill] sm:$0xff]  ;;  %v18913_v11 = vld [vmem:[#allocation41_spill] sm:$0xff] }
 0xab8   : > { %v9200_v62 = vadd.f32 %v17576_v8, %v9164_v34 }
 0xaba   : > { %v9811_v52 = vpop.f32.mrf.mxu2  ;;  %v9232_v39 = vmax.f32 %v9200_v62, 0.0  ;;  %v18909_v62 = vld [vmem:[#allocation71_spill] sm:$0xff] }
 0xabb   : > { %v17796_v20 = vadd.f32 %v9811_v52, %v9610_v33  ;;  %v9612_v19 = vpop.f32.mrf.mxu1  ;;  %v9297_v24 = vld [vmem:[#allocation2 + $0x110] sm:$0xff]  ;;  %v9477_v35 = vpop.f32.mrf.mxu0  ;;  %v8699_v52 = vadd.f32 %v18909_v62, %v8465_v46 }
 0xabc   : > { %v9699_v56 = vld [vmem:[#allocation2 + $0x10a] sm:$0xff]  ;;  %v9700_v3 = vld [vmem:[#allocation2 + $0x112] sm:$0xff]  ;;  %9264 = vst [vmem:[#allocation2 + $0x121] sm:$0xff] %v9232_v39  ;;  %v9613_v51 = vadd.f32 %v9612_v19, %v9475_v48  ;;  %v17799_v14 = vpack.c.bf16 %v9297_v24, %v9296_v50 }
 0xabd   : > { %v9720_v28 = vpack.c.bf16 %v9700_v3, %v9699_v56  ;;  %v9119_v6 = vpop.f32.mrf.mxu3  ;;  %v18906_v48 = vld [vmem:[#allocation57_spill] sm:$0xff]  ;;  %v8933_v3 = vadd.f32 %v17644_v4, %v8699_v52 }
 0xabe   : > { %v9165_v42 = vadd.f32 %v9119_v6, %v8931_v9  ;;  %9651 = vmatmul.bf16.gmra.mxu1 %v17799_v14  ;;  %v8932_v22 = vadd.f32 %v18906_v48, %v8698_v7  ;;  %v13857_v4 = vld [vmem:[%s18561_s9 + $0x178] sm:$0xff] }
 0xabf   : > { %9853 = vmatmul.bf16.gmra.mxu2 %v9720_v28  ;;  %10492 = vmatpush.bf16.msrb.mxu1 %v13857_v4 }
 0xac0   : > { %v9201_v23 = vadd.f32 %v17576_v8, %v9165_v42 }
 0xac2   : > { %v9814_v30 = vpop.f32.mrf.mxu2  ;;  %v9233_v2 = vmax.f32 %v9201_v23, 0.0  ;;  %10052 = vmatmul.bf16.gmra.mxu3 %v17684_v5  ;;  %v18910_v23 = vld [vmem:[#allocation51_spill] sm:$0xff] }
 0xac3   : > { %v17805_v13 = vadd.f32 %v9814_v30, %v9613_v51  ;;  %v9614_v40 = vpop.f32.mrf.mxu1  ;;  %v9480_v53 = vpop.f32.mrf.mxu0  ;;  %v9298_v31 = vld [vmem:[#allocation2 + $0x120] sm:$0xff]  ;;  %v18911_v30 = vld [vmem:[#allocation44_spill] sm:$0xff] }
 0xac4   : > { %9265 = vst [vmem:[#allocation2 + $0x129] sm:$0xff] %v9233_v2  ;;  %v9615_v1 = vadd.f32 %v9614_v40, %v9477_v35  ;;  %v9382_v33 = vpack.c.bf16 %v9233_v2, %v9232_v39  ;;  %v8700_v21 = vadd.f32 %v18911_v30, %v18910_v23  ;;  %v13865_v2 = vld [vmem:[%s18561_s9 + $0x1b8] sm:$0xff]  ;;  %v13854_v23 = vld [vmem:[%s18561_s9 + $0x160] sm:$0xff] }
 0xac5   : > { %v9122_v36 = vpop.f32.mrf.mxu3  ;;  %10726 = vmatpush.bf16.msrb.mxu2 %v13865_v2  ;;  %v18915_v2 = vld [vmem:[#allocation55_spill] sm:$0xff] }
 0xac6   : > { %v9166_v29 = vadd.f32 %v9122_v36, %v8932_v22  ;;  %9519 = vmatmul.bf16.gmra.mxu0 %v9382_v33  ;;  %v8934_v48 = vadd.f32 %v17656_v43, %v8700_v21  ;;  %v13842_v33 = vld [vmem:[%s18561_s9 + $0x100] sm:$0xff]  ;;  %v13864_v36 = vld [vmem:[%s18561_s9 + $0x1b0] sm:$0xff]  ;;  %v8467_v43 = vadd.f32 %v18913_v11, %v18912_v54 }
 0xac7   : > { %10265 = vmatpush.bf16.msra.mxu0 %v13842_v33  ;;  %v13861_v33 = vld [vmem:[%s18561_s9 + $0x198] sm:$0xff] }
 0xac8   : > { %v9202_v41 = vadd.f32 %v17576_v8, %v9166_v29 }
 0xac9   : > { %10727 = vmatpush.bf16.msrb.mxu2 %v13864_v36 }
 0xaca   : > { %v9816_v34 = vpop.f32.mrf.mxu2  ;;  %v9234_v44 = vmax.f32 %v9202_v41, 0.0 }
 0xacb   : > { %v17813_v5 = vadd.f32 %v9816_v34, %v9615_v1  ;;  %v9617_v50 = vpop.f32.mrf.mxu1  ;;  %v9299_v19 = vld [vmem:[#allocation2 + $0x128] sm:$0xff]  ;;  %v9482_v39 = vpop.f32.mrf.mxu0 }
 0xacc   : > { %v9701_v24 = vld [vmem:[#allocation2 + $0x122] sm:$0xff]  ;;  %v9702_v56 = vld [vmem:[#allocation2 + $0x12a] sm:$0xff]  ;;  %9266 = vst [vmem:[#allocation2 + $0x139] sm:$0xff] %v9234_v44  ;;  %v9618_v35 = vadd.f32 %v9617_v50, %v9480_v53  ;;  %v17816_v59 = vpack.c.bf16 %v9299_v19, %v9298_v31 }
 0xacd   : > { %v9721_v9 = vpack.c.bf16 %v9702_v56, %v9701_v24  ;;  %v9124_v51 = vpop.f32.mrf.mxu3  ;;  %v18914_v34 = vld [vmem:[#allocation19_spill] sm:$0xff] }
 0xace   : > { %v9167_v28 = vadd.f32 %v9124_v51, %v8933_v3  ;;  %9656 = vmatmul.bf16.gmra.mxu1 %v17816_v59  ;;  %v8701_v62 = vadd.f32 %v18914_v34, %v8467_v43  ;;  %v13855_v19 = vld [vmem:[%s18561_s9 + $0x168] sm:$0xff] }
 0xacf   : > { %9858 = vmatmul.bf16.gmra.mxu2 %v9721_v9  ;;  %v13863_v24 = vld [vmem:[%s18561_s9 + $0x1a8] sm:$0xff] }
 0xad0   : > { %v9203_v6 = vadd.f32 %v17576_v8, %v9167_v28  ;;  %v8935_v56 = vadd.f32 %v17672_v55, %v8701_v62  ;;  %10728 = vmatpush.bf16.msrb.mxu2 %v13863_v24  ;;  %v13862_v55 = vld [vmem:[%s18561_s9 + $0x1a0] sm:$0xff] }
 0xad2   : > { %v9819_v42 = vpop.f32.mrf.mxu2  ;;  %v9235_v17 = vmax.f32 %v9203_v6, 0.0  ;;  %10057 = vmatmul.bf16.gmra.mxu3 %v17706_v61  ;;  %v13856_v61 = vld [vmem:[%s18561_s9 + $0x170] sm:$0xff] }
 0xad3   : > { %v17822_v7 = vadd.f32 %v9819_v42, %v9618_v35  ;;  %v9619_v40 = vpop.f32.mrf.mxu1  ;;  %v9485_v53 = vpop.f32.mrf.mxu0  ;;  %10493 = vmatpush.bf16.msrb.mxu1 %v13856_v61  ;;  %v9300_v50 = vld [vmem:[#allocation2 + $0x138] sm:$0xff] }
 0xad4   : > { %9267 = vst [vmem:[#allocation2 + $0x141] sm:$0xff] %v9235_v17  ;;  %v9620_v22 = vadd.f32 %v9619_v40, %v9482_v39  ;;  %v9383_v1 = vpack.c.bf16 %v9235_v17, %v9234_v44  ;;  %10729 = vmatpush.bf16.msrb.mxu2 %v13862_v55  ;;  %v18916_v40 = vld [vmem:[#allocation59_spill] sm:$0xff] }
 0xad5   : > { %v9127_v46 = vpop.f32.mrf.mxu3 }
 0xad6   : > { %v9168_v29 = vadd.f32 %v9127_v46, %v8934_v48  ;;  %9524 = vmatmul.bf16.gmra.mxu0 %v9383_v1  ;;  %v13853_v1 = vld [vmem:[%s18561_s9 + $0x158] sm:$0xff]  ;;  %v13860_v46 = vld [vmem:[%s18561_s9 + $0x190] sm:$0xff] }
 0xad7   : > { %10494 = vmatpush.bf16.msrb.mxu1 %v13855_v19  ;;  %v13859_v19 = vld [vmem:[%s18561_s9 + $0x188] sm:$0xff] }
 0xad8   : > { %v9204_v41 = vadd.f32 %v17576_v8, %v9168_v29  ;;  %10730 = vmatpush.bf16.msrb.mxu2 %v13861_v33  ;;  %v18917_v29 = vld [vmem:[#allocation56_spill] sm:$0xff] }
 0xada   : > { %v9821_v52 = vpop.f32.mrf.mxu2  ;;  %v9236_v44 = vmax.f32 %v9204_v41, 0.0  ;;  %v18918_v41 = vld [vmem:[#allocation79_spill] sm:$0xff] }
 0xadb   : > { %v17845_v31 = vadd.f32 %v9821_v52, %v9620_v22  ;;  %v9622_v39 = vpop.f32.mrf.mxu1  ;;  %v9301_v3 = vld [vmem:[#allocation2 + $0x140] sm:$0xff]  ;;  %v9487_v51 = vpop.f32.mrf.mxu0  ;;  %10495 = vmatpush.bf16.msrb.mxu1 %v13854_v23  ;;  %v8469_v34 = vadd.f32 %v18918_v41, %v18917_v29 }
 0xadc   : > { %v9703_v35 = vld [vmem:[#allocation2 + $0x13a] sm:$0xff]  ;;  %v9704_v9 = vld [vmem:[#allocation2 + $0x142] sm:$0xff]  ;;  %9268 = vst [vmem:[#allocation2 + $0x151] sm:$0xff] %v9236_v44  ;;  %v9623_v28 = vadd.f32 %v9622_v39, %v9485_v53  ;;  %v17854_v6 = vpack.c.bf16 %v9301_v3, %v9300_v50  ;;  %v8702_v53 = vadd.f32 %v18916_v40, %v18915_v2  ;;  %10731 = vmatpush.bf16.msrb.mxu2 %v13860_v46 }
 0xadd   : > { %v9722_v42 = vpack.c.bf16 %v9704_v9, %v9703_v35  ;;  %v9129_v30 = vpop.f32.mrf.mxu3  ;;  %v13851_v50 = vld [vmem:[%s18561_s9 + $0x148] sm:$0xff]  ;;  %v8703_v24 = vadd.f32 %v17647_v38, %v8469_v34  ;;  %v13850_v38 = vld [vmem:[%s18561_s9 + $0x140] sm:$0xff]  ;;  %v13881_v2 = vld [vmem:[%s18561_s9 + $0x238] sm:$0xff] }
 0xade   : > { %v9169_v21 = vadd.f32 %v9129_v30, %v8935_v56  ;;  %9661 = vmatmul.bf16.gmra.mxu1 %v17854_v6  ;;  %v8936_v54 = vadd.f32 %v17690_v49, %v8702_v53  ;;  %v13873_v49 = vld [vmem:[%s18561_s9 + $0x1f8] sm:$0xff]  ;;  %v13985_v40 = vld [vmem:[%s18560_s8] ss:$0 sm:$0xff]  ;;  %11194 = vmatpush.bf16.msrb.mxu0 %v13881_v2 }
 0xadf   : > { %9863 = vmatmul.bf16.gmra.mxu2 %v9722_v42  ;;  %10496 = vmatpush.bf16.msrb.mxu1 %v13853_v1  ;;  %v18919_v1 = vld [vmem:[#allocation42_spill] sm:$0xff] }
 0xae0   : > { %v9205_v17 = vadd.f32 %v17576_v8, %v9169_v21  ;;  %10960 = vmatpush.bf16.msrb.mxu3 %v13873_v49  ;;  %10732 = vmatpush.bf16.msrb.mxu2 %v13859_v19  ;;  %v8704_v33 = vadd.f32 %v17659_v60, %v18919_v1  ;;  %v18920_v41 = vld [vmem:[#allocation54_spill] sm:$0xff] }
 0xae1   : > { %v8471_v34 = vadd.f32 %v17679_v26, %v18920_v41  ;;  %v10379_v1 = vld [vmem:[#allocation2 + $0x1a] sm:$0xff]  ;;  %v13880_v41 = vld [vmem:[%s18561_s9 + $0x230] sm:$0xff] }
 0xae2   : > { %v9824_v4 = vpop.f32.mrf.mxu2  ;;  %v9237_v48 = vmax.f32 %v9205_v17, 0.0  ;;  %10062 = vmatmul.bf16.gmra.mxu3 %v17725_v18  ;;  %v13852_v18 = vld [vmem:[%s18561_s9 + $0x150] sm:$0xff]  ;;  %11195 = vmatpush.bf16.msrb.mxu0 %v13880_v41 }
 0xae3   : > { %v17866_v22 = vadd.f32 %v9824_v4, %v9623_v28  ;;  %v9624_v61 = vpop.f32.mrf.mxu1  ;;  %v9490_v36 = vpop.f32.mrf.mxu0  ;;  %10497 = vmatpush.bf16.msrb.mxu1 %v13852_v18  ;;  %v9302_v35 = vld [vmem:[#allocation2 + $0x150] sm:$0xff]  ;;  %v8705_v49 = vadd.f32 %v17681_v32, %v8471_v34 }
 0xae4   : > { %9269 = vst [vmem:[#allocation2 + $0x159] sm:$0xff] %v9237_v48  ;;  %v9625_v11 = vadd.f32 %v9624_v61, %v9487_v51  ;;  %v9384_v43 = vpack.c.bf16 %v9237_v48, %v9236_v44 }
 0xae5   : > { %v9132_v62 = vpop.f32.mrf.mxu3 }
 0xae6   : > { %v9170_v52 = vadd.f32 %v9132_v62, %v8936_v54  ;;  %9529 = vmatmul.bf16.gmra.mxu0 %v9384_v43  ;;  %v8938_v43 = vadd.f32 %v17709_v47, %v8704_v33  ;;  %v10380_v33 = vld [vmem:[#allocation2 + $0x22] sm:$0xff] }
 0xae7   : > { %10498 = vmatpush.bf16.msrb.mxu1 %v13851_v50 }
 0xae8   : > { %v9206_v44 = vadd.f32 %v17576_v8, %v9170_v52  ;;  %v8937_v8 = vadd.f32 %v17701_v25, %v8703_v24  ;;  %v13858_v25 = vld [vmem:[%s18561_s9 + $0x180] sm:$0xff] }
 0xae9   : > { %10733 = vmatpush.bf16.msrb.mxu2 %v13858_v25  ;;  %v10145_v25 = vld [vmem:[#allocation2 + $0x19] sm:$0xff] }
 0xaea   : > { %v9826_v56 = vpop.f32.mrf.mxu2  ;;  %v9238_v39 = vmax.f32 %v9206_v44, 0.0 }
 0xaeb   : > { %v17895_v3 = vadd.f32 %v9826_v56, %v9625_v11  ;;  %v9627_v9 = vpop.f32.mrf.mxu1  ;;  %v9303_v51 = vld [vmem:[#allocation2 + $0x158] sm:$0xff]  ;;  %v9492_v23 = vpop.f32.mrf.mxu0  ;;  %10499 = vmatpush.bf16.msrb.mxu1 %v13850_v38 }
 0xaec   : > { %v9705_v28 = vld [vmem:[#allocation2 + $0x152] sm:$0xff]  ;;  %v9706_v42 = vld [vmem:[#allocation2 + $0x15a] sm:$0xff]  ;;  %9270 = vst [vmem:[#allocation2 + $0x169] sm:$0xff] %v9238_v39  ;;  %v9628_v55 = vadd.f32 %v9627_v9, %v9490_v36  ;;  %v17898_v30 = vpack.c.bf16 %v9303_v51, %v9302_v35 }
 0xaed   : > { %v9723_v21 = vpack.c.bf16 %v9706_v42, %v9705_v28  ;;  %v9134_v17 = vpop.f32.mrf.mxu3 }
 0xaee   : > { %v9171_v4 = vadd.f32 %v9134_v17, %v8937_v8  ;;  %9666 = vmatmul.bf16.gmra.mxu1 %v17898_v30 }
 0xaef   : > { %9868 = vmatmul.bf16.gmra.mxu2 %v9723_v21 }
 0xaf0   : > { %v9207_v53 = vadd.f32 %v13985_v40, %v9171_v4 }
 0xaf2   : > { %v9829_v48 = vpop.f32.mrf.mxu2  ;;  %v9239_v61 = vmax.f32 %v9207_v53, 0.0  ;;  %10067 = vmatmul.bf16.gmra.mxu3 %v17742_v12 }
 0xaf3   : > { %v17915_v36 = vadd.f32 %v9829_v48, %v9628_v55  ;;  %v9629_v54 = vpop.f32.mrf.mxu1  ;;  %v9495_v11 = vpop.f32.mrf.mxu0  ;;  %v9304_v12 = vld [vmem:[#allocation2 + $0x168] sm:$0xff] }
 0xaf4   : > { %9271 = vst [vmem:[#allocation2 + $0x171] sm:$0xff] %v9239_v61  ;;  %v9630_v18 = vadd.f32 %v9629_v54, %v9492_v23  ;;  %v9385_v46 = vpack.c.bf16 %v9239_v61, %v9238_v39  ;;  %v8939_v39 = vadd.f32 %v17720_v45, %v8705_v49  ;;  %v10146_v23 = vld [vmem:[#allocation2 + $0x21] sm:$0xff] }
 0xaf5   : > { %v9137_v29 = vpop.f32.mrf.mxu3  ;;  %v10177_v4 = vpack.c.bf16 %v10146_v23, %v10145_v25 }
 0xaf6   : > { %v9172_v62 = vadd.f32 %v9137_v29, %v8938_v43  ;;  %9534 = vmatmul.bf16.gmra.mxu0 %v9385_v46  ;;  %v10411_v46 = vpack.c.bf16 %v10380_v33, %v10379_v1 }
 0xaf8   : > { %v9208_v52 = vadd.f32 %v13985_v40, %v9172_v62  ;;  %v10148_v62 = vld [vmem:[#allocation2 + $0x39] sm:$0xff] }
 0xafa   : > { %v9831_v60 = vpop.f32.mrf.mxu2  ;;  %v9240_v44 = vmax.f32 %v9208_v52, 0.0 }
 0xafb   : > { %v17922_v50 = vadd.f32 %v9831_v60, %v9630_v18  ;;  %v9632_v19 = vpop.f32.mrf.mxu1  ;;  %v9305_v24 = vld [vmem:[#allocation2 + $0x170] sm:$0xff]  ;;  %v9497_v35 = vpop.f32.mrf.mxu0 }
 0xafc   : > { %v9707_v47 = vld [vmem:[#allocation2 + $0x16a] sm:$0xff]  ;;  %v9708_v56 = vld [vmem:[#allocation2 + $0x172] sm:$0xff]  ;;  %9272 = vst [vmem:[#allocation2 + $0x181] sm:$0xff] %v9240_v44  ;;  %v9633_v8 = vadd.f32 %v9632_v19, %v9495_v11  ;;  %v17925_v26 = vpack.c.bf16 %v9305_v24, %v9304_v12 }
 0xafd   : > { %v9724_v9 = vpack.c.bf16 %v9708_v56, %v9707_v47  ;;  %v9139_v51 = vpop.f32.mrf.mxu3  ;;  %v10613_v11 = vld [vmem:[#allocation2 + $0x30] sm:$0xff] }
 0xafe   : > { %v9173_v28 = vadd.f32 %v9139_v51, %v8939_v39  ;;  %9671 = vmatmul.bf16.gmra.mxu1 %v17925_v26  ;;  %v10147_v44 = vld [vmem:[#allocation2 + $0x31] sm:$0xff]  ;;  %v10382_v39 = vld [vmem:[#allocation2 + $0x3a] sm:$0xff] }
 0xaff   : > { %9873 = vmatmul.bf16.gmra.mxu2 %v9724_v9  ;;  %v17947_v19 = vpack.c.bf16 %v10148_v62, %v10147_v44 }
 0xb00   : > { %v9209_v32 = vadd.f32 %v13985_v40, %v9173_v28  ;;  %v13872_v40 = vld [vmem:[%s18561_s9 + $0x1f0] sm:$0xff] }
 0xb01   : > { %10961 = vmatpush.bf16.msrb.mxu3 %v13872_v40 }
 0xb02   : > { %v9834_v42 = vpop.f32.mrf.mxu2  ;;  %v9241_v55 = vmax.f32 %v9209_v32, 0.0  ;;  %10072 = vmatmul.bf16.gmra.mxu3 %v17762_v10  ;;  %v10614_v10 = vld [vmem:[#allocation2 + $0x38] sm:$0xff] }
 0xb03   : > { %v17928_v21 = vadd.f32 %v9834_v42, %v9633_v8  ;;  %v9634_v38 = vpop.f32.mrf.mxu1  ;;  %v9500_v45 = vpop.f32.mrf.mxu0  ;;  %v10645_v29 = vpack.c.bf16 %v10614_v10, %v10613_v11  ;;  %v10616_v8 = vld [vmem:[#allocation2 + $0x50] sm:$0xff]  ;;  %v10618_v11 = vld [vmem:[#allocation2 + $0x68] sm:$0xff] }
 0xb04   : > { %9273 = vst [vmem:[#allocation2 + $0x189] sm:$0xff] %v9241_v55  ;;  %v9635_v17 = vadd.f32 %v9634_v38, %v9497_v35  ;;  %v10381_v35 = vld [vmem:[#allocation2 + $0x32] sm:$0xff] }
 0xb05   : > { %v10033_v2 = vpop.f32.mrf.mxu3  ;;  %v10412_v42 = vpack.c.bf16 %v10382_v39, %v10381_v35  ;;  %v10151_v39 = vld [vmem:[#allocation2 + $0x61] sm:$0xff] }
 0xb06   : > { %v17932_v53 = vadd.f32 %v10033_v2, %v17729_v63  ;;  %10266 = vmatmul.bf16.vlgmr.msra.gmra.mxu0 %v10177_v4  ;;  %v10149_v2 = vld [vmem:[#allocation2 + $0x49] sm:$0xff] }
 0xb0a   : > { %v9836_v48 = vpop.f32.mrf.mxu2 }
 0xb0b   : > { %v17937_v61 = vadd.f32 %v9836_v48, %v9635_v17  ;;  %v9637_v54 = vpop.f32.mrf.mxu1  ;;  %v9502_v43 = vpop.f32.mrf.mxu0 }
 0xb0c   : > { %v9638_v18 = vadd.f32 %v9637_v54, %v9500_v45  ;;  %v10150_v45 = vld [vmem:[#allocation2 + $0x51] sm:$0xff] }
 0xb0d   : > { %v17939_v63 = vpop.f32.mrf.mxu3  ;;  %v17961_v48 = vpack.c.bf16 %v10150_v45, %v10149_v2  ;;  %v10383_v54 = vld [vmem:[#allocation2 + $0x4a] sm:$0xff] }
 0xb0e   : > { %10500 = vmatmul.bf16.vlgmr.msrb.gmra.mxu1 %v10411_v46  ;;  %v10617_v46 = vld [vmem:[#allocation2 + $0x60] sm:$0xff] }
 0xb0f   : > { %10734 = vmatmul.bf16.vlgmr.msrb.gmra.mxu2 %v10645_v29 }
 0xb12   : > { %v9839_v34 = vpop.f32.mrf.mxu2  ;;  %10077 = vmatmul.bf16.gmra.mxu3 %v17779_v0  ;;  %v10615_v0 = vld [vmem:[#allocation2 + $0x48] sm:$0xff] }
 0xb13   : > { %v17944_v52 = vadd.f32 %v9839_v34, %v9638_v18  ;;  %v9639_v60 = vpop.f32.mrf.mxu1  ;;  %v9505_v49 = vpop.f32.mrf.mxu0  ;;  %v10646_v23 = vpack.c.bf16 %v10616_v8, %v10615_v0 }
 0xb14   : > { %v9640_v12 = vadd.f32 %v9639_v60, %v9502_v43 }
 0xb15   : > { %v10038_v24 = vpop.f32.mrf.mxu3 }
 0xb16   : > { %v17950_v47 = vadd.f32 %v10038_v24, %v17768_v27  ;;  %10271 = vmatmul.bf16.gmra.mxu0 %v17947_v19 }
 0xb1a   : > { %v9841_v56 = vpop.f32.mrf.mxu2 }
 0xb1b   : > { %v17953_v9 = vadd.f32 %v9841_v56, %v9640_v12  ;;  %v9642_v51 = vpop.f32.mrf.mxu1  ;;  %v9507_v28 = vpop.f32.mrf.mxu0  ;;  %v10152_v12 = vld [vmem:[#allocation2 + $0x69] sm:$0xff] }
 0xb1c   : > { %v9643_v32 = vadd.f32 %v9642_v51, %v9505_v49  ;;  %v13879_v49 = vld [vmem:[%s18561_s9 + $0x228] sm:$0xff] }
 0xb1d   : > { %v10040_v55 = vpop.f32.mrf.mxu3  ;;  %11196 = vmatpush.bf16.msrb.mxu0 %v13879_v49  ;;  %v10622_v49 = vld [vmem:[#allocation2 + $0x98] sm:$0xff] }
 0xb1e   : > { %v17956_v38 = vadd.f32 %v10040_v55, %v17776_v37  ;;  %10505 = vmatmul.bf16.gmra.mxu1 %v10412_v42  ;;  %v13871_v37 = vld [vmem:[%s18561_s9 + $0x1e8] sm:$0xff] }
 0xb1f   : > { %10739 = vmatmul.bf16.gmra.mxu2 %v10646_v23  ;;  %10962 = vmatpush.bf16.msrb.mxu3 %v13871_v37  ;;  %v10386_v42 = vld [vmem:[#allocation2 + $0x6a] sm:$0xff]  ;;  %v10620_v23 = vld [vmem:[#allocation2 + $0x80] sm:$0xff] }
 0xb20   : > { %v10154_v37 = vld [vmem:[#allocation2 + $0x81] sm:$0xff] }
 0xb22   : > { %v9844_v27 = vpop.f32.mrf.mxu2  ;;  %10082 = vmatmul.bf16.gmra.mxu3 %v17799_v14  ;;  %v10384_v14 = vld [vmem:[#allocation2 + $0x52] sm:$0xff] }
 0xb23   : > { %v17958_v25 = vadd.f32 %v9844_v27, %v9643_v32  ;;  %v9644_v17 = vpop.f32.mrf.mxu1  ;;  %v9510_v4 = vpop.f32.mrf.mxu0  ;;  %v17972_v34 = vpack.c.bf16 %v10384_v14, %v10383_v54  ;;  %v10385_v32 = vld [vmem:[#allocation2 + $0x62] sm:$0xff] }
 0xb24   : > { %v9645_v40 = vadd.f32 %v9644_v17, %v9507_v28 }
 0xb25   : > { %v10043_v1 = vpop.f32.mrf.mxu3 }
 0xb26   : > { %v17964_v33 = vadd.f32 %v10043_v1, %v17785_v16  ;;  %10276 = vmatmul.bf16.gmra.mxu0 %v17961_v48  ;;  %v10647_v16 = vpack.c.bf16 %v10618_v11, %v10617_v46  ;;  %v10153_v11 = vld [vmem:[#allocation2 + $0x79] sm:$0xff] }
 0xb27   : > { %v18001_v46 = vpack.c.bf16 %v10154_v37, %v10153_v11  ;;  %v10390_v11 = vld [vmem:[#allocation2 + $0x9a] sm:$0xff] }
 0xb2a   : > { %v9846_v10 = vpop.f32.mrf.mxu2 }
 0xb2b   : > { %v17970_v43 = vadd.f32 %v9846_v10, %v9645_v40  ;;  %v9647_v18 = vpop.f32.mrf.mxu1  ;;  %v9512_v29 = vpop.f32.mrf.mxu0 }
 0xb2c   : > { %v9648_v41 = vadd.f32 %v9647_v18, %v9510_v4  ;;  %v17992_v4 = vpack.c.bf16 %v10386_v42, %v10385_v32  ;;  %v13878_v32 = vld [vmem:[%s18561_s9 + $0x220] sm:$0xff] }
 0xb2d   : > { %v10045_v62 = vpop.f32.mrf.mxu3  ;;  %11197 = vmatpush.bf16.msrb.mxu0 %v13878_v32 }
 0xb2e   : > { %v17975_v60 = vadd.f32 %v10045_v62, %v17796_v20  ;;  %10510 = vmatmul.bf16.gmra.mxu1 %v17972_v34  ;;  %v17984_v20 = vpack.c.bf16 %v10152_v12, %v10151_v39  ;;  %v10387_v62 = vld [vmem:[#allocation2 + $0x7a] sm:$0xff] }
 0xb2f   : > { %10744 = vmatmul.bf16.gmra.mxu2 %v10647_v16 }
 0xb32   : > { %v9849_v44 = vpop.f32.mrf.mxu2  ;;  %10087 = vmatmul.bf16.gmra.mxu3 %v17816_v59  ;;  %v10619_v59 = vld [vmem:[#allocation2 + $0x78] sm:$0xff] }
 0xb33   : > { %v17981_v24 = vadd.f32 %v9849_v44, %v9648_v41  ;;  %v9649_v56 = vpop.f32.mrf.mxu1  ;;  %v9515_v35 = vpop.f32.mrf.mxu0  ;;  %v10648_v2 = vpack.c.bf16 %v10620_v23, %v10619_v59  ;;  %v10156_v23 = vld [vmem:[#allocation2 + $0x99] sm:$0xff] }
 0xb34   : > { %v9650_v8 = vadd.f32 %v9649_v56, %v9512_v29  ;;  %v10621_v56 = vld [vmem:[#allocation2 + $0x90] sm:$0xff] }
 0xb35   : > { %v10048_v51 = vpop.f32.mrf.mxu3 }
 0xb36   : > { %v17987_v0 = vadd.f32 %v10048_v51, %v17805_v13  ;;  %10281 = vmatmul.bf16.gmra.mxu0 %v17984_v20 }
 0xb3a   : > { %v9851_v28 = vpop.f32.mrf.mxu2 }
 0xb3b   : > { %v17990_v55 = vadd.f32 %v9851_v28, %v9650_v8  ;;  %v9652_v27 = vpop.f32.mrf.mxu1  ;;  %v9517_v45 = vpop.f32.mrf.mxu0 }
 0xb3c   : > { %v9653_v17 = vadd.f32 %v9652_v27, %v9515_v35 }
 0xb3d   : > { %v10050_v40 = vpop.f32.mrf.mxu3 }
 0xb3e   : > { %v17995_v1 = vadd.f32 %v10050_v40, %v17813_v5  ;;  %10515 = vmatmul.bf16.gmra.mxu1 %v17992_v4  ;;  %v13870_v5 = vld [vmem:[%s18561_s9 + $0x1e0] sm:$0xff]  ;;  %v13869_v40 = vld [vmem:[%s18561_s9 + $0x1d8] sm:$0xff] }
 0xb3f   : > { %10749 = vmatmul.bf16.gmra.mxu2 %v10648_v2  ;;  %10963 = vmatpush.bf16.msrb.mxu3 %v13870_v5 }
 0xb42   : > { %v9854_v13 = vpop.f32.mrf.mxu2  ;;  %10092 = vmatmul.bf16.gmra.mxu3 %v17854_v6  ;;  %v10388_v6 = vld [vmem:[#allocation2 + $0x82] sm:$0xff] }
 0xb43   : > { %v17998_v10 = vadd.f32 %v9854_v13, %v9653_v17  ;;  %v9654_v54 = vpop.f32.mrf.mxu1  ;;  %v9520_v14 = vpop.f32.mrf.mxu0  ;;  %v18012_v8 = vpack.c.bf16 %v10388_v6, %v10387_v62  ;;  %v10155_v17 = vld [vmem:[#allocation2 + $0x91] sm:$0xff]  ;;  %10964 = vmatpush.bf16.msrb.mxu3 %v13869_v40 }
 0xb44   : > { %v9655_v18 = vadd.f32 %v9654_v54, %v9517_v45 }
 0xb45   : > { %v10053_v29 = vpop.f32.mrf.mxu3 }
 0xb46   : > { %v18004_v41 = vadd.f32 %v10053_v29, %v17822_v7  ;;  %10286 = vmatmul.bf16.gmra.mxu0 %v18001_v46  ;;  %v10649_v7 = vpack.c.bf16 %v10622_v49, %v10621_v56 }
 0xb4a   : > { %v9856_v16 = vpop.f32.mrf.mxu2 }
 0xb4b   : > { %v18010_v44 = vadd.f32 %v9856_v16, %v9655_v18  ;;  %v9657_v12 = vpop.f32.mrf.mxu1  ;;  %v9522_v35 = vpop.f32.mrf.mxu0  ;;  %v10624_v18 = vld [vmem:[#allocation2 + $0xb0] sm:$0xff]  ;;  %v10623_v16 = vld [vmem:[#allocation2 + $0xa8] sm:$0xff] }
 0xb4c   : > { %v9658_v39 = vadd.f32 %v9657_v12, %v9520_v14  ;;  %v10389_v14 = vld [vmem:[#allocation2 + $0x92] sm:$0xff]  ;;  %v10650_v49 = vpack.c.bf16 %v10624_v18, %v10623_v16  ;;  %v13867_v12 = vld [vmem:[%s18561_s9 + $0x1c8] sm:$0xff] }
 0xb4d   : > { %v10055_v51 = vpop.f32.mrf.mxu3 }
 0xb4e   : > { %v18015_v28 = vadd.f32 %v10055_v51, %v17845_v31  ;;  %10520 = vmatmul.bf16.gmra.mxu1 %v18012_v8  ;;  %v18024_v31 = vpack.c.bf16 %v10156_v23, %v10155_v17  ;;  %v10158_v51 = vld [vmem:[#allocation2 + $0xb1] sm:$0xff] }
 0xb4f   : > { %10754 = vmatmul.bf16.gmra.mxu2 %v10649_v7 }
 0xb52   : > { %v9859_v42 = vpop.f32.mrf.mxu2  ;;  %10097 = vmatmul.bf16.gmra.mxu3 %v17898_v30  ;;  %v13868_v30 = vld [vmem:[%s18561_s9 + $0x1d0] sm:$0xff] }
 0xb53   : > { %v18021_v27 = vadd.f32 %v9859_v42, %v9658_v39  ;;  %v9659_v59 = vpop.f32.mrf.mxu1  ;;  %v9525_v45 = vpop.f32.mrf.mxu0  ;;  %10965 = vmatpush.bf16.msrb.mxu3 %v13868_v30  ;;  %v13866_v39 = vld [vmem:[%s18561_s9 + $0x1c0] sm:$0xff]  ;;  %v10392_v30 = vld [vmem:[#allocation2 + $0xb2] sm:$0xff] }
 0xb54   : > { %v9660_v2 = vadd.f32 %v9659_v59, %v9522_v35  ;;  %v10157_v59 = vld [vmem:[#allocation2 + $0xa9] sm:$0xff] }
 0xb55   : > { %v10058_v13 = vpop.f32.mrf.mxu3 }
 0xb56   : > { %v18030_v37 = vadd.f32 %v10058_v13, %v17866_v22  ;;  %10291 = vmatmul.bf16.gmra.mxu0 %v18024_v31  ;;  %v18038_v22 = vpack.c.bf16 %v10390_v11, %v10389_v14  ;;  %v10391_v13 = vld [vmem:[#allocation2 + $0xaa] sm:$0xff]  ;;  %v10625_v11 = vld [vmem:[#allocation2 + $0xc0] sm:$0xff] }
 0xb57   : > { %10966 = vmatpush.bf16.msrb.mxu3 %v13867_v12  ;;  %v18061_v16 = vpack.c.bf16 %v10392_v30, %v10391_v13  ;;  %v13877_v12 = vld [vmem:[%s18561_s9 + $0x218] sm:$0xff] }
 0xb58   : > { %11198 = vmatpush.bf16.msrb.mxu0 %v13877_v12 }
 0xb5a   : > { %v9861_v54 = vpop.f32.mrf.mxu2 }
 0xb5b   : > { %v18036_v29 = vadd.f32 %v9861_v54, %v9660_v2  ;;  %v9662_v5 = vpop.f32.mrf.mxu1  ;;  %v9527_v62 = vpop.f32.mrf.mxu0  ;;  %10967 = vmatpush.bf16.msrb.mxu3 %v13866_v39  ;;  %v10626_v54 = vld [vmem:[#allocation2 + $0xc8] sm:$0xff] }
 0xb5c   : > { %v9663_v6 = vadd.f32 %v9662_v5, %v9525_v45  ;;  %v18053_v45 = vpack.c.bf16 %v10158_v51, %v10157_v59  ;;  %v10160_v51 = vld [vmem:[#allocation2 + $0xc9] sm:$0xff]  ;;  %v10159_v59 = vld [vmem:[#allocation2 + $0xc1] sm:$0xff] }
 0xb5d   : > { %v10060_v56 = vpop.f32.mrf.mxu3 }
 0xb5e   : > { %v18044_v35 = vadd.f32 %v10060_v56, %v17895_v3  ;;  %10525 = vmatmul.bf16.gmra.mxu1 %v18038_v22  ;;  %v9941_v56 = vld [vmem:[#allocation2 + $0x180] sm:$0xff] }
 0xb5f   : > { %10759 = vmatmul.bf16.gmra.mxu2 %v10650_v49  ;;  %v9942_v49 = vld [vmem:[#allocation2 + $0x188] sm:$0xff] }
 0xb60   : > { %v18070_v39 = vpack.c.bf16 %v9942_v49, %v9941_v56 }
 0xb62   : > { %v9864_v7 = vpop.f32.mrf.mxu2  ;;  %10102 = vmatmul.bf16.gmra.mxu3 %v17925_v26 }
 0xb63   : > { %v18050_v32 = vadd.f32 %v9864_v7, %v9663_v6  ;;  %v9664_v42 = vpop.f32.mrf.mxu1  ;;  %v9530_v23 = vpop.f32.mrf.mxu0 }
 0xb64   : > { %v9665_v3 = vadd.f32 %v9664_v42, %v9527_v62  ;;  %v10651_v62 = vpack.c.bf16 %v10626_v54, %v10625_v11  ;;  %v10393_v54 = vld [vmem:[#allocation2 + $0xc2] sm:$0xff] }
 0xb65   : > { %v10063_v17 = vpop.f32.mrf.mxu3  ;;  %v10628_v11 = vld [vmem:[#allocation2 + $0xe0] sm:$0xff] }
 0xb66   : > { %v18056_v2 = vadd.f32 %v10063_v17, %v17915_v36  ;;  %10296 = vmatmul.bf16.gmra.mxu0 %v18053_v45  ;;  %v18075_v17 = vpack.c.bf16 %v10160_v51, %v10159_v59 }
 0xb6a   : > { %v9866_v40 = vpop.f32.mrf.mxu2 }
 0xb6b   : > { %v18059_v14 = vadd.f32 %v9866_v40, %v9665_v3  ;;  %v9667_v26 = vpop.f32.mrf.mxu1  ;;  %v9532_v18 = vpop.f32.mrf.mxu0 }
 0xb6c   : > { %v9668_v5 = vadd.f32 %v9667_v26, %v9530_v23  ;;  %v10394_v26 = vld [vmem:[#allocation2 + $0xca] sm:$0xff] }
 0xb6d   : > { %v10065_v6 = vpop.f32.mrf.mxu3  ;;  %v18083_v56 = vpack.c.bf16 %v10394_v26, %v10393_v54 }
 0xb6e   : > { %v18064_v36 = vadd.f32 %v10065_v6, %v17922_v50  ;;  %10530 = vmatmul.bf16.gmra.mxu1 %v18061_v16  ;;  %v10627_v6 = vld [vmem:[#allocation2 + $0xd8] sm:$0xff] }
 0xb6f   : > { %10764 = vmatmul.bf16.gmra.mxu2 %v10651_v62 }
 0xb72   : > { %v9869_v7 = vpop.f32.mrf.mxu2  ;;  %10107 = vmatmul.bf16.gmra.mxu3 %v18070_v39 }
 0xb73   : > { %v18072_v42 = vadd.f32 %v9869_v7, %v9668_v5  ;;  %v9669_v23 = vpop.f32.mrf.mxu1  ;;  %v9535_v50 = vpop.f32.mrf.mxu0 }
 0xb74   : > { %v9670_v3 = vadd.f32 %v9669_v23, %v9532_v18  ;;  %v10652_v18 = vpack.c.bf16 %v10628_v11, %v10627_v6  ;;  %v10162_v23 = vld [vmem:[#allocation2 + $0xe1] sm:$0xff] }
 0xb75   : > { %v10068_v40 = vpop.f32.mrf.mxu3 }
 0xb76   : > { %v18078_v13 = vadd.f32 %v10068_v40, %v17928_v21  ;;  %10301 = vmatmul.bf16.gmra.mxu0 %v18075_v17 }
 0xb7a   : > { %v9871_v30 = vpop.f32.mrf.mxu2 }
 0xb7b   : > { %v18081_v5 = vadd.f32 %v9871_v30, %v9670_v3  ;;  %v9672_v62 = vpop.f32.mrf.mxu1  ;;  %v9537_v49 = vpop.f32.mrf.mxu0  ;;  %v10161_v30 = vld [vmem:[#allocation2 + $0xd9] sm:$0xff] }
 0xb7c   : > { %v9673_v12 = vadd.f32 %v9672_v62, %v9535_v50  ;;  %v18093_v26 = vpack.c.bf16 %v10162_v23, %v10161_v30  ;;  %v10629_v23 = vld [vmem:[#allocation2 + $0xf0] sm:$0xff] }
 0xb7d   : > { %v10070_v7 = vpop.f32.mrf.mxu3 }
 0xb7e   : > { %v18086_v51 = vadd.f32 %v10070_v7, %v17937_v61  ;;  %10535 = vmatmul.bf16.gmra.mxu1 %v18083_v56  ;;  %v9600_v61 = vadd.f32 %v17749_v58, %v17739_v57  ;;  %v10630_v7 = vld [vmem:[#allocation2 + $0xf8] sm:$0xff] }
 0xb7f   : > { %10769 = vmatmul.bf16.gmra.mxu2 %v10652_v18  ;;  %v10396_v18 = vld [vmem:[#allocation2 + $0xe2] sm:$0xff]  ;;  %v10653_v58 = vpack.c.bf16 %v10630_v7, %v10629_v23  ;;  %v10397_v23 = vld [vmem:[#allocation2 + $0xf2] sm:$0xff] }
 0xb80   : > { %v9880_v6 = vadd.f32 %v17758_v15, %v9600_v61  ;;  %v13876_v15 = vld [vmem:[%s18561_s9 + $0x210] sm:$0xff] }
 0xb81   : > { %11199 = vmatpush.bf16.msrb.mxu0 %v13876_v15 }
 0xb82   : > { %v9874_v21 = vpop.f32.mrf.mxu2  ;;  %10968 = vmatmul.bf16.vlgmr.msrb.gmra.mxu3 %v17947_v19 }
 0xb83   : > { %v18089_v59 = vadd.f32 %v9874_v21, %v9673_v12  ;;  %v9674_v3 = vpop.f32.mrf.mxu1  ;;  %v10267_v40 = vpop.f32.mrf.mxu0  ;;  %v10395_v12 = vld [vmem:[#allocation2 + $0xda] sm:$0xff] }
 0xb84   : > { %v9675_v50 = vadd.f32 %v9674_v3, %v9537_v49  ;;  %v10347_v54 = vadd.f32 %v10267_v40, %v17932_v53  ;;  %v10114_v49 = vadd.f32 %v17939_v63, %v9880_v6  ;;  %v18105_v57 = vpack.c.bf16 %v10396_v18, %v10395_v12 }
 0xb85   : > { %v10073_v11 = vpop.f32.mrf.mxu3 }
 0xb86   : > { %v18098_v62 = vadd.f32 %v10073_v11, %v17944_v52  ;;  %10306 = vmatmul.bf16.gmra.mxu0 %v18093_v26 }
 0xb8a   : > { %v9876_v19 = vpop.f32.mrf.mxu2 }
 0xb8b   : > { %v18103_v53 = vadd.f32 %v9876_v19, %v9675_v50  ;;  %v10501_v21 = vpop.f32.mrf.mxu1  ;;  %v10269_v3 = vpop.f32.mrf.mxu0  ;;  %v10164_v50 = vld [vmem:[#allocation2 + $0xf9] sm:$0xff]  ;;  %v10163_v19 = vld [vmem:[#allocation2 + $0xf1] sm:$0xff] }
 0xb8c   : > { %v10581_v40 = vadd.f32 %v10501_v21, %v10347_v54  ;;  %v10348_v52 = vadd.f32 %v10269_v3, %v10114_v49  ;;  %v18118_v18 = vpack.c.bf16 %v10164_v50, %v10163_v19  ;;  %v10398_v3 = vld [vmem:[#allocation2 + $0xfa] sm:$0xff]  ;;  %v10166_v19 = vld [vmem:[#allocation2 + $0x111] sm:$0xff] }
 0xb8d   : > { %v10075_v30 = vpop.f32.mrf.mxu3 }
 0xb8e   : > { %v18108_v11 = vadd.f32 %v10075_v30, %v17953_v9  ;;  %10540 = vmatmul.bf16.gmra.mxu1 %v18105_v57  ;;  %v10631_v30 = vld [vmem:[#allocation2 + $0x108] sm:$0xff] }
 0xb8f   : > { %10774 = vmatmul.bf16.gmra.mxu2 %v10653_v58 }
 0xb92   : > { %v10735_v63 = vpop.f32.mrf.mxu2  ;;  %10973 = vmatmul.bf16.gmra.mxu3 %v17961_v48 }
 0xb93   : > { %v18114_v61 = vadd.f32 %v10735_v63, %v10581_v40  ;;  %v10503_v54 = vpop.f32.mrf.mxu1  ;;  %v10272_v6 = vpop.f32.mrf.mxu0  ;;  %v10632_v40 = vld [vmem:[#allocation2 + $0x110] sm:$0xff]  ;;  %v18126_v63 = vpack.c.bf16 %v10398_v3, %v10397_v23 }
 0xb94   : > { %v10582_v12 = vadd.f32 %v10503_v54, %v10348_v52  ;;  %v10349_v9 = vadd.f32 %v10272_v6, %v17950_v47  ;;  %v10654_v47 = vpack.c.bf16 %v10632_v40, %v10631_v30  ;;  %v10399_v30 = vld [vmem:[#allocation2 + $0x10a] sm:$0xff] }
 0xb95   : > { %v10078_v7 = vpop.f32.mrf.mxu3  ;;  %18921 = vst [vmem:[#allocation17_spill] sm:$0xff] %v18126_v63 }
 0xb96   : > { %v18121_v49 = vadd.f32 %v10078_v7, %v17958_v25  ;;  %10311 = vmatmul.bf16.gmra.mxu0 %v18118_v18 }
 0xb9a   : > { %v10737_v21 = vpop.f32.mrf.mxu2 }
 0xb9b   : > { %v18124_v58 = vadd.f32 %v10737_v21, %v10582_v12  ;;  %v10506_v48 = vpop.f32.mrf.mxu1  ;;  %v10274_v15 = vpop.f32.mrf.mxu0  ;;  %v10165_v21 = vld [vmem:[#allocation2 + $0x109] sm:$0xff] }
 0xb9c   : > { %v10583_v52 = vadd.f32 %v10506_v48, %v10349_v9  ;;  %v10350_v50 = vadd.f32 %v10274_v15, %v17956_v38  ;;  %v18137_v38 = vpack.c.bf16 %v10166_v19, %v10165_v21  ;;  %v10400_v15 = vld [vmem:[#allocation2 + $0x112] sm:$0xff]  ;;  %v13875_v21 = vld [vmem:[%s18561_s9 + $0x208] sm:$0xff] }
 0xb9d   : > { %v10080_v54 = vpop.f32.mrf.mxu3  ;;  %11200 = vmatpush.bf16.msrb.mxu0 %v13875_v21 }
 0xb9e   : > { %v18130_v25 = vadd.f32 %v10080_v54, %v17970_v43  ;;  %10545 = vmatmul.bf16.gmra.mxu1 %v18126_v63  ;;  %v10633_v54 = vld [vmem:[#allocation2 + $0x120] sm:$0xff] }
 0xb9f   : > { %10779 = vmatmul.bf16.gmra.mxu2 %v10654_v47 }
 0xba2   : > { %v10740_v6 = vpop.f32.mrf.mxu2  ;;  %10978 = vmatmul.bf16.gmra.mxu3 %v17984_v20 }
 0xba3   : > { %v18133_v12 = vadd.f32 %v10740_v6, %v10583_v52  ;;  %v10508_v7 = vpop.f32.mrf.mxu1  ;;  %v10277_v9 = vpop.f32.mrf.mxu0  ;;  %v10634_v52 = vld [vmem:[#allocation2 + $0x128] sm:$0xff] }
 0xba4   : > { %v10584_v23 = vadd.f32 %v10508_v7, %v10350_v50  ;;  %v10351_v3 = vadd.f32 %v10277_v9, %v17964_v33  ;;  %v18145_v7 = vpack.c.bf16 %v10400_v15, %v10399_v30  ;;  %v10655_v33 = vpack.c.bf16 %v10634_v52, %v10633_v54  ;;  %v10167_v30 = vld [vmem:[#allocation2 + $0x121] sm:$0xff] }
 0xba5   : > { %v10083_v40 = vpop.f32.mrf.mxu3 }
 0xba6   : > { %v18140_v43 = vadd.f32 %v10083_v40, %v17981_v24  ;;  %10316 = vmatmul.bf16.gmra.mxu0 %v18137_v38  ;;  %18922 = vst [vmem:[#allocation61_spill] sm:$0xff] %v18145_v7  ;;  %v10168_v40 = vld [vmem:[#allocation2 + $0x129] sm:$0xff] }
 0xba7   : > { %v18159_v52 = vpack.c.bf16 %v10168_v40, %v10167_v30 }
 0xbaa   : > { %v10742_v48 = vpop.f32.mrf.mxu2 }
 0xbab   : > { %v18143_v47 = vadd.f32 %v10742_v48, %v10584_v23  ;;  %v10511_v20 = vpop.f32.mrf.mxu1  ;;  %v10279_v6 = vpop.f32.mrf.mxu0 }
 0xbac   : > { %v10585_v50 = vadd.f32 %v10511_v20, %v10351_v3  ;;  %v10352_v19 = vadd.f32 %v10279_v6, %v17975_v60 }
 0xbad   : > { %v10085_v9 = vpop.f32.mrf.mxu3 }
 0xbae   : > { %v18149_v24 = vadd.f32 %v10085_v9, %v17990_v55  ;;  %10550 = vmatmul.bf16.gmra.mxu1 %v18145_v7  ;;  %v10636_v9 = vld [vmem:[#allocation2 + $0x140] sm:$0xff] }
 0xbaf   : > { %10784 = vmatmul.bf16.gmra.mxu2 %v10655_v33  ;;  %v10401_v33 = vld [vmem:[#allocation2 + $0x122] sm:$0xff] }
 0xbb2   : > { %v10745_v23 = vpop.f32.mrf.mxu2  ;;  %10983 = vmatmul.bf16.gmra.mxu3 %v18001_v46 }
 0xbb3   : > { %v18155_v3 = vadd.f32 %v10745_v23, %v10585_v50  ;;  %v10513_v48 = vpop.f32.mrf.mxu1  ;;  %v10282_v60 = vpop.f32.mrf.mxu0  ;;  %v10402_v50 = vld [vmem:[#allocation2 + $0x12a] sm:$0xff]  ;;  %v10635_v23 = vld [vmem:[#allocation2 + $0x138] sm:$0xff] }
 0xbb4   : > { %v10586_v15 = vadd.f32 %v10513_v48, %v10352_v19  ;;  %v10353_v55 = vadd.f32 %v10282_v60, %v17987_v0  ;;  %v18167_v48 = vpack.c.bf16 %v10402_v50, %v10401_v33  ;;  %v10656_v0 = vpack.c.bf16 %v10636_v9, %v10635_v23  ;;  %v10169_v33 = vld [vmem:[#allocation2 + $0x139] sm:$0xff] }
 0xbb5   : > { %v10088_v20 = vpop.f32.mrf.mxu3  ;;  %v10403_v23 = vld [vmem:[#allocation2 + $0x13a] sm:$0xff] }
 0xbb6   : > { %v18162_v54 = vadd.f32 %v10088_v20, %v17998_v10  ;;  %10321 = vmatmul.bf16.gmra.mxu0 %v18159_v52  ;;  %18923 = vst [vmem:[#allocation46_spill] sm:$0xff] %v18167_v48  ;;  %v10170_v20 = vld [vmem:[#allocation2 + $0x141] sm:$0xff] }
 0xbba   : > { %v10747_v6 = vpop.f32.mrf.mxu2 }
 0xbbb   : > { %v18165_v21 = vadd.f32 %v10747_v6, %v10586_v15  ;;  %v10516_v46 = vpop.f32.mrf.mxu1  ;;  %v10284_v7 = vpop.f32.mrf.mxu0 }
 0xbbc   : > { %v10587_v19 = vadd.f32 %v10516_v46, %v10353_v55  ;;  %v10354_v40 = vadd.f32 %v10284_v7, %v17995_v1  ;;  %v18178_v1 = vpack.c.bf16 %v10170_v20, %v10169_v33  ;;  %v13874_v33 = vld [vmem:[%s18561_s9 + $0x200] sm:$0xff] }
 0xbbd   : > { %v10090_v60 = vpop.f32.mrf.mxu3  ;;  %11201 = vmatpush.bf16.msrb.mxu0 %v13874_v33 }
 0xbbe   : > { %v18171_v10 = vadd.f32 %v10090_v60, %v18010_v44  ;;  %10555 = vmatmul.bf16.gmra.mxu1 %v18167_v48 }
 0xbbf   : > { %10789 = vmatmul.bf16.gmra.mxu2 %v10656_v0  ;;  %v10638_v0 = vld [vmem:[#allocation2 + $0x158] sm:$0xff] }
 0xbc2   : > { %v10750_v30 = vpop.f32.mrf.mxu2  ;;  %10988 = vmatmul.bf16.gmra.mxu3 %v18024_v31 }
 0xbc3   : > { %v18174_v15 = vadd.f32 %v10750_v30, %v10587_v19  ;;  %v10518_v6 = vpop.f32.mrf.mxu1  ;;  %v10287_v55 = vpop.f32.mrf.mxu0  ;;  %v10404_v19 = vld [vmem:[#allocation2 + $0x142] sm:$0xff]  ;;  %v10637_v30 = vld [vmem:[#allocation2 + $0x150] sm:$0xff] }
 0xbc4   : > { %v10588_v50 = vadd.f32 %v10518_v6, %v10354_v40  ;;  %v10355_v9 = vadd.f32 %v10287_v55, %v18004_v41  ;;  %v18186_v6 = vpack.c.bf16 %v10404_v19, %v10403_v23  ;;  %v10657_v41 = vpack.c.bf16 %v10638_v0, %v10637_v30 }
 0xbc5   : > { %v10093_v7 = vpop.f32.mrf.mxu3 }
 0xbc6   : > { %v18181_v44 = vadd.f32 %v10093_v7, %v18021_v27  ;;  %10326 = vmatmul.bf16.gmra.mxu0 %v18178_v1  ;;  %18924 = vst [vmem:[#allocation74_spill] sm:$0xff] %v18186_v6  ;;  %v10172_v7 = vld [vmem:[#allocation2 + $0x159] sm:$0xff] }
 0xbca   : > { %v10752_v46 = vpop.f32.mrf.mxu2 }
 0xbcb   : > { %v18184_v60 = vadd.f32 %v10752_v46, %v10588_v50  ;;  %v10521_v31 = vpop.f32.mrf.mxu1  ;;  %v10289_v48 = vpop.f32.mrf.mxu0 }
 0xbcc   : > { %v10589_v40 = vadd.f32 %v10521_v31, %v10355_v9  ;;  %v10356_v20 = vadd.f32 %v10289_v48, %v18015_v28  ;;  %v10171_v48 = vld [vmem:[#allocation2 + $0x151] sm:$0xff] }
 0xbcd   : > { %v10095_v55 = vpop.f32.mrf.mxu3  ;;  %v18200_v23 = vpack.c.bf16 %v10172_v7, %v10171_v48 }
 0xbce   : > { %v18190_v27 = vadd.f32 %v10095_v55, %v18036_v29  ;;  %10560 = vmatmul.bf16.gmra.mxu1 %v18186_v6  ;;  %v10640_v55 = vld [vmem:[#allocation2 + $0x170] sm:$0xff] }
 0xbcf   : > { %10794 = vmatmul.bf16.gmra.mxu2 %v10657_v41  ;;  %v10405_v41 = vld [vmem:[#allocation2 + $0x152] sm:$0xff] }
 0xbd2   : > { %v10755_v50 = vpop.f32.mrf.mxu2  ;;  %10993 = vmatmul.bf16.gmra.mxu3 %v18053_v45 }
 0xbd3   : > { %v18196_v9 = vadd.f32 %v10755_v50, %v10589_v40  ;;  %v10523_v46 = vpop.f32.mrf.mxu1  ;;  %v10292_v28 = vpop.f32.mrf.mxu0  ;;  %v10406_v40 = vld [vmem:[#allocation2 + $0x15a] sm:$0xff]  ;;  %v10639_v50 = vld [vmem:[#allocation2 + $0x168] sm:$0xff] }
 0xbd4   : > { %v10357_v29 = vadd.f32 %v10292_v28, %v18030_v37  ;;  %v10590_v31 = vadd.f32 %v10523_v46, %v10356_v20  ;;  %v18208_v37 = vpack.c.bf16 %v10406_v40, %v10405_v41  ;;  %v10658_v7 = vpack.c.bf16 %v10640_v55, %v10639_v50  ;;  %v10174_v46 = vld [vmem:[#allocation2 + $0x171] sm:$0xff] }
 0xbd5   : > { %v10098_v19 = vpop.f32.mrf.mxu3 }
 0xbd6   : > { %v18203_v0 = vadd.f32 %v10098_v19, %v18050_v32  ;;  %10331 = vmatmul.bf16.gmra.mxu0 %v18200_v23 }
 0xbda   : > { %v10757_v30 = vpop.f32.mrf.mxu2 }
 0xbdb   : > { %v18206_v33 = vadd.f32 %v10757_v30, %v10590_v31  ;;  %v10526_v45 = vpop.f32.mrf.mxu1  ;;  %v10294_v6 = vpop.f32.mrf.mxu0  ;;  %v10173_v30 = vld [vmem:[#allocation2 + $0x169] sm:$0xff] }
 0xbdc   : > { %v10591_v63 = vadd.f32 %v10526_v45, %v10357_v29  ;;  %v10358_v28 = vadd.f32 %v10294_v6, %v18044_v35  ;;  %v18219_v35 = vpack.c.bf16 %v10174_v46, %v10173_v30  ;;  %v10407_v45 = vld [vmem:[#allocation2 + $0x16a] sm:$0xff] }
 0xbdd   : > { %v10100_v32 = vpop.f32.mrf.mxu3 }
 0xbde   : > { %v18212_v48 = vadd.f32 %v10100_v32, %v18059_v14  ;;  %10565 = vmatmul.bf16.gmra.mxu1 %v18208_v37 }
 0xbdf   : > { %10799 = vmatmul.bf16.gmra.mxu2 %v10658_v7 }
 0xbe2   : > { %v10760_v20 = vpop.f32.mrf.mxu2  ;;  %10998 = vmatmul.bf16.gmra.mxu3 %v18075_v17 }
 0xbe3   : > { %v18215_v19 = vadd.f32 %v10760_v20, %v10591_v63  ;;  %v10528_v31 = vpop.f32.mrf.mxu1  ;;  %v10297_v29 = vpop.f32.mrf.mxu0  ;;  %v10408_v63 = vld [vmem:[#allocation2 + $0x172] sm:$0xff] }
 0xbe4   : > { %v10592_v41 = vadd.f32 %v10528_v31, %v10358_v28  ;;  %v10359_v40 = vadd.f32 %v10297_v29, %v18056_v2  ;;  %v18227_v20 = vpack.c.bf16 %v10408_v63, %v10407_v45  ;;  %v10176_v31 = vld [vmem:[#allocation2 + $0x189] sm:$0xff]  ;;  %v10644_v63 = vld [vmem:[#allocation2 + $0x1a0] sm:$0xff] }
 0xbe5   : > { %v10103_v6 = vpop.f32.mrf.mxu3 }
 0xbe6   : > { %v18222_v14 = vadd.f32 %v10103_v6, %v18072_v42  ;;  %10336 = vmatmul.bf16.gmra.mxu0 %v18219_v35  ;;  %18925 = vst [vmem:[#allocation47_spill] sm:$0xff] %v18227_v20 }
 0xbea   : > { %v10762_v55 = vpop.f32.mrf.mxu2 }
 0xbeb   : > { %v18225_v50 = vadd.f32 %v10762_v55, %v10592_v41  ;;  %v10531_v17 = vpop.f32.mrf.mxu1  ;;  %v10299_v7 = vpop.f32.mrf.mxu0 }
 0xbec   : > { %v10593_v32 = vadd.f32 %v10531_v17, %v10359_v40  ;;  %v10360_v2 = vadd.f32 %v10299_v7, %v18064_v36  ;;  %v10175_v40 = vld [vmem:[#allocation2 + $0x181] sm:$0xff] }
 0xbed   : > { %v10105_v28 = vpop.f32.mrf.mxu3  ;;  %v18239_v55 = vpack.c.bf16 %v10176_v31, %v10175_v40  ;;  %v10409_v7 = vld [vmem:[#allocation2 + $0x182] sm:$0xff] }
 0xbee   : > { %v18231_v46 = vadd.f32 %v10105_v28, %v18081_v5  ;;  %10570 = vmatmul.bf16.gmra.mxu1 %v18227_v20  ;;  %v11082_v20 = vld [vmem:[#allocation2 + $0x3a] sm:$0xff] }
 0xbef   : > { %10804 = vmatmul.bf16.gmra.mxu2 %v18070_v39  ;;  %v10643_v39 = vld [vmem:[#allocation2 + $0x198] sm:$0xff] }
 0xbf0   : > { %v10660_v28 = vpack.c.bf16 %v10644_v63, %v10643_v39 }
 0xbf2   : > { %v10765_v42 = vpop.f32.mrf.mxu2  ;;  %11003 = vmatmul.bf16.gmra.mxu3 %v18093_v26 }
 0xbf3   : > { %v18235_v29 = vadd.f32 %v10765_v42, %v10593_v32  ;;  %v10533_v30 = vpop.f32.mrf.mxu1  ;;  %v10302_v41 = vpop.f32.mrf.mxu0  ;;  %v10410_v32 = vld [vmem:[#allocation2 + $0x18a] sm:$0xff] }
 0xbf4   : > { %v10594_v6 = vadd.f32 %v10533_v30, %v10360_v2  ;;  %v10361_v36 = vadd.f32 %v10302_v41, %v18078_v13  ;;  %v18247_v13 = vpack.c.bf16 %v10410_v32, %v10409_v7 }
 0xbf5   : > { %v10108_v5 = vpop.f32.mrf.mxu3 }
 0xbf6   : > { %v18242_v45 = vadd.f32 %v10108_v5, %v18089_v59  ;;  %10341 = vmatmul.bf16.gmra.mxu0 %v18239_v55  ;;  %v11081_v5 = vld [vmem:[#allocation2 + $0x32] sm:$0xff] }
 0xbfa   : > { %v10767_v17 = vpop.f32.mrf.mxu2 }
 0xbfb   : > { %v18245_v26 = vadd.f32 %v10767_v17, %v10594_v6  ;;  %v10536_v42 = vpop.f32.mrf.mxu1  ;;  %v10304_v2 = vpop.f32.mrf.mxu0 }
 0xbfc   : > { %v10595_v30 = vadd.f32 %v10536_v42, %v10361_v36  ;;  %v10362_v31 = vadd.f32 %v10304_v2, %v18086_v51  ;;  %v11113_v51 = vpack.c.bf16 %v11082_v20, %v11081_v5 }
 0xbfd   : > { %v10110_v41 = vpop.f32.mrf.mxu3 }
 0xbfe   : > { %v18251_v59 = vadd.f32 %v10110_v41, %v18103_v53  ;;  %10575 = vmatmul.bf16.gmra.mxu1 %v18247_v13 }
 0xbff   : > { %10809 = vmatmul.bf16.gmra.mxu2 %v10660_v28 }
 0xc02   : > { %v10770_v40 = vpop.f32.mrf.mxu2  ;;  %11008 = vmatmul.bf16.gmra.mxu3 %v18118_v18 }
 0xc03   : > { %v18254_v6 = vadd.f32 %v10770_v40, %v10595_v30  ;;  %v10538_v39 = vpop.f32.mrf.mxu1  ;;  %v10307_v36 = vpop.f32.mrf.mxu0 }
 0xc04   : > { %v10596_v63 = vadd.f32 %v10538_v39, %v10362_v31  ;;  %v10363_v17 = vadd.f32 %v10307_v36, %v18098_v62 }
 0xc05   : > { %v10969_v7 = vpop.f32.mrf.mxu3 }
 0xc06   : > { %v18259_v53 = vadd.f32 %v10969_v7, %v18114_v61  ;;  %11202 = vmatmul.bf16.vlgmr.msrb.gmra.mxu0 %v11113_v51 }
 0xc0a   : > { %v10772_v32 = vpop.f32.mrf.mxu2 }
 0xc0b   : > { %v18261_v28 = vadd.f32 %v10772_v32, %v10596_v63  ;;  %v10541_v42 = vpop.f32.mrf.mxu1  ;;  %v10309_v2 = vpop.f32.mrf.mxu0 }
 0xc0c   : > { %v10597_v30 = vadd.f32 %v10541_v42, %v10363_v17  ;;  %v10364_v41 = vadd.f32 %v10309_v2, %v18108_v11 }
 0xc0d   : > { %v10971_v18 = vpop.f32.mrf.mxu3 }
 0xc0e   : > { %v18265_v40 = vadd.f32 %v10971_v18, %v18124_v58 }
 0xc12   : > { %v10775_v31 = vpop.f32.mrf.mxu2  ;;  %11013 = vmatmul.bf16.gmra.mxu3 %v18137_v38 }
 0xc13   : > { %v18267_v62 = vadd.f32 %v10775_v31, %v10597_v30  ;;  %v10543_v61 = vpop.f32.mrf.mxu1  ;;  %v10312_v20 = vpop.f32.mrf.mxu0 }
 0xc14   : > { %v10598_v5 = vadd.f32 %v10543_v61, %v10364_v41  ;;  %v10365_v39 = vadd.f32 %v10312_v20, %v18121_v49 }
 0xc15   : > { %v10974_v36 = vpop.f32.mrf.mxu3 }
 0xc16   : > { %v18272_v63 = vadd.f32 %v10974_v36, %v18133_v12  ;;  %11207 = vmatmul.bf16.gmra.mxu0 %v17972_v34 }
 0xc1a   : > { %v10777_v11 = vpop.f32.mrf.mxu2 }
 0xc1b   : > { %v18275_v17 = vadd.f32 %v10777_v11, %v10598_v5  ;;  %v10546_v58 = vpop.f32.mrf.mxu1  ;;  %v10314_v51 = vpop.f32.mrf.mxu0 }
 0xc1c   : > { %v10599_v7 = vadd.f32 %v10546_v58, %v10365_v39  ;;  %v10366_v32 = vadd.f32 %v10314_v51, %v18130_v25 }
 0xc1d   : > { %v10976_v38 = vpop.f32.mrf.mxu3 }
 0xc1e   : > { %v18279_v42 = vadd.f32 %v10976_v38, %v18143_v47 }
 0xc22   : > { %v10780_v2 = vpop.f32.mrf.mxu2  ;;  %11018 = vmatmul.bf16.gmra.mxu3 %v18159_v52 }
 0xc23   : > { %v18281_v49 = vadd.f32 %v10780_v2, %v10599_v7  ;;  %v10548_v12 = vpop.f32.mrf.mxu1  ;;  %v10317_v30 = vpop.f32.mrf.mxu0 }
 0xc24   : > { %v10600_v34 = vadd.f32 %v10548_v12, %v10366_v32  ;;  %v10367_v41 = vadd.f32 %v10317_v30, %v18140_v43 }
 0xc25   : > { %v10979_v18 = vpop.f32.mrf.mxu3 }
 0xc26   : > { %v18286_v31 = vadd.f32 %v10979_v18, %v18155_v3  ;;  %11212 = vmatmul.bf16.gmra.mxu0 %v17992_v4 }
 0xc2a   : > { %v10782_v25 = vpop.f32.mrf.mxu2 }
 0xc2b   : > { %v18289_v61 = vadd.f32 %v10782_v25, %v10600_v34  ;;  %v10551_v47 = vpop.f32.mrf.mxu1  ;;  %v10319_v20 = vpop.f32.mrf.mxu0 }
 0xc2c   : > { %v10601_v5 = vadd.f32 %v10551_v47, %v10367_v41  ;;  %v18292_v39 = vadd.f32 %v10319_v20, %v18149_v24  ;;  %v10878_v41 = vld [vmem:[#allocation2 + $0x1a1] sm:$0xff] }
 0xc2d   : > { %v10981_v52 = vpop.f32.mrf.mxu3 }
 0xc2e   : > { %v18295_v36 = vadd.f32 %v10981_v52, %v18165_v21  ;;  %v13889_v52 = vld [vmem:[%s18563_s11 + $0x38] sm:$0xff] }
 0xc2f   : > { %11551 = vmatpush.bf16.msra.mxu1 %v13889_v52  ;;  %v18931_v52 = vld [vmem:[#allocation49_spill] sm:$0xff] }
 0xc32   : > { %v10785_v43 = vpop.f32.mrf.mxu2  ;;  %11023 = vmatmul.bf16.gmra.mxu3 %v18178_v1 }
 0xc33   : > { %v18297_v11 = vadd.f32 %v10785_v43, %v10601_v5  ;;  %v10322_v3 = vpop.f32.mrf.mxu0 }
 0xc34   : > { %v18301_v4 = vadd.f32 %v10322_v3, %v18162_v54 }
 0xc35   : > { %v10984_v58 = vpop.f32.mrf.mxu3 }
 0xc36   : > { %v18304_v51 = vadd.f32 %v10984_v58, %v18174_v15  ;;  %11217 = vmatmul.bf16.gmra.mxu0 %v18012_v8 }
 0xc3b   : > { %v10324_v24 = vpop.f32.mrf.mxu0 }
 0xc3c   : > { %v18308_v7 = vadd.f32 %v10324_v24, %v18171_v10 }
 0xc3d   : > { %v10986_v21 = vpop.f32.mrf.mxu3 }
 0xc3e   : > { %v18311_v32 = vadd.f32 %v10986_v21, %v18184_v60 }
 0xc42   : > { %11028 = vmatmul.bf16.gmra.mxu3 %v18200_v23 }
 0xc43   : > { %v10327_v1 = vpop.f32.mrf.mxu0 }
 0xc44   : > { %v18315_v54 = vadd.f32 %v10327_v1, %v18181_v44  ;;  %v18927_v1 = vld [vmem:[#allocation64_spill] sm:$0xff] }
 0xc45   : > { %v10989_v38 = vpop.f32.mrf.mxu3 }
 0xc46   : > { %v18318_v15 = vadd.f32 %v10989_v38, %v18196_v9  ;;  %11222 = vmatmul.bf16.gmra.mxu0 %v18038_v22 }
 0xc4b   : > { %v10329_v8 = vpop.f32.mrf.mxu0 }
 0xc4c   : > { %v18322_v10 = vadd.f32 %v10329_v8, %v18190_v27  ;;  %v18928_v8 = vld [vmem:[#allocation65_spill] sm:$0xff] }
 0xc4d   : > { %v10991_v2 = vpop.f32.mrf.mxu3 }
 0xc4e   : > { %v18325_v60 = vadd.f32 %v10991_v2, %v18206_v33 }
 0xc52   : > { %11033 = vmatmul.bf16.gmra.mxu3 %v18219_v35 }
 0xc53   : > { %v10332_v23 = vpop.f32.mrf.mxu0 }
 0xc54   : > { %v18329_v44 = vadd.f32 %v10332_v23, %v18203_v0 }
 0xc55   : > { %v10994_v12 = vpop.f32.mrf.mxu3 }
 0xc56   : > { %v18332_v9 = vadd.f32 %v10994_v12, %v18215_v19  ;;  %11227 = vmatmul.bf16.gmra.mxu0 %v18061_v16  ;;  %v10877_v16 = vld [vmem:[#allocation2 + $0x199] sm:$0xff] }
 0xc5b   : > { %v10334_v22 = vpop.f32.mrf.mxu0 }
 0xc5c   : > { %v18336_v27 = vadd.f32 %v10334_v22, %v18212_v48 }
 0xc5d   : > { %v10996_v30 = vpop.f32.mrf.mxu3 }
 0xc5e   : > { %v18339_v33 = vadd.f32 %v10996_v30, %v18225_v50 }
 0xc62   : > { %11038 = vmatmul.bf16.gmra.mxu3 %v18239_v55  ;;  %v10894_v55 = vpack.c.bf16 %v10878_v41, %v10877_v16  ;;  %v18929_v41 = vld [vmem:[#allocation61_spill] sm:$0xff] }
 0xc63   : > { %v10337_v35 = vpop.f32.mrf.mxu0 }
 0xc64   : > { %v18343_v0 = vadd.f32 %v10337_v35, %v18222_v14 }
 0xc65   : > { %v10999_v34 = vpop.f32.mrf.mxu3 }
 0xc66   : > { %v18346_v19 = vadd.f32 %v10999_v34, %v18235_v29  ;;  %11232 = vmatmul.bf16.gmra.mxu0 %v18083_v56 }
 0xc6b   : > { %v10339_v48 = vpop.f32.mrf.mxu0 }
 0xc6c   : > { %v18350_v18 = vadd.f32 %v10339_v48, %v18231_v46 }
 0xc6d   : > { %v11001_v50 = vpop.f32.mrf.mxu3 }
 0xc6e   : > { %v18353_v25 = vadd.f32 %v11001_v50, %v18245_v26 }
 0xc72   : > { %11043 = vmatmul.bf16.gmra.mxu3 %v10894_v55 }
 0xc73   : > { %v10342_v14 = vpop.f32.mrf.mxu0 }
 0xc74   : > { %v18356_v47 = vadd.f32 %v10342_v14, %v18242_v45 }
 0xc75   : > { %v11004_v29 = vpop.f32.mrf.mxu3 }
 0xc76   : > { %v18359_v20 = vadd.f32 %v11004_v29, %v18254_v6  ;;  %11237 = vmatmul.bf16.gmra.mxu0 %v18105_v57  ;;  %v18378_v57 = vld [vmem:[%s18562_s10] ss:$0 sm:$0xff] }
 0xc7b   : > { %v10344_v56 = vpop.f32.mrf.mxu0 }
 0xc7c   : > { %v18363_v46 = vadd.f32 %v10344_v56, %v18251_v59  ;;  %v18926_v59 = vld [vmem:[#allocation17_spill] sm:$0xff] }
 0xc7d   : > { %v11006_v5 = vpop.f32.mrf.mxu3 }
 0xc7e   : > { %v18366_v26 = vadd.f32 %v11006_v5, %v18261_v28 }
 0xc83   : > { %v11203_v45 = vpop.f32.mrf.mxu0 }
 0xc84   : > { %v11283_v43 = vadd.f32 %v11203_v45, %v18259_v53 }
 0xc85   : > { %v11009_v6 = vpop.f32.mrf.mxu3 }
 0xc86   : > { %v18373_v3 = vadd.f32 %v11009_v6, %v18267_v62  ;;  %11242 = vmatmul.bf16.gmra.mxu0 %v18926_v59  ;;  %v11319_v28 = vadd.f32 %v18378_v57, %v11283_v43 }
 0xc88   : > { %v11383_v38 = vadd.f32 %v11319_v28, %v18927_v1 }
 0xc8a   : > { %v11415_v23 = vmax.f32 %v11383_v38, 0.0 }
 0xc8b   : > { %v11205_v58 = vpop.f32.mrf.mxu0 }
 0xc8c   : > { %v11284_v24 = vadd.f32 %v11205_v58, %v18265_v40 }
 0xc8d   : > { %v11011_v21 = vpop.f32.mrf.mxu3 }
 0xc8e   : > { %v18385_v53 = vadd.f32 %v11011_v21, %v18275_v17  ;;  %v11320_v62 = vadd.f32 %v18378_v57, %v11284_v24  ;;  %v18930_v17 = vld [vmem:[#allocation66_spill] sm:$0xff]  ;;  %v18933_v21 = vld [vmem:[#allocation69_spill] sm:$0xff] }
 0xc8f   : > { %v18932_v24 = vld [vmem:[#allocation46_spill] sm:$0xff] }
 0xc90   : > { %v11384_v2 = vadd.f32 %v11320_v62, %v18928_v8 }
 0xc92   : > { %v11416_v12 = vmax.f32 %v11384_v2, 0.0 }
 0xc93   : > { %v11208_v22 = vpop.f32.mrf.mxu0 }
 0xc94   : > { %v11447_v30 = vadd.f32 %v11416_v12, %v11415_v23  ;;  %v11285_v35 = vadd.f32 %v11208_v22, %v18272_v63  ;;  %v18934_v12 = vld [vmem:[#allocation67_spill] sm:$0xff] }
 0xc95   : > { %v11014_v34 = vpop.f32.mrf.mxu3 }
 0xc96   : > { %v18391_v16 = vadd.f32 %v11014_v34, %v18281_v49  ;;  %v11321_v40 = vadd.f32 %v18378_v57, %v11285_v35  ;;  %11247 = vmatmul.bf16.gmra.mxu0 %v18929_v41  ;;  %v13888_v49 = vld [vmem:[%s18563_s11 + $0x30] sm:$0xff]  ;;  %v18936_v41 = vld [vmem:[#allocation70_spill] sm:$0xff] }
 0xc97   : > { %11552 = vmatpush.bf16.msra.mxu1 %v13888_v49 }
 0xc98   : > { %v11385_v48 = vadd.f32 %v11321_v40, %v18930_v17  ;;  %v18935_v40 = vld [vmem:[#allocation74_spill] sm:$0xff] }
 0xc9a   : > { %v11417_v50 = vmax.f32 %v11385_v48, 0.0 }
 0xc9b   : > { %v11210_v55 = vpop.f32.mrf.mxu0 }
 0xc9c   : > { %v11448_v14 = vadd.f32 %v11447_v30, %v11417_v50  ;;  %v11286_v29 = vadd.f32 %v11210_v55, %v18279_v42 }
 0xc9d   : > { %v11016_v56 = vpop.f32.mrf.mxu3 }
 0xc9e   : > { %v18398_v5 = vadd.f32 %v11016_v56, %v18289_v61  ;;  %v11322_v63 = vadd.f32 %v18378_v57, %v11286_v29  ;;  %v13887_v29 = vld [vmem:[%s18563_s11 + $0x28] sm:$0xff]  ;;  %v18937_v56 = vld [vmem:[#allocation18_spill] sm:$0xff] }
 0xc9f   : > { %11553 = vmatpush.bf16.msra.mxu1 %v13887_v29 }
 0xca0   : > { %v11386_v45 = vadd.f32 %v11322_v63, %v18931_v52 }
 0xca2   : > { %v11418_v43 = vmax.f32 %v11386_v45, 0.0 }
 0xca3   : > { %v11213_v6 = vpop.f32.mrf.mxu0 }
 0xca4   : > { %v11449_v59 = vadd.f32 %v11448_v14, %v11418_v43  ;;  %v11287_v28 = vadd.f32 %v11213_v6, %v18286_v31  ;;  %v18938_v6 = vld [vmem:[#allocation20_spill] sm:$0xff] }
 0xca5   : > { %v11019_v58 = vpop.f32.mrf.mxu3 }
 0xca6   : > { %v18407_v42 = vadd.f32 %v11019_v58, %v18297_v11  ;;  %v11323_v61 = vadd.f32 %v18378_v57, %v11287_v28  ;;  %11252 = vmatmul.bf16.gmra.mxu0 %v18932_v24 }
 0xca8   : > { %v11387_v1 = vadd.f32 %v11323_v61, %v18933_v21  ;;  %v18939_v21 = vld [vmem:[#allocation21_spill] sm:$0xff] }
 0xcaa   : > { %v11419_v38 = vmax.f32 %v11387_v1, 0.0 }
 0xcab   : > { %v11215_v62 = vpop.f32.mrf.mxu0 }
 0xcac   : > { %v11450_v8 = vadd.f32 %v11449_v59, %v11419_v38  ;;  %v11288_v2 = vadd.f32 %v11215_v62, %v18295_v36 }
 0xcae   : > { %v11324_v23 = vadd.f32 %v18378_v57, %v11288_v2 }
 0xcb0   : > { %v11388_v22 = vadd.f32 %v11324_v23, %v18934_v12  ;;  %v18940_v23 = vld [vmem:[#allocation47_spill] sm:$0xff] }
 0xcb2   : > { %v11420_v31 = vmax.f32 %v11388_v22, 0.0 }
 0xcb3   : > { %v11218_v30 = vpop.f32.mrf.mxu0 }
 0xcb4   : > { %v11451_v35 = vadd.f32 %v11450_v8, %v11420_v31  ;;  %v11289_v11 = vadd.f32 %v11218_v30, %v18304_v51 }
 0xcb6   : > { %v11325_v34 = vadd.f32 %v18378_v57, %v11289_v11  ;;  %11257 = vmatmul.bf16.gmra.mxu0 %v18935_v40  ;;  %v13886_v11 = vld [vmem:[%s18563_s11 + $0x20] sm:$0xff] }
 0xcb7   : > { %11554 = vmatpush.bf16.msra.mxu1 %v13886_v11  ;;  %v10553_v11 = vpop.f32.mrf.mxu1 }
 0xcb8   : > { %v11389_v17 = vadd.f32 %v11325_v34, %v18936_v41  ;;  %v18942_v34 = vld [vmem:[#allocation23_spill] sm:$0xff] }
 0xcba   : > { %v11421_v48 = vmax.f32 %v11389_v17, 0.0 }
 0xcbb   : > { %v11220_v50 = vpop.f32.mrf.mxu0 }
 0xcbc   : > { %v11452_v55 = vadd.f32 %v11451_v35, %v11421_v48  ;;  %v11290_v36 = vadd.f32 %v11220_v50, %v18311_v32 }
 0xcbe   : > { %v11326_v14 = vadd.f32 %v18378_v57, %v11290_v36 }
 0xcc0   : > { %v11390_v63 = vadd.f32 %v11326_v14, %v18937_v56 }
 0xcc2   : > { %v11422_v51 = vmax.f32 %v11390_v63, 0.0 }
 0xcc3   : > { %v11223_v49 = vpop.f32.mrf.mxu0 }
 0xcc4   : > { %v11453_v52 = vadd.f32 %v11452_v55, %v11422_v51  ;;  %v11291_v45 = vadd.f32 %v11223_v49, %v18318_v15  ;;  %v18943_v55 = vld [vmem:[#allocation24_spill] sm:$0xff]  ;;  %v11111_v51 = vld [vmem:[#allocation2 + $0x19a] sm:$0xff]  ;;  %v11112_v49 = vld [vmem:[#allocation2 + $0x1a2] sm:$0xff] }
 0xcc6   : > { %v11327_v43 = vadd.f32 %v18378_v57, %v11291_v45  ;;  %11262 = vmatmul.bf16.gmra.mxu0 %v18208_v37  ;;  %v18941_v37 = vld [vmem:[#allocation22_spill] sm:$0xff] }
 0xcc8   : > { %v11391_v32 = vadd.f32 %v11327_v43, %v18938_v6  ;;  %v11128_v6 = vpack.c.bf16 %v11112_v49, %v11111_v51  ;;  %v13884_v49 = vld [vmem:[%s18563_s11 + $0x10] sm:$0xff] }
 0xcca   : > { %v11423_v59 = vmax.f32 %v11391_v32, 0.0 }
 0xccb   : > { %v11225_v28 = vpop.f32.mrf.mxu0 }
 0xccc   : > { %v11454_v58 = vadd.f32 %v11453_v52, %v11423_v59  ;;  %v11292_v61 = vadd.f32 %v11225_v28, %v18325_v60  ;;  %v18944_v52 = vld [vmem:[#allocation25_spill] sm:$0xff]  ;;  %v18945_v28 = vld [vmem:[#allocation26_spill] sm:$0xff] }
 0xcce   : > { %v11328_v24 = vadd.f32 %v18378_v57, %v11292_v61 }
 0xcd0   : > { %v11392_v1 = vadd.f32 %v11328_v24, %v18939_v21 }
 0xcd2   : > { %v11424_v38 = vmax.f32 %v11392_v1, 0.0  ;;  %v13885_v1 = vld [vmem:[%s18563_s11 + $0x18] sm:$0xff] }
 0xcd3   : > { %v11228_v62 = vpop.f32.mrf.mxu0  ;;  %11555 = vmatpush.bf16.msra.mxu1 %v13885_v1 }
 0xcd4   : > { %v11455_v8 = vadd.f32 %v11454_v58, %v11424_v38  ;;  %v11293_v15 = vadd.f32 %v11228_v62, %v18332_v9  ;;  %v18946_v62 = vld [vmem:[#allocation27_spill] sm:$0xff] }
 0xcd6   : > { %v11329_v2 = vadd.f32 %v18378_v57, %v11293_v15  ;;  %11267 = vmatmul.bf16.gmra.mxu0 %v18940_v23 }
 0xcd7   : > { %11556 = vmatpush.bf16.msra.mxu1 %v13884_v49 }
 0xcd8   : > { %v11393_v12 = vadd.f32 %v11329_v2, %v18941_v37 }
 0xcda   : > { %v11425_v22 = vmax.f32 %v11393_v12, 0.0  ;;  %v18947_v12 = vld [vmem:[#allocation28_spill] sm:$0xff] }
 0xcdb   : > { %v11230_v31 = vpop.f32.mrf.mxu0 }
 0xcdc   : > { %v11456_v30 = vadd.f32 %v11455_v8, %v11425_v22  ;;  %v11294_v60 = vadd.f32 %v11230_v31, %v18339_v33 }
 0xcde   : > { %v11330_v35 = vadd.f32 %v18378_v57, %v11294_v60 }
 0xce0   : > { %v11394_v40 = vadd.f32 %v11330_v35, %v18942_v34  ;;  %v18948_v34 = vld [vmem:[#allocation29_spill] sm:$0xff] }
 0xce2   : > { %v11426_v9 = vmax.f32 %v11394_v40, 0.0 }
 0xce3   : > { %v11233_v41 = vpop.f32.mrf.mxu0 }
 0xce4   : > { %v11457_v17 = vadd.f32 %v11456_v30, %v11426_v9  ;;  %v11295_v48 = vadd.f32 %v11233_v41, %v18346_v19  ;;  %v10787_v9 = vpop.f32.mrf.mxu2 }
 0xce6   : > { %v11331_v50 = vadd.f32 %v18378_v57, %v11295_v48  ;;  %11272 = vmatmul.bf16.gmra.mxu0 %v18247_v13 }
 0xce8   : > { %v11395_v33 = vadd.f32 %v11331_v50, %v18943_v55 }
 0xcea   : > { %v11427_v36 = vmax.f32 %v11395_v33, 0.0  ;;  %v18949_v33 = vld [vmem:[#allocation30_spill] sm:$0xff] }
 0xceb   : > { %v11235_v14 = vpop.f32.mrf.mxu0 }
 0xcec   : > { %v11458_v29 = vadd.f32 %v11457_v17, %v11427_v36  ;;  %v11296_v56 = vadd.f32 %v11235_v14, %v18353_v25  ;;  %v11021_v17 = vpop.f32.mrf.mxu3  ;;  %v10556_v14 = vpop.f32.mrf.mxu1 }
 0xcee   : > { %v11332_v63 = vadd.f32 %v18378_v57, %v11296_v56  ;;  %v10790_v56 = vpop.f32.mrf.mxu2 }
 0xcf0   : > { %v11396_v45 = vadd.f32 %v11332_v63, %v18944_v52 }
 0xcf2   : > { %v11428_v43 = vmax.f32 %v11396_v45, 0.0 }
 0xcf3   : > { %v11238_v19 = vpop.f32.mrf.mxu0 }
 0xcf4   : > { %v11459_v32 = vadd.f32 %v11458_v29, %v11428_v43  ;;  %v11297_v59 = vadd.f32 %v11238_v19, %v18359_v20  ;;  %v11024_v52 = vpop.f32.mrf.mxu3  ;;  %v10558_v19 = vpop.f32.mrf.mxu1 }
 0xcf6   : > { %v11333_v13 = vadd.f32 %v18378_v57, %v11297_v59  ;;  %11277 = vmatmul.bf16.gmra.mxu0 %v11128_v6 }
 0xcf8   : > { %v11397_v58 = vadd.f32 %v11333_v13, %v18945_v28  ;;  %v10792_v28 = vpop.f32.mrf.mxu2 }
 0xcfa   : > { %v11429_v61 = vmax.f32 %v11397_v58, 0.0  ;;  %v10602_v58 = vadd.f32 %v10553_v11, %v18292_v39  ;;  %v10604_v11 = vadd.f32 %v10558_v19, %v18308_v7 }
 0xcfb   : > { %v11240_v24 = vpop.f32.mrf.mxu0 }
 0xcfc   : > { %v11460_v25 = vadd.f32 %v11459_v32, %v11429_v61  ;;  %v11298_v21 = vadd.f32 %v11240_v24, %v18366_v26  ;;  %v11026_v61 = vpop.f32.mrf.mxu3  ;;  %v10836_v24 = vadd.f32 %v10787_v9, %v10602_v58  ;;  %v10838_v9 = vadd.f32 %v10792_v28, %v10604_v11 }
 0xcfe   : > { %v11334_v38 = vadd.f32 %v18378_v57, %v11298_v21  ;;  %v11070_v1 = vadd.f32 %v11021_v17, %v10836_v24 }
 0xd00   : > { %v11398_v8 = vadd.f32 %v11334_v38, %v18946_v62 }
 0xd02   : > { %v11430_v20 = vmax.f32 %v11398_v8, 0.0 }
 0xd03   : > { %v11243_v15 = vpop.f32.mrf.mxu0 }
 0xd04   : > { %v11461_v2 = vadd.f32 %v11460_v25, %v11430_v20  ;;  %v11299_v23 = vadd.f32 %v11243_v15, %v18373_v3  ;;  %v18951_v25 = vld [vmem:[#allocation32_spill] sm:$0xff]  ;;  %v10561_v15 = vpop.f32.mrf.mxu1 }
 0xd06   : > { %v11335_v37 = vadd.f32 %v18378_v57, %v11299_v23 }
 0xd08   : > { %v11399_v22 = vadd.f32 %v11335_v37, %v18947_v12  ;;  %v18952_v12 = vld [vmem:[#allocation33_spill] sm:$0xff] }
 0xd0a   : > { %v11431_v31 = vmax.f32 %v11399_v22, 0.0  ;;  %v11029_v22 = vpop.f32.mrf.mxu3 }
 0xd0b   : > { %v11245_v26 = vpop.f32.mrf.mxu0 }
 0xd0c   : > { %v11462_v30 = vadd.f32 %v11461_v2, %v11431_v31  ;;  %v11300_v60 = vadd.f32 %v11245_v26, %v18385_v53  ;;  %v10603_v2 = vadd.f32 %v10556_v14, %v18301_v4  ;;  %v13883_v14 = vld [vmem:[%s18563_s11 + $0x8] sm:$0xff] }
 0xd0d   : > { %11557 = vmatpush.bf16.msra.mxu1 %v13883_v14 }
 0xd0e   : > { %v11336_v35 = vadd.f32 %v18378_v57, %v11300_v60  ;;  %v10837_v37 = vadd.f32 %v10790_v56, %v10603_v2 }
 0xd10   : > { %v11400_v40 = vadd.f32 %v11336_v35, %v18948_v34  ;;  %v11071_v31 = vadd.f32 %v11024_v52, %v10837_v37 }
 0xd12   : > { %v11432_v41 = vmax.f32 %v11400_v40, 0.0  ;;  %v10563_v40 = vpop.f32.mrf.mxu1 }
 0xd13   : > { %v11248_v48 = vpop.f32.mrf.mxu0 }
 0xd14   : > { %v11463_v50 = vadd.f32 %v11462_v30, %v11432_v41  ;;  %v11301_v3 = vadd.f32 %v11248_v48, %v18391_v16  ;;  %v18950_v16 = vld [vmem:[#allocation31_spill] sm:$0xff]  ;;  %v18953_v41 = vld [vmem:[#allocation34_spill] sm:$0xff]  ;;  %v11072_v48 = vadd.f32 %v11026_v61, %v10838_v9 }
 0xd16   : > { %v11337_v55 = vadd.f32 %v18378_v57, %v11301_v3  ;;  %v11031_v3 = vpop.f32.mrf.mxu3 }
 0xd18   : > { %v11401_v36 = vadd.f32 %v11337_v55, %v18949_v33 }
 0xd1a   : > { %v11433_v29 = vmax.f32 %v11401_v36, 0.0 }
 0xd1b   : > { %v11250_v53 = vpop.f32.mrf.mxu0 }
 0xd1c   : > { %v11464_v63 = vadd.f32 %v11463_v50, %v11433_v29  ;;  %v11302_v51 = vadd.f32 %v11250_v53, %v18398_v5  ;;  %v10605_v29 = vadd.f32 %v10561_v15, %v18315_v54  ;;  %v18954_v53 = vld [vmem:[#allocation35_spill] sm:$0xff]  ;;  %v18955_v54 = vld [vmem:[#allocation50_spill] sm:$0xff]  ;;  %v18956_v15 = vld [vmem:[#allocation36_spill] sm:$0xff] }
 0xd1e   : > { %v11338_v45 = vadd.f32 %v18378_v57, %v11302_v51  ;;  %v10566_v51 = vpop.f32.mrf.mxu1  ;;  %v11034_v19 = vpop.f32.mrf.mxu3 }
 0xd20   : > { %v11402_v43 = vadd.f32 %v11338_v45, %v18950_v16 }
 0xd22   : > { %v11434_v6 = vmax.f32 %v11402_v43, 0.0 }
 0xd23   : > { %v11253_v32 = vpop.f32.mrf.mxu0 }
 0xd24   : > { %v11465_v59 = vadd.f32 %v11464_v63, %v11434_v6  ;;  %v11303_v13 = vadd.f32 %v11253_v32, %v18407_v42  ;;  %v10795_v42 = vpop.f32.mrf.mxu2  ;;  %v10606_v32 = vadd.f32 %v10563_v40, %v18322_v10 }
 0xd25   : > { %v10839_v56 = vadd.f32 %v10795_v42, %v10605_v29 }
 0xd26   : > { %v11339_v5 = vadd.f32 %v18378_v57, %v11303_v13  ;;  %v10568_v61 = vpop.f32.mrf.mxu1 }
 0xd27   : > { %v11073_v49 = vadd.f32 %v11029_v22, %v10839_v56  ;;  %v10608_v22 = vadd.f32 %v10568_v61, %v18336_v27 }
 0xd28   : > { %v11403_v21 = vadd.f32 %v11339_v5, %v18951_v25 }
 0xd2a   : > { %v11435_v38 = vmax.f32 %v11403_v21, 0.0 }
 0xd2b   : > { %v11255_v62 = vpop.f32.mrf.mxu0 }
 0xd2c   : > { %v11466_v8 = vadd.f32 %v11465_v59, %v11435_v38  ;;  %v11304_v20 = vadd.f32 %v11255_v62, %v11070_v1  ;;  %v10797_v17 = vpop.f32.mrf.mxu2  ;;  %v10607_v38 = vadd.f32 %v10566_v51, %v18329_v44 }
 0xd2d   : > { %v10840_v13 = vadd.f32 %v10797_v17, %v10606_v32 }
 0xd2e   : > { %v11340_v23 = vadd.f32 %v18378_v57, %v11304_v20 }
 0xd2f   : > { %v11074_v58 = vadd.f32 %v11031_v3, %v10840_v13  ;;  %v18958_v3 = vld [vmem:[#allocation52_spill] sm:$0xff] }
 0xd30   : > { %v11404_v39 = vadd.f32 %v11340_v23, %v18952_v12 }
 0xd32   : > { %v11436_v26 = vmax.f32 %v11404_v39, 0.0  ;;  %v10571_v39 = vpop.f32.mrf.mxu1 }
 0xd33   : > { %v11258_v30 = vpop.f32.mrf.mxu0  ;;  %v10609_v17 = vadd.f32 %v10571_v39, %v18343_v0  ;;  %v18959_v0 = vld [vmem:[#allocation76_spill] sm:$0xff] }
 0xd34   : > { %v11467_v60 = vadd.f32 %v11466_v8, %v11436_v26  ;;  %v11305_v35 = vadd.f32 %v11258_v30, %v11071_v31  ;;  %v10800_v45 = vpop.f32.mrf.mxu2  ;;  %v11036_v8 = vpop.f32.mrf.mxu3 }
 0xd35   : > { %v10841_v20 = vadd.f32 %v10800_v45, %v10607_v38 }
 0xd36   : > { %v11341_v34 = vadd.f32 %v18378_v57, %v11305_v35 }
 0xd37   : > { %v11075_v2 = vadd.f32 %v11034_v19, %v10841_v20 }
 0xd38   : > { %v11405_v4 = vadd.f32 %v11341_v34, %v18953_v41 }
 0xd3a   : > { %v11437_v50 = vmax.f32 %v11405_v4, 0.0  ;;  %v13882_v4 = vld [vmem:[%s18563_s11] sm:$0xff] }
 0xd3b   : > { %v11260_v55 = vpop.f32.mrf.mxu0  ;;  %11558 = vmatpush.bf16.msra.mxu1 %v13882_v4 }
 0xd3c   : > { %v11468_v33 = vadd.f32 %v11467_v60, %v11437_v50  ;;  %v11306_v36 = vadd.f32 %v11260_v55, %v11072_v48  ;;  %v10802_v1 = vpop.f32.mrf.mxu2  ;;  %v18957_v60 = vld [vmem:[#allocation37_spill] sm:$0xff]  ;;  %v11039_v35 = vpop.f32.mrf.mxu3 }
 0xd3d   : > { %v10842_v30 = vadd.f32 %v10802_v1, %v10608_v22  ;;  %v10573_v48 = vpop.f32.mrf.mxu1 }
 0xd3e   : > { %v11342_v7 = vadd.f32 %v18378_v57, %v11306_v36 }
 0xd3f   : > { %v11076_v11 = vadd.f32 %v11036_v8, %v10842_v30 }
 0xd40   : > { %v11406_v63 = vadd.f32 %v11342_v7, %v18954_v53 }
 0xd42   : > { %v11438_v52 = vmax.f32 %v11406_v63, 0.0  ;;  %v10610_v63 = vadd.f32 %v10573_v48, %v18350_v18 }
 0xd43   : > { %v11263_v16 = vpop.f32.mrf.mxu0 }
 0xd44   : > { %v11469_v43 = vadd.f32 %v11468_v33, %v11438_v52  ;;  %v11307_v6 = vadd.f32 %v11263_v16, %v11073_v49  ;;  %v10805_v26 = vpop.f32.mrf.mxu2  ;;  %v11041_v29 = vpop.f32.mrf.mxu3 }
 0xd45   : > { %v10843_v50 = vadd.f32 %v10805_v26, %v10609_v17  ;;  %v10576_v45 = vpop.f32.mrf.mxu1  ;;  %v18963_v26 = vld [vmem:[#allocation62_spill] sm:$0xff] }
 0xd46   : > { %v11343_v59 = vadd.f32 %v18378_v57, %v11307_v6  ;;  %v18964_v30 = vmax.f32 %v18963_v26, 0.0 }
 0xd47   : > { %v11077_v36 = vadd.f32 %v11039_v35, %v10843_v50 }
 0xd48   : > { %v11407_v28 = vadd.f32 %v11343_v59, %v18955_v54  ;;  %v10611_v54 = vadd.f32 %v10576_v45, %v18356_v47 }
 0xd4a   : > { %v11439_v5 = vmax.f32 %v11407_v28, 0.0 }
 0xd4b   : > { %v11265_v24 = vpop.f32.mrf.mxu0 }
 0xd4c   : > { %v11470_v25 = vadd.f32 %v11469_v43, %v11439_v5  ;;  %v11308_v21 = vadd.f32 %v11265_v24, %v11074_v58  ;;  %v10807_v33 = vpop.f32.mrf.mxu2  ;;  %v11044_v13 = vpop.f32.mrf.mxu3  ;;  %v18960_v5 = vld [vmem:[#allocation38_spill] sm:$0xff] }
 0xd4d   : > { %v10844_v49 = vadd.f32 %v10807_v33, %v10610_v63 }
 0xd4e   : > { %v11344_v62 = vadd.f32 %v18378_v57, %v11308_v21 }
 0xd4f   : > { %v11078_v16 = vadd.f32 %v11041_v29, %v10844_v49 }
 0xd50   : > { %v11408_v10 = vadd.f32 %v11344_v62, %v18956_v15 }
 0xd52   : > { %v11440_v23 = vmax.f32 %v11408_v10, 0.0 }
 0xd53   : > { %v11268_v42 = vpop.f32.mrf.mxu0 }
 0xd54   : > { %v11471_v37 = vadd.f32 %v11470_v25, %v11440_v23  ;;  %v11309_v12 = vadd.f32 %v11268_v42, %v11075_v2  ;;  %v10810_v6 = vpop.f32.mrf.mxu2  ;;  %v10578_v25 = vpop.f32.mrf.mxu1  ;;  %v18961_v2 = vld [vmem:[#allocation68_spill] sm:$0xff] }
 0xd55   : > { %v10845_v58 = vadd.f32 %v10810_v6, %v10611_v54  ;;  %v10612_v8 = vadd.f32 %v10578_v25, %v18363_v46  ;;  %v11046_v15 = vpop.f32.mrf.mxu3  ;;  %v18962_v47 = vmax.f32 %v18961_v2, 0.0 }
 0xd56   : > { %v11345_v31 = vadd.f32 %v18378_v57, %v11309_v12 }
 0xd57   : > { %v11079_v61 = vadd.f32 %v11044_v13, %v10845_v58 }
 0xd58   : > { %v11409_v44 = vadd.f32 %v11345_v31, %v18957_v60 }
 0xd5a   : > { %v11441_v34 = vmax.f32 %v11409_v44, 0.0 }
 0xd5b   : > { %v11270_v40 = vpop.f32.mrf.mxu0 }
 0xd5c   : > { %v11472_v9 = vadd.f32 %v11471_v37, %v11441_v34  ;;  %v11310_v41 = vadd.f32 %v11270_v40, %v11076_v11  ;;  %v10812_v62 = vpop.f32.mrf.mxu2 }
 0xd5d   : > { %v10846_v10 = vadd.f32 %v10812_v62, %v10612_v8 }
 0xd5e   : > { %v11346_v27 = vadd.f32 %v18378_v57, %v11310_v41 }
 0xd5f   : > { %v11080_v42 = vadd.f32 %v11046_v15, %v10846_v10 }
 0xd60   : > { %v11410_v55 = vadd.f32 %v11346_v27, %v18958_v3 }
 0xd62   : > { %v11442_v14 = vmax.f32 %v11410_v55, 0.0 }
 0xd63   : > { %v11273_v7 = vpop.f32.mrf.mxu0 }
 0xd64   : > { %v11473_v56 = vadd.f32 %v11472_v9, %v11442_v14  ;;  %v11311_v53 = vadd.f32 %v11273_v7, %v11077_v36 }
 0xd66   : > { %v11347_v51 = vadd.f32 %v18378_v57, %v11311_v53 }
 0xd68   : > { %v11411_v52 = vadd.f32 %v11347_v51, %v18959_v0 }
 0xd6a   : > { %v11443_v43 = vmax.f32 %v11411_v52, 0.0 }
 0xd6b   : > { %v11275_v19 = vpop.f32.mrf.mxu0 }
 0xd6c   : > { %v11474_v32 = vadd.f32 %v11473_v56, %v11443_v43  ;;  %v11312_v59 = vadd.f32 %v11275_v19, %v11078_v16 }
 0xd6e   : > { %v11348_v28 = vadd.f32 %v18378_v57, %v11312_v59 }
 0xd70   : > { %v11412_v18 = vadd.f32 %v11348_v28, %v18960_v5 }
 0xd72   : > { %v11444_v24 = vmax.f32 %v11412_v18, 0.0 }
 0xd73   : > { %v11278_v21 = vpop.f32.mrf.mxu0 }
 0xd74   : > { %v11475_v1 = vadd.f32 %v11474_v32, %v11444_v24  ;;  %v11313_v38 = vadd.f32 %v11278_v21, %v11079_v61 }
 0xd76   : > { %v11349_v20 = vadd.f32 %v18378_v57, %v11313_v38 }
 0xd78   : > { %v11413_v23 = vadd.f32 %v11349_v20, %v18962_v47 }
 0xd7a   : > { %v11445_v37 = vmax.f32 %v11413_v23, 0.0 }
 0xd7b   : > { %v11280_v12 = vpop.f32.mrf.mxu0 }
 0xd7c   : > { %v11476_v39 = vadd.f32 %v11475_v1, %v11445_v37  ;;  %v11314_v22 = vadd.f32 %v11280_v12, %v11080_v42 }
 0xd7e   : > { %v11350_v31 = vadd.f32 %v18378_v57, %v11314_v22  ;;  %v11502_v57 = vld [vmem:[%s18564_s12] sm:$0x1] }
 0xd80   : > { %v11414_v60 = vadd.f32 %v11350_v31, %v18964_v30 }
 0xd82   : > { %v11446_v46 = vmax.f32 %v11414_v60, 0.0 }
 0xd84   : > { %v11477_v44 = vadd.f32 %v11476_v39, %v11446_v46 }
 0xd86   : > { %v11478_v35 = vrot.slane %v11477_v44, 4 }
 0xd88   : > { %v11479_v11 = vadd.f32 %v11478_v35, %v11477_v44 }
 0xd8a   : > { %v11480_v34 = vrot.slane %v11479_v11, 2 }
 0xd8c   : > { %v11481_v40 = vadd.f32 %v11480_v34, %v11479_v11 }
 0xd8e   : > { %v11482_v9 = vrot.slane %v11481_v40, 1 }
 0xd90   : > { %v11483_v41 = vadd.f32 %v11482_v9, %v11481_v40 }
 0xd92   : > { %v11484_v4 = vmul.f32 0.00390625, %v11483_v41 }
 0xd94   : > { %v11485_v17 = vpack.c.bf16 %v11484_v4, %v11484_v4 }
 0xd96   : > { %11559 = vmatmul.bf16.vlgmr.msra.gmra.mxu1 %v11485_v17 }
 0xe13   : > { %v11560_v27 = vpop.f32.mrf.mxu1 }
 0xe14   : > { %v11561_v48 = vadd.f32 %v11560_v27, %v11502_v57 }
 0xe16   : > { %11564 = vst [vmem:[%s466_s15] sm:$0x1] %v11561_v48 }
 0xe17   : > { %14073 = shalt.err (!%p14070_p8)
}
 0xe18   : > { %13923 = dma.vmem_to_hbm [thread:$0]  (%p14230_p5), %s11577_s16, 16, %s11579_s21, %s11566_s19  }
 0xe1b   : > { %v11562_v50 = vpop.f32.mrf.mxu1 }
 0xe1c PF: > { %p13940_p9 = scmp.ge.s32.totalorder %s14116_s28, 2  ;;  %s11590_s23 = sand.u32 1, %s14104_s25  }
 0xe1d   : > { %s11591_s15 = scalar_lea.sflag [#allocation6], %s11590_s23 }
 0xe1e   : > { %p13933_p10 = pnand %p13940_p9, %p14234_p6 }
 0xe20   : > { %p13934_p11 = pneg %p13933_p10 }
 0xe22   : > { %14099 = dma.done.wait (%p13934_p11), %s11591_s15, 16  }
 0xe23   : > { %14101 = vsyncadd (%p13934_p11), %s11591_s15, 4294967280  ;;  %s18966_s28 = sld [smem:[#allocation14_spill]]  ;;  %s18969_s25 = smov %s14108_s26 }
 0xe24   : > { %s18967_s27 = sld [smem:[#allocation13_spill]] }
 0xe25   : > { %s18968_s14 = sld [smem:[#allocation15_spill]] }
 0xe29   : > { %p25_p12 = scmp.ge.s32.totalorder %s18966_s28, 4  }
 0xe2a   : > { %s18970_s26 = smov %s18967_s27 }
 0xe2b   : > { %s18971_s27 = smov %s18968_s14  ;;  %27 = sbr.rel (!%p25_p12) target bundleno = 5 (0x5), region = 158 }
 0xe30   :  { %11596 = vsyncpa [#allocation5], 1 }
 0xe31   :  { %11598 = vsyncpa [#allocation5 + $0x1], 1 }
 0xe32   :  { %11599 = vsyncpa [#allocation8], 1 }
 0xe33   :  { %11600 = vsyncpa [#allocation6], 1 }
 0xe34   :  { %11602 = vsyncpa [#allocation6 + $0x1], 1 }

</bundles_post_ra>
